<compile_context>
chip_gen: v7x
topology: tpu7x:2x2x1
jax: 0.10.0
libtpu: 0.0.40
codegen_flags: <defaults>
</compile_context>

<pallas_src>
import functools

import jax
import jax.numpy as jnp
import numpy as np
from jax import lax
from jax.experimental import pallas as pl
from jax.experimental.pallas import tpu as pltpu

EPS = 1e-5
_PREC = lax.Precision.HIGHEST


def _mxu(a, b):
    return jnp.dot(a, b, preferred_element_type=jnp.float32, precision=_PREC)


def _sl_baseblock_kernel(x_ref, w1_ref, w2_ref,
                         cb1_ref, g1_ref, b1_ref,
                         cb2_ref, g2_ref, b2_ref,
                         gmean_ref, out_ref, *, hh):
    # x_ref    : (M, L) = (N*H/2, 2*W*C) f32; each row packs two image rows.
    # w*_ref   : (3, L, L) packed banded conv weights: contribution of packed
    #            input row p-1 / p / p+1 to packed output row p.
    # cb*/g*/b*: (1, L) conv bias / BN gamma / BN beta, tiled per channel.
    # gmean_ref: (L, L) same-channel averaging matrix, entries 1/(N*H*W).
    # out_ref  : (M, L).   hh = packed rows per image (= H // 2).
    M, L = x_ref.shape
    x = x_ref[...]

    # 0/1 packed-row shift operators with the per-image halo masking folded in.
    # Tiny (M,M)x(M,L) MXU matmuls keep the halo handling off the load/store and
    # sublane-relayout paths entirely (MXU has plenty of slack at this size).
    ri = lax.broadcasted_iota(jnp.int32, (M, M), 0)
    ci = lax.broadcasted_iota(jnp.int32, (M, M), 1)
    shift_prev = jnp.where((ri - ci == 1) & (ri % hh != 0), 1.0, 0.0)  # -> z[m-1]
    shift_next = jnp.where((ci - ri == 1) & (ci % hh != 0), 1.0, 0.0)  # -> z[m+1]

    def conv3x3(z, w_ref, cb_ref):
        # "same" 3x3 conv as 3 lane-dense 128x128 matmuls; kx taps, W padding and
        # within-pair ky coupling live inside the packed band matrices, the H
        # halo (with zero padding at image boundaries) in the shift operators.
        z_prev = _mxu(shift_prev, z)
        z_next = _mxu(shift_next, z)
        acc = _mxu(z, w_ref[1])
        acc = acc + _mxu(z_prev, w_ref[0])
        acc = acc + _mxu(z_next, w_ref[2])
        return acc + cb_ref[...]

    def batchnorm(z, g_ref, b_ref):
        # Train-mode BN, biased variance, single pass.  Sublane sums -> two tiny
        # matmuls that average same-channel lanes over the whole batch and
        # re-broadcast across the lane dim; scale/shift folded into one FMA.
        s1 = jnp.sum(z, axis=0, keepdims=True)
        s2 = jnp.sum(z * z, axis=0, keepdims=True)
        mean = _mxu(s1, gmean_ref[...])
        ex2 = _mxu(s2, gmean_ref[...])
        var = ex2 - mean * mean        # fine at these magnitudes / f32
        scale = g_ref[...] * lax.rsqrt(var + EPS)
        shift = b_ref[...] - mean * scale
        return z * scale + shift

    # conv1 -> bn1 -> relu
    y1 = jnp.maximum(
        batchnorm(conv3x3(x, w1_ref, cb1_ref), g1_ref, b1_ref), 0.0)
    # conv2 -> bn2 -> identity residual -> relu
    y2 = batchnorm(conv3x3(y1, w2_ref, cb2_ref), g2_ref, b2_ref)
    out_ref[...] = jnp.maximum(y2 + x, 0.0).astype(out_ref.dtype)


def _banded_weight(w, width):
    """HWIO (3,3,Cin,Cout) -> (3, width*Cin, width*Cout) per-ky banded matrices.

    band[ky][xin*Cin + ci, x*Cout + co] = w[ky, xin - x + 1, ci, co] whenever
    0 <= xin - x + 1 < 3 (kx taps and width zero-padding folded in).
    """
    kh, kw, cin, cout = w.shape
    sel = np.zeros((kw, width, width), np.float32)          # sel[kx, x, xin]
    for kx in range(kw):
        for x in range(width):
            xin = x + kx - 1
            if 0 <= xin < width:
                sel[kx, x, xin] = 1.0
    bw = jnp.einsum('kxj,hkcd->hjcxd', jnp.asarray(sel), w)
    return bw.reshape(kh, width * cin, width * cout)


def _packed_banded_weight(w, width):
    """(3,3,Cin,Cout) -> (3, 2*width*Cin, 2*width*Cout) packed row-pair bands.

    Packed row p holds image rows (2p, 2p+1).  Output index 0/1/2 is the
    contribution of packed input row p-1 / p / p+1 to packed output row p, with
    the ky taps distributed over the 2x2 sub-row block structure:
      prev: (in row 2p-1 -> out row 2p, ky=0)
      same: (2p->2p ky=1, 2p->2p+1 ky=0, 2p+1->2p ky=2, 2p+1->2p+1 ky=1)
      next: (in row 2p+2 -> out row 2p+1, ky=2)
    """
    band = _banded_weight(w, width)                  # band[ky]
    z = jnp.zeros_like(band[0])
    w_prev = jnp.concatenate([jnp.concatenate([z, z], axis=1),
                              jnp.concatenate([band[0], z], axis=1)], axis=0)
    w_same = jnp.concatenate([jnp.concatenate([band[1], band[0]], axis=1),
                              jnp.concatenate([band[2], band[1]], axis=1)], axis=0)
    w_next = jnp.concatenate([jnp.concatenate([z, band[2]], axis=1),
                              jnp.concatenate([z, z], axis=1)], axis=0)
    return jnp.stack([w_prev, w_same, w_next])


def _group_mean_matrix(lanes, c, count):
    idx = np.arange(lanes)
    g = (idx[:, None] % c == idx[None, :] % c).astype(np.float32) / float(count)
    return jnp.asarray(g)


def sl_baseblock(x_nchw, params):
    """x_nchw: (N, C, H, W) float32 — same layout/semantics as the PyTorch module."""
    N, Cin, H, W = x_nchw.shape
    C = params["w1"].shape[-1]
    assert Cin == C, "identity residual (downsample=None, stride=1) needs Cin == C"
    assert H % 2 == 0, "row-pair packing needs even H"

    hh = H // 2
    L = 2 * W * C                  # lanes per packed row (128 at W=16, C=4)
    M = N * hh

    # NCHW -> NHWC -> (M, L): two image rows per lane-dense vector row.  No
    # activation padding: W padding is folded into the band matrices, the H halo
    # into the in-kernel shift operators.
    x = jnp.transpose(x_nchw, (0, 2, 3, 1)).astype(jnp.float32)
    x_flat = x.reshape(M, L)

    pw1 = _packed_banded_weight(params["w1"], W)
    pw2 = _packed_banded_weight(params["w2"], W)
    gmean = _group_mean_matrix(L, C, N * H * W)
    lane = lambda v: jnp.tile(v.reshape(-1), 2 * W).reshape(1, -1)

    operands = (x_flat, pw1, pw2,
                lane(params["cb1"]), lane(params["g1"]), lane(params["b1"]),
                lane(params["cb2"]), lane(params["g2"]), lane(params["b2"]),
                gmean)

    def _spec(shape):
        nd = len(shape)
        return pl.BlockSpec(shape, lambda i, nd=nd: (0,) * nd)

    flops = 2 * (3 * 2 * M * L * L) + 2 * (2 * 2 * M * M * L) + 2 * (2 * 2 * L * L)
    bytes_accessed = 4 * (2 * M * L + int(pw1.size) + int(pw2.size)
                          + 6 * L + int(gmean.size))

    out = pl.pallas_call(
        functools.partial(_sl_baseblock_kernel, hh=hh),
        out_shape=jax.ShapeDtypeStruct((M, L), jnp.float32),
        grid=(1,),
        in_specs=[_spec(op.shape) for op in operands],
        out_specs=_spec((M, L)),
        compiler_params=pltpu.CompilerParams(
            dimension_semantics=("arbitrary",)),
        cost_estimate=pl.CostEstimate(flops=flops, transcendentals=2 * L,
                                      bytes_accessed=bytes_accessed),
    )(*operands)

    out_nhwc = out.reshape(N, H, W, C)
    return jnp.transpose(out_nhwc, (0, 3, 1, 2)).astype(x_nchw.dtype)


def ref_forward(x_nchw, p):
    """Pure-JAX reference of the PyTorch forward (train-mode BN)."""
    x = jnp.transpose(x_nchw, (0, 2, 3, 1))
    dn = ("NHWC", "HWIO", "NHWC")

    def conv(z, w, b):
        return lax.conv_general_dilated(
            z, w, (1, 1), ((1, 1), (1, 1)), dimension_numbers=dn,
            precision=_PREC) + b.reshape(1, 1, 1, -1)

    def bn(z, g, b):
        mean = z.mean(axis=(0, 1, 2), keepdims=True)
        var = ((z - mean) ** 2).mean(axis=(0, 1, 2), keepdims=True)
        return (z - mean) * lax.rsqrt(var + EPS) * g.reshape(1, 1, 1, -1) \
            + b.reshape(1, 1, 1, -1)

    y = jax.nn.relu(bn(conv(x, p["w1"], p["cb1"]), p["g1"], p["b1"]))
    y = bn(conv(y, p["w2"], p["cb2"]), p["g2"], p["b2"])
    y = jax.nn.relu(y + x)
    return jnp.transpose(y, (0, 3, 1, 2))


def init_params(key, cin, c):
    ks = jax.random.split(key, 8)
    bound1 = 1.0 / np.sqrt(cin * 9)
    bound2 = 1.0 / np.sqrt(c * 9)
    return {
        "w1": jax.random.uniform(ks[0], (3, 3, cin, c), jnp.float32, -bound1, bound1),
        "cb1": jax.random.uniform(ks[1], (1, c), jnp.float32, -bound1, bound1),
        "g1": 1.0 + 0.1 * jax.random.normal(ks[2], (1, c), jnp.float32),
        "b1": 0.1 * jax.random.normal(ks[3], (1, c), jnp.float32),
        "w2": jax.random.uniform(ks[4], (3, 3, c, c), jnp.float32, -bound2, bound2),
        "cb2": jax.random.uniform(ks[5], (1, c), jnp.float32, -bound2, bound2),
        "g2": 1.0 + 0.1 * jax.random.normal(ks[6], (1, c), jnp.float32),
        "b2": 0.1 * jax.random.normal(ks[7], (1, c), jnp.float32),
    }


# TODO(synk): nn.BatchNorm2d running_mean/var buffer updates (training-time side
# effect) are not materialized; they do not affect the forward output.

if __name__ == "__main__":
    key = jax.random.PRNGKey(0)
    k_x, k_p = jax.random.split(key)

    N, C, H, W = 2, 4, 16, 16            # PyTorch NCHW input (2, 4, 16, 16)
    x = jax.random.normal(k_x, (N, C, H, W), jnp.float32)
    params = init_params(k_p, C, C)

    out = jax.block_until_ready(jax.jit(sl_baseblock)(x, params))
    ref = jax.block_until_ready(ref_forward(x, params))
    np.testing.assert_allclose(np.asarray(out), np.asarray(ref),
                               rtol=1e-3, atol=1e-3)
    print("KERNEL_OK")
</pallas_src>

<mosaic_0001>
module attributes {stable_mosaic.version = 11 : i64} {
  func.func @_sl_baseblock_kernel(%arg0: i32, %arg1: memref<16x128xf32, #tpu.memory_space<vmem>>, %arg2: memref<3x128x128xf32, #tpu.memory_space<vmem>>, %arg3: memref<3x128x128xf32, #tpu.memory_space<vmem>>, %arg4: memref<1x128xf32, #tpu.memory_space<vmem>>, %arg5: memref<1x128xf32, #tpu.memory_space<vmem>>, %arg6: memref<1x128xf32, #tpu.memory_space<vmem>>, %arg7: memref<1x128xf32, #tpu.memory_space<vmem>>, %arg8: memref<1x128xf32, #tpu.memory_space<vmem>>, %arg9: memref<1x128xf32, #tpu.memory_space<vmem>>, %arg10: memref<128x128xf32, #tpu.memory_space<vmem>>, %arg11: memref<16x128xf32, #tpu.memory_space<vmem>>) attributes {dimension_semantics = [#tpu.dimension_semantics<arbitrary>], iteration_bounds = array<i64: 1>, scalar_prefetch = 0 : i64, scratch_operands = 0 : i64, tpu.core_type = #tpu.core_type<tc>, window_params = [{pipeline_mode = #tpu.pipeline_mode<synchronous>, transform_indices = @transform_0, window_bounds = array<i64: 16, 128>}, {pipeline_mode = #tpu.pipeline_mode<synchronous>, transform_indices = @transform_1, window_bounds = array<i64: 3, 128, 128>}, {pipeline_mode = #tpu.pipeline_mode<synchronous>, transform_indices = @transform_2, window_bounds = array<i64: 3, 128, 128>}, {pipeline_mode = #tpu.pipeline_mode<synchronous>, transform_indices = @transform_3, window_bounds = array<i64: 1, 128>}, {pipeline_mode = #tpu.pipeline_mode<synchronous>, transform_indices = @transform_4, window_bounds = array<i64: 1, 128>}, {pipeline_mode = #tpu.pipeline_mode<synchronous>, transform_indices = @transform_5, window_bounds = array<i64: 1, 128>}, {pipeline_mode = #tpu.pipeline_mode<synchronous>, transform_indices = @transform_6, window_bounds = array<i64: 1, 128>}, {pipeline_mode = #tpu.pipeline_mode<synchronous>, transform_indices = @transform_7, window_bounds = array<i64: 1, 128>}, {pipeline_mode = #tpu.pipeline_mode<synchronous>, transform_indices = @transform_8, window_bounds = array<i64: 1, 128>}, {pipeline_mode = #tpu.pipeline_mode<synchronous>, transform_indices = @transform_9, window_bounds = array<i64: 128, 128>}, {pipeline_mode = #tpu.pipeline_mode<synchronous>, transform_indices = @transform_10, window_bounds = array<i64: 16, 128>}]} {
    %c0 = arith.constant 0 : index
    %c0_0 = arith.constant 0 : index
    %0 = vector.load %arg1[%c0, %c0_0] : memref<16x128xf32, #tpu.memory_space<vmem>>, vector<16x128xf32>
    %1 = tpu.iota {dimensions = array<i32: 0>} : vector<16x16xi32>
    %2 = tpu.iota {dimensions = array<i32: 1>} : vector<16x16xi32>
    %3 = arith.subi %1, %2 : vector<16x16xi32>
    %c1_i32 = arith.constant 1 : i32
    %4 = vector.broadcast %c1_i32 : i32 to vector<16x16xi32>
    %5 = arith.cmpi eq, %3, %4 : vector<16x16xi32>
    %c8_i32 = arith.constant 8 : i32
    %c0_i32 = arith.constant 0 : i32
    %6 = arith.cmpi eq, %c8_i32, %c0_i32 : i32
    %c1_i32_1 = arith.constant 1 : i32
    %7 = arith.select %6, %c1_i32_1, %c8_i32 : i32
    %8 = vector.broadcast %7 : i32 to vector<16x16xi32>
    %9 = arith.remsi %1, %8 : vector<16x16xi32>
    %c0_i32_2 = arith.constant 0 : i32
    %10 = vector.broadcast %c0_i32_2 : i32 to vector<16x16xi32>
    %11 = arith.cmpi ne, %9, %10 : vector<16x16xi32>
    %c0_i32_3 = arith.constant 0 : i32
    %12 = vector.broadcast %c0_i32_3 : i32 to vector<16x16xi32>
    %13 = arith.cmpi slt, %9, %12 : vector<16x16xi32>
    %c0_i32_4 = arith.constant 0 : i32
    %14 = arith.cmpi slt, %7, %c0_i32_4 : i32
    %15 = vector.broadcast %14 : i1 to vector<16x16xi1>
    %16 = vector.broadcast %15 : vector<16x16xi1> to vector<16x16xi1>
    %17 = arith.xori %13, %16 : vector<16x16xi1>
    %18 = arith.andi %17, %11 : vector<16x16xi1>
    %19 = vector.broadcast %7 : i32 to vector<16x16xi32>
    %20 = arith.addi %9, %19 : vector<16x16xi32>
    %21 = arith.select %18, %20, %9 : vector<16x16xi1>, vector<16x16xi32>
    %c0_i32_5 = arith.constant 0 : i32
    %22 = vector.broadcast %c0_i32_5 : i32 to vector<16x16xi32>
    %23 = arith.cmpi ne, %21, %22 : vector<16x16xi32>
    %24 = arith.andi %5, %23 : vector<16x16xi1>
    %cst = arith.constant 1.000000e+00 : f32
    %cst_6 = arith.constant 0.000000e+00 : f32
    %25 = vector.broadcast %cst : f32 to vector<16x16xf32>
    %26 = vector.broadcast %cst_6 : f32 to vector<16x16xf32>
    %27 = arith.select %24, %25, %26 : vector<16x16xi1>, vector<16x16xf32>
    %28 = arith.subi %2, %1 : vector<16x16xi32>
    %c1_i32_7 = arith.constant 1 : i32
    %29 = vector.broadcast %c1_i32_7 : i32 to vector<16x16xi32>
    %30 = arith.cmpi eq, %28, %29 : vector<16x16xi32>
    %c8_i32_8 = arith.constant 8 : i32
    %c0_i32_9 = arith.constant 0 : i32
    %31 = arith.cmpi eq, %c8_i32_8, %c0_i32_9 : i32
    %c1_i32_10 = arith.constant 1 : i32
    %32 = arith.select %31, %c1_i32_10, %c8_i32_8 : i32
    %33 = vector.broadcast %32 : i32 to vector<16x16xi32>
    %34 = arith.remsi %2, %33 : vector<16x16xi32>
    %c0_i32_11 = arith.constant 0 : i32
    %35 = vector.broadcast %c0_i32_11 : i32 to vector<16x16xi32>
    %36 = arith.cmpi ne, %34, %35 : vector<16x16xi32>
    %c0_i32_12 = arith.constant 0 : i32
    %37 = vector.broadcast %c0_i32_12 : i32 to vector<16x16xi32>
    %38 = arith.cmpi slt, %34, %37 : vector<16x16xi32>
    %c0_i32_13 = arith.constant 0 : i32
    %39 = arith.cmpi slt, %32, %c0_i32_13 : i32
    %40 = vector.broadcast %39 : i1 to vector<16x16xi1>
    %41 = vector.broadcast %40 : vector<16x16xi1> to vector<16x16xi1>
    %42 = arith.xori %38, %41 : vector<16x16xi1>
    %43 = arith.andi %42, %36 : vector<16x16xi1>
    %44 = vector.broadcast %32 : i32 to vector<16x16xi32>
    %45 = arith.addi %34, %44 : vector<16x16xi32>
    %46 = arith.select %43, %45, %34 : vector<16x16xi1>, vector<16x16xi32>
    %c0_i32_14 = arith.constant 0 : i32
    %47 = vector.broadcast %c0_i32_14 : i32 to vector<16x16xi32>
    %48 = arith.cmpi ne, %46, %47 : vector<16x16xi32>
    %49 = arith.andi %30, %48 : vector<16x16xi1>
    %cst_15 = arith.constant 1.000000e+00 : f32
    %cst_16 = arith.constant 0.000000e+00 : f32
    %50 = vector.broadcast %cst_15 : f32 to vector<16x16xf32>
    %51 = vector.broadcast %cst_16 : f32 to vector<16x16xf32>
    %52 = arith.select %49, %50, %51 : vector<16x16xi1>, vector<16x16xf32>
    %cst_17 = arith.constant dense<0.000000e+00> : vector<16x128xf32>
    %53 = tpu.matmul %27, %0, %cst_17 {dimension_numbers = #tpu.dot_dimension_numbers<[1], [0], [0], [1], [0, 0, 1, 1], [], []>, precision = #tpu.contract_precision<fp32>} : vector<16x16xf32>, vector<16x128xf32>, vector<16x128xf32> -> vector<16x128xf32>
    %cst_18 = arith.constant dense<0.000000e+00> : vector<16x128xf32>
    %54 = tpu.matmul %52, %0, %cst_18 {dimension_numbers = #tpu.dot_dimension_numbers<[1], [0], [0], [1], [0, 0, 1, 1], [], []>, precision = #tpu.contract_precision<fp32>} : vector<16x16xf32>, vector<16x128xf32>, vector<16x128xf32> -> vector<16x128xf32>
    %c1 = arith.constant 1 : index
    %c0_19 = arith.constant 0 : index
    %c0_20 = arith.constant 0 : index
    %55 = vector.load %arg2[%c1, %c0_19, %c0_20] : memref<3x128x128xf32, #tpu.memory_space<vmem>>, vector<1x128x128xf32>
    %56 = vector.shape_cast %55 : vector<1x128x128xf32> to vector<128x128xf32>
    %cst_21 = arith.constant dense<0.000000e+00> : vector<16x128xf32>
    %57 = tpu.matmul %0, %56, %cst_21 {dimension_numbers = #tpu.dot_dimension_numbers<[1], [0], [0], [1], [0, 0, 1, 1], [], []>, precision = #tpu.contract_precision<fp32>} : vector<16x128xf32>, vector<128x128xf32>, vector<16x128xf32> -> vector<16x128xf32>
    %c0_22 = arith.constant 0 : index
    %c0_23 = arith.constant 0 : index
    %c0_24 = arith.constant 0 : index
    %58 = vector.load %arg2[%c0_22, %c0_23, %c0_24] : memref<3x128x128xf32, #tpu.memory_space<vmem>>, vector<1x128x128xf32>
    %59 = vector.shape_cast %58 : vector<1x128x128xf32> to vector<128x128xf32>
    %cst_25 = arith.constant dense<0.000000e+00> : vector<16x128xf32>
    %60 = tpu.matmul %53, %59, %cst_25 {dimension_numbers = #tpu.dot_dimension_numbers<[1], [0], [0], [1], [0, 0, 1, 1], [], []>, precision = #tpu.contract_precision<fp32>} : vector<16x128xf32>, vector<128x128xf32>, vector<16x128xf32> -> vector<16x128xf32>
    %61 = arith.addf %57, %60 : vector<16x128xf32>
    %c2 = arith.constant 2 : index
    %c0_26 = arith.constant 0 : index
    %c0_27 = arith.constant 0 : index
    %62 = vector.load %arg2[%c2, %c0_26, %c0_27] : memref<3x128x128xf32, #tpu.memory_space<vmem>>, vector<1x128x128xf32>
    %63 = vector.shape_cast %62 : vector<1x128x128xf32> to vector<128x128xf32>
    %cst_28 = arith.constant dense<0.000000e+00> : vector<16x128xf32>
    %64 = tpu.matmul %54, %63, %cst_28 {dimension_numbers = #tpu.dot_dimension_numbers<[1], [0], [0], [1], [0, 0, 1, 1], [], []>, precision = #tpu.contract_precision<fp32>} : vector<16x128xf32>, vector<128x128xf32>, vector<16x128xf32> -> vector<16x128xf32>
    %65 = arith.addf %61, %64 : vector<16x128xf32>
    %c0_29 = arith.constant 0 : index
    %c0_30 = arith.constant 0 : index
    %66 = vector.load %arg4[%c0_29, %c0_30] : memref<1x128xf32, #tpu.memory_space<vmem>>, vector<1x128xf32>
    %67 = vector.broadcast %66 : vector<1x128xf32> to vector<16x128xf32>
    %68 = arith.addf %65, %67 : vector<16x128xf32>
    %cst_31 = arith.constant dense<0.000000e+00> : vector<128xf32>
    %69 = vector.multi_reduction <add>, %68, %cst_31 [0] : vector<16x128xf32> to vector<128xf32>
    %70 = vector.shape_cast %69 : vector<128xf32> to vector<1x128xf32>
    %71 = arith.mulf %68, %68 : vector<16x128xf32>
    %cst_32 = arith.constant dense<0.000000e+00> : vector<128xf32>
    %72 = vector.multi_reduction <add>, %71, %cst_32 [0] : vector<16x128xf32> to vector<128xf32>
    %73 = vector.shape_cast %72 : vector<128xf32> to vector<1x128xf32>
    %c0_33 = arith.constant 0 : index
    %c0_34 = arith.constant 0 : index
    %74 = vector.load %arg10[%c0_33, %c0_34] : memref<128x128xf32, #tpu.memory_space<vmem>>, vector<128x128xf32>
    %cst_35 = arith.constant dense<0.000000e+00> : vector<1x128xf32>
    %75 = tpu.matmul %70, %74, %cst_35 {dimension_numbers = #tpu.dot_dimension_numbers<[1], [0], [0], [1], [0, 0, 1, 1], [], []>, precision = #tpu.contract_precision<fp32>} : vector<1x128xf32>, vector<128x128xf32>, vector<1x128xf32> -> vector<1x128xf32>
    %c0_36 = arith.constant 0 : index
    %c0_37 = arith.constant 0 : index
    %76 = vector.load %arg10[%c0_36, %c0_37] : memref<128x128xf32, #tpu.memory_space<vmem>>, vector<128x128xf32>
    %cst_38 = arith.constant dense<0.000000e+00> : vector<1x128xf32>
    %77 = tpu.matmul %73, %76, %cst_38 {dimension_numbers = #tpu.dot_dimension_numbers<[1], [0], [0], [1], [0, 0, 1, 1], [], []>, precision = #tpu.contract_precision<fp32>} : vector<1x128xf32>, vector<128x128xf32>, vector<1x128xf32> -> vector<1x128xf32>
    %78 = arith.mulf %75, %75 : vector<1x128xf32>
    %79 = arith.subf %77, %78 : vector<1x128xf32>
    %c0_39 = arith.constant 0 : index
    %c0_40 = arith.constant 0 : index
    %80 = vector.load %arg5[%c0_39, %c0_40] : memref<1x128xf32, #tpu.memory_space<vmem>>, vector<1x128xf32>
    %cst_41 = arith.constant 9.99999974E-6 : f32
    %81 = vector.broadcast %cst_41 : f32 to vector<1x128xf32>
    %82 = arith.addf %79, %81 : vector<1x128xf32>
    %83 = math.rsqrt %82 : vector<1x128xf32>
    %84 = arith.mulf %80, %83 : vector<1x128xf32>
    %c0_42 = arith.constant 0 : index
    %c0_43 = arith.constant 0 : index
    %85 = vector.load %arg6[%c0_42, %c0_43] : memref<1x128xf32, #tpu.memory_space<vmem>>, vector<1x128xf32>
    %86 = arith.mulf %75, %84 : vector<1x128xf32>
    %87 = arith.subf %85, %86 : vector<1x128xf32>
    %88 = vector.broadcast %84 : vector<1x128xf32> to vector<16x128xf32>
    %89 = arith.mulf %68, %88 : vector<16x128xf32>
    %90 = vector.broadcast %87 : vector<1x128xf32> to vector<16x128xf32>
    %91 = arith.addf %89, %90 : vector<16x128xf32>
    %cst_44 = arith.constant 0.000000e+00 : f32
    %92 = vector.broadcast %cst_44 : f32 to vector<16x128xf32>
    %93 = arith.maximumf %91, %92 : vector<16x128xf32>
    %cst_45 = arith.constant dense<0.000000e+00> : vector<16x128xf32>
    %94 = tpu.matmul %27, %93, %cst_45 {dimension_numbers = #tpu.dot_dimension_numbers<[1], [0], [0], [1], [0, 0, 1, 1], [], []>, precision = #tpu.contract_precision<fp32>} : vector<16x16xf32>, vector<16x128xf32>, vector<16x128xf32> -> vector<16x128xf32>
    %cst_46 = arith.constant dense<0.000000e+00> : vector<16x128xf32>
    %95 = tpu.matmul %52, %93, %cst_46 {dimension_numbers = #tpu.dot_dimension_numbers<[1], [0], [0], [1], [0, 0, 1, 1], [], []>, precision = #tpu.contract_precision<fp32>} : vector<16x16xf32>, vector<16x128xf32>, vector<16x128xf32> -> vector<16x128xf32>
    %c1_47 = arith.constant 1 : index
    %c0_48 = arith.constant 0 : index
    %c0_49 = arith.constant 0 : index
    %96 = vector.load %arg3[%c1_47, %c0_48, %c0_49] : memref<3x128x128xf32, #tpu.memory_space<vmem>>, vector<1x128x128xf32>
    %97 = vector.shape_cast %96 : vector<1x128x128xf32> to vector<128x128xf32>
    %cst_50 = arith.constant dense<0.000000e+00> : vector<16x128xf32>
    %98 = tpu.matmul %93, %97, %cst_50 {dimension_numbers = #tpu.dot_dimension_numbers<[1], [0], [0], [1], [0, 0, 1, 1], [], []>, precision = #tpu.contract_precision<fp32>} : vector<16x128xf32>, vector<128x128xf32>, vector<16x128xf32> -> vector<16x128xf32>
    %c0_51 = arith.constant 0 : index
    %c0_52 = arith.constant 0 : index
    %c0_53 = arith.constant 0 : index
    %99 = vector.load %arg3[%c0_51, %c0_52, %c0_53] : memref<3x128x128xf32, #tpu.memory_space<vmem>>, vector<1x128x128xf32>
    %100 = vector.shape_cast %99 : vector<1x128x128xf32> to vector<128x128xf32>
    %cst_54 = arith.constant dense<0.000000e+00> : vector<16x128xf32>
    %101 = tpu.matmul %94, %100, %cst_54 {dimension_numbers = #tpu.dot_dimension_numbers<[1], [0], [0], [1], [0, 0, 1, 1], [], []>, precision = #tpu.contract_precision<fp32>} : vector<16x128xf32>, vector<128x128xf32>, vector<16x128xf32> -> vector<16x128xf32>
    %102 = arith.addf %98, %101 : vector<16x128xf32>
    %c2_55 = arith.constant 2 : index
    %c0_56 = arith.constant 0 : index
    %c0_57 = arith.constant 0 : index
    %103 = vector.load %arg3[%c2_55, %c0_56, %c0_57] : memref<3x128x128xf32, #tpu.memory_space<vmem>>, vector<1x128x128xf32>
    %104 = vector.shape_cast %103 : vector<1x128x128xf32> to vector<128x128xf32>
    %cst_58 = arith.constant dense<0.000000e+00> : vector<16x128xf32>
    %105 = tpu.matmul %95, %104, %cst_58 {dimension_numbers = #tpu.dot_dimension_numbers<[1], [0], [0], [1], [0, 0, 1, 1], [], []>, precision = #tpu.contract_precision<fp32>} : vector<16x128xf32>, vector<128x128xf32>, vector<16x128xf32> -> vector<16x128xf32>
    %106 = arith.addf %102, %105 : vector<16x128xf32>
    %c0_59 = arith.constant 0 : index
    %c0_60 = arith.constant 0 : index
    %107 = vector.load %arg7[%c0_59, %c0_60] : memref<1x128xf32, #tpu.memory_space<vmem>>, vector<1x128xf32>
    %108 = vector.broadcast %107 : vector<1x128xf32> to vector<16x128xf32>
    %109 = arith.addf %106, %108 : vector<16x128xf32>
    %cst_61 = arith.constant dense<0.000000e+00> : vector<128xf32>
    %110 = vector.multi_reduction <add>, %109, %cst_61 [0] : vector<16x128xf32> to vector<128xf32>
    %111 = vector.shape_cast %110 : vector<128xf32> to vector<1x128xf32>
    %112 = arith.mulf %109, %109 : vector<16x128xf32>
    %cst_62 = arith.constant dense<0.000000e+00> : vector<128xf32>
    %113 = vector.multi_reduction <add>, %112, %cst_62 [0] : vector<16x128xf32> to vector<128xf32>
    %114 = vector.shape_cast %113 : vector<128xf32> to vector<1x128xf32>
    %c0_63 = arith.constant 0 : index
    %c0_64 = arith.constant 0 : index
    %115 = vector.load %arg10[%c0_63, %c0_64] : memref<128x128xf32, #tpu.memory_space<vmem>>, vector<128x128xf32>
    %cst_65 = arith.constant dense<0.000000e+00> : vector<1x128xf32>
    %116 = tpu.matmul %111, %115, %cst_65 {dimension_numbers = #tpu.dot_dimension_numbers<[1], [0], [0], [1], [0, 0, 1, 1], [], []>, precision = #tpu.contract_precision<fp32>} : vector<1x128xf32>, vector<128x128xf32>, vector<1x128xf32> -> vector<1x128xf32>
    %c0_66 = arith.constant 0 : index
    %c0_67 = arith.constant 0 : index
    %117 = vector.load %arg10[%c0_66, %c0_67] : memref<128x128xf32, #tpu.memory_space<vmem>>, vector<128x128xf32>
    %cst_68 = arith.constant dense<0.000000e+00> : vector<1x128xf32>
    %118 = tpu.matmul %114, %117, %cst_68 {dimension_numbers = #tpu.dot_dimension_numbers<[1], [0], [0], [1], [0, 0, 1, 1], [], []>, precision = #tpu.contract_precision<fp32>} : vector<1x128xf32>, vector<128x128xf32>, vector<1x128xf32> -> vector<1x128xf32>
    %119 = arith.mulf %116, %116 : vector<1x128xf32>
    %120 = arith.subf %118, %119 : vector<1x128xf32>
    %c0_69 = arith.constant 0 : index
    %c0_70 = arith.constant 0 : index
    %121 = vector.load %arg8[%c0_69, %c0_70] : memref<1x128xf32, #tpu.memory_space<vmem>>, vector<1x128xf32>
    %cst_71 = arith.constant 9.99999974E-6 : f32
    %122 = vector.broadcast %cst_71 : f32 to vector<1x128xf32>
    %123 = arith.addf %120, %122 : vector<1x128xf32>
    %124 = math.rsqrt %123 : vector<1x128xf32>
    %125 = arith.mulf %121, %124 : vector<1x128xf32>
    %c0_72 = arith.constant 0 : index
    %c0_73 = arith.constant 0 : index
    %126 = vector.load %arg9[%c0_72, %c0_73] : memref<1x128xf32, #tpu.memory_space<vmem>>, vector<1x128xf32>
    %127 = arith.mulf %116, %125 : vector<1x128xf32>
    %128 = arith.subf %126, %127 : vector<1x128xf32>
    %129 = vector.broadcast %125 : vector<1x128xf32> to vector<16x128xf32>
    %130 = arith.mulf %109, %129 : vector<16x128xf32>
    %131 = vector.broadcast %128 : vector<1x128xf32> to vector<16x128xf32>
    %132 = arith.addf %130, %131 : vector<16x128xf32>
    %133 = arith.addf %132, %0 : vector<16x128xf32>
    %cst_74 = arith.constant 0.000000e+00 : f32
    %134 = vector.broadcast %cst_74 : f32 to vector<16x128xf32>
    %135 = arith.maximumf %133, %134 : vector<16x128xf32>
    %c0_75 = arith.constant 0 : index
    %c0_76 = arith.constant 0 : index
    %136 = vector.load %arg11[%c0_75, %c0_76] : memref<16x128xf32, #tpu.memory_space<vmem>>, vector<16x128xf32>
    tpu.vector_store %arg11[%c0_75, %c0_76], %135 {strides = array<i32>} : memref<16x128xf32, #tpu.memory_space<vmem>>, vector<16x128xf32>,
    return
  }
  func.func @transform_0(%arg0: i32) -> (i32, i32) {
    %c0_i32 = arith.constant 0 : i32
    %c0_i32_0 = arith.constant 0 : i32
    %c0_i32_1 = arith.constant 0 : i32
    return %c0_i32, %c0_i32_0 : i32, i32
  }
  func.func @transform_1(%arg0: i32) -> (i32, i32, i32) {
    %c0_i32 = arith.constant 0 : i32
    %c0_i32_0 = arith.constant 0 : i32
    %c0_i32_1 = arith.constant 0 : i32
    %c0_i32_2 = arith.constant 0 : i32
    return %c0_i32, %c0_i32_0, %c0_i32_1 : i32, i32, i32
  }
  func.func @transform_2(%arg0: i32) -> (i32, i32, i32) {
    %c0_i32 = arith.constant 0 : i32
    %c0_i32_0 = arith.constant 0 : i32
    %c0_i32_1 = arith.constant 0 : i32
    %c0_i32_2 = arith.constant 0 : i32
    return %c0_i32, %c0_i32_0, %c0_i32_1 : i32, i32, i32
  }
  func.func @transform_3(%arg0: i32) -> (i32, i32) {
    %c0_i32 = arith.constant 0 : i32
    %c0_i32_0 = arith.constant 0 : i32
    %c0_i32_1 = arith.constant 0 : i32
    return %c0_i32, %c0_i32_0 : i32, i32
  }
  func.func @transform_4(%arg0: i32) -> (i32, i32) {
    %c0_i32 = arith.constant 0 : i32
    %c0_i32_0 = arith.constant 0 : i32
    %c0_i32_1 = arith.constant 0 : i32
    return %c0_i32, %c0_i32_0 : i32, i32
  }
  func.func @transform_5(%arg0: i32) -> (i32, i32) {
    %c0_i32 = arith.constant 0 : i32
    %c0_i32_0 = arith.constant 0 : i32
    %c0_i32_1 = arith.constant 0 : i32
    return %c0_i32, %c0_i32_0 : i32, i32
  }
  func.func @transform_6(%arg0: i32) -> (i32, i32) {
    %c0_i32 = arith.constant 0 : i32
    %c0_i32_0 = arith.constant 0 : i32
    %c0_i32_1 = arith.constant 0 : i32
    return %c0_i32, %c0_i32_0 : i32, i32
  }
  func.func @transform_7(%arg0: i32) -> (i32, i32) {
    %c0_i32 = arith.constant 0 : i32
    %c0_i32_0 = arith.constant 0 : i32
    %c0_i32_1 = arith.constant 0 : i32
    return %c0_i32, %c0_i32_0 : i32, i32
  }
  func.func @transform_8(%arg0: i32) -> (i32, i32) {
    %c0_i32 = arith.constant 0 : i32
    %c0_i32_0 = arith.constant 0 : i32
    %c0_i32_1 = arith.constant 0 : i32
    return %c0_i32, %c0_i32_0 : i32, i32
  }
  func.func @transform_9(%arg0: i32) -> (i32, i32) {
    %c0_i32 = arith.constant 0 : i32
    %c0_i32_0 = arith.constant 0 : i32
    %c0_i32_1 = arith.constant 0 : i32
    return %c0_i32, %c0_i32_0 : i32, i32
  }
  func.func @transform_10(%arg0: i32) -> (i32, i32) {
    %c0_i32 = arith.constant 0 : i32
    %c0_i32_0 = arith.constant 0 : i32
    %c0_i32_1 = arith.constant 0 : i32
    return %c0_i32, %c0_i32_0 : i32, i32
  }
}

</mosaic_0001>

<bundles_post_ra>
// kernel: squeeze.12
= control target key start
LH: loop header
LB: loop body
LE: loop exit
PB: predicated region body
PF: predicated region fallthrough
CT: control target
= control target key end

     0   :  { %vm6_vm0 = vcmask 1043458   ;;  %s211_s6 = smov 3  ;;  %vm10_vm1 = vcmask 1045508   ;;  %vm14_vm2 = vcmask 1047558   ;;  %s214_s9 = smov 12  ;;  %vm16_vm3 = vcmask 31744   ;;  %s6167_s0 = inlined_call_operand.vmem [shape: f32[1,16,4,16,4], index: 0, kind: input, shape index: {}]   ;;  %s6168_s1 = inlined_call_operand.vmem [shape: f32[64,64], index: 1, kind: output, shape index: {}]  }
   0x1   :  { %v2954_v0 = vld [vmem:[%s6167_s0 + $0x8f] ss:$16 sm:%s211_s6]   ;;  %s219_s10 = smov 48  ;;  %s224_s15 = smov 192  ;;  %vm185_vm4 = vcmask 523744   ;;  %vm368_vm5 = vcmask 490944  }
   0x2   :  { %v2955_v1 = vld [vmem:[%s6167_s0 + $0x8f] ss:$16 sm:%s214_s9]   ;;  %s166_s16 = smov 3  ;;  %s169_s21 = smov 12  ;;  %vm551_vm6 = vcmask 458144   ;;  %vm734_vm7 = vcmask 425344  }
   0x3   :  { %v2956_v2 = vld [vmem:[%s6167_s0 + $0x8f] ss:$16 sm:%s219_s10]   ;;  %v217_v3 = vsel %vm6_vm0, %v2955_v1, %v2954_v0  ;;  %s174_s22 = smov 48  ;;  %s179_s27 = smov 192  ;;  %vm917_vm8 = vcmask 392544   ;;  %vm1100_vm9 = vcmask 359744  }
   0x4   :  { %v2957_v4 = vld [vmem:[%s6167_s0 + $0x8f] ss:$16 sm:%s224_s15]   ;;  %v222_v6 = vsel %vm10_vm1, %v2956_v2, %v217_v3  ;;  %s234_s28 = smov 3  ;;  %s237_s4 = smov 12  ;;  %vm1283_vm10 = vcmask 326944   ;;  %vm1466_vm11 = vcmask 294144  }
   0x5   :  { %v2945_v5 = vld [vmem:[%s6167_s0 + $0xf] ss:$16 sm:%s166_s16]   ;;  %v227_v9 = vsel %vm14_vm2, %v2957_v4, %v222_v6  ;;  %s242_s5 = smov 48  ;;  %s3545_s6 = smov 60   ;;  %vm1649_vm12 = vcmask 261344   ;;  %vm1832_vm13 = vcmask 228544  }
   0x6   :  { %v2946_v7 = vld [vmem:[%s6167_s0 + $0xf] ss:$16 sm:%s169_s21]   ;;  %228 = vrot.lane.b32.xlu1 %v227_v9, %s3545_s6  ;;  %s247_s9 = smov 192  ;;  %s188_s10 = smov 3  ;;  %vm2015_vm14 = vcmask 195744   ;;  %vm2198_vm15 = vcmask 162944  }
   0x7   :  { %v2947_v8 = vld [vmem:[%s6167_s0 + $0xf] ss:$16 sm:%s174_s22]   ;;  %v172_v10 = vsel %vm6_vm0, %v2946_v7, %v2945_v5  ;;  %s191_s15 = smov 12  ;;  %s196_s16 = smov 48 }
   0x8   :  { %v2948_v11 = vld [vmem:[%s6167_s0 + $0xf] ss:$16 sm:%s179_s27]   ;;  %v177_v13 = vsel %vm10_vm1, %v2947_v8, %v172_v10  ;;  %s201_s19 = smov 192  ;;  %s280_s20 = smov 3 }
   0x9   :  { %v2959_v12 = vld [vmem:[%s6167_s0 + $0x28f] ss:$16 sm:%s234_s28]   ;;  %v182_v15 = vsel %vm14_vm2, %v2948_v11, %v177_v13  ;;  %s283_s25 = smov 12  ;;  %s288_s26 = smov 48 }
   0xa   :  { %v2960_v14 = vld [vmem:[%s6167_s0 + $0x28f] ss:$16 sm:%s237_s4]   ;;  %183 = vrot.lane.b32.xlu0 %v182_v15, %s3545_s6  ;;  %s293_s29 = smov 192  ;;  %s257_s30 = smov 3 }
   0xb   :  { %v240_v16 = vsel %vm6_vm0, %v2960_v14, %v2959_v12  ;;  %v2961_v17 = vld [vmem:[%s6167_s0 + $0x28f] ss:$16 sm:%s242_s5]   ;;  %s260_s7 = smov 12  ;;  %s265_s8 = smov 48 }
   0xc   :  { %v2962_v18 = vld [vmem:[%s6167_s0 + $0x28f] ss:$16 sm:%s247_s9]   ;;  %v245_v19 = vsel %vm10_vm1, %v2961_v17, %v240_v16  ;;  %s270_s13 = smov 192  ;;  %s329_s17 = smov 12 }
   0xd   :  { %v2949_v20 = vld [vmem:[%s6167_s0 + $0x20f] ss:$16 sm:%s188_s10]   ;;  %v250_v21 = vsel %vm14_vm2, %v2962_v18, %v245_v19  ;;  %s334_s22 = smov 48  ;;  %s339_s23 = smov 192 }
   0xe   :  { %v2950_v22 = vld [vmem:[%s6167_s0 + $0x20f] ss:$16 sm:%s191_s15]   ;;  %251 = vrot.lane.b32.xlu1 %v250_v21, %s3545_s6  ;;  %s306_s2 = smov 12  ;;  %s311_s3 = smov 48 }
   0xf   :  { %v2951_v23 = vld [vmem:[%s6167_s0 + $0x20f] ss:$16 sm:%s196_s16]   ;;  %v194_v24 = vsel %vm6_vm0, %v2950_v22, %v2949_v20  ;;  %s326_s16 = smov 3  ;;  %s316_s9 = smov 192 }
  0x10   :  { %v2952_v25 = vld [vmem:[%s6167_s0 + $0x20f] ss:$16 sm:%s201_s19]   ;;  %v199_v26 = vsel %vm10_vm1, %v2951_v23, %v194_v24  ;;  %s371_s12 = smov 3  ;;  %s379_s18 = smov 48 }
  0x11   :  { %v2969_v27 = vld [vmem:[%s6167_s0 + $0x30f] ss:$16 sm:%s280_s20]   ;;  %v204_v29 = vsel %vm14_vm2, %v2952_v25, %v199_v26  ;;  %s384_s19 = smov 192  ;;  %v2988_v55 = vld [vmem:[%s6167_s0 + $0x20e] ss:$16 sm:%s371_s12]   ;;  %s352_s27 = smov 12 }
  0x12   :  { %v2970_v28 = vld [vmem:[%s6167_s0 + $0x30f] ss:$16 sm:%s283_s25]   ;;  %205 = vrot.lane.b32.xlu0 %v204_v29, %s3545_s6  ;;  %s357_s28 = smov 48  ;;  %s362_s4 = smov 192 }
  0x13   :  { %v286_v30 = vsel %vm6_vm0, %v2970_v28, %v2969_v27  ;;  %v2971_v31 = vld [vmem:[%s6167_s0 + $0x30f] ss:$16 sm:%s288_s26]   ;;  %s303_s26 = smov 3  ;;  %v2990_v59 = vld [vmem:[%s6167_s0 + $0x20e] ss:$16 sm:%s379_s18]   ;;  %s430_s14 = smov 192 }
  0x14   :  { %v2972_v32 = vld [vmem:[%s6167_s0 + $0x30f] ss:$16 sm:%s293_s29]   ;;  %v291_v33 = vsel %vm10_vm1, %v2971_v31, %v286_v30  ;;  %v2991_v60 = vld [vmem:[%s6167_s0 + $0x20e] ss:$16 sm:%s384_s19]   ;;  %s3546_s15 = smov 56   ;;  %s394_s18 = smov 3 }
  0x15   :  { %v2964_v34 = vld [vmem:[%s6167_s0 + $0x10f] ss:$16 sm:%s257_s30]   ;;  %v296_v35 = vsel %vm14_vm2, %v2972_v32, %v291_v33  ;;  %v2985_v0 = vld [vmem:[%s6167_s0 + $0xe] ss:$16 sm:%s352_s27]   ;;  %s402_s24 = smov 48  ;;  %s407_s29 = smov 192 }
  0x16   :  { %v2965_v36 = vld [vmem:[%s6167_s0 + $0x10f] ss:$16 sm:%s260_s7]   ;;  %297 = vrot.lane.b32.xlu1 %v296_v35, %s3545_s6  ;;  %s417_s7 = smov 3  ;;  %s476_s10 = smov 192 }
  0x17   :  { %v2966_v37 = vld [vmem:[%s6167_s0 + $0x10f] ss:$16 sm:%s265_s8]   ;;  %v263_v38 = vsel %vm6_vm0, %v2965_v36, %v2964_v34  ;;  %s420_s8 = smov 12  ;;  %v2986_v1 = vld [vmem:[%s6167_s0 + $0xe] ss:$16 sm:%s357_s28]   ;;  %s443_s19 = smov 12 }
  0x18   :  { %v2967_v39 = vld [vmem:[%s6167_s0 + $0x10f] ss:$16 sm:%s270_s13]   ;;  %v268_v40 = vsel %vm10_vm1, %v2966_v37, %v263_v38  ;;  %s374_s13 = smov 12  ;;  %v2987_v3 = vld [vmem:[%s6167_s0 + $0xe] ss:$16 sm:%s362_s4]   ;;  %s466_s4 = smov 12 }
  0x19   :  { %v2979_v41 = vld [vmem:[%s6167_s0 + $0x38f] ss:$16 sm:%s326_s16]   ;;  %v273_v43 = vsel %vm14_vm2, %v2967_v39, %v268_v40  ;;  %v2989_v56 = vld [vmem:[%s6167_s0 + $0x20e] ss:$16 sm:%s374_s13]   ;;  %s425_s13 = smov 48  ;;  %s448_s20 = smov 48 }
  0x1a   :  { %v2980_v42 = vld [vmem:[%s6167_s0 + $0x38f] ss:$16 sm:%s329_s17]   ;;  %274 = vrot.lane.b32.xlu0 %v273_v43, %s3545_s6  ;;  %v377_v58 = vsel %vm6_vm0, %v2989_v56, %v2988_v55  ;;  %s453_s25 = smov 192  ;;  %s509_s28 = smov 3 }
  0x1b   :  { %v332_v44 = vsel %vm6_vm0, %v2980_v42, %v2979_v41  ;;  %v2981_v45 = vld [vmem:[%s6167_s0 + $0x38f] ss:$16 sm:%s334_s22]   ;;  %s349_s22 = smov 3  ;;  %v382_v61 = vsel %vm10_vm1, %v2990_v59, %v377_v58  ;;  %v2998_v5 = vld [vmem:[%s6167_s0 + $0x28e] ss:$16 sm:%s417_s7]   ;;  %s522_s5 = smov 192 }
  0x1c   :  { %v2982_v46 = vld [vmem:[%s6167_s0 + $0x38f] ss:$16 sm:%s339_s23]   ;;  %v337_v47 = vsel %vm10_vm1, %v2981_v45, %v332_v44  ;;  %v2984_v62 = vld [vmem:[%s6167_s0 + $0xe] ss:$16 sm:%s349_s22]   ;;  %v387_v63 = vsel %vm14_vm2, %v2991_v60, %v382_v61  ;;  %s397_s23 = smov 12  ;;  %s494_s16 = smov 48 }
  0x1d   :  { %v2974_v48 = vld [vmem:[%s6167_s0 + $0x18f] ss:$16 sm:%s303_s26]   ;;  %v342_v49 = vsel %vm14_vm2, %v2982_v46, %v337_v47  ;;  %v355_v2 = vsel %vm6_vm0, %v2985_v0, %v2984_v62  ;;  %v2999_v6 = vld [vmem:[%s6167_s0 + $0x28e] ss:$16 sm:%s420_s8]   ;;  %s499_s21 = smov 192  ;;  %s562_s30 = smov 48 }
  0x1e   :  { %v2975_v50 = vld [vmem:[%s6167_s0 + $0x18f] ss:$16 sm:%s306_s2]   ;;  %343 = vrot.lane.b32.xlu1 %v342_v49, %s3545_s6  ;;  %v360_v4 = vsel %vm10_vm1, %v2986_v1, %v355_v2  ;;  %v423_v8 = vsel %vm6_vm0, %v2999_v6, %v2998_v5  ;;  %s567_s2 = smov 192  ;;  %s540_s11 = smov 48 }
  0x1f   :  { %v2976_v51 = vld [vmem:[%s6167_s0 + $0x18f] ss:$16 sm:%s311_s3]   ;;  %v309_v52 = vsel %vm6_vm0, %v2975_v50, %v2974_v48  ;;  %v365_v7 = vsel %vm14_vm2, %v2987_v3, %v360_v4  ;;  %v3000_v9 = vld [vmem:[%s6167_s0 + $0x28e] ss:$16 sm:%s425_s13]   ;;  %s463_s3 = smov 3  ;;  %s440_s13 = smov 3 }
  0x20   :  { %v2977_v53 = vld [vmem:[%s6167_s0 + $0x18f] ss:$16 sm:%s316_s9]   ;;  %v314_v54 = vsel %vm10_vm1, %v2976_v51, %v309_v52  ;;  %v3001_v10 = vld [vmem:[%s6167_s0 + $0x28e] ss:$16 sm:%s430_s14]   ;;  %v428_v11 = vsel %vm10_vm1, %v3000_v9, %v423_v8  ;;  %s471_s9 = smov 48  ;;  %s489_s14 = smov 12 }
  0x21   :  { %v319_v57 = vsel %vm14_vm2, %v2977_v53, %v314_v54  ;;  %v2993_v12 = vld [vmem:[%s6167_s0 + $0x8e] ss:$16 sm:%s394_s18]   ;;  %v433_v13 = vsel %vm14_vm2, %v3001_v10, %v428_v11  ;;  %v3029_v51 = vld [vmem:[%s6167_s0 + $0x20d] ss:$16 sm:%s562_s30]   ;;  %s545_s17 = smov 192  ;;  %s613_s26 = smov 192 }
  0x22   :  { %320 = vrot.lane.b32.xlu0 %v319_v57, %s3545_s6  ;;  %388 = vrot.lane.b32.xlu1 %v387_v63, %s3546_s15  ;;  %v2994_v14 = vld [vmem:[%s6167_s0 + $0x8e] ss:$16 sm:%s397_s23]   ;;  %s517_s6 = smov 48  ;;  %s3547_s27 = smov 52  }
  0x23   :  { %v2995_v15 = vld [vmem:[%s6167_s0 + $0x8e] ss:$16 sm:%s402_s24]   ;;  %v400_v16 = vsel %vm6_vm0, %v2994_v14, %v2993_v12  ;;  %s554_s24 = smov 3  ;;  %v3030_v52 = vld [vmem:[%s6167_s0 + $0x20d] ss:$16 sm:%s567_s2]   ;;  %s577_s30 = smov 3 }
  0x24   :  { %v2996_v17 = vld [vmem:[%s6167_s0 + $0x8e] ss:$16 sm:%s407_s29]   ;;  %v405_v18 = vsel %vm10_vm1, %v2995_v15, %v400_v16  ;;  %s512_s29 = smov 12  ;;  %v3027_v47 = vld [vmem:[%s6167_s0 + $0x20d] ss:$16 sm:%s554_s24]   ;;  %s585_s7 = smov 48 }
  0x25   :  { %v3008_v19 = vld [vmem:[%s6167_s0 + $0x30e] ss:$16 sm:%s463_s3]   ;;  %v410_v21 = vsel %vm14_vm2, %v2996_v17, %v405_v18  ;;  %v3025_v57 = vld [vmem:[%s6167_s0 + $0xd] ss:$16 sm:%s540_s11]   ;;  %s590_s12 = smov 192  ;;  %s659_s22 = smov 192 }
  0x26   :  { %366 = vrot.lane.b32.xlu0 %v365_v7, %s3546_s15  ;;  %434 = vrot.lane.b32.xlu1 %v433_v13, %s3546_s15  ;;  %v3009_v20 = vld [vmem:[%s6167_s0 + $0x30e] ss:$16 sm:%s466_s4]   ;;  %s626_s2 = smov 12  ;;  %s631_s3 = smov 48 }
  0x27   :  { %v469_v22 = vsel %vm6_vm0, %v3009_v20, %v3008_v19  ;;  %v3010_v23 = vld [vmem:[%s6167_s0 + $0x30e] ss:$16 sm:%s471_s9]   ;;  %s486_s9 = smov 3  ;;  %v3026_v59 = vld [vmem:[%s6167_s0 + $0xd] ss:$16 sm:%s545_s17]   ;;  %s649_s17 = smov 12 }
  0x28   :  { %v3011_v24 = vld [vmem:[%s6167_s0 + $0x30e] ss:$16 sm:%s476_s10]   ;;  %v474_v25 = vsel %vm10_vm1, %v3010_v23, %v469_v22  ;;  %s535_s10 = smov 12  ;;  %v3040_v2 = vld [vmem:[%s6167_s0 + $0x28d] ss:$16 sm:%s613_s26]   ;;  %s636_s8 = smov 192 }
  0x29   :  { %v3003_v26 = vld [vmem:[%s6167_s0 + $0x10e] ss:$16 sm:%s440_s13]   ;;  %v479_v27 = vsel %vm14_vm2, %v3011_v24, %v474_v25  ;;  %v3024_v56 = vld [vmem:[%s6167_s0 + $0xd] ss:$16 sm:%s535_s10]   ;;  %s692_s11 = smov 3  ;;  %s705_s18 = smov 192 }
  0x2a   :  { %411 = vrot.lane.b32.xlu0 %v410_v21, %s3546_s15  ;;  %v3004_v28 = vld [vmem:[%s6167_s0 + $0x10e] ss:$16 sm:%s443_s19]   ;;  %480 = vrot.lane.b32.xlu1 %v479_v27, %s3546_s15  ;;  %s600_s19 = smov 3  ;;  %s672_s26 = smov 12 }
  0x2b   :  { %v3005_v29 = vld [vmem:[%s6167_s0 + $0x10e] ss:$16 sm:%s448_s20]   ;;  %v446_v30 = vsel %vm6_vm0, %v3004_v28, %v3003_v26  ;;  %s603_s20 = smov 12  ;;  %v3037_v61 = vld [vmem:[%s6167_s0 + $0x28d] ss:$16 sm:%s600_s19]   ;;  %s682_s4 = smov 192 }
  0x2c   :  { %v3006_v31 = vld [vmem:[%s6167_s0 + $0x10e] ss:$16 sm:%s453_s25]   ;;  %v451_v32 = vsel %vm10_vm1, %v3005_v29, %v446_v30  ;;  %s557_s25 = smov 12  ;;  %v3038_v62 = vld [vmem:[%s6167_s0 + $0x28d] ss:$16 sm:%s603_s20]   ;;  %s745_s13 = smov 48 }
  0x2d   :  { %v3018_v33 = vld [vmem:[%s6167_s0 + $0x38e] ss:$16 sm:%s509_s28]   ;;  %v456_v35 = vsel %vm14_vm2, %v3006_v31, %v451_v32  ;;  %v3028_v48 = vld [vmem:[%s6167_s0 + $0x20d] ss:$16 sm:%s557_s25]   ;;  %s608_s25 = smov 48  ;;  %v606_v0 = vsel %vm6_vm0, %v3038_v62, %v3037_v61  ;;  %s677_s28 = smov 48 }
  0x2e   :  { %v3019_v34 = vld [vmem:[%s6167_s0 + $0x38e] ss:$16 sm:%s512_s29]   ;;  %457 = vrot.lane.b32.xlu0 %v456_v35, %s3546_s15  ;;  %v560_v50 = vsel %vm6_vm0, %v3028_v48, %v3027_v47  ;;  %s723_s23 = smov 48  ;;  %s728_s29 = smov 192 }
  0x2f   :  { %v515_v36 = vsel %vm6_vm0, %v3019_v34, %v3018_v33  ;;  %v3020_v37 = vld [vmem:[%s6167_s0 + $0x38e] ss:$16 sm:%s517_s6]   ;;  %s532_s6 = smov 3  ;;  %v565_v53 = vsel %vm10_vm1, %v3029_v51, %v560_v50  ;;  %v3039_v1 = vld [vmem:[%s6167_s0 + $0x28d] ss:$16 sm:%s608_s25]   ;;  %s623_s25 = smov 3 }
  0x30   :  { %v3021_v38 = vld [vmem:[%s6167_s0 + $0x38e] ss:$16 sm:%s522_s5]   ;;  %v520_v39 = vsel %vm10_vm1, %v3020_v37, %v515_v36  ;;  %v3023_v54 = vld [vmem:[%s6167_s0 + $0xd] ss:$16 sm:%s532_s6]   ;;  %v570_v55 = vsel %vm14_vm2, %v3030_v52, %v565_v53  ;;  %s580_s5 = smov 12  ;;  %v611_v3 = vsel %vm10_vm1, %v3039_v1, %v606_v0  ;;  %s3548_s10 = smov 48  }
  0x31   :  { %v3013_v40 = vld [vmem:[%s6167_s0 + $0x18e] ss:$16 sm:%s486_s9]   ;;  %v525_v41 = vsel %vm14_vm2, %v3021_v38, %v520_v39  ;;  %v538_v58 = vsel %vm6_vm0, %v3024_v56, %v3023_v54  ;;  %v3032_v4 = vld [vmem:[%s6167_s0 + $0x8d] ss:$16 sm:%s577_s30]   ;;  %v616_v5 = vsel %vm14_vm2, %v3040_v2, %v611_v3  ;;  %s796_s9 = smov 192  ;;  %s768_s19 = smov 48 }
  0x32   :  { %v3014_v42 = vld [vmem:[%s6167_s0 + $0x18e] ss:$16 sm:%s489_s14]   ;;  %526 = vrot.lane.b32.xlu1 %v525_v41, %s3546_s15  ;;  %v543_v60 = vsel %vm10_vm1, %v3025_v57, %v538_v58  ;;  %s750_s14 = smov 192  ;;  %s773_s24 = smov 192 }
  0x33   :  { %v3015_v43 = vld [vmem:[%s6167_s0 + $0x18e] ss:$16 sm:%s494_s16]   ;;  %v492_v44 = vsel %vm6_vm0, %v3014_v42, %v3013_v40  ;;  %v548_v63 = vsel %vm14_vm2, %v3026_v59, %v543_v60  ;;  %s646_s16 = smov 3  ;;  %v3033_v6 = vld [vmem:[%s6167_s0 + $0x8d] ss:$16 sm:%s580_s5]   ;;  %s842_s6 = smov 192 }
  0x34   :  { %v3016_v45 = vld [vmem:[%s6167_s0 + $0x18e] ss:$16 sm:%s499_s21]   ;;  %v497_v46 = vsel %vm10_vm1, %v3015_v43, %v492_v44  ;;  %v3034_v7 = vld [vmem:[%s6167_s0 + $0x8d] ss:$16 sm:%s585_s7]   ;;  %s654_s21 = smov 48  ;;  %v583_v8 = vsel %vm6_vm0, %v3033_v6, %v3032_v4  ;;  %s737_s7 = smov 3 }
  0x35   :  { %v502_v49 = vsel %vm14_vm2, %v3016_v45, %v497_v46  ;;  %v3035_v9 = vld [vmem:[%s6167_s0 + $0x8d] ss:$16 sm:%s590_s12]   ;;  %v588_v10 = vsel %vm10_vm1, %v3034_v7, %v583_v8  ;;  %s695_s12 = smov 12  ;;  %v3066_v39 = vld [vmem:[%s6167_s0 + $0x20c] ss:$16 sm:%s737_s7]   ;;  %s819_s20 = smov 192 }
  0x36   :  { %503 = vrot.lane.b32.xlu0 %v502_v49, %s3546_s15  ;;  %571 = vrot.lane.b32.xlu1 %v570_v55, %s3547_s27  ;;  %v3047_v11 = vld [vmem:[%s6167_s0 + $0x30d] ss:$16 sm:%s646_s16]   ;;  %v593_v13 = vsel %vm14_vm2, %v3035_v9, %v588_v10  ;;  %s700_s15 = smov 48  ;;  %s814_s16 = smov 48 }
  0x37   :  { %v3048_v12 = vld [vmem:[%s6167_s0 + $0x30d] ss:$16 sm:%s649_s17]   ;;  %v3068_v43 = vld [vmem:[%s6167_s0 + $0x20c] ss:$16 sm:%s745_s13]   ;;  %s760_s13 = smov 3  ;;  %s888_s30 = smov 192 }
  0x38   :  { %v652_v14 = vsel %vm6_vm0, %v3048_v12, %v3047_v11  ;;  %v3049_v15 = vld [vmem:[%s6167_s0 + $0x30d] ss:$16 sm:%s654_s21]   ;;  %s669_s21 = smov 3  ;;  %v3069_v44 = vld [vmem:[%s6167_s0 + $0x20c] ss:$16 sm:%s750_s14]   ;;  %s809_s14 = smov 12 }
  0x39   :  { %v3050_v16 = vld [vmem:[%s6167_s0 + $0x30d] ss:$16 sm:%s659_s22]   ;;  %v657_v17 = vsel %vm10_vm1, %v3049_v15, %v652_v14  ;;  %s718_s22 = smov 12  ;;  %v3064_v49 = vld [vmem:[%s6167_s0 + $0xc] ss:$16 sm:%s723_s23]   ;;  %s875_s23 = smov 3 }
  0x3a   :  { %549 = vrot.lane.b32.xlu0 %v548_v63, %s3547_s27  ;;  %617 = vrot.lane.b32.xlu1 %v616_v5, %s3547_s27  ;;  %v3042_v18 = vld [vmem:[%s6167_s0 + $0x10d] ss:$16 sm:%s623_s25]   ;;  %v662_v19 = vsel %vm14_vm2, %v3050_v16, %v657_v17  ;;  %s865_s17 = smov 192  ;;  %s928_s25 = smov 48 }
  0x3b   :  { %v3043_v20 = vld [vmem:[%s6167_s0 + $0x10d] ss:$16 sm:%s626_s2]   ;;  %s783_s2 = smov 3  ;;  %v3063_v48 = vld [vmem:[%s6167_s0 + $0xc] ss:$16 sm:%s718_s22]   ;;  %s906_s5 = smov 48 }
  0x3c   :  { %v3044_v21 = vld [vmem:[%s6167_s0 + $0x10d] ss:$16 sm:%s631_s3]   ;;  %v629_v22 = vsel %vm6_vm0, %v3043_v20, %v3042_v18  ;;  %s786_s3 = smov 12  ;;  %v3065_v51 = vld [vmem:[%s6167_s0 + $0xc] ss:$16 sm:%s728_s29]   ;;  %s832_s29 = smov 12 }
  0x3d   :  { %v3045_v23 = vld [vmem:[%s6167_s0 + $0x10d] ss:$16 sm:%s636_s8]   ;;  %v634_v24 = vsel %vm10_vm1, %v3044_v21, %v629_v22  ;;  %s740_s8 = smov 12  ;;  %v3076_v53 = vld [vmem:[%s6167_s0 + $0x28c] ss:$16 sm:%s783_s2]   ;;  %s3549_s22 = smov 44  }
  0x3e   :  { %594 = vrot.lane.b32.xlu0 %v593_v13, %s3547_s27  ;;  %663 = vrot.lane.b32.xlu1 %v662_v19, %s3547_s27  ;;  %v3057_v25 = vld [vmem:[%s6167_s0 + $0x38d] ss:$16 sm:%s692_s11]   ;;  %v639_v27 = vsel %vm14_vm2, %v3045_v23, %v634_v24  ;;  %s860_s11 = smov 48  ;;  %s951_s2 = smov 48 }
  0x3f   :  { %v3058_v26 = vld [vmem:[%s6167_s0 + $0x38d] ss:$16 sm:%s695_s12]   ;;  %v3067_v40 = vld [vmem:[%s6167_s0 + $0x20c] ss:$16 sm:%s740_s8]   ;;  %s791_s8 = smov 48  ;;  %s911_s12 = smov 192 }
  0x40   :  { %v698_v28 = vsel %vm6_vm0, %v3058_v26, %v3057_v25  ;;  %v3059_v29 = vld [vmem:[%s6167_s0 + $0x38d] ss:$16 sm:%s700_s15]   ;;  %s715_s15 = smov 3  ;;  %v743_v42 = vsel %vm6_vm0, %v3067_v40, %v3066_v39  ;;  %v3077_v54 = vld [vmem:[%s6167_s0 + $0x28c] ss:$16 sm:%s786_s3]   ;;  %s956_s7 = smov 192 }
  0x41   :  { %v3060_v30 = vld [vmem:[%s6167_s0 + $0x38d] ss:$16 sm:%s705_s18]   ;;  %v703_v31 = vsel %vm10_vm1, %v3059_v29, %v698_v28  ;;  %v748_v45 = vsel %vm10_vm1, %v3068_v43, %v743_v42  ;;  %v3062_v46 = vld [vmem:[%s6167_s0 + $0xc] ss:$16 sm:%s715_s15]   ;;  %s763_s18 = smov 12  ;;  %v789_v56 = vsel %vm6_vm0, %v3077_v54, %v3076_v53  ;;  %s1025_s15 = smov 192 }
  0x42   :  { %640 = vrot.lane.b32.xlu0 %v639_v27, %s3547_s27  ;;  %v3052_v32 = vld [vmem:[%s6167_s0 + $0x18d] ss:$16 sm:%s669_s21]   ;;  %v708_v33 = vsel %vm14_vm2, %v3060_v30, %v703_v31  ;;  %v753_v47 = vsel %vm14_vm2, %v3069_v44, %v748_v45  ;;  %v721_v50 = vsel %vm6_vm0, %v3063_v48, %v3062_v46  ;;  %s979_s21 = smov 192  ;;  %s1002_s3 = smov 192 }
  0x43   :  { %v3053_v34 = vld [vmem:[%s6167_s0 + $0x18d] ss:$16 sm:%s672_s26]   ;;  %709 = vrot.lane.b32.xlu1 %v708_v33, %s3547_s27  ;;  %v726_v52 = vsel %vm10_vm1, %v3064_v49, %v721_v50  ;;  %s933_s26 = smov 192 }
  0x44   :  { %v3054_v35 = vld [vmem:[%s6167_s0 + $0x18d] ss:$16 sm:%s677_s28]   ;;  %v675_v36 = vsel %vm6_vm0, %v3053_v34, %v3052_v32  ;;  %v731_v55 = vsel %vm14_vm2, %v3065_v51, %v726_v52  ;;  %v3078_v57 = vld [vmem:[%s6167_s0 + $0x28c] ss:$16 sm:%s791_s8]   ;;  %s829_s28 = smov 3  ;;  %s806_s8 = smov 3 }
  0x45   :  { %v3055_v37 = vld [vmem:[%s6167_s0 + $0x18d] ss:$16 sm:%s682_s4]   ;;  %v680_v38 = vsel %vm10_vm1, %v3054_v35, %v675_v36  ;;  %v3079_v58 = vld [vmem:[%s6167_s0 + $0x28c] ss:$16 sm:%s796_s9]   ;;  %v794_v59 = vsel %vm10_vm1, %v3078_v57, %v789_v56  ;;  %s837_s4 = smov 48  ;;  %s855_s9 = smov 12 }
  0x46   :  { %v685_v41 = vsel %vm14_vm2, %v3055_v37, %v680_v38  ;;  %v3071_v60 = vld [vmem:[%s6167_s0 + $0x8c] ss:$16 sm:%s760_s13]   ;;  %v799_v61 = vsel %vm14_vm2, %v3079_v58, %v794_v59  ;;  %v3107_v35 = vld [vmem:[%s6167_s0 + $0x20b] ss:$16 sm:%s928_s25]   ;;  %s943_s25 = smov 3  ;;  %s1071_s13 = smov 192 }
  0x47   :  { %686 = vrot.lane.b32.xlu0 %v685_v41, %s3547_s27  ;;  %754 = vrot.lane.b32.xlu1 %v753_v47, %s3548_s10  ;;  %v3072_v62 = vld [vmem:[%s6167_s0 + $0x8c] ss:$16 sm:%s763_s18]   ;;  %s883_s27 = smov 48  ;;  %s1089_s18 = smov 48 }
  0x48   :  { %v3073_v63 = vld [vmem:[%s6167_s0 + $0x8c] ss:$16 sm:%s768_s19]   ;;  %v766_v0 = vsel %vm6_vm0, %v3072_v62, %v3071_v60  ;;  %s920_s19 = smov 3  ;;  %v3108_v36 = vld [vmem:[%s6167_s0 + $0x20b] ss:$16 sm:%s933_s26]   ;;  %s992_s26 = smov 12 }
  0x49   :  { %v3074_v1 = vld [vmem:[%s6167_s0 + $0x8c] ss:$16 sm:%s773_s24]   ;;  %v771_v2 = vsel %vm10_vm1, %v3073_v63, %v766_v0  ;;  %s878_s24 = smov 12  ;;  %v3105_v31 = vld [vmem:[%s6167_s0 + $0x20b] ss:$16 sm:%s920_s19]   ;;  %s1139_s19 = smov 192 }
  0x4a   :  { %v3086_v3 = vld [vmem:[%s6167_s0 + $0x30c] ss:$16 sm:%s829_s28]   ;;  %v776_v5 = vsel %vm14_vm2, %v3074_v1, %v771_v2  ;;  %v3103_v41 = vld [vmem:[%s6167_s0 + $0xb] ss:$16 sm:%s906_s5]   ;;  %s997_s28 = smov 48  ;;  %s1058_s5 = smov 3 }
  0x4b   :  { %732 = vrot.lane.b32.xlu0 %v731_v55, %s3548_s10  ;;  %800 = vrot.lane.b32.xlu1 %v799_v61, %s3548_s10  ;;  %v3087_v4 = vld [vmem:[%s6167_s0 + $0x30c] ss:$16 sm:%s832_s29]   ;;  %s1048_s29 = smov 192 }
  0x4c   :  { %v835_v6 = vsel %vm6_vm0, %v3087_v4, %v3086_v3  ;;  %v3088_v7 = vld [vmem:[%s6167_s0 + $0x30c] ss:$16 sm:%s837_s4]   ;;  %s852_s4 = smov 3  ;;  %v3104_v43 = vld [vmem:[%s6167_s0 + $0xb] ss:$16 sm:%s911_s12]   ;;  %s1015_s12 = smov 12 }
  0x4d   :  { %v3089_v8 = vld [vmem:[%s6167_s0 + $0x30c] ss:$16 sm:%s842_s6]   ;;  %v840_v9 = vsel %vm10_vm1, %v3088_v7, %v835_v6  ;;  %s901_s6 = smov 12  ;;  %v3118_v50 = vld [vmem:[%s6167_s0 + $0x28b] ss:$16 sm:%s979_s21]   ;;  %s1038_s21 = smov 12 }
  0x4e   :  { %v3081_v10 = vld [vmem:[%s6167_s0 + $0x10c] ss:$16 sm:%s806_s8]   ;;  %v845_v11 = vsel %vm14_vm2, %v3089_v8, %v840_v9  ;;  %v3102_v40 = vld [vmem:[%s6167_s0 + $0xb] ss:$16 sm:%s901_s6]   ;;  %s1111_s8 = smov 48  ;;  %s3550_s6 = smov 40  }
  0x4f   :  { %777 = vrot.lane.b32.xlu0 %v776_v5, %s3548_s10  ;;  %v3082_v12 = vld [vmem:[%s6167_s0 + $0x10c] ss:$16 sm:%s809_s14]   ;;  %846 = vrot.lane.b32.xlu1 %v845_v11, %s3548_s10  ;;  %s966_s14 = smov 3 }
  0x50   :  { %v3083_v13 = vld [vmem:[%s6167_s0 + $0x10c] ss:$16 sm:%s814_s16]   ;;  %v812_v14 = vsel %vm6_vm0, %v3082_v12, %v3081_v10  ;;  %s969_s16 = smov 12  ;;  %v3115_v45 = vld [vmem:[%s6167_s0 + $0x28b] ss:$16 sm:%s966_s14]   ;;  %s1134_s14 = smov 48 }
  0x51   :  { %v3084_v15 = vld [vmem:[%s6167_s0 + $0x10c] ss:$16 sm:%s819_s20]   ;;  %v817_v16 = vsel %vm10_vm1, %v3083_v13, %v812_v14  ;;  %s923_s20 = smov 12  ;;  %v3116_v46 = vld [vmem:[%s6167_s0 + $0x28b] ss:$16 sm:%s969_s16]   ;;  %s1185_s16 = smov 192 }
  0x52   :  { %v3096_v17 = vld [vmem:[%s6167_s0 + $0x38c] ss:$16 sm:%s875_s23]   ;;  %v822_v19 = vsel %vm14_vm2, %v3084_v15, %v817_v16  ;;  %v3106_v32 = vld [vmem:[%s6167_s0 + $0x20b] ss:$16 sm:%s923_s20]   ;;  %s974_s20 = smov 48  ;;  %v972_v48 = vsel %vm6_vm0, %v3116_v46, %v3115_v45  ;;  %s1043_s23 = smov 48 }
  0x53   :  { %v3097_v18 = vld [vmem:[%s6167_s0 + $0x38c] ss:$16 sm:%s878_s24]   ;;  %823 = vrot.lane.b32.xlu0 %v822_v19, %s3548_s10  ;;  %v926_v34 = vsel %vm6_vm0, %v3106_v32, %v3105_v31  ;;  %s1094_s24 = smov 192 }
  0x54   :  { %v881_v20 = vsel %vm6_vm0, %v3097_v18, %v3096_v17  ;;  %v3098_v21 = vld [vmem:[%s6167_s0 + $0x38c] ss:$16 sm:%s883_s27]   ;;  %s898_s27 = smov 3  ;;  %v931_v37 = vsel %vm10_vm1, %v3107_v35, %v926_v34  ;;  %v3117_v49 = vld [vmem:[%s6167_s0 + $0x28b] ss:$16 sm:%s974_s20]   ;;  %s989_s20 = smov 3 }
  0x55   :  { %v3099_v22 = vld [vmem:[%s6167_s0 + $0x38c] ss:$16 sm:%s888_s30]   ;;  %v886_v23 = vsel %vm10_vm1, %v3098_v21, %v881_v20  ;;  %v3101_v38 = vld [vmem:[%s6167_s0 + $0xb] ss:$16 sm:%s898_s27]   ;;  %v936_v39 = vsel %vm14_vm2, %v3108_v36, %v931_v37  ;;  %s946_s30 = smov 12  ;;  %v977_v51 = vsel %vm10_vm1, %v3117_v49, %v972_v48  ;;  %s1208_s27 = smov 192 }
  0x56   :  { %v3091_v24 = vld [vmem:[%s6167_s0 + $0x18c] ss:$16 sm:%s852_s4]   ;;  %v891_v25 = vsel %vm14_vm2, %v3099_v22, %v886_v23  ;;  %v904_v42 = vsel %vm6_vm0, %v3102_v40, %v3101_v38  ;;  %v3110_v52 = vld [vmem:[%s6167_s0 + $0x8b] ss:$16 sm:%s943_s25]   ;;  %v982_v53 = vsel %vm14_vm2, %v3118_v50, %v977_v51  ;;  %s1162_s4 = smov 192  ;;  %s1254_s25 = smov 192 }
  0x57   :  { %v3092_v26 = vld [vmem:[%s6167_s0 + $0x18c] ss:$16 sm:%s855_s9]   ;;  %892 = vrot.lane.b32.xlu1 %v891_v25, %s3548_s10  ;;  %v909_v44 = vsel %vm10_vm1, %v3103_v41, %v904_v42  ;;  %s1116_s9 = smov 192 }
  0x58   :  { %v3093_v27 = vld [vmem:[%s6167_s0 + $0x18c] ss:$16 sm:%s860_s11]   ;;  %v858_v28 = vsel %vm6_vm0, %v3092_v26, %v3091_v24  ;;  %v914_v47 = vsel %vm14_vm2, %v3104_v43, %v909_v44  ;;  %s1012_s11 = smov 3  ;;  %v3111_v54 = vld [vmem:[%s6167_s0 + $0x8b] ss:$16 sm:%s946_s30]   ;;  %s1272_s30 = smov 48 }
  0x59   :  { %v3094_v29 = vld [vmem:[%s6167_s0 + $0x18c] ss:$16 sm:%s865_s17]   ;;  %v863_v30 = vsel %vm10_vm1, %v3093_v27, %v858_v28  ;;  %v3112_v55 = vld [vmem:[%s6167_s0 + $0x8b] ss:$16 sm:%s951_s2]   ;;  %s1020_s17 = smov 48  ;;  %v949_v56 = vsel %vm6_vm0, %v3111_v54, %v3110_v52  ;;  %s1103_s2 = smov 3 }
  0x5a   :  { %v868_v33 = vsel %vm14_vm2, %v3094_v29, %v863_v30  ;;  %v3113_v57 = vld [vmem:[%s6167_s0 + $0x8b] ss:$16 sm:%s956_s7]   ;;  %v954_v58 = vsel %vm10_vm1, %v3112_v55, %v949_v56  ;;  %s1061_s7 = smov 12  ;;  %v3144_v23 = vld [vmem:[%s6167_s0 + $0x20a] ss:$16 sm:%s1103_s2]   ;;  %s1322_s2 = smov 192 }
  0x5b   :  { %869 = vrot.lane.b32.xlu0 %v868_v33, %s3548_s10  ;;  %937 = vrot.lane.b32.xlu1 %v936_v39, %s3549_s22  ;;  %v3125_v59 = vld [vmem:[%s6167_s0 + $0x30b] ss:$16 sm:%s1012_s11]   ;;  %v959_v61 = vsel %vm14_vm2, %v3113_v57, %v954_v58  ;;  %s1066_s10 = smov 48  ;;  %s1180_s11 = smov 48 }
  0x5c   :  { %v3126_v60 = vld [vmem:[%s6167_s0 + $0x30b] ss:$16 sm:%s1015_s12]   ;;  %v3146_v27 = vld [vmem:[%s6167_s0 + $0x20a] ss:$16 sm:%s1111_s8]   ;;  %s1126_s8 = smov 3  ;;  %s1231_s12 = smov 192 }
  0x5d   :  { %v1018_v62 = vsel %vm6_vm0, %v3126_v60, %v3125_v59  ;;  %v3127_v63 = vld [vmem:[%s6167_s0 + $0x30b] ss:$16 sm:%s1020_s17]   ;;  %s1035_s17 = smov 3  ;;  %v3147_v28 = vld [vmem:[%s6167_s0 + $0x20a] ss:$16 sm:%s1116_s9]   ;;  %s1175_s9 = smov 12 }
  0x5e   :  { %v3128_v0 = vld [vmem:[%s6167_s0 + $0x30b] ss:$16 sm:%s1025_s15]   ;;  %v1023_v1 = vsel %vm10_vm1, %v3127_v63, %v1018_v62  ;;  %s1084_s15 = smov 12  ;;  %v3142_v33 = vld [vmem:[%s6167_s0 + $0xa] ss:$16 sm:%s1089_s18]   ;;  %s1241_s18 = smov 3 }
  0x5f   :  { %915 = vrot.lane.b32.xlu0 %v914_v47, %s3549_s22  ;;  %983 = vrot.lane.b32.xlu1 %v982_v53, %s3549_s22  ;;  %v3120_v2 = vld [vmem:[%s6167_s0 + $0x10b] ss:$16 sm:%s989_s20]   ;;  %v1028_v3 = vsel %vm14_vm2, %v3128_v0, %v1023_v1  ;;  %s1294_s20 = smov 48 }
  0x60   :  { %v3121_v4 = vld [vmem:[%s6167_s0 + $0x10b] ss:$16 sm:%s992_s26]   ;;  %s1149_s26 = smov 3  ;;  %v3141_v32 = vld [vmem:[%s6167_s0 + $0xa] ss:$16 sm:%s1084_s15]   ;;  %s3551_s15 = smov 36  }
  0x61   :  { %v3122_v5 = vld [vmem:[%s6167_s0 + $0x10b] ss:$16 sm:%s997_s28]   ;;  %v995_v6 = vsel %vm6_vm0, %v3121_v4, %v3120_v2  ;;  %s1152_s28 = smov 12  ;;  %v3143_v35 = vld [vmem:[%s6167_s0 + $0xa] ss:$16 sm:%s1094_s24]   ;;  %s1198_s24 = smov 12 }
  0x62   :  { %v3123_v7 = vld [vmem:[%s6167_s0 + $0x10b] ss:$16 sm:%s1002_s3]   ;;  %v1000_v8 = vsel %vm10_vm1, %v3122_v5, %v995_v6  ;;  %s1106_s3 = smov 12  ;;  %v3154_v37 = vld [vmem:[%s6167_s0 + $0x28a] ss:$16 sm:%s1149_s26]   ;;  %s1317_s26 = smov 48 }
  0x63   :  { %960 = vrot.lane.b32.xlu0 %v959_v61, %s3549_s22  ;;  %1029 = vrot.lane.b32.xlu1 %v1028_v3, %s3549_s22  ;;  %v3135_v9 = vld [vmem:[%s6167_s0 + $0x38b] ss:$16 sm:%s1058_s5]   ;;  %v1005_v11 = vsel %vm14_vm2, %v3123_v7, %v1000_v8  ;;  %s1226_s5 = smov 48 }
  0x64   :  { %v3136_v10 = vld [vmem:[%s6167_s0 + $0x38b] ss:$16 sm:%s1061_s7]   ;;  %v3145_v24 = vld [vmem:[%s6167_s0 + $0x20a] ss:$16 sm:%s1106_s3]   ;;  %s1157_s3 = smov 48  ;;  %s1277_s7 = smov 192 }
  0x65   :  { %v1064_v12 = vsel %vm6_vm0, %v3136_v10, %v3135_v9  ;;  %v3137_v13 = vld [vmem:[%s6167_s0 + $0x38b] ss:$16 sm:%s1066_s10]   ;;  %s1081_s10 = smov 3  ;;  %v1109_v26 = vsel %vm6_vm0, %v3145_v24, %v3144_v23  ;;  %v3155_v38 = vld [vmem:[%s6167_s0 + $0x28a] ss:$16 sm:%s1152_s28]   ;;  %s1368_s28 = smov 192 }
  0x66   :  { %v3138_v14 = vld [vmem:[%s6167_s0 + $0x38b] ss:$16 sm:%s1071_s13]   ;;  %v1069_v15 = vsel %vm10_vm1, %v3137_v13, %v1064_v12  ;;  %v1114_v29 = vsel %vm10_vm1, %v3146_v27, %v1109_v26  ;;  %v3140_v30 = vld [vmem:[%s6167_s0 + $0xa] ss:$16 sm:%s1081_s10]   ;;  %s1129_s13 = smov 12  ;;  %v1155_v40 = vsel %vm6_vm0, %v3155_v38, %v3154_v37  ;;  %s1391_s10 = smov 192 }
  0x67   :  { %1006 = vrot.lane.b32.xlu0 %v1005_v11, %s3549_s22  ;;  %v3130_v16 = vld [vmem:[%s6167_s0 + $0x18b] ss:$16 sm:%s1035_s17]   ;;  %v1074_v17 = vsel %vm14_vm2, %v3138_v14, %v1069_v15  ;;  %v1119_v31 = vsel %vm14_vm2, %v3147_v28, %v1114_v29  ;;  %v1087_v34 = vsel %vm6_vm0, %v3141_v32, %v3140_v30  ;;  %s1345_s17 = smov 192 }
  0x68   :  { %v3131_v18 = vld [vmem:[%s6167_s0 + $0x18b] ss:$16 sm:%s1038_s21]   ;;  %1075 = vrot.lane.b32.xlu1 %v1074_v17, %s3549_s22  ;;  %v1092_v36 = vsel %vm10_vm1, %v3142_v33, %v1087_v34  ;;  %s1299_s21 = smov 192 }
  0x69   :  { %v3132_v19 = vld [vmem:[%s6167_s0 + $0x18b] ss:$16 sm:%s1043_s23]   ;;  %v1041_v20 = vsel %vm6_vm0, %v3131_v18, %v3130_v16  ;;  %v1097_v39 = vsel %vm14_vm2, %v3143_v35, %v1092_v36  ;;  %v3156_v41 = vld [vmem:[%s6167_s0 + $0x28a] ss:$16 sm:%s1157_s3]   ;;  %s1195_s23 = smov 3  ;;  %s1172_s3 = smov 3 }
  0x6a   :  { %v3133_v21 = vld [vmem:[%s6167_s0 + $0x18b] ss:$16 sm:%s1048_s29]   ;;  %v1046_v22 = vsel %vm10_vm1, %v3132_v19, %v1041_v20  ;;  %v3157_v42 = vld [vmem:[%s6167_s0 + $0x28a] ss:$16 sm:%s1162_s4]   ;;  %v1160_v43 = vsel %vm10_vm1, %v3156_v41, %v1155_v40  ;;  %s1203_s29 = smov 48  ;;  %s1221_s4 = smov 12 }
  0x6b   :  { %v1051_v25 = vsel %vm14_vm2, %v3133_v21, %v1046_v22  ;;  %v3149_v44 = vld [vmem:[%s6167_s0 + $0x8a] ss:$16 sm:%s1126_s8]   ;;  %v1165_v45 = vsel %vm14_vm2, %v3157_v42, %v1160_v43  ;;  %v3185_v20 = vld [vmem:[%s6167_s0 + $0x209] ss:$16 sm:%s1294_s20]   ;;  %s1309_s20 = smov 3  ;;  %s1437_s8 = smov 192 }
  0x6c   :  { %1052 = vrot.lane.b32.xlu0 %v1051_v25, %s3549_s22  ;;  %1120 = vrot.lane.b32.xlu1 %v1119_v31, %s3550_s6  ;;  %v3150_v46 = vld [vmem:[%s6167_s0 + $0x8a] ss:$16 sm:%s1129_s13]   ;;  %s1249_s22 = smov 48  ;;  %s1455_s13 = smov 48 }
  0x6d   :  { %v3151_v47 = vld [vmem:[%s6167_s0 + $0x8a] ss:$16 sm:%s1134_s14]   ;;  %v1132_v48 = vsel %vm6_vm0, %v3150_v46, %v3149_v44  ;;  %s1286_s14 = smov 3  ;;  %v3186_v21 = vld [vmem:[%s6167_s0 + $0x209] ss:$16 sm:%s1299_s21]   ;;  %s1358_s21 = smov 12 }
  0x6e   :  { %v3152_v49 = vld [vmem:[%s6167_s0 + $0x8a] ss:$16 sm:%s1139_s19]   ;;  %v1137_v50 = vsel %vm10_vm1, %v3151_v47, %v1132_v48  ;;  %s1244_s19 = smov 12  ;;  %v3183_v16 = vld [vmem:[%s6167_s0 + $0x209] ss:$16 sm:%s1286_s14]   ;;  %s12_s14 = smov 192 }
  0x6f   :  { %v3164_v51 = vld [vmem:[%s6167_s0 + $0x30a] ss:$16 sm:%s1195_s23]   ;;  %v1142_v53 = vsel %vm14_vm2, %v3152_v49, %v1137_v50  ;;  %v3181_v27 = vld [vmem:[%s6167_s0 + $0x9] ss:$16 sm:%s1272_s30]   ;;  %s1363_s23 = smov 48  ;;  %s1424_s30 = smov 3 }
  0x70   :  { %1098 = vrot.lane.b32.xlu0 %v1097_v39, %s3550_s6  ;;  %1166 = vrot.lane.b32.xlu1 %v1165_v45, %s3550_s6  ;;  %v3165_v52 = vld [vmem:[%s6167_s0 + $0x30a] ss:$16 sm:%s1198_s24]   ;;  %s1414_s24 = smov 192 }
  0x71   :  { %v1201_v54 = vsel %vm6_vm0, %v3165_v52, %v3164_v51  ;;  %v3166_v55 = vld [vmem:[%s6167_s0 + $0x30a] ss:$16 sm:%s1203_s29]   ;;  %s1218_s29 = smov 3  ;;  %v3182_v30 = vld [vmem:[%s6167_s0 + $0x9] ss:$16 sm:%s1277_s7]   ;;  %s1381_s7 = smov 12 }
  0x72   :  { %v3167_v56 = vld [vmem:[%s6167_s0 + $0x30a] ss:$16 sm:%s1208_s27]   ;;  %v1206_v57 = vsel %vm10_vm1, %v3166_v55, %v1201_v54  ;;  %s1267_s27 = smov 12  ;;  %v3196_v37 = vld [vmem:[%s6167_s0 + $0x289] ss:$16 sm:%s1345_s17]   ;;  %s1404_s17 = smov 12 }
  0x73   :  { %v3159_v58 = vld [vmem:[%s6167_s0 + $0x10a] ss:$16 sm:%s1172_s3]   ;;  %v1211_v59 = vsel %vm14_vm2, %v3167_v56, %v1206_v57  ;;  %v3180_v26 = vld [vmem:[%s6167_s0 + $0x9] ss:$16 sm:%s1267_s27]   ;;  %s1477_s3 = smov 48  ;;  %s3552_s27 = smov 32  }
  0x74   :  { %1143 = vrot.lane.b32.xlu0 %v1142_v53, %s3550_s6  ;;  %v3160_v60 = vld [vmem:[%s6167_s0 + $0x10a] ss:$16 sm:%s1175_s9]   ;;  %1212 = vrot.lane.b32.xlu1 %v1211_v59, %s3550_s6  ;;  %s1332_s9 = smov 3 }
  0x75   :  { %v3161_v61 = vld [vmem:[%s6167_s0 + $0x10a] ss:$16 sm:%s1180_s11]   ;;  %v1178_v62 = vsel %vm6_vm0, %v3160_v60, %v3159_v58  ;;  %s1335_s11 = smov 12  ;;  %v3193_v32 = vld [vmem:[%s6167_s0 + $0x289] ss:$16 sm:%s1332_s9]   ;;  %s8_s9 = smov 48 }
  0x76   :  { %v3162_v63 = vld [vmem:[%s6167_s0 + $0x10a] ss:$16 sm:%s1185_s16]   ;;  %v1183_v0 = vsel %vm10_vm1, %v3161_v61, %v1178_v62  ;;  %s1289_s16 = smov 12  ;;  %v3194_v33 = vld [vmem:[%s6167_s0 + $0x289] ss:$16 sm:%s1335_s11]   ;;  %s85_s11 = smov 12 }
  0x77   :  { %v3174_v1 = vld [vmem:[%s6167_s0 + $0x38a] ss:$16 sm:%s1241_s18]   ;;  %v1188_v3 = vsel %vm14_vm2, %v3162_v63, %v1183_v0  ;;  %v3184_v17 = vld [vmem:[%s6167_s0 + $0x209] ss:$16 sm:%s1289_s16]   ;;  %s1340_s16 = smov 48  ;;  %v1338_v35 = vsel %vm6_vm0, %v3194_v33, %v3193_v32  ;;  %s1409_s18 = smov 48 }
  0x78   :  { %v3175_v2 = vld [vmem:[%s6167_s0 + $0x38a] ss:$16 sm:%s1244_s19]   ;;  %1189 = vrot.lane.b32.xlu0 %v1188_v3, %s3550_s6  ;;  %v4335_v14 = vpop.permute.xlu1 %228   ;;  %v1292_v19 = vsel %vm6_vm0, %v3184_v17, %v3183_v16  ;;  %s1460_s19 = smov 192 }
  0x79   :  { %v1247_v4 = vsel %vm6_vm0, %v3175_v2, %v3174_v1  ;;  %v3176_v5 = vld [vmem:[%s6167_s0 + $0x38a] ss:$16 sm:%s1249_s22]   ;;  %s1264_s22 = smov 3  ;;  %v1297_v23 = vsel %vm10_vm1, %v3185_v20, %v1292_v19  ;;  %v3195_v36 = vld [vmem:[%s6167_s0 + $0x289] ss:$16 sm:%s1340_s16]   ;;  %s1355_s16 = smov 3 }
  0x7a   :  { %v3177_v6 = vld [vmem:[%s6167_s0 + $0x38a] ss:$16 sm:%s1254_s25]   ;;  %v1252_v7 = vsel %vm10_vm1, %v3176_v5, %v1247_v4  ;;  %v3179_v24 = vld [vmem:[%s6167_s0 + $0x9] ss:$16 sm:%s1264_s22]   ;;  %v1302_v25 = vsel %vm14_vm2, %v3186_v21, %v1297_v23  ;;  %s1312_s25 = smov 12  ;;  %v1343_v39 = vsel %vm10_vm1, %v3195_v36, %v1338_v35  ;;  %s1528_s22 = smov 192 }
  0x7b   :  { %v3169_v8 = vld [vmem:[%s6167_s0 + $0x18a] ss:$16 sm:%s1218_s29]   ;;  %v1257_v9 = vsel %vm14_vm2, %v3177_v6, %v1252_v7  ;;  %v1270_v29 = vsel %vm6_vm0, %v3180_v26, %v3179_v24  ;;  %v3188_v40 = vld [vmem:[%s6167_s0 + $0x89] ss:$16 sm:%s1309_s20]   ;;  %v1348_v41 = vsel %vm14_vm2, %v3196_v37, %v1343_v39  ;;  %s32_s29 = smov 192  ;;  %s1630_s20 = smov 3 }
  0x7c   :  { %v3170_v10 = vld [vmem:[%s6167_s0 + $0x18a] ss:$16 sm:%s1221_s4]   ;;  %1258 = vrot.lane.b32.xlu1 %v1257_v9, %s3550_s6  ;;  %v4352_v22 = vpop.permute.xlu0 %183   ;;  %v1275_v31 = vsel %vm10_vm1, %v3181_v27, %v1270_v29  ;;  %s1482_s4 = smov 192 }
  0x7d   :  { %v3171_v11 = vld [vmem:[%s6167_s0 + $0x18a] ss:$16 sm:%s1226_s5]   ;;  %v1224_v12 = vsel %vm6_vm0, %v3170_v10, %v3169_v8  ;;  %v1280_v34 = vsel %vm14_vm2, %v3182_v30, %v1275_v31  ;;  %s1378_s5 = smov 3  ;;  %v3189_v42 = vld [vmem:[%s6167_s0 + $0x89] ss:$16 sm:%s1312_s25]   ;;  %s1492_s25 = smov 3 }
  0x7e   :  { %v3172_v13 = vld [vmem:[%s6167_s0 + $0x18a] ss:$16 sm:%s1231_s12]   ;;  %v1229_v15 = vsel %vm10_vm1, %v3171_v11, %v1224_v12  ;;  %v3190_v43 = vld [vmem:[%s6167_s0 + $0x89] ss:$16 sm:%s1317_s26]   ;;  %s1386_s12 = smov 48  ;;  %v1315_v45 = vsel %vm6_vm0, %v3189_v42, %v3188_v40  ;;  %s1469_s26 = smov 3 }
  0x7f   :  { %v1234_v18 = vsel %vm14_vm2, %v3172_v13, %v1229_v15  ;;  %v3191_v46 = vld [vmem:[%s6167_s0 + $0x89] ss:$16 sm:%s1322_s2]   ;;  %v1320_v47 = vsel %vm10_vm1, %v3190_v43, %v1315_v45  ;;  %s1427_s2 = smov 12  ;;  %v3222_v17 = vld [vmem:[%s6167_s0 + $0x208] ss:$16 sm:%s1469_s26]   ;;  %s2255_s26 = smov 48 }
  0x80   :  { %1235 = vrot.lane.b32.xlu0 %v1234_v18, %s3550_s6  ;;  %v4366_v28 = vpop.permute.xlu1 %251   ;;  %1303 = vrot.lane.b32.xlu1 %v1302_v25, %s3551_s15  ;;  %v3203_v48 = vld [vmem:[%s6167_s0 + $0x309] ss:$16 sm:%s1378_s5]   ;;  %v1325_v50 = vsel %vm14_vm2, %v3191_v46, %v1320_v47  ;;  %s1432_s6 = smov 48  ;;  %s1500_s5 = smov 48 }
  0x81   :  { %v3204_v49 = vld [vmem:[%s6167_s0 + $0x309] ss:$16 sm:%s1381_s7]   ;;  %v3224_v21 = vld [vmem:[%s6167_s0 + $0x208] ss:$16 sm:%s1477_s3]   ;;  %s2_s3 = smov 3  ;;  %s148_s7 = smov 12 }
  0x82   :  { %v1384_v51 = vsel %vm6_vm0, %v3204_v49, %v3203_v48  ;;  %v3205_v52 = vld [vmem:[%s6167_s0 + $0x309] ss:$16 sm:%s1386_s12]   ;;  %s1401_s12 = smov 3  ;;  %v3225_v23 = vld [vmem:[%s6167_s0 + $0x208] ss:$16 sm:%s1482_s4]   ;;  %s1495_s4 = smov 12 }
  0x83   :  { %v3206_v53 = vld [vmem:[%s6167_s0 + $0x309] ss:$16 sm:%s1391_s10]   ;;  %v1389_v55 = vsel %vm10_vm1, %v3205_v52, %v1384_v51  ;;  %s1450_s10 = smov 12  ;;  %v3220_v30 = vld [vmem:[%s6167_s0 + $0x8] ss:$16 sm:%s1455_s13]   ;;  %s103_s13 = smov 3 }
  0x84   :  { %v4388_v38 = vpop.permute.xlu0 %205   ;;  %1281 = vrot.lane.b32.xlu0 %v1280_v34, %s3551_s15  ;;  %1349 = vrot.lane.b32.xlu1 %v1348_v41, %s3551_s15  ;;  %v3198_v56 = vld [vmem:[%s6167_s0 + $0x109] ss:$16 sm:%s1355_s16]   ;;  %v1394_v57 = vsel %vm14_vm2, %v3206_v53, %v1389_v55  ;;  %s1515_s16 = smov 3 }
  0x85   :  { %v3199_v58 = vld [vmem:[%s6167_s0 + $0x109] ss:$16 sm:%s1358_s21]   ;;  %s19_s21 = smov 3  ;;  %v3219_v29 = vld [vmem:[%s6167_s0 + $0x8] ss:$16 sm:%s1450_s10]   ;;  %s1505_s10 = smov 192 }
  0x86   :  { %v3200_v59 = vld [vmem:[%s6167_s0 + $0x109] ss:$16 sm:%s1363_s23]   ;;  %v1361_v61 = vsel %vm6_vm0, %v3199_v58, %v3198_v56  ;;  %s22_s23 = smov 12  ;;  %v3221_v33 = vld [vmem:[%s6167_s0 + $0x8] ss:$16 sm:%s1460_s19]   ;;  %s1518_s19 = smov 12 }
  0x87   :  { %v3201_v62 = vld [vmem:[%s6167_s0 + $0x109] ss:$16 sm:%s1368_s28]   ;;  %v1366_v63 = vsel %vm10_vm1, %v3200_v59, %v1361_v61  ;;  %s1472_s28 = smov 12  ;;  %v2910_v35 = vld [vmem:[%s6167_s0 + $0x80] ss:$16 sm:%s19_s21]   ;;  %s1706_s21 = smov 48 }
  0x88   :  { %v4402_v44 = vpop.permute.xlu1 %297   ;;  %1326 = vrot.lane.b32.xlu0 %v1325_v50, %s3551_s15  ;;  %1395 = vrot.lane.b32.xlu1 %v1394_v57, %s3551_s15  ;;  %v3213_v0 = vld [vmem:[%s6167_s0 + $0x389] ss:$16 sm:%s1424_s30]   ;;  %v1371_v2 = vsel %vm14_vm2, %v3201_v62, %v1366_v63  ;;  %s1538_s30 = smov 3 }
  0x89   :  { %v3214_v1 = vld [vmem:[%s6167_s0 + $0x389] ss:$16 sm:%s1427_s2]   ;;  %v3223_v18 = vld [vmem:[%s6167_s0 + $0x208] ss:$16 sm:%s1472_s28]   ;;  %s27_s28 = smov 48  ;;  %s1757_s2 = smov 192 }
  0x8a   :  { %v1430_v3 = vsel %vm6_vm0, %v3214_v1, %v3213_v0  ;;  %v3215_v4 = vld [vmem:[%s6167_s0 + $0x389] ss:$16 sm:%s1432_s6]   ;;  %s1447_s6 = smov 3  ;;  %v1475_v20 = vsel %vm6_vm0, %v3223_v18, %v3222_v17  ;;  %v2911_v36 = vld [vmem:[%s6167_s0 + $0x80] ss:$16 sm:%s22_s23]   ;;  %s1564_s23 = smov 12 }
  0x8b   :  { %v3216_v5 = vld [vmem:[%s6167_s0 + $0x389] ss:$16 sm:%s1437_s8]   ;;  %v1435_v7 = vsel %vm10_vm1, %v3215_v4, %v1430_v3  ;;  %v1480_v25 = vsel %vm10_vm1, %v3224_v21, %v1475_v20  ;;  %v3218_v26 = vld [vmem:[%s6167_s0 + $0x8] ss:$16 sm:%s1447_s6]   ;;  %s4_s8 = smov 12  ;;  %v25_v39 = vsel %vm6_vm0, %v2911_v36, %v2910_v35  ;;  %s82_s6 = smov 3 }
  0x8c   :  { %v4424_v54 = vpop.permute.xlu0 %274   ;;  %1372 = vrot.lane.b32.xlu0 %v1371_v2, %s3551_s15  ;;  %v3208_v8 = vld [vmem:[%s6167_s0 + $0x189] ss:$16 sm:%s1401_s12]   ;;  %v1440_v9 = vsel %vm14_vm2, %v3216_v5, %v1435_v7  ;;  %v1485_v27 = vsel %vm14_vm2, %v3225_v23, %v1480_v25  ;;  %v1453_v32 = vsel %vm6_vm0, %v3219_v29, %v3218_v26  ;;  %s90_s12 = smov 48 }
  0x8d   :  { %v3209_v10 = vld [vmem:[%s6167_s0 + $0x189] ss:$16 sm:%s1404_s17]   ;;  %1441 = vrot.lane.b32.xlu1 %v1440_v9, %s3551_s15  ;;  %v1458_v34 = vsel %vm10_vm1, %v3220_v30, %v1453_v32  ;;  %s1551_s17 = smov 192 }
  0x8e   :  { %v3210_v11 = vld [vmem:[%s6167_s0 + $0x189] ss:$16 sm:%s1409_s18]   ;;  %v1407_v13 = vsel %vm6_vm0, %v3209_v10, %v3208_v8  ;;  %v1463_v37 = vsel %vm14_vm2, %v3221_v33, %v1458_v34  ;;  %v2912_v40 = vld [vmem:[%s6167_s0 + $0x80] ss:$16 sm:%s27_s28]   ;;  %s111_s28 = smov 48  ;;  %s124_s18 = smov 3 }
  0x8f   :  { %v3211_v15 = vld [vmem:[%s6167_s0 + $0x189] ss:$16 sm:%s1414_s24]   ;;  %v1412_v16 = vsel %vm10_vm1, %v3210_v11, %v1407_v13  ;;  %v2913_v41 = vld [vmem:[%s6167_s0 + $0x80] ss:$16 sm:%s32_s29]   ;;  %v30_v43 = vsel %vm10_vm1, %v2912_v40, %v25_v39  ;;  %s116_s29 = smov 192  ;;  %s1569_s24 = smov 48 }
  0x90   :  { %v4438_v60 = vpop.permute.xlu1 %343   ;;  %v1417_v19 = vsel %vm14_vm2, %v3211_v15, %v1412_v16  ;;  %v3_v45 = vld [vmem:[%s6167_s0] ss:$16 sm:%s2_s3]   ;;  %v35_v46 = vsel %vm14_vm2, %v2913_v41, %v30_v43  ;;  %v3232_v52 = vld [vmem:[%s6167_s0 + $0x288] ss:$16 sm:%s1515_s16]   ;;  %s132_s3 = smov 48  ;;  %s153_s16 = smov 48 }
  0x91   :  { %1418 = vrot.lane.b32.xlu0 %v1417_v19, %s3551_s15  ;;  %1486 = vrot.lane.b32.xlu1 %v1485_v27, %s3552_s27  ;;  %s1523_s15 = smov 48  ;;  %v5_v47 = vld [vmem:[%s6167_s0] ss:$16 sm:%s4_s8]   ;;  %s1541_s8 = smov 12 }
  0x92   :  { %v9_v48 = vld [vmem:[%s6167_s0] ss:$16 sm:%s8_s9]   ;;  %2914 = vst.msk [vmem:[%s6168_s1 + $0x8] sm:$0xff] %vm16_vm3, %v35_v46   ;;  %v7_v50 = vsel %vm6_vm0, %v5_v47, %v3_v45  ;;  %s1546_s9 = smov 48 }
  0x93   :  { %v13_v51 = vld [vmem:[%s6167_s0] ss:$16 sm:%s12_s14]   ;;  %2958 = vst.msk [vmem:[%s6168_s1 + $0x8] sm:$0xff] %vm185_vm4, %v4335_v14   ;;  %v11_v14 = vsel %vm10_vm1, %v9_v48, %v7_v50  ;;  %s1660_s14 = smov 48 }
  0x94   :  { %v4460_v6 = vpop.permute.xlu0 %320   ;;  %v4474_v12 = vpop.permute.xlu1 %388   ;;  %v3233_v53 = vld [vmem:[%s6167_s0 + $0x288] ss:$16 sm:%s1518_s19]   ;;  %v15_v56 = vsel %vm14_vm2, %v13_v51, %v11_v14  ;;  %s106_s19 = smov 12  ;;  %v2930_v3 = vld [vmem:[%s6167_s0 + $0x280] ss:$16 sm:%s103_s13]   ;;  %s1655_s13 = smov 12 }
  0x95   :  { %1464 = vrot.lane.b32.xlu0 %v1463_v37, %s3552_s27  ;;  %v3234_v55 = vld [vmem:[%s6167_s0 + $0x288] ss:$16 sm:%s1523_s15]   ;;  %v1521_v57 = vsel %vm6_vm0, %v3233_v53, %v3232_v52  ;;  %17 = vst.msk [vmem:[%s6168_s1] sm:$0xff] %vm16_vm3, %v15_v56   ;;  %s1561_s15 = smov 3 }
  0x96   :  { %v3235_v58 = vld [vmem:[%s6167_s0 + $0x288] ss:$16 sm:%s1528_s22]   ;;  %v1526_v62 = vsel %vm10_vm1, %v3234_v55, %v1521_v57  ;;  %186 = vst.msk [vmem:[%s6168_s1] sm:$0xff] %vm185_vm4, %v4352_v22   ;;  %s53_s22 = smov 192 }
  0x97   :  { %v3227_v59 = vld [vmem:[%s6167_s0 + $0x88] ss:$16 sm:%s1492_s25]   ;;  %v1531_v22 = vsel %vm14_vm2, %v3235_v58, %v1526_v62  ;;  %v2931_v7 = vld [vmem:[%s6167_s0 + $0x280] ss:$16 sm:%s106_s19]   ;;  %s95_s19 = smov 192  ;;  %s1607_s25 = smov 3 }
  0x98   :  { %v4496_v24 = vpop.permute.xlu0 %366   ;;  %v4510_v31 = vpop.permute.xlu1 %434   ;;  %v3228_v63 = vld [vmem:[%s6167_s0 + $0x88] ss:$16 sm:%s1495_s4]   ;;  %1532 = vrot.lane.b32.xlu1 %v1531_v22, %s3552_s27  ;;  %v109_v9 = vsel %vm6_vm0, %v2931_v7, %v2930_v3  ;;  %s137_s4 = smov 192 }
  0x99   :  { %v3229_v0 = vld [vmem:[%s6167_s0 + $0x88] ss:$16 sm:%s1500_s5]   ;;  %v1498_v1 = vsel %vm6_vm0, %v3228_v63, %v3227_v59  ;;  %369 = vst.msk [vmem:[%s6168_s1] sm:$0xff] %vm368_vm5, %v4496_v24   ;;  %s1615_s5 = smov 48 }
  0x9a   :  { %v3230_v2 = vld [vmem:[%s6167_s0 + $0x88] ss:$16 sm:%s1505_s10]   ;;  %v1503_v5 = vsel %vm10_vm1, %v3229_v0, %v1498_v1  ;;  %v2932_v10 = vld [vmem:[%s6167_s0 + $0x280] ss:$16 sm:%s111_s28]   ;;  %s1633_s28 = smov 12  ;;  %s1701_s10 = smov 12 }
  0x9b   :  { %v1508_v8 = vsel %vm14_vm2, %v3230_v2, %v1503_v5  ;;  %v2933_v11 = vld [vmem:[%s6167_s0 + $0x280] ss:$16 sm:%s116_s29]   ;;  %v114_v13 = vsel %vm10_vm1, %v2932_v10, %v109_v9  ;;  %s1574_s29 = smov 192  ;;  %v3242_v23 = vld [vmem:[%s6167_s0 + $0x308] ss:$16 sm:%s1561_s15]   ;;  %s1592_s15 = smov 48 }
  0x9c   :  { %v412_v42 = vpop.permute.xlu0 %411   ;;  %v4544_v49 = vpop.permute.xlu1 %480   ;;  %1509 = vrot.lane.b32.xlu0 %v1508_v8, %s3552_s27  ;;  %v2925_v15 = vld [vmem:[%s6167_s0 + $0x200] ss:$16 sm:%s82_s6]   ;;  %v119_v17 = vsel %vm14_vm2, %v2933_v11, %v114_v13  ;;  %s1643_s6 = smov 192 }
  0x9d   :  { %2997 = vst.msk [vmem:[%s6168_s1 + $0x8] sm:$0xff] %vm368_vm5, %v412_v42   ;;  %v2926_v18 = vld [vmem:[%s6167_s0 + $0x200] ss:$16 sm:%s85_s11]   ;;  %s1620_s11 = smov 192 }
  0x9e   :  { %v2927_v19 = vld [vmem:[%s6167_s0 + $0x200] ss:$16 sm:%s90_s12]   ;;  %2934 = vst.msk [vmem:[%s6168_s1 + $0x28] sm:$0xff] %vm16_vm3, %v119_v17   ;;  %v88_v20 = vsel %vm6_vm0, %v2926_v18, %v2925_v15  ;;  %s40_s12 = smov 3 }
  0x9f   :  { %v2928_v21 = vld [vmem:[%s6167_s0 + $0x200] ss:$16 sm:%s95_s19]   ;;  %2963 = vst.msk [vmem:[%s6168_s1 + $0x28] sm:$0xff] %vm185_vm4, %v4366_v28   ;;  %v93_v28 = vsel %vm10_vm1, %v2927_v19, %v88_v20  ;;  %s1587_s19 = smov 12 }
  0xa0   :  { %v4581_v61 = vpop.permute.xlu0 %457   ;;  %v3243_v25 = vld [vmem:[%s6167_s0 + $0x308] ss:$16 sm:%s1564_s23]   ;;  %v98_v27 = vsel %vm14_vm2, %v2928_v21, %v93_v28  ;;  %s127_s23 = smov 12  ;;  %3002 = vst.msk [vmem:[%s6168_s1 + $0x28] sm:$0xff] %vm368_vm5, %v4510_v31  }
  0xa1   :  { %v3244_v26 = vld [vmem:[%s6167_s0 + $0x308] ss:$16 sm:%s1569_s24]   ;;  %v1567_v29 = vsel %vm6_vm0, %v3243_v25, %v3242_v23  ;;  %2929 = vst.msk [vmem:[%s6168_s1 + $0x20] sm:$0xff] %vm16_vm3, %v98_v27   ;;  %s1744_s24 = smov 3 }
  0xa2   :  { %v3245_v30 = vld [vmem:[%s6167_s0 + $0x308] ss:$16 sm:%s1574_s29]   ;;  %v1572_v31 = vsel %vm10_vm1, %v3244_v26, %v1567_v29  ;;  %2953 = vst.msk [vmem:[%s6168_s1 + $0x20] sm:$0xff] %vm185_vm4, %v4388_v38   ;;  %s1597_s29 = smov 192 }
  0xa3   :  { %v3237_v32 = vld [vmem:[%s6167_s0 + $0x108] ss:$16 sm:%s1538_s30]   ;;  %v1577_v38 = vsel %vm14_vm2, %v3245_v30, %v1572_v31  ;;  %v2935_v39 = vld [vmem:[%s6167_s0 + $0x300] ss:$16 sm:%s124_s18]   ;;  %s48_s18 = smov 48  ;;  %s145_s30 = smov 3 }
  0xa4   :  { %v4607_v4 = vpop.permute.xlu1 %526   ;;  %v3238_v33 = vld [vmem:[%s6167_s0 + $0x108] ss:$16 sm:%s1541_s8]   ;;  %1578 = vrot.lane.b32.xlu1 %v1577_v38, %s3552_s27  ;;  %2992 = vst.msk [vmem:[%s6168_s1 + $0x20] sm:$0xff] %vm368_vm5, %v4474_v12   ;;  %s74_s8 = smov 192 }
  0xa5   :  { %v3239_v34 = vld [vmem:[%s6167_s0 + $0x108] ss:$16 sm:%s1546_s9]   ;;  %v1544_v36 = vsel %vm6_vm0, %v3238_v33, %v3237_v32  ;;  %v2936_v41 = vld [vmem:[%s6167_s0 + $0x300] ss:$16 sm:%s127_s23]   ;;  %s1652_s9 = smov 3  ;;  %s1711_s23 = smov 192 }
  0xa6   :  { %v3240_v37 = vld [vmem:[%s6167_s0 + $0x108] ss:$16 sm:%s1551_s17]   ;;  %v1549_v40 = vsel %vm10_vm1, %v3239_v34, %v1544_v36  ;;  %s43_s17 = smov 12  ;;  %v130_v43 = vsel %vm6_vm0, %v2936_v41, %v2935_v39  ;;  %v2937_v45 = vld [vmem:[%s6167_s0 + $0x300] ss:$16 sm:%s132_s3]   ;;  %s3555_s3 = smov 20  }
  0xa7   :  { %v1554_v42 = vsel %vm14_vm2, %v3240_v37, %v1549_v40  ;;  %v2938_v46 = vld [vmem:[%s6167_s0 + $0x300] ss:$16 sm:%s137_s4]   ;;  %v135_v47 = vsel %vm10_vm1, %v2937_v45, %v130_v43  ;;  %s1610_s4 = smov 12  ;;  %v3252_v56 = vld [vmem:[%s6167_s0 + $0x388] ss:$16 sm:%s1607_s25]   ;;  %s61_s25 = smov 3 }
  0xa8   :  { %v4632_v16 = vpop.permute.xlu0 %503   ;;  %v572_v24 = vpop.permute.xlu1 %571   ;;  %1555 = vrot.lane.b32.xlu0 %v1554_v42, %s3552_s27  ;;  %v2915_v48 = vld [vmem:[%s6167_s0 + $0x100] ss:$16 sm:%s40_s12]   ;;  %v140_v50 = vsel %vm14_vm2, %v2938_v46, %v135_v47  ;;  %s1584_s12 = smov 3 }
  0xa9   :  { %3031 = vst.msk [vmem:[%s6168_s1 + $0x20] sm:$0xff] %vm551_vm6, %v572_v24   ;;  %v2916_v51 = vld [vmem:[%s6167_s0 + $0x100] ss:$16 sm:%s43_s17]   ;;  %s158_s17 = smov 192 }
  0xaa   :  { %v2917_v52 = vld [vmem:[%s6167_s0 + $0x100] ss:$16 sm:%s48_s18]   ;;  %2939 = vst.msk [vmem:[%s6168_s1 + $0x30] sm:$0xff] %vm16_vm3, %v140_v50   ;;  %v46_v53 = vsel %vm6_vm0, %v2916_v51, %v2915_v48  ;;  %s2763_s18 = smov 192 }
  0xab   :  { %v2918_v55 = vld [vmem:[%s6167_s0 + $0x100] ss:$16 sm:%s53_s22]   ;;  %2973 = vst.msk [vmem:[%s6168_s1 + $0x30] sm:$0xff] %vm185_vm4, %v4402_v44   ;;  %v51_v44 = vsel %vm10_vm1, %v2917_v52, %v46_v53  ;;  %s1747_s22 = smov 12 }
  0xac   :  { %v550_v35 = vpop.permute.xlu0 %549   ;;  %v618_v12 = vpop.permute.xlu1 %617   ;;  %v3253_v57 = vld [vmem:[%s6167_s0 + $0x388] ss:$16 sm:%s1610_s4]   ;;  %v56_v62 = vsel %vm14_vm2, %v2918_v55, %v51_v44  ;;  %3012 = vst.msk [vmem:[%s6168_s1 + $0x30] sm:$0xff] %vm368_vm5, %v4544_v49   ;;  %s3554_s4 = smov 24  }
  0xad   :  { %552 = vst.msk [vmem:[%s6168_s1] sm:$0xff] %vm551_vm6, %v550_v35   ;;  %3041 = vst.msk [vmem:[%s6168_s1 + $0x28] sm:$0xff] %vm551_vm6, %v618_v12   ;;  %v3254_v58 = vld [vmem:[%s6167_s0 + $0x388] ss:$16 sm:%s1615_s5]   ;;  %v1613_v63 = vsel %vm6_vm0, %v3253_v57, %v3252_v56  ;;  %s1675_s5 = smov 3 }
  0xae   :  { %v3255_v0 = vld [vmem:[%s6167_s0 + $0x388] ss:$16 sm:%s1620_s11]   ;;  %2919 = vst.msk [vmem:[%s6168_s1 + $0x10] sm:$0xff] %vm16_vm3, %v56_v62   ;;  %v1618_v49 = vsel %vm10_vm1, %v3254_v58, %v1613_v63  ;;  %s1683_s11 = smov 48 }
  0xaf   :  { %v3247_v22 = vld [vmem:[%s6167_s0 + $0x188] ss:$16 sm:%s1584_s12]   ;;  %2968 = vst.msk [vmem:[%s6168_s1 + $0x10] sm:$0xff] %vm185_vm4, %v4424_v54   ;;  %v1623_v54 = vsel %vm14_vm2, %v3255_v0, %v1618_v49  ;;  %s2456_s12 = smov 12 }
  0xb0   :  { %v595_v14 = vpop.permute.xlu0 %594   ;;  %v664_v59 = vpop.permute.xlu1 %663   ;;  %v3248_v1 = vld [vmem:[%s6167_s0 + $0x188] ss:$16 sm:%s1587_s19]   ;;  %v2940_v7 = vld [vmem:[%s6167_s0 + $0x380] ss:$16 sm:%s145_s30]   ;;  %s69_s30 = smov 48  ;;  %s1734_s19 = smov 192 }
  0xb1   :  { %3036 = vst.msk [vmem:[%s6168_s1 + $0x8] sm:$0xff] %vm551_vm6, %v595_v14   ;;  %v3249_v2 = vld [vmem:[%s6167_s0 + $0x188] ss:$16 sm:%s1592_s15]   ;;  %3051 = vst.msk [vmem:[%s6168_s1 + $0x30] sm:$0xff] %vm551_vm6, %v664_v59   ;;  %v1590_v3 = vsel %vm6_vm0, %v3248_v1, %v3247_v22  ;;  %s1665_s15 = smov 192 }
  0xb2   :  { %v3250_v5 = vld [vmem:[%s6167_s0 + $0x188] ss:$16 sm:%s1597_s29]   ;;  %1624 = vrot.lane.b32.xlu1 %v1623_v54, %s3552_s27  ;;  %v1595_v9 = vsel %vm10_vm1, %v3249_v2, %v1590_v3  ;;  %s64_s29 = smov 12  ;;  %3007 = vst.msk [vmem:[%s6168_s1 + $0x10] sm:$0xff] %vm368_vm5, %v4581_v61  }
  0xb3   :  { %v2941_v10 = vld [vmem:[%s6167_s0 + $0x380] ss:$16 sm:%s148_s7]   ;;  %v1600_v61 = vsel %vm14_vm2, %v3250_v5, %v1595_v9  ;;  %v3261_v25 = vld [vmem:[%s6167_s0 + $0x207] ss:$16 sm:%s1652_s9]   ;;  %s3553_s7 = smov 28   ;;  %s1678_s9 = smov 12 }
  0xb4   :  { %v641_v8 = vpop.permute.xlu0 %640   ;;  %v151_v11 = vsel %vm6_vm0, %v2941_v10, %v2940_v7  ;;  %v2942_v13 = vld [vmem:[%s6167_s0 + $0x380] ss:$16 sm:%s153_s16]   ;;  %1601 = vrot.lane.b32.xlu0 %v1600_v61, %s3552_s27  ;;  %s2461_s27 = smov 48  ;;  %s2616_s16 = smov 12 }
  0xb5   :  { %v2943_v15 = vld [vmem:[%s6167_s0 + $0x380] ss:$16 sm:%s158_s17]   ;;  %3046 = vst.msk [vmem:[%s6168_s1 + $0x10] sm:$0xff] %vm551_vm6, %v641_v8   ;;  %v710_v17 = vpop.permute.xlu1 %709   ;;  %v156_v18 = vsel %vm10_vm1, %v2942_v13, %v151_v11  ;;  %s1688_s17 = smov 192 }
  0xb6   :  { %v2920_v19 = vld [vmem:[%s6167_s0 + $0x180] ss:$16 sm:%s61_s25]   ;;  %v161_v20 = vsel %vm14_vm2, %v2943_v15, %v156_v18  ;;  %v3262_v27 = vld [vmem:[%s6167_s0 + $0x207] ss:$16 sm:%s1655_s13]   ;;  %s1729_s13 = smov 48  ;;  %s2438_s25 = smov 48 }
  0xb7   :  { %v2921_v21 = vld [vmem:[%s6167_s0 + $0x180] ss:$16 sm:%s64_s29]   ;;  %2944 = vst.msk [vmem:[%s6168_s1 + $0x38] sm:$0xff] %vm16_vm3, %v161_v20   ;;  %s1638_s29 = smov 48  ;;  %v1658_v32 = vsel %vm6_vm0, %v3262_v27, %v3261_v25 }
  0xb8   :  { %v2922_v23 = vld [vmem:[%s6167_s0 + $0x180] ss:$16 sm:%s69_s30]   ;;  %v67_v24 = vsel %vm6_vm0, %v2921_v21, %v2920_v19  ;;  %2983 = vst.msk [vmem:[%s6168_s1 + $0x38] sm:$0xff] %vm185_vm4, %v4438_v60   ;;  %s1752_s30 = smov 48 }
  0xb9   :  { %v2923_v28 = vld [vmem:[%s6167_s0 + $0x180] ss:$16 sm:%s74_s8]   ;;  %v687_v26 = vpop.permute.xlu0 %686   ;;  %v72_v60 = vsel %vm10_vm1, %v2922_v23, %v67_v24  ;;  %v3263_v29 = vld [vmem:[%s6167_s0 + $0x207] ss:$16 sm:%s1660_s14]   ;;  %s1698_s8 = smov 3  ;;  %s2613_s14 = smov 3 }
  0xba   :  { %v77_v30 = vsel %vm14_vm2, %v2923_v28, %v72_v60  ;;  %v3264_v31 = vld [vmem:[%s6167_s0 + $0x207] ss:$16 sm:%s1665_s15]   ;;  %3022 = vst.msk [vmem:[%s6168_s1 + $0x38] sm:$0xff] %vm368_vm5, %v4607_v4   ;;  %v755_v4 = vpop.permute.xlu1 %754   ;;  %v1663_v34 = vsel %vm10_vm1, %v3263_v29, %v1658_v32  ;;  %s2522_s15 = smov 3 }
  0xbb   :  { %v3257_v33 = vld [vmem:[%s6167_s0 + $0x7] ss:$16 sm:%s1630_s20]   ;;  %2924 = vst.msk [vmem:[%s6168_s1 + $0x18] sm:$0xff] %vm16_vm3, %v77_v30   ;;  %s2525_s20 = smov 12 }
  0xbc   :  { %v3258_v35 = vld [vmem:[%s6167_s0 + $0x7] ss:$16 sm:%s1633_s28]   ;;  %3061 = vst.msk [vmem:[%s6168_s1 + $0x38] sm:$0xff] %vm551_vm6, %v710_v17   ;;  %s2072_s28 = smov 48 }
  0xbd   :  { %v3259_v38 = vld [vmem:[%s6167_s0 + $0x7] ss:$16 sm:%s1638_s29]   ;;  %3070 = vst.msk [vmem:[%s6168_s1 + $0x20] sm:$0xff] %vm734_vm7, %v755_v4   ;;  %v1636_v36 = vsel %vm6_vm0, %v3258_v35, %v3257_v33  ;;  %s1889_s29 = smov 48 }
  0xbe   :  { %2978 = vst.msk [vmem:[%s6168_s1 + $0x18] sm:$0xff] %vm185_vm4, %v4460_v6   ;;  %v1668_v6 = vsel %vm14_vm2, %v3264_v31, %v1663_v34  ;;  %v3260_v37 = vld [vmem:[%s6167_s0 + $0x7] ss:$16 sm:%s1643_s6]   ;;  %v1641_v40 = vsel %vm10_vm1, %v3259_v38, %v1636_v36  ;;  %v801_v48 = vpop.permute.xlu1 %800   ;;  %s2548_s6 = smov 12 }
  0xbf   :  { %v3271_v39 = vld [vmem:[%s6167_s0 + $0x287] ss:$16 sm:%s1698_s8]   ;;  %1669 = vrot.lane.b32.xlu1 %v1668_v6, %s3553_s7  ;;  %3017 = vst.msk [vmem:[%s6168_s1 + $0x18] sm:$0xff] %vm368_vm5, %v4632_v16   ;;  %v733_v16 = vpop.permute.xlu0 %732   ;;  %v1646_v12 = vsel %vm14_vm2, %v3260_v37, %v1641_v40  ;;  %s1721_s8 = smov 3 }
  0xc0   :  { %v3272_v41 = vld [vmem:[%s6167_s0 + $0x287] ss:$16 sm:%s1701_s10]   ;;  %3056 = vst.msk [vmem:[%s6168_s1 + $0x18] sm:$0xff] %vm551_vm6, %v687_v26   ;;  %1647 = vrot.lane.b32.xlu0 %v1646_v12, %s3553_s7  ;;  %s1724_s10 = smov 12 }
  0xc1   :  { %v1704_v42 = vsel %vm6_vm0, %v3272_v41, %v3271_v39  ;;  %v3273_v43 = vld [vmem:[%s6167_s0 + $0x287] ss:$16 sm:%s1706_s21]   ;;  %735 = vst.msk [vmem:[%s6168_s1] sm:$0xff] %vm734_vm7, %v733_v16   ;;  %3080 = vst.msk [vmem:[%s6168_s1 + $0x28] sm:$0xff] %vm734_vm7, %v801_v48   ;;  %s2064_s21 = smov 3 }
  0xc2   :  { %v3274_v45 = vld [vmem:[%s6167_s0 + $0x287] ss:$16 sm:%s1711_s23]   ;;  %v1709_v46 = vsel %vm10_vm1, %v3273_v43, %v1704_v42  ;;  %v847_v49 = vpop.permute.xlu1 %846   ;;  %s1881_s23 = smov 3  ;;  %v3312_v43 = vld [vmem:[%s6167_s0 + $0x286] ss:$16 sm:%s1889_s29]   ;;  %s1935_s29 = smov 48 }
  0xc3   :  { %v3266_v47 = vld [vmem:[%s6167_s0 + $0x87] ss:$16 sm:%s1675_s5]   ;;  %v1714_v50 = vsel %vm14_vm2, %v3274_v45, %v1709_v46  ;;  %v778_v57 = vpop.permute.xlu0 %777   ;;  %3090 = vst.msk [vmem:[%s6168_s1 + $0x30] sm:$0xff] %vm734_vm7, %v847_v49   ;;  %s2453_s5 = smov 3 }
  0xc4   :  { %v3267_v51 = vld [vmem:[%s6167_s0 + $0x87] ss:$16 sm:%s1678_s9]   ;;  %1715 = vrot.lane.b32.xlu1 %v1714_v50, %s3553_s7  ;;  %3075 = vst.msk [vmem:[%s6168_s1 + $0x8] sm:$0xff] %vm734_vm7, %v778_v57   ;;  %s2502_s9 = smov 12 }
  0xc5   :  { %v3268_v52 = vld [vmem:[%s6167_s0 + $0x87] ss:$16 sm:%s1683_s11]   ;;  %v1681_v14 = vsel %vm6_vm0, %v3267_v51, %v3266_v47  ;;  %v3310_v40 = vld [vmem:[%s6167_s0 + $0x286] ss:$16 sm:%s1881_s23]   ;;  %s1927_s23 = smov 3  ;;  %s2507_s11 = smov 48 }
  0xc6   :  { %v3269_v53 = vld [vmem:[%s6167_s0 + $0x87] ss:$16 sm:%s1688_s17]   ;;  %v1686_v55 = vsel %vm10_vm1, %v3268_v52, %v1681_v14  ;;  %s2466_s17 = smov 192 }
  0xc7   :  { %v3281_v56 = vld [vmem:[%s6167_s0 + $0x307] ss:$16 sm:%s1744_s24]   ;;  %v1691_v58 = vsel %vm14_vm2, %v3269_v53, %v1686_v55  ;;  %s1790_s24 = smov 3  ;;  %v824_v10 = vpop.permute.xlu0 %823  }
  0xc8   :  { %v3282_v44 = vld [vmem:[%s6167_s0 + $0x307] ss:$16 sm:%s1747_s22]   ;;  %1692 = vrot.lane.b32.xlu0 %v1691_v58, %s3553_s7  ;;  %s1793_s22 = smov 12  ;;  %3085 = vst.msk [vmem:[%s6168_s1 + $0x10] sm:$0xff] %vm734_vm7, %v824_v10  }
  0xc9   :  { %v1750_v59 = vsel %vm6_vm0, %v3282_v44, %v3281_v56  ;;  %v3283_v62 = vld [vmem:[%s6167_s0 + $0x307] ss:$16 sm:%s1752_s30]   ;;  %s1798_s30 = smov 48  ;;  %v893_v19 = vpop.permute.xlu1 %892   ;;  %v3320_v56 = vld [vmem:[%s6167_s0 + $0x306] ss:$16 sm:%s1927_s23]   ;;  %s1973_s23 = smov 3 }
  0xca   :  { %v3284_v63 = vld [vmem:[%s6167_s0 + $0x307] ss:$16 sm:%s1757_s2]   ;;  %v1755_v0 = vsel %vm10_vm1, %v3283_v62, %v1750_v59  ;;  %s1803_s2 = smov 192  ;;  %3100 = vst.msk [vmem:[%s6168_s1 + $0x38] sm:$0xff] %vm734_vm7, %v893_v19  }
  0xcb   :  { %v3276_v22 = vld [vmem:[%s6167_s0 + $0x107] ss:$16 sm:%s1721_s8]   ;;  %v1760_v1 = vsel %vm14_vm2, %v3284_v63, %v1755_v0  ;;  %s1767_s8 = smov 3  ;;  %v3322_v62 = vld [vmem:[%s6167_s0 + $0x306] ss:$16 sm:%s1935_s29]   ;;  %s1981_s29 = smov 48 }
  0xcc   :  { %v3277_v2 = vld [vmem:[%s6167_s0 + $0x107] ss:$16 sm:%s1724_s10]   ;;  %1761 = vrot.lane.b32.xlu1 %v1760_v1, %s3553_s7  ;;  %s1770_s10 = smov 12 }
  0xcd   :  { %v3278_v54 = vld [vmem:[%s6167_s0 + $0x107] ss:$16 sm:%s1729_s13]   ;;  %v1727_v3 = vsel %vm6_vm0, %v3277_v2, %v3276_v22  ;;  %s1775_s13 = smov 48  ;;  %v870_v27 = vpop.permute.xlu0 %869   ;;  %v938_v34 = vpop.permute.xlu1 %937  }
  0xce   :  { %v3279_v5 = vld [vmem:[%s6167_s0 + $0x107] ss:$16 sm:%s1734_s19]   ;;  %v1732_v7 = vsel %vm10_vm1, %v3278_v54, %v1727_v3  ;;  %s1780_s19 = smov 192  ;;  %3095 = vst.msk [vmem:[%s6168_s1 + $0x18] sm:$0xff] %vm734_vm7, %v870_v27  }
  0xcf   :  { %v3291_v8 = vld [vmem:[%s6167_s0 + $0x387] ss:$16 sm:%s1790_s24]   ;;  %v1737_v61 = vsel %vm14_vm2, %v3279_v5, %v1732_v7  ;;  %s1835_s24 = smov 3  ;;  %3109 = vst.msk [vmem:[%s6168_s1 + $0x20] sm:$0xff] %vm917_vm8, %v938_v34  }
  0xd0   :  { %v3292_v9 = vld [vmem:[%s6167_s0 + $0x387] ss:$16 sm:%s1793_s22]   ;;  %1738 = vrot.lane.b32.xlu0 %v1737_v61, %s3553_s7  ;;  %s1838_s22 = smov 12 }
  0xd1   :  { %v1796_v11 = vsel %vm6_vm0, %v3292_v9, %v3291_v8  ;;  %v3293_v13 = vld [vmem:[%s6167_s0 + $0x387] ss:$16 sm:%s1798_s30]   ;;  %s1843_s30 = smov 48  ;;  %v3300_v26 = vld [vmem:[%s6167_s0 + $0x206] ss:$16 sm:%s1835_s24]   ;;  %s1884_s24 = smov 12  ;;  %v916_v16 = vpop.permute.xlu0 %915   ;;  %v984_v48 = vpop.permute.xlu1 %983  }
  0xd2   :  { %v3294_v15 = vld [vmem:[%s6167_s0 + $0x387] ss:$16 sm:%s1803_s2]   ;;  %v1801_v17 = vsel %vm10_vm1, %v3293_v13, %v1796_v11  ;;  %s1848_s2 = smov 192  ;;  %v3301_v60 = vld [vmem:[%s6167_s0 + $0x206] ss:$16 sm:%s1838_s22]   ;;  %s2776_s22 = smov 12 }
  0xd3   :  { %v3286_v18 = vld [vmem:[%s6167_s0 + $0x187] ss:$16 sm:%s1767_s8]   ;;  %v1806_v20 = vsel %vm14_vm2, %v3294_v15, %v1801_v17  ;;  %s1813_s8 = smov 3  ;;  %v1841_v30 = vsel %vm6_vm0, %v3301_v60, %v3300_v26  ;;  %v3302_v32 = vld [vmem:[%s6167_s0 + $0x206] ss:$16 sm:%s1843_s30]   ;;  %s1894_s30 = smov 192 }
  0xd4   :  { %v3287_v21 = vld [vmem:[%s6167_s0 + $0x187] ss:$16 sm:%s1770_s10]   ;;  %1807 = vrot.lane.b32.xlu1 %v1806_v20, %s3553_s7  ;;  %s1816_s10 = smov 12  ;;  %v1846_v33 = vsel %vm10_vm1, %v3302_v32, %v1841_v30  ;;  %918 = vst.msk [vmem:[%s6168_s1] sm:$0xff] %vm917_vm8, %v916_v16  }
  0xd5   :  { %v3288_v23 = vld [vmem:[%s6167_s0 + $0x187] ss:$16 sm:%s1775_s13]   ;;  %v1773_v24 = vsel %vm6_vm0, %v3287_v21, %v3286_v18  ;;  %s1821_s13 = smov 48  ;;  %v3303_v31 = vld [vmem:[%s6167_s0 + $0x206] ss:$16 sm:%s1848_s2]   ;;  %v961_v57 = vpop.permute.xlu0 %960   ;;  %v1030_v49 = vpop.permute.xlu1 %1029   ;;  %s3556_s2 = smov 16  }
  0xd6   :  { %v3289_v28 = vld [vmem:[%s6167_s0 + $0x187] ss:$16 sm:%s1780_s19]   ;;  %v1778_v25 = vsel %vm10_vm1, %v3288_v23, %v1773_v24  ;;  %s1826_s19 = smov 192  ;;  %v3296_v4 = vld [vmem:[%s6167_s0 + $0x6] ss:$16 sm:%s1813_s8]   ;;  %v1851_v35 = vsel %vm14_vm2, %v3303_v31, %v1846_v33  ;;  %s1858_s8 = smov 3 }
  0xd7   :  { %v1783_v29 = vsel %vm14_vm2, %v3289_v28, %v1778_v25  ;;  %v3297_v38 = vld [vmem:[%s6167_s0 + $0x6] ss:$16 sm:%s1816_s10]   ;;  %s1861_s10 = smov 12  ;;  %3119 = vst.msk [vmem:[%s6168_s1 + $0x28] sm:$0xff] %vm917_vm8, %v984_v48   ;;  %3114 = vst.msk [vmem:[%s6168_s1 + $0x8] sm:$0xff] %vm917_vm8, %v961_v57  }
  0xd8   :  { %1784 = vrot.lane.b32.xlu0 %v1783_v29, %s3553_s7  ;;  %v3298_v6 = vld [vmem:[%s6167_s0 + $0x6] ss:$16 sm:%s1821_s13]   ;;  %1852 = vrot.lane.b32.xlu1 %v1851_v35, %s3554_s4  ;;  %v1819_v36 = vsel %vm6_vm0, %v3297_v38, %v3296_v4  ;;  %s1866_s13 = smov 48  ;;  %s2247_s7 = smov 3 }
  0xd9   :  { %v3299_v37 = vld [vmem:[%s6167_s0 + $0x6] ss:$16 sm:%s1826_s19]   ;;  %v1824_v39 = vsel %vm10_vm1, %v3298_v6, %v1819_v36  ;;  %s1871_s19 = smov 192  ;;  %3129 = vst.msk [vmem:[%s6168_s1 + $0x30] sm:$0xff] %vm917_vm8, %v1030_v49   ;;  %v1007_v10 = vpop.permute.xlu0 %1006  }
  0xda   :  { %v3311_v41 = vld [vmem:[%s6167_s0 + $0x286] ss:$16 sm:%s1884_s24]   ;;  %v1829_v12 = vsel %vm14_vm2, %v3299_v37, %v1824_v39  ;;  %s1930_s24 = smov 12  ;;  %3124 = vst.msk [vmem:[%s6168_s1 + $0x10] sm:$0xff] %vm917_vm8, %v1007_v10   ;;  %v1076_v19 = vpop.permute.xlu1 %1075  }
  0xdb   :  { %v1887_v42 = vsel %vm6_vm0, %v3311_v41, %v3310_v40  ;;  %v3313_v45 = vld [vmem:[%s6167_s0 + $0x286] ss:$16 sm:%s1894_s30]   ;;  %s1940_s30 = smov 192  ;;  %3139 = vst.msk [vmem:[%s6168_s1 + $0x38] sm:$0xff] %vm917_vm8, %v1076_v19  }
  0xdc   :  { %1830 = vrot.lane.b32.xlu0 %v1829_v12, %s3554_s4  ;;  %v1892_v46 = vsel %vm10_vm1, %v3312_v43, %v1887_v42  ;;  %v3305_v47 = vld [vmem:[%s6167_s0 + $0x86] ss:$16 sm:%s1858_s8]   ;;  %s1904_s8 = smov 3 }
  0xdd   :  { %v1897_v50 = vsel %vm14_vm2, %v3313_v45, %v1892_v46  ;;  %v3306_v51 = vld [vmem:[%s6167_s0 + $0x86] ss:$16 sm:%s1861_s10]   ;;  %s1907_s10 = smov 12  ;;  %v3349_v40 = vld [vmem:[%s6167_s0 + $0x285] ss:$16 sm:%s2064_s21]   ;;  %s2110_s21 = smov 3 }
  0xde   :  { %v3307_v52 = vld [vmem:[%s6167_s0 + $0x86] ss:$16 sm:%s1866_s13]   ;;  %1898 = vrot.lane.b32.xlu1 %v1897_v50, %s3554_s4  ;;  %v1864_v14 = vsel %vm6_vm0, %v3306_v51, %v3305_v47  ;;  %s1912_s13 = smov 48  ;;  %v1053_v27 = vpop.permute.xlu0 %1052   ;;  %v1121_v34 = vpop.permute.xlu1 %1120  }
  0xdf   :  { %v3308_v53 = vld [vmem:[%s6167_s0 + $0x86] ss:$16 sm:%s1871_s19]   ;;  %v1869_v55 = vsel %vm10_vm1, %v3307_v52, %v1864_v14  ;;  %s1917_s19 = smov 192  ;;  %3134 = vst.msk [vmem:[%s6168_s1 + $0x18] sm:$0xff] %vm917_vm8, %v1053_v27  }
  0xe0   :  { %v3321_v44 = vld [vmem:[%s6167_s0 + $0x306] ss:$16 sm:%s1930_s24]   ;;  %v1874_v58 = vsel %vm14_vm2, %v3308_v53, %v1869_v55  ;;  %s1976_s24 = smov 12  ;;  %3148 = vst.msk [vmem:[%s6168_s1 + $0x20] sm:$0xff] %vm1100_vm9, %v1121_v34  }
  0xe1   :  { %v1933_v59 = vsel %vm6_vm0, %v3321_v44, %v3320_v56  ;;  %v3323_v63 = vld [vmem:[%s6167_s0 + $0x306] ss:$16 sm:%s1940_s30]   ;;  %1875 = vrot.lane.b32.xlu0 %v1874_v58, %s3554_s4  ;;  %s1986_s30 = smov 192 }
  0xe2   :  { %v1938_v0 = vsel %vm10_vm1, %v3322_v62, %v1933_v59  ;;  %v3315_v22 = vld [vmem:[%s6167_s0 + $0x106] ss:$16 sm:%s1904_s8]   ;;  %s1950_s8 = smov 3  ;;  %v1099_v16 = vpop.permute.xlu0 %1098   ;;  %v3351_v43 = vld [vmem:[%s6167_s0 + $0x285] ss:$16 sm:%s2072_s28]   ;;  %v1167_v48 = vpop.permute.xlu1 %1166   ;;  %s2118_s28 = smov 48 }
  0xe3   :  { %v1943_v1 = vsel %vm14_vm2, %v3323_v63, %v1938_v0  ;;  %v3316_v2 = vld [vmem:[%s6167_s0 + $0x106] ss:$16 sm:%s1907_s10]   ;;  %s1953_s10 = smov 12  ;;  %1101 = vst.msk [vmem:[%s6168_s1] sm:$0xff] %vm1100_vm9, %v1099_v16   ;;  %3158 = vst.msk [vmem:[%s6168_s1 + $0x28] sm:$0xff] %vm1100_vm9, %v1167_v48  }
  0xe4   :  { %v3317_v54 = vld [vmem:[%s6167_s0 + $0x106] ss:$16 sm:%s1912_s13]   ;;  %1944 = vrot.lane.b32.xlu1 %v1943_v1, %s3554_s4  ;;  %v1910_v3 = vsel %vm6_vm0, %v3316_v2, %v3315_v22  ;;  %s1958_s13 = smov 48 }
  0xe5   :  { %v3318_v5 = vld [vmem:[%s6167_s0 + $0x106] ss:$16 sm:%s1917_s19]   ;;  %v1915_v7 = vsel %vm10_vm1, %v3317_v54, %v1910_v3  ;;  %s1963_s19 = smov 192  ;;  %v3359_v56 = vld [vmem:[%s6167_s0 + $0x305] ss:$16 sm:%s2110_s21]   ;;  %s2156_s21 = smov 3 }
  0xe6   :  { %v3330_v8 = vld [vmem:[%s6167_s0 + $0x386] ss:$16 sm:%s1973_s23]   ;;  %v1920_v61 = vsel %vm14_vm2, %v3318_v5, %v1915_v7  ;;  %s2018_s23 = smov 3  ;;  %v1144_v57 = vpop.permute.xlu0 %1143   ;;  %v3361_v62 = vld [vmem:[%s6167_s0 + $0x305] ss:$16 sm:%s2118_s28]   ;;  %v1213_v49 = vpop.permute.xlu1 %1212   ;;  %s2164_s28 = smov 48 }
  0xe7   :  { %v3331_v9 = vld [vmem:[%s6167_s0 + $0x386] ss:$16 sm:%s1976_s24]   ;;  %1921 = vrot.lane.b32.xlu0 %v1920_v61, %s3554_s4  ;;  %s2021_s24 = smov 12  ;;  %3153 = vst.msk [vmem:[%s6168_s1 + $0x8] sm:$0xff] %vm1100_vm9, %v1144_v57  }
  0xe8   :  { %v1979_v11 = vsel %vm6_vm0, %v3331_v9, %v3330_v8  ;;  %v3332_v13 = vld [vmem:[%s6167_s0 + $0x386] ss:$16 sm:%s1981_s29]   ;;  %s2026_s29 = smov 48  ;;  %v3339_v26 = vld [vmem:[%s6167_s0 + $0x205] ss:$16 sm:%s2018_s23]   ;;  %s2067_s23 = smov 12 }
  0xe9   :  { %v3333_v15 = vld [vmem:[%s6167_s0 + $0x386] ss:$16 sm:%s1986_s30]   ;;  %v1984_v17 = vsel %vm10_vm1, %v3332_v13, %v1979_v11  ;;  %s2031_s30 = smov 192  ;;  %v3340_v60 = vld [vmem:[%s6167_s0 + $0x205] ss:$16 sm:%s2021_s24]   ;;  %s2590_s24 = smov 3 }
  0xea   :  { %v3325_v18 = vld [vmem:[%s6167_s0 + $0x186] ss:$16 sm:%s1950_s8]   ;;  %v1989_v20 = vsel %vm14_vm2, %v3333_v15, %v1984_v17  ;;  %s1996_s8 = smov 3  ;;  %v2024_v30 = vsel %vm6_vm0, %v3340_v60, %v3339_v26  ;;  %v3341_v32 = vld [vmem:[%s6167_s0 + $0x205] ss:$16 sm:%s2026_s29]   ;;  %s2077_s29 = smov 192  ;;  %v1190_v10 = vpop.permute.xlu0 %1189  }
  0xeb   :  { %v3326_v21 = vld [vmem:[%s6167_s0 + $0x186] ss:$16 sm:%s1953_s10]   ;;  %1990 = vrot.lane.b32.xlu1 %v1989_v20, %s3554_s4  ;;  %s1999_s10 = smov 12  ;;  %v2029_v33 = vsel %vm10_vm1, %v3341_v32, %v2024_v30  ;;  %3168 = vst.msk [vmem:[%s6168_s1 + $0x30] sm:$0xff] %vm1100_vm9, %v1213_v49  }
  0xec   :  { %v3327_v23 = vld [vmem:[%s6167_s0 + $0x186] ss:$16 sm:%s1958_s13]   ;;  %v1956_v24 = vsel %vm6_vm0, %v3326_v21, %v3325_v18  ;;  %s2004_s13 = smov 48  ;;  %v3342_v31 = vld [vmem:[%s6167_s0 + $0x205] ss:$16 sm:%s2031_s30]   ;;  %s3557_s30 = smov 12  }
  0xed   :  { %v3328_v28 = vld [vmem:[%s6167_s0 + $0x186] ss:$16 sm:%s1963_s19]   ;;  %v1961_v25 = vsel %vm10_vm1, %v3327_v23, %v1956_v24  ;;  %s2009_s19 = smov 192  ;;  %v3335_v4 = vld [vmem:[%s6167_s0 + $0x5] ss:$16 sm:%s1996_s8]   ;;  %v2034_v35 = vsel %vm14_vm2, %v3342_v31, %v2029_v33  ;;  %s2041_s8 = smov 3 }
  0xee   :  { %v1966_v29 = vsel %vm14_vm2, %v3328_v28, %v1961_v25  ;;  %v3336_v38 = vld [vmem:[%s6167_s0 + $0x5] ss:$16 sm:%s1999_s10]   ;;  %s2044_s10 = smov 12  ;;  %3163 = vst.msk [vmem:[%s6168_s1 + $0x10] sm:$0xff] %vm1100_vm9, %v1190_v10   ;;  %v1259_v19 = vpop.permute.xlu1 %1258  }
  0xef   :  { %1967 = vrot.lane.b32.xlu0 %v1966_v29, %s3554_s4  ;;  %v3337_v6 = vld [vmem:[%s6167_s0 + $0x5] ss:$16 sm:%s2004_s13]   ;;  %2035 = vrot.lane.b32.xlu1 %v2034_v35, %s3555_s3  ;;  %v2002_v36 = vsel %vm6_vm0, %v3336_v38, %v3335_v4  ;;  %s2049_s13 = smov 48  ;;  %s2430_s4 = smov 3 }
  0xf0   :  { %v3338_v37 = vld [vmem:[%s6167_s0 + $0x5] ss:$16 sm:%s2009_s19]   ;;  %v2007_v39 = vsel %vm10_vm1, %v3337_v6, %v2002_v36  ;;  %s2054_s19 = smov 192  ;;  %3178 = vst.msk [vmem:[%s6168_s1 + $0x38] sm:$0xff] %vm1100_vm9, %v1259_v19  }
  0xf1   :  { %v3350_v41 = vld [vmem:[%s6167_s0 + $0x285] ss:$16 sm:%s2067_s23]   ;;  %v2012_v12 = vsel %vm14_vm2, %v3338_v37, %v2007_v39  ;;  %s2113_s23 = smov 12 }
  0xf2   :  { %v2070_v42 = vsel %vm6_vm0, %v3350_v41, %v3349_v40  ;;  %v3352_v45 = vld [vmem:[%s6167_s0 + $0x285] ss:$16 sm:%s2077_s29]   ;;  %s2123_s29 = smov 192  ;;  %v1236_v27 = vpop.permute.xlu0 %1235   ;;  %v1304_v34 = vpop.permute.xlu1 %1303   ;;  %v3388_v40 = vld [vmem:[%s6167_s0 + $0x284] ss:$16 sm:%s2247_s7]   ;;  %s2293_s7 = smov 3 }
  0xf3   :  { %2013 = vrot.lane.b32.xlu0 %v2012_v12, %s3555_s3  ;;  %v2075_v46 = vsel %vm10_vm1, %v3351_v43, %v2070_v42  ;;  %v3344_v47 = vld [vmem:[%s6167_s0 + $0x85] ss:$16 sm:%s2041_s8]   ;;  %s2087_s8 = smov 3  ;;  %3173 = vst.msk [vmem:[%s6168_s1 + $0x18] sm:$0xff] %vm1100_vm9, %v1236_v27  }
  0xf4   :  { %v2080_v50 = vsel %vm14_vm2, %v3352_v45, %v2075_v46  ;;  %v3345_v51 = vld [vmem:[%s6167_s0 + $0x85] ss:$16 sm:%s2044_s10]   ;;  %s2090_s10 = smov 12  ;;  %3187 = vst.msk [vmem:[%s6168_s1 + $0x20] sm:$0xff] %vm1283_vm10, %v1304_v34  }
  0xf5   :  { %v3346_v52 = vld [vmem:[%s6167_s0 + $0x85] ss:$16 sm:%s2049_s13]   ;;  %2081 = vrot.lane.b32.xlu1 %v2080_v50, %s3555_s3  ;;  %v2047_v14 = vsel %vm6_vm0, %v3345_v51, %v3344_v47  ;;  %s2095_s13 = smov 48 }
  0xf6   :  { %v3347_v53 = vld [vmem:[%s6167_s0 + $0x85] ss:$16 sm:%s2054_s19]   ;;  %v2052_v55 = vsel %vm10_vm1, %v3346_v52, %v2047_v14  ;;  %s2100_s19 = smov 192  ;;  %v1282_v16 = vpop.permute.xlu0 %1281   ;;  %v3390_v43 = vld [vmem:[%s6167_s0 + $0x284] ss:$16 sm:%s2255_s26]   ;;  %v1350_v48 = vpop.permute.xlu1 %1349   ;;  %s2301_s26 = smov 48 }
  0xf7   :  { %v3360_v44 = vld [vmem:[%s6167_s0 + $0x305] ss:$16 sm:%s2113_s23]   ;;  %v2057_v58 = vsel %vm14_vm2, %v3347_v53, %v2052_v55  ;;  %s2159_s23 = smov 12  ;;  %1284 = vst.msk [vmem:[%s6168_s1] sm:$0xff] %vm1283_vm10, %v1282_v16   ;;  %3197 = vst.msk [vmem:[%s6168_s1 + $0x28] sm:$0xff] %vm1283_vm10, %v1350_v48  }
  0xf8   :  { %v2116_v59 = vsel %vm6_vm0, %v3360_v44, %v3359_v56  ;;  %v3362_v63 = vld [vmem:[%s6167_s0 + $0x305] ss:$16 sm:%s2123_s29]   ;;  %2058 = vrot.lane.b32.xlu0 %v2057_v58, %s3555_s3  ;;  %s2169_s29 = smov 192 }
  0xf9   :  { %v2121_v0 = vsel %vm10_vm1, %v3361_v62, %v2116_v59  ;;  %v3354_v22 = vld [vmem:[%s6167_s0 + $0x105] ss:$16 sm:%s2087_s8]   ;;  %s2133_s8 = smov 3  ;;  %v3398_v56 = vld [vmem:[%s6167_s0 + $0x304] ss:$16 sm:%s2293_s7]   ;;  %s2339_s7 = smov 3 }
  0xfa   :  { %v2126_v1 = vsel %vm14_vm2, %v3362_v63, %v2121_v0  ;;  %v3355_v2 = vld [vmem:[%s6167_s0 + $0x105] ss:$16 sm:%s2090_s10]   ;;  %s2136_s10 = smov 12  ;;  %v1327_v57 = vpop.permute.xlu0 %1326   ;;  %v3400_v62 = vld [vmem:[%s6167_s0 + $0x304] ss:$16 sm:%s2301_s26]   ;;  %v1396_v49 = vpop.permute.xlu1 %1395   ;;  %s2347_s26 = smov 48 }
  0xfb   :  { %v3356_v54 = vld [vmem:[%s6167_s0 + $0x105] ss:$16 sm:%s2095_s13]   ;;  %2127 = vrot.lane.b32.xlu1 %v2126_v1, %s3555_s3  ;;  %v2093_v3 = vsel %vm6_vm0, %v3355_v2, %v3354_v22  ;;  %s2141_s13 = smov 48  ;;  %3192 = vst.msk [vmem:[%s6168_s1 + $0x8] sm:$0xff] %vm1283_vm10, %v1327_v57  }
  0xfc   :  { %v3357_v5 = vld [vmem:[%s6167_s0 + $0x105] ss:$16 sm:%s2100_s19]   ;;  %v2098_v7 = vsel %vm10_vm1, %v3356_v54, %v2093_v3  ;;  %s2146_s19 = smov 192  ;;  %3207 = vst.msk [vmem:[%s6168_s1 + $0x30] sm:$0xff] %vm1283_vm10, %v1396_v49  }
  0xfd   :  { %v3369_v8 = vld [vmem:[%s6167_s0 + $0x385] ss:$16 sm:%s2156_s21]   ;;  %v2103_v61 = vsel %vm14_vm2, %v3357_v5, %v2098_v7  ;;  %s2201_s21 = smov 3  ;;  %v3433_v49 = vld [vmem:[%s6167_s0 + $0x103] ss:$16 sm:%s2456_s12]  }
  0xfe   :  { %v3370_v9 = vld [vmem:[%s6167_s0 + $0x385] ss:$16 sm:%s2159_s23]   ;;  %2104 = vrot.lane.b32.xlu0 %v2103_v61, %s3555_s3  ;;  %s2204_s23 = smov 12  ;;  %v1373_v10 = vpop.permute.xlu0 %1372  }
  0xff   :  { %v2162_v11 = vsel %vm6_vm0, %v3370_v9, %v3369_v8  ;;  %v3371_v13 = vld [vmem:[%s6167_s0 + $0x385] ss:$16 sm:%s2164_s28]   ;;  %s2209_s28 = smov 48  ;;  %v3378_v26 = vld [vmem:[%s6167_s0 + $0x204] ss:$16 sm:%s2201_s21]   ;;  %s2250_s21 = smov 12  ;;  %v1442_v19 = vpop.permute.xlu1 %1441  }
 0x100   :  { %v3372_v15 = vld [vmem:[%s6167_s0 + $0x385] ss:$16 sm:%s2169_s29]   ;;  %v2167_v17 = vsel %vm10_vm1, %v3371_v13, %v2162_v11  ;;  %s2214_s29 = smov 192  ;;  %v3379_v60 = vld [vmem:[%s6167_s0 + $0x204] ss:$16 sm:%s2204_s23]   ;;  %s2535_s23 = smov 192 }
 0x101   :  { %v3364_v18 = vld [vmem:[%s6167_s0 + $0x185] ss:$16 sm:%s2133_s8]   ;;  %v2172_v20 = vsel %vm14_vm2, %v3372_v15, %v2167_v17  ;;  %s2179_s8 = smov 3  ;;  %v2207_v30 = vsel %vm6_vm0, %v3379_v60, %v3378_v26  ;;  %v3380_v32 = vld [vmem:[%s6167_s0 + $0x204] ss:$16 sm:%s2209_s28]   ;;  %s2260_s28 = smov 192 }
 0x102   :  { %v3365_v21 = vld [vmem:[%s6167_s0 + $0x185] ss:$16 sm:%s2136_s10]   ;;  %2173 = vrot.lane.b32.xlu1 %v2172_v20, %s3555_s3  ;;  %s2182_s10 = smov 12  ;;  %v2212_v33 = vsel %vm10_vm1, %v3380_v32, %v2207_v30  ;;  %3202 = vst.msk [vmem:[%s6168_s1 + $0x10] sm:$0xff] %vm1283_vm10, %v1373_v10  }
 0x103   :  { %v3366_v23 = vld [vmem:[%s6167_s0 + $0x185] ss:$16 sm:%s2141_s13]   ;;  %v2139_v24 = vsel %vm6_vm0, %v3365_v21, %v3364_v18  ;;  %s2187_s13 = smov 48  ;;  %v3381_v31 = vld [vmem:[%s6167_s0 + $0x204] ss:$16 sm:%s2214_s29]   ;;  %v1419_v27 = vpop.permute.xlu0 %1418   ;;  %v1487_v34 = vpop.permute.xlu1 %1486  }
 0x104   :  { %v3367_v28 = vld [vmem:[%s6167_s0 + $0x185] ss:$16 sm:%s2146_s19]   ;;  %v2144_v25 = vsel %vm10_vm1, %v3366_v23, %v2139_v24  ;;  %s2192_s19 = smov 192  ;;  %v3374_v4 = vld [vmem:[%s6167_s0 + $0x4] ss:$16 sm:%s2179_s8]   ;;  %v2217_v35 = vsel %vm14_vm2, %v3381_v31, %v2212_v33  ;;  %s2224_s8 = smov 3 }
 0x105   :  { %v2149_v29 = vsel %vm14_vm2, %v3367_v28, %v2144_v25  ;;  %v3375_v38 = vld [vmem:[%s6167_s0 + $0x4] ss:$16 sm:%s2182_s10]   ;;  %s2227_s10 = smov 12  ;;  %3217 = vst.msk [vmem:[%s6168_s1 + $0x38] sm:$0xff] %vm1283_vm10, %v1442_v19   ;;  %3212 = vst.msk [vmem:[%s6168_s1 + $0x18] sm:$0xff] %vm1283_vm10, %v1419_v27  }
 0x106   :  { %2150 = vrot.lane.b32.xlu0 %v2149_v29, %s3555_s3  ;;  %v3376_v6 = vld [vmem:[%s6167_s0 + $0x4] ss:$16 sm:%s2187_s13]   ;;  %2218 = vrot.lane.b32.xlu1 %v2217_v35, %s3556_s2  ;;  %v2185_v36 = vsel %vm6_vm0, %v3375_v38, %v3374_v4  ;;  %s2232_s13 = smov 48  ;;  %s2621_s3 = smov 48 }
 0x107   :  { %v3377_v37 = vld [vmem:[%s6167_s0 + $0x4] ss:$16 sm:%s2192_s19]   ;;  %v2190_v39 = vsel %vm10_vm1, %v3376_v6, %v2185_v36  ;;  %s2237_s19 = smov 192  ;;  %3226 = vst.msk [vmem:[%s6168_s1 + $0x20] sm:$0xff] %vm1466_vm11, %v1487_v34   ;;  %v1465_v16 = vpop.permute.xlu0 %1464  }
 0x108   :  { %v3389_v41 = vld [vmem:[%s6167_s0 + $0x284] ss:$16 sm:%s2250_s21]   ;;  %v2195_v12 = vsel %vm14_vm2, %v3377_v37, %v2190_v39  ;;  %s2296_s21 = smov 12  ;;  %1467 = vst.msk [vmem:[%s6168_s1] sm:$0xff] %vm1466_vm11, %v1465_v16  }
 0x109   :  { %v2253_v42 = vsel %vm6_vm0, %v3389_v41, %v3388_v40  ;;  %v3391_v45 = vld [vmem:[%s6167_s0 + $0x284] ss:$16 sm:%s2260_s28]   ;;  %s2306_s28 = smov 192  ;;  %v3427_v40 = vld [vmem:[%s6167_s0 + $0x283] ss:$16 sm:%s2430_s4]   ;;  %s2476_s4 = smov 3 }
 0x10a   :  { %2196 = vrot.lane.b32.xlu0 %v2195_v12, %s3556_s2  ;;  %v2258_v46 = vsel %vm10_vm1, %v3390_v43, %v2253_v42  ;;  %v3383_v47 = vld [vmem:[%s6167_s0 + $0x84] ss:$16 sm:%s2224_s8]   ;;  %s2270_s8 = smov 3 }
 0x10b   :  { %v2263_v50 = vsel %vm14_vm2, %v3391_v45, %v2258_v46  ;;  %v3384_v51 = vld [vmem:[%s6167_s0 + $0x84] ss:$16 sm:%s2227_s10]   ;;  %s2273_s10 = smov 12  ;;  %v3429_v43 = vld [vmem:[%s6167_s0 + $0x283] ss:$16 sm:%s2438_s25]   ;;  %s2484_s25 = smov 48 }
 0x10c   :  { %v3385_v52 = vld [vmem:[%s6167_s0 + $0x84] ss:$16 sm:%s2232_s13]   ;;  %2264 = vrot.lane.b32.xlu1 %v2263_v50, %s3556_s2  ;;  %v2230_v14 = vsel %vm6_vm0, %v3384_v51, %v3383_v47  ;;  %s2278_s13 = smov 48 }
 0x10d   :  { %v3386_v53 = vld [vmem:[%s6167_s0 + $0x84] ss:$16 sm:%s2237_s19]   ;;  %v2235_v55 = vsel %vm10_vm1, %v3385_v52, %v2230_v14  ;;  %s2283_s19 = smov 192  ;;  %v3444_v19 = vld [vmem:[%s6167_s0 + $0x183] ss:$16 sm:%s2507_s11]   ;;  %s2799_s11 = smov 12 }
 0x10e   :  { %v3399_v44 = vld [vmem:[%s6167_s0 + $0x304] ss:$16 sm:%s2296_s21]   ;;  %v2240_v58 = vsel %vm14_vm2, %v3386_v53, %v2235_v55  ;;  %s2342_s21 = smov 12  ;;  %v3437_v55 = vld [vmem:[%s6167_s0 + $0x303] ss:$16 sm:%s2476_s4]   ;;  %s2626_s4 = smov 192 }
 0x10f   :  { %v2299_v59 = vsel %vm6_vm0, %v3399_v44, %v3398_v56  ;;  %v3401_v63 = vld [vmem:[%s6167_s0 + $0x304] ss:$16 sm:%s2306_s28]   ;;  %2241 = vrot.lane.b32.xlu0 %v2240_v58, %s3556_s2  ;;  %s2352_s28 = smov 192 }
 0x110   :  { %v2304_v0 = vsel %vm10_vm1, %v3400_v62, %v2299_v59  ;;  %v3393_v22 = vld [vmem:[%s6167_s0 + $0x104] ss:$16 sm:%s2270_s8]   ;;  %s2316_s8 = smov 3  ;;  %v3439_v58 = vld [vmem:[%s6167_s0 + $0x303] ss:$16 sm:%s2484_s25]   ;;  %s2545_s25 = smov 3 }
 0x111   :  { %v2309_v1 = vsel %vm14_vm2, %v3401_v63, %v2304_v0  ;;  %v3394_v2 = vld [vmem:[%s6167_s0 + $0x104] ss:$16 sm:%s2273_s10]   ;;  %s2319_s10 = smov 12  ;;  %v3432_v63 = vld [vmem:[%s6167_s0 + $0x103] ss:$16 sm:%s2453_s5]   ;;  %v1533_v0 = vpop.permute.xlu1 %1532  }
 0x112   :  { %v3395_v54 = vld [vmem:[%s6167_s0 + $0x104] ss:$16 sm:%s2278_s13]   ;;  %2310 = vrot.lane.b32.xlu1 %v2309_v1, %s3556_s2  ;;  %v2276_v3 = vsel %vm6_vm0, %v3394_v2, %v3393_v22  ;;  %s2324_s13 = smov 48  ;;  %3236 = vst.msk [vmem:[%s6168_s1 + $0x28] sm:$0xff] %vm1466_vm11, %v1533_v0   ;;  %v2459_v2 = vsel %vm6_vm0, %v3433_v49, %v3432_v63 }
 0x113   :  { %v3396_v5 = vld [vmem:[%s6167_s0 + $0x104] ss:$16 sm:%s2283_s19]   ;;  %v2281_v7 = vsel %vm10_vm1, %v3395_v54, %v2276_v3  ;;  %s2329_s19 = smov 192  ;;  %v3434_v1 = vld [vmem:[%s6167_s0 + $0x103] ss:$16 sm:%s2461_s27]   ;;  %v1510_v3 = vpop.permute.xlu0 %1509   ;;  %s2750_s27 = smov 3 }
 0x114   :  { %v3408_v8 = vld [vmem:[%s6167_s0 + $0x384] ss:$16 sm:%s2339_s7]   ;;  %v2286_v61 = vsel %vm14_vm2, %v3396_v5, %v2281_v7  ;;  %s2384_s7 = smov 3  ;;  %v3435_v54 = vld [vmem:[%s6167_s0 + $0x103] ss:$16 sm:%s2466_s17]   ;;  %v2464_v5 = vsel %vm10_vm1, %v3434_v1, %v2459_v2  ;;  %s2512_s17 = smov 192 }
 0x115   :  { %v3409_v9 = vld [vmem:[%s6167_s0 + $0x384] ss:$16 sm:%s2342_s21]   ;;  %2287 = vrot.lane.b32.xlu0 %v2286_v61, %s3556_s2  ;;  %s2387_s21 = smov 12  ;;  %3231 = vst.msk [vmem:[%s6168_s1 + $0x8] sm:$0xff] %vm1466_vm11, %v1510_v3  }
 0x116   :  { %v2345_v11 = vsel %vm6_vm0, %v3409_v9, %v3408_v8  ;;  %v3410_v13 = vld [vmem:[%s6167_s0 + $0x384] ss:$16 sm:%s2347_s26]   ;;  %s2392_s26 = smov 48  ;;  %v3417_v26 = vld [vmem:[%s6167_s0 + $0x203] ss:$16 sm:%s2384_s7]   ;;  %s2433_s7 = smov 12  ;;  %v2469_v9 = vsel %vm14_vm2, %v3435_v54, %v2464_v5 }
 0x117   :  { %v3411_v15 = vld [vmem:[%s6167_s0 + $0x384] ss:$16 sm:%s2352_s28]   ;;  %v2350_v17 = vsel %vm10_vm1, %v3410_v13, %v2345_v11  ;;  %s2397_s28 = smov 192  ;;  %v3418_v60 = vld [vmem:[%s6167_s0 + $0x203] ss:$16 sm:%s2387_s21]   ;;  %s2530_s21 = smov 48 }
 0x118   :  { %v3403_v18 = vld [vmem:[%s6167_s0 + $0x184] ss:$16 sm:%s2316_s8]   ;;  %v2355_v20 = vsel %vm14_vm2, %v3411_v15, %v2350_v17  ;;  %s2362_s8 = smov 3  ;;  %v2390_v30 = vsel %vm6_vm0, %v3418_v60, %v3417_v26  ;;  %v3419_v32 = vld [vmem:[%s6167_s0 + $0x203] ss:$16 sm:%s2392_s26]   ;;  %s2443_s26 = smov 192 }
 0x119   :  { %v3404_v21 = vld [vmem:[%s6167_s0 + $0x184] ss:$16 sm:%s2319_s10]   ;;  %2356 = vrot.lane.b32.xlu1 %v2355_v20, %s3556_s2  ;;  %s2365_s10 = smov 12  ;;  %v2395_v33 = vsel %vm10_vm1, %v3419_v32, %v2390_v30 }
 0x11a   :  { %v3405_v23 = vld [vmem:[%s6167_s0 + $0x184] ss:$16 sm:%s2324_s13]   ;;  %v2322_v24 = vsel %vm6_vm0, %v3404_v21, %v3403_v18  ;;  %s2370_s13 = smov 48  ;;  %v3420_v31 = vld [vmem:[%s6167_s0 + $0x203] ss:$16 sm:%s2397_s28]   ;;  %s2499_s28 = smov 3  ;;  %v1556_v34 = vpop.permute.xlu0 %1555  }
 0x11b   :  { %v3406_v28 = vld [vmem:[%s6167_s0 + $0x184] ss:$16 sm:%s2329_s19]   ;;  %v2327_v25 = vsel %vm10_vm1, %v3405_v23, %v2322_v24  ;;  %s2375_s19 = smov 192  ;;  %v3413_v4 = vld [vmem:[%s6167_s0 + $0x3] ss:$16 sm:%s2362_s8]   ;;  %v2400_v35 = vsel %vm14_vm2, %v3420_v31, %v2395_v33  ;;  %s2407_s8 = smov 3 }
 0x11c   :  { %v2332_v29 = vsel %vm14_vm2, %v3406_v28, %v2327_v25  ;;  %v3414_v38 = vld [vmem:[%s6167_s0 + $0x3] ss:$16 sm:%s2365_s10]   ;;  %s2410_s10 = smov 12  ;;  %v3452_v32 = vld [vmem:[%s6167_s0 + $0x2] ss:$16 sm:%s2545_s25]   ;;  %s2781_s25 = smov 48 }
 0x11d   :  { %2333 = vrot.lane.b32.xlu0 %v2332_v29, %s3556_s2  ;;  %v3415_v6 = vld [vmem:[%s6167_s0 + $0x3] ss:$16 sm:%s2370_s13]   ;;  %2401 = vrot.lane.b32.xlu1 %v2400_v35, %s3557_s30  ;;  %v2368_v36 = vsel %vm6_vm0, %v3414_v38, %v3413_v4  ;;  %s2415_s13 = smov 48  ;;  %v1579_v29 = vpop.permute.xlu1 %1578   ;;  %s2672_s2 = smov 192 }
 0x11e   :  { %v3416_v37 = vld [vmem:[%s6167_s0 + $0x3] ss:$16 sm:%s2375_s19]   ;;  %v2373_v39 = vsel %vm10_vm1, %v3415_v6, %v2368_v36  ;;  %s2420_s19 = smov 192  ;;  %3246 = vst.msk [vmem:[%s6168_s1 + $0x30] sm:$0xff] %vm1466_vm11, %v1579_v29   ;;  %3241 = vst.msk [vmem:[%s6168_s1 + $0x10] sm:$0xff] %vm1466_vm11, %v1556_v34  }
 0x11f   :  { %v3428_v41 = vld [vmem:[%s6167_s0 + $0x283] ss:$16 sm:%s2433_s7]   ;;  %v2378_v12 = vsel %vm14_vm2, %v3416_v37, %v2373_v39  ;;  %s2479_s7 = smov 12  ;;  %v3453_v33 = vld [vmem:[%s6167_s0 + $0x2] ss:$16 sm:%s2548_s6]   ;;  %s2593_s6 = smov 12 }
 0x120   :  { %v2436_v42 = vsel %vm6_vm0, %v3428_v41, %v3427_v40  ;;  %v3430_v45 = vld [vmem:[%s6167_s0 + $0x283] ss:$16 sm:%s2443_s26]   ;;  %s2489_s26 = smov 192  ;;  %v2551_v35 = vsel %vm6_vm0, %v3453_v33, %v3452_v32  ;;  %v3466_v36 = vld [vmem:[%s6167_s0 + $0x282] ss:$16 sm:%s2613_s14]   ;;  %s2659_s14 = smov 3 }
 0x121   :  { %2379 = vrot.lane.b32.xlu0 %v2378_v12, %s3557_s30  ;;  %v2441_v46 = vsel %vm10_vm1, %v3429_v43, %v2436_v42  ;;  %v3422_v47 = vld [vmem:[%s6167_s0 + $0x83] ss:$16 sm:%s2407_s8]   ;;  %s2553_s8 = smov 48 }
 0x122   :  { %v2446_v48 = vsel %vm14_vm2, %v3430_v45, %v2441_v46  ;;  %v3423_v50 = vld [vmem:[%s6167_s0 + $0x83] ss:$16 sm:%s2410_s10]   ;;  %s2558_s10 = smov 192  ;;  %v3454_v4 = vld [vmem:[%s6167_s0 + $0x2] ss:$16 sm:%s2553_s8]   ;;  %s2598_s8 = smov 48 }
 0x123   :  { %v3424_v51 = vld [vmem:[%s6167_s0 + $0x83] ss:$16 sm:%s2415_s13]   ;;  %2447 = vrot.lane.b32.xlu1 %v2446_v48, %s3557_s30  ;;  %v2413_v52 = vsel %vm6_vm0, %v3423_v50, %v3422_v47  ;;  %v2556_v6 = vsel %vm10_vm1, %v3454_v4, %v2551_v35  ;;  %s2708_s13 = smov 12 }
 0x124   :  { %v3425_v14 = vld [vmem:[%s6167_s0 + $0x83] ss:$16 sm:%s2420_s19]   ;;  %v2418_v53 = vsel %vm10_vm1, %v3424_v51, %v2413_v52  ;;  %v3455_v38 = vld [vmem:[%s6167_s0 + $0x2] ss:$16 sm:%s2558_s10]   ;;  %s2603_s10 = smov 192  ;;  %s2713_s19 = smov 48 }
 0x125   :  { %v3438_v56 = vld [vmem:[%s6167_s0 + $0x303] ss:$16 sm:%s2479_s7]   ;;  %v2423_v44 = vsel %vm14_vm2, %v3425_v14, %v2418_v53  ;;  %s3558_s7 = smov 8   ;;  %v3467_v37 = vld [vmem:[%s6167_s0 + $0x282] ss:$16 sm:%s2616_s16]   ;;  %v2561_v39 = vsel %vm14_vm2, %v3455_v38, %v2556_v6  ;;  %s2662_s16 = smov 12  ;;  %v1625_v14 = vpop.permute.xlu1 %1624  }
 0x126   :  { %v2482_v57 = vsel %vm6_vm0, %v3438_v56, %v3437_v55  ;;  %v3440_v59 = vld [vmem:[%s6167_s0 + $0x303] ss:$16 sm:%s2489_s26]   ;;  %2424 = vrot.lane.b32.xlu0 %v2423_v44, %s3557_s30  ;;  %v2619_v40 = vsel %vm6_vm0, %v3467_v37, %v3466_v36  ;;  %s2639_s26 = smov 12  ;;  %3256 = vst.msk [vmem:[%s6168_s1 + $0x38] sm:$0xff] %vm1466_vm11, %v1625_v14  }
 0x127   :  { %v2487_v62 = vsel %vm10_vm1, %v3439_v58, %v2482_v57  ;;  %v3447_v7 = vld [vmem:[%s6167_s0 + $0x383] ss:$16 sm:%s2522_s15]   ;;  %s2567_s15 = smov 3  ;;  %v3468_v41 = vld [vmem:[%s6167_s0 + $0x282] ss:$16 sm:%s2621_s3]  }
 0x128   :  { %v2492_v22 = vsel %vm14_vm2, %v3440_v59, %v2487_v62  ;;  %v3448_v8 = vld [vmem:[%s6167_s0 + $0x383] ss:$16 sm:%s2525_s20]   ;;  %s2570_s20 = smov 12  ;;  %v3456_v24 = vld [vmem:[%s6167_s0 + $0x202] ss:$16 sm:%s2567_s15]   ;;  %v2624_v12 = vsel %vm10_vm1, %v3468_v41, %v2619_v40  ;;  %v1602_v59 = vpop.permute.xlu0 %1601   ;;  %s2718_s15 = smov 192 }
 0x129   :  { %2493 = vrot.lane.b32.xlu1 %v2492_v22, %s3557_s30  ;;  %v2528_v10 = vsel %vm6_vm0, %v3448_v8, %v3447_v7  ;;  %v3449_v61 = vld [vmem:[%s6167_s0 + $0x383] ss:$16 sm:%s2530_s21]   ;;  %s2575_s21 = smov 48  ;;  %3251 = vst.msk [vmem:[%s6168_s1 + $0x18] sm:$0xff] %vm1466_vm11, %v1602_v59  }
 0x12a   :  { %v3450_v11 = vld [vmem:[%s6167_s0 + $0x383] ss:$16 sm:%s2535_s23]   ;;  %2470 = vrot.lane.b32.xlu0 %v2469_v9, %s3557_s30  ;;  %v2533_v13 = vsel %vm10_vm1, %v3449_v61, %v2528_v10  ;;  %s2580_s23 = smov 192 }
 0x12b   :  { %v3442_v15 = vld [vmem:[%s6167_s0 + $0x183] ss:$16 sm:%s2499_s28]   ;;  %v2538_v17 = vsel %vm14_vm2, %v3450_v11, %v2533_v13  ;;  %v3457_v28 = vld [vmem:[%s6167_s0 + $0x202] ss:$16 sm:%s2570_s20]   ;;  %s2667_s20 = smov 48  ;;  %s2644_s28 = smov 48 }
 0x12c   :  { %v3443_v18 = vld [vmem:[%s6167_s0 + $0x183] ss:$16 sm:%s2502_s9]   ;;  %v2573_v26 = vsel %vm6_vm0, %v3457_v28, %v3456_v24  ;;  %v3458_v60 = vld [vmem:[%s6167_s0 + $0x202] ss:$16 sm:%s2575_s21]   ;;  %s2636_s21 = smov 3  ;;  %s2649_s9 = smov 192 }
 0x12d   :  { %2539 = vrot.lane.b32.xlu1 %v2538_v17, %s3557_s30  ;;  %v2505_v20 = vsel %vm6_vm0, %v3443_v18, %v3442_v15  ;;  %v3445_v21 = vld [vmem:[%s6167_s0 + $0x183] ss:$16 sm:%s2512_s17]   ;;  %v2578_v30 = vsel %vm10_vm1, %v3458_v60, %v2573_v26  ;;  %s2758_s17 = smov 48 }
 0x12e   :  { %v2510_v23 = vsel %vm10_vm1, %v3444_v19, %v2505_v20  ;;  %v3459_v27 = vld [vmem:[%s6167_s0 + $0x202] ss:$16 sm:%s2580_s23]   ;;  %v3495_v20 = vld [vmem:[%s6167_s0 + $0x201] ss:$16 sm:%s2750_s27]   ;;  %s2731_s23 = smov 12 }
 0x12f   :  { %v2515_v25 = vsel %vm14_vm2, %v3445_v21, %v2510_v23  ;;  %v2583_v31 = vsel %vm14_vm2, %v3459_v27, %v2578_v30  ;;  %v3469_v16 = vld [vmem:[%s6167_s0 + $0x282] ss:$16 sm:%s2626_s4]   ;;  %v3497_v28 = vld [vmem:[%s6167_s0 + $0x201] ss:$16 sm:%s2758_s17]   ;;  %s2809_s17 = smov 192 }
 0x130   :  { %2516 = vrot.lane.b32.xlu0 %v2515_v25, %s3557_s30  ;;  %v3461_v42 = vld [vmem:[%s6167_s0 + $0x82] ss:$16 sm:%s2590_s24]   ;;  %v2629_v43 = vsel %vm14_vm2, %v3469_v16, %v2624_v12  ;;  %s2705_s30 = smov 3  ;;  %s2736_s24 = smov 48 }
 0x131   :  { %2584 = vrot.lane.b32.xlu1 %v2583_v31, %s3558_s7  ;;  %v3462_v45 = vld [vmem:[%s6167_s0 + $0x82] ss:$16 sm:%s2593_s6]   ;;  %v1670_v18 = vpop.permute.xlu1 %1669   ;;  %s2741_s6 = smov 192 }
 0x132   :  { %v3463_v46 = vld [vmem:[%s6167_s0 + $0x82] ss:$16 sm:%s2598_s8]   ;;  %v2596_v47 = vsel %vm6_vm0, %v3462_v45, %v3461_v42  ;;  %3265 = vst.msk [vmem:[%s6168_s1 + $0x20] sm:$0xff] %vm1649_vm12, %v1670_v18   ;;  %v1648_v26 = vpop.permute.xlu0 %1647  }
 0x133   :  { %v3464_v48 = vld [vmem:[%s6167_s0 + $0x82] ss:$16 sm:%s2603_s10]   ;;  %v2601_v50 = vsel %vm10_vm1, %v3463_v46, %v2596_v47  ;;  %s2753_s10 = smov 12  ;;  %v3498_v25 = vld [vmem:[%s6167_s0 + $0x201] ss:$16 sm:%s2763_s18]   ;;  %s3559_s18 = smov 4  }
 0x134   :  { %2562 = vrot.lane.b32.xlu0 %v2561_v39, %s3558_s7  ;;  %v3476_v51 = vld [vmem:[%s6167_s0 + $0x302] ss:$16 sm:%s2659_s14]   ;;  %v2606_v53 = vsel %vm14_vm2, %v3464_v48, %v2601_v50  ;;  %1650 = vst.msk [vmem:[%s6168_s1] sm:$0xff] %vm1649_vm12, %v1648_v26  }
 0x135   :  { %2630 = vrot.lane.b32.xlu1 %v2629_v43, %s3558_s7  ;;  %v3477_v52 = vld [vmem:[%s6167_s0 + $0x302] ss:$16 sm:%s2662_s16]   ;;  %s2804_s16 = smov 48 }
 0x136   :  { %v2665_v55 = vsel %vm6_vm0, %v3477_v52, %v3476_v51  ;;  %v3478_v56 = vld [vmem:[%s6167_s0 + $0x302] ss:$16 sm:%s2667_s20]   ;;  %s2728_s20 = smov 3  ;;  %v3496_v21 = vld [vmem:[%s6167_s0 + $0x201] ss:$16 sm:%s2753_s10]   ;;  %v1716_v31 = vpop.permute.xlu1 %1715  }
 0x137   :  { %v3479_v44 = vld [vmem:[%s6167_s0 + $0x302] ss:$16 sm:%s2672_s2]   ;;  %v2670_v57 = vsel %vm10_vm1, %v3478_v56, %v2665_v55  ;;  %v2756_v24 = vsel %vm6_vm0, %v3496_v21, %v3495_v20  ;;  %v3491_v27 = vld [vmem:[%s6167_s0 + $0x1] ss:$16 sm:%s2728_s20]   ;;  %s2773_s20 = smov 3 }
 0x138   :  { %2607 = vrot.lane.b32.xlu0 %v2606_v53, %s3558_s7  ;;  %v3471_v58 = vld [vmem:[%s6167_s0 + $0x102] ss:$16 sm:%s2636_s21]   ;;  %v2675_v62 = vsel %vm14_vm2, %v3479_v44, %v2670_v57  ;;  %s2682_s21 = smov 3  ;;  %v2761_v60 = vsel %vm10_vm1, %v3497_v28, %v2756_v24  ;;  %3275 = vst.msk [vmem:[%s6168_s1 + $0x28] sm:$0xff] %vm1649_vm12, %v1716_v31  }
 0x139   :  { %v3472_v63 = vld [vmem:[%s6167_s0 + $0x102] ss:$16 sm:%s2639_s26]   ;;  %2676 = vrot.lane.b32.xlu1 %v2675_v62, %s3558_s7  ;;  %s2685_s26 = smov 12  ;;  %v2766_v29 = vsel %vm14_vm2, %v3498_v25, %v2761_v60 }
 0x13a   :  { %v3473_v0 = vld [vmem:[%s6167_s0 + $0x102] ss:$16 sm:%s2644_s28]   ;;  %v2642_v22 = vsel %vm6_vm0, %v3472_v63, %v3471_v58  ;;  %s2690_s28 = smov 48  ;;  %v3492_v30 = vld [vmem:[%s6167_s0 + $0x1] ss:$16 sm:%s2731_s23]   ;;  %v1693_v40 = vpop.permute.xlu0 %1692  }
 0x13b   :  { %v3474_v49 = vld [vmem:[%s6167_s0 + $0x102] ss:$16 sm:%s2649_s9]   ;;  %v2647_v1 = vsel %vm10_vm1, %v3473_v0, %v2642_v22  ;;  %s2695_s9 = smov 192  ;;  %v3493_v32 = vld [vmem:[%s6167_s0 + $0x1] ss:$16 sm:%s2736_s24]   ;;  %v2734_v33 = vsel %vm6_vm0, %v3492_v30, %v3491_v27 }
 0x13c   :  { %v3486_v2 = vld [vmem:[%s6167_s0 + $0x382] ss:$16 sm:%s2705_s30]   ;;  %v2652_v3 = vsel %vm14_vm2, %v3474_v49, %v2647_v1  ;;  %v3494_v4 = vld [vmem:[%s6167_s0 + $0x1] ss:$16 sm:%s2741_s6]   ;;  %v2739_v34 = vsel %vm10_vm1, %v3493_v32, %v2734_v33  ;;  %s2786_s6 = smov 192 }
 0x13d   :  { %v3487_v54 = vld [vmem:[%s6167_s0 + $0x382] ss:$16 sm:%s2708_s13]   ;;  %2653 = vrot.lane.b32.xlu0 %v2652_v3, %s3558_s7  ;;  %v2744_v6 = vsel %vm14_vm2, %v3494_v4, %v2739_v34  ;;  %3270 = vst.msk [vmem:[%s6168_s1 + $0x8] sm:$0xff] %vm1649_vm12, %v1693_v40  }
 0x13e   :  { %v2711_v5 = vsel %vm6_vm0, %v3487_v54, %v3486_v2  ;;  %v3488_v7 = vld [vmem:[%s6167_s0 + $0x382] ss:$16 sm:%s2713_s19]   ;;  %v3506_v38 = vld [vmem:[%s6167_s0 + $0x281] ss:$16 sm:%s2799_s11]   ;;  %s2845_s11 = smov 12  ;;  %v1762_v45 = vpop.permute.xlu1 %1761  }
 0x13f   :  { %v3489_v8 = vld [vmem:[%s6167_s0 + $0x382] ss:$16 sm:%s2718_s15]   ;;  %v2716_v9 = vsel %vm10_vm1, %v3488_v7, %v2711_v5  ;;  %v3507_v37 = vld [vmem:[%s6167_s0 + $0x281] ss:$16 sm:%s2804_s16]   ;;  %s2850_s16 = smov 48 }
 0x140   :  { %v3481_v10 = vld [vmem:[%s6167_s0 + $0x182] ss:$16 sm:%s2682_s21]   ;;  %v2721_v61 = vsel %vm14_vm2, %v3489_v8, %v2716_v9  ;;  %v3508_v39 = vld [vmem:[%s6167_s0 + $0x281] ss:$16 sm:%s2809_s17]   ;;  %s2855_s17 = smov 192 }
 0x141   :  { %v3482_v11 = vld [vmem:[%s6167_s0 + $0x182] ss:$16 sm:%s2685_s26]   ;;  %2722 = vrot.lane.b32.xlu1 %v2721_v61, %s3558_s7  ;;  %3285 = vst.msk [vmem:[%s6168_s1 + $0x30] sm:$0xff] %vm1649_vm12, %v1762_v45  }
 0x142   :  { %v3483_v13 = vld [vmem:[%s6167_s0 + $0x182] ss:$16 sm:%s2690_s28]   ;;  %v2688_v15 = vsel %vm6_vm0, %v3482_v11, %v3481_v10  ;;  %v3500_v16 = vld [vmem:[%s6167_s0 + $0x81] ss:$16 sm:%s2773_s20]   ;;  %s2819_s20 = smov 3  ;;  %v1739_v56 = vpop.permute.xlu0 %1738  }
 0x143   :  { %v3484_v17 = vld [vmem:[%s6167_s0 + $0x182] ss:$16 sm:%s2695_s9]   ;;  %v2693_v19 = vsel %vm10_vm1, %v3483_v13, %v2688_v15  ;;  %s2796_s9 = smov 3  ;;  %v3501_v42 = vld [vmem:[%s6167_s0 + $0x81] ss:$16 sm:%s2776_s22]   ;;  %s2822_s22 = smov 12 }
 0x144   :  { %v2698_v23 = vsel %vm14_vm2, %v3484_v17, %v2693_v19  ;;  %v3505_v35 = vld [vmem:[%s6167_s0 + $0x281] ss:$16 sm:%s2796_s9]   ;;  %s2842_s9 = smov 3  ;;  %v2779_v46 = vsel %vm6_vm0, %v3501_v42, %v3500_v16  ;;  %3280 = vst.msk [vmem:[%s6168_s1 + $0x10] sm:$0xff] %vm1649_vm12, %v1739_v56  }
 0x145   :  { %2699 = vrot.lane.b32.xlu0 %v2698_v23, %s3558_s7  ;;  %2767 = vrot.lane.b32.xlu1 %v2766_v29, %s3559_s18  ;;  %v2802_v36 = vsel %vm6_vm0, %v3506_v38, %v3505_v35  ;;  %v3502_v43 = vld [vmem:[%s6167_s0 + $0x81] ss:$16 sm:%s2781_s25]   ;;  %s2827_s25 = smov 48 }
 0x146   :  { %v2807_v41 = vsel %vm10_vm1, %v3507_v37, %v2802_v36  ;;  %v3503_v47 = vld [vmem:[%s6167_s0 + $0x81] ss:$16 sm:%s2786_s6]   ;;  %v2784_v48 = vsel %vm10_vm1, %v3502_v43, %v2779_v46  ;;  %s2832_s6 = smov 192  ;;  %v1808_v63 = vpop.permute.xlu1 %1807  }
 0x147   :  { %v2812_v12 = vsel %vm14_vm2, %v3508_v39, %v2807_v41  ;;  %v3515_v50 = vld [vmem:[%s6167_s0 + $0x301] ss:$16 sm:%s2842_s9]   ;;  %v2789_v52 = vsel %vm14_vm2, %v3503_v47, %v2784_v48  ;;  %s2888_s9 = smov 3  ;;  %3295 = vst.msk [vmem:[%s6168_s1 + $0x38] sm:$0xff] %vm1649_vm12, %v1808_v63  }
 0x148   :  { %v3516_v51 = vld [vmem:[%s6167_s0 + $0x301] ss:$16 sm:%s2845_s11]   ;;  %s2891_s11 = smov 12 }
 0x149   :  { %2745 = vrot.lane.b32.xlu0 %v2744_v6, %s3559_s18  ;;  %2813 = vrot.lane.b32.xlu1 %v2812_v12, %s3559_s18  ;;  %v2848_v14 = vsel %vm6_vm0, %v3516_v51, %v3515_v50  ;;  %v3517_v53 = vld [vmem:[%s6167_s0 + $0x301] ss:$16 sm:%s2850_s16]   ;;  %s2896_s16 = smov 48 }
 0x14a   :  { %v3518_v55 = vld [vmem:[%s6167_s0 + $0x301] ss:$16 sm:%s2855_s17]   ;;  %v2853_v44 = vsel %vm10_vm1, %v3517_v53, %v2848_v14  ;;  %s2901_s17 = smov 192  ;;  %v1785_v8 = vpop.permute.xlu0 %1784   ;;  %v1853_v15 = vpop.permute.xlu1 %1852  }
 0x14b   :  { %v3510_v57 = vld [vmem:[%s6167_s0 + $0x101] ss:$16 sm:%s2819_s20]   ;;  %v2858_v58 = vsel %vm14_vm2, %v3518_v55, %v2853_v44  ;;  %s2865_s20 = smov 3  ;;  %3290 = vst.msk [vmem:[%s6168_s1 + $0x18] sm:$0xff] %vm1649_vm12, %v1785_v8  }
 0x14c   :  { %v3511_v59 = vld [vmem:[%s6167_s0 + $0x101] ss:$16 sm:%s2822_s22]   ;;  %s2868_s22 = smov 12  ;;  %3304 = vst.msk [vmem:[%s6168_s1 + $0x20] sm:$0xff] %vm1832_vm13, %v1853_v15  }
 0x14d   :  { %2790 = vrot.lane.b32.xlu0 %v2789_v52, %s3559_s18  ;;  %v3512_v62 = vld [vmem:[%s6167_s0 + $0x101] ss:$16 sm:%s2827_s25]   ;;  %2859 = vrot.lane.b32.xlu1 %v2858_v58, %s3559_s18  ;;  %v2825_v0 = vsel %vm6_vm0, %v3511_v59, %v3510_v57  ;;  %s2873_s25 = smov 48 }
 0x14e   :  { %v3513_v22 = vld [vmem:[%s6167_s0 + $0x101] ss:$16 sm:%s2832_s6]   ;;  %v2830_v49 = vsel %vm10_vm1, %v3512_v62, %v2825_v0  ;;  %s2878_s6 = smov 192  ;;  %v1831_v21 = vpop.permute.xlu0 %1830  }
 0x14f   :  { %v3525_v1 = vld [vmem:[%s6167_s0 + $0x381] ss:$16 sm:%s2888_s9]   ;;  %v2835_v54 = vsel %vm14_vm2, %v3513_v22, %v2830_v49  ;;  %1833 = vst.msk [vmem:[%s6168_s1] sm:$0xff] %vm1832_vm13, %v1831_v21  }
 0x150   :  { %v3526_v2 = vld [vmem:[%s6167_s0 + $0x381] ss:$16 sm:%s2891_s11]   ;;  %v1899_v23 = vpop.permute.xlu1 %1898  }
 0x151   :  { %v2894_v3 = vsel %vm6_vm0, %v3526_v2, %v3525_v1  ;;  %v3527_v5 = vld [vmem:[%s6167_s0 + $0x381] ss:$16 sm:%s2896_s16]   ;;  %2836 = vrot.lane.b32.xlu0 %v2835_v54, %s3559_s18  ;;  %3314 = vst.msk [vmem:[%s6168_s1 + $0x28] sm:$0xff] %vm1832_vm13, %v1899_v23  }
 0x152   :  { %v3528_v7 = vld [vmem:[%s6167_s0 + $0x381] ss:$16 sm:%s2901_s17]   ;;  %v2899_v9 = vsel %vm10_vm1, %v3527_v5, %v2894_v3 }
 0x153   :  { %v3520_v10 = vld [vmem:[%s6167_s0 + $0x181] ss:$16 sm:%s2865_s20]   ;;  %v2904_v61 = vsel %vm14_vm2, %v3528_v7, %v2899_v9  ;;  %v1876_v24 = vpop.permute.xlu0 %1875  }
 0x154   :  { %v3521_v11 = vld [vmem:[%s6167_s0 + $0x181] ss:$16 sm:%s2868_s22]   ;;  %2905 = vrot.lane.b32.xlu1 %v2904_v61, %s3559_s18  ;;  %3309 = vst.msk [vmem:[%s6168_s1 + $0x8] sm:$0xff] %vm1832_vm13, %v1876_v24  }
 0x155   :  { %v3522_v13 = vld [vmem:[%s6167_s0 + $0x181] ss:$16 sm:%s2873_s25]   ;;  %v2871_v17 = vsel %vm6_vm0, %v3521_v11, %v3520_v10  ;;  %vm2381_vm0 = vcmask 130144  }
 0x156   :  { %v3523_v18 = vld [vmem:[%s6167_s0 + $0x181] ss:$16 sm:%s2878_s6]   ;;  %v2876_v19 = vsel %vm10_vm1, %v3522_v13, %v2871_v17  ;;  %v1945_v28 = vpop.permute.xlu1 %1944   ;;  %vm2564_vm1 = vcmask 97344  }
 0x157   :  { %v2881_v20 = vsel %vm14_vm2, %v3523_v18, %v2876_v19  ;;  %3324 = vst.msk [vmem:[%s6168_s1 + $0x30] sm:$0xff] %vm1832_vm13, %v1945_v28   ;;  %vm2747_vm2 = vcmask 64544  }
 0x158   :  { %2882 = vrot.lane.b32.xlu0 %v2881_v20, %s3559_s18 }
 0x159   :  { %v1922_v25 = vpop.permute.xlu0 %1921  }
 0x15a   :  { %3319 = vst.msk [vmem:[%s6168_s1 + $0x10] sm:$0xff] %vm1832_vm13, %v1922_v25  }
 0x15d   :  { %v1991_v26 = vpop.permute.xlu1 %1990  }
 0x15e   :  { %3334 = vst.msk [vmem:[%s6168_s1 + $0x38] sm:$0xff] %vm1832_vm13, %v1991_v26  }
 0x161   :  { %v1968_v60 = vpop.permute.xlu0 %1967   ;;  %v2036_v27 = vpop.permute.xlu1 %2035  }
 0x162   :  { %3329 = vst.msk [vmem:[%s6168_s1 + $0x18] sm:$0xff] %vm1832_vm13, %v1968_v60  }
 0x163   :  { %3343 = vst.msk [vmem:[%s6168_s1 + $0x20] sm:$0xff] %vm2015_vm14, %v2036_v27  }
 0x165   :  { %v2014_v29 = vpop.permute.xlu0 %2013  }
 0x166   :  { %2016 = vst.msk [vmem:[%s6168_s1] sm:$0xff] %vm2015_vm14, %v2014_v29  }
 0x167   :  { %v2082_v30 = vpop.permute.xlu1 %2081  }
 0x168   :  { %3353 = vst.msk [vmem:[%s6168_s1 + $0x28] sm:$0xff] %vm2015_vm14, %v2082_v30  }
 0x16a   :  { %v2059_v32 = vpop.permute.xlu0 %2058  }
 0x16b   :  { %3348 = vst.msk [vmem:[%s6168_s1 + $0x8] sm:$0xff] %vm2015_vm14, %v2059_v32  }
 0x16d   :  { %v2128_v31 = vpop.permute.xlu1 %2127  }
 0x16e   :  { %3363 = vst.msk [vmem:[%s6168_s1 + $0x30] sm:$0xff] %vm2015_vm14, %v2128_v31  }
 0x170   :  { %v2105_v33 = vpop.permute.xlu0 %2104  }
 0x171   :  { %3358 = vst.msk [vmem:[%s6168_s1 + $0x10] sm:$0xff] %vm2015_vm14, %v2105_v33  }
 0x174   :  { %v2174_v4 = vpop.permute.xlu1 %2173  }
 0x175   :  { %3373 = vst.msk [vmem:[%s6168_s1 + $0x38] sm:$0xff] %vm2015_vm14, %v2174_v4  }
 0x178   :  { %v2151_v34 = vpop.permute.xlu0 %2150   ;;  %v2219_v35 = vpop.permute.xlu1 %2218  }
 0x179   :  { %3368 = vst.msk [vmem:[%s6168_s1 + $0x18] sm:$0xff] %vm2015_vm14, %v2151_v34  }
 0x17a   :  { %3382 = vst.msk [vmem:[%s6168_s1 + $0x20] sm:$0xff] %vm2198_vm15, %v2219_v35  }
 0x17c   :  { %v2197_v38 = vpop.permute.xlu0 %2196  }
 0x17d   :  { %2199 = vst.msk [vmem:[%s6168_s1] sm:$0xff] %vm2198_vm15, %v2197_v38  }
 0x17e   :  { %v2265_v6 = vpop.permute.xlu1 %2264  }
 0x17f   :  { %3392 = vst.msk [vmem:[%s6168_s1 + $0x28] sm:$0xff] %vm2198_vm15, %v2265_v6  }
 0x181   :  { %v2242_v36 = vpop.permute.xlu0 %2241  }
 0x182   :  { %3387 = vst.msk [vmem:[%s6168_s1 + $0x8] sm:$0xff] %vm2198_vm15, %v2242_v36  }
 0x184   :  { %v2311_v37 = vpop.permute.xlu1 %2310  }
 0x185   :  { %3402 = vst.msk [vmem:[%s6168_s1 + $0x30] sm:$0xff] %vm2198_vm15, %v2311_v37  }
 0x187   :  { %v2288_v39 = vpop.permute.xlu0 %2287  }
 0x188   :  { %3397 = vst.msk [vmem:[%s6168_s1 + $0x10] sm:$0xff] %vm2198_vm15, %v2288_v39  }
 0x18b   :  { %v2357_v40 = vpop.permute.xlu1 %2356  }
 0x18c   :  { %3412 = vst.msk [vmem:[%s6168_s1 + $0x38] sm:$0xff] %vm2198_vm15, %v2357_v40  }
 0x18f   :  { %v2334_v41 = vpop.permute.xlu0 %2333   ;;  %v2402_v16 = vpop.permute.xlu1 %2401  }
 0x190   :  { %3407 = vst.msk [vmem:[%s6168_s1 + $0x18] sm:$0xff] %vm2198_vm15, %v2334_v41  }
 0x191   :  { %3421 = vst.msk [vmem:[%s6168_s1 + $0x20] sm:$0xff] %vm2381_vm0, %v2402_v16  }
 0x193   :  { %v2380_v12 = vpop.permute.xlu0 %2379  }
 0x194   :  { %2382 = vst.msk [vmem:[%s6168_s1] sm:$0xff] %vm2381_vm0, %v2380_v12  }
 0x195   :  { %v2448_v42 = vpop.permute.xlu1 %2447  }
 0x196   :  { %3431 = vst.msk [vmem:[%s6168_s1 + $0x28] sm:$0xff] %vm2381_vm0, %v2448_v42  }
 0x198   :  { %v2425_v43 = vpop.permute.xlu0 %2424  }
 0x199   :  { %3426 = vst.msk [vmem:[%s6168_s1 + $0x8] sm:$0xff] %vm2381_vm0, %v2425_v43  }
 0x19b   :  { %v2494_v45 = vpop.permute.xlu1 %2493  }
 0x19c   :  { %3441 = vst.msk [vmem:[%s6168_s1 + $0x30] sm:$0xff] %vm2381_vm0, %v2494_v45   ;;  %v2471_v46 = vpop.permute.xlu0 %2470  }
 0x19d   :  { %3436 = vst.msk [vmem:[%s6168_s1 + $0x10] sm:$0xff] %vm2381_vm0, %v2471_v46  }
 0x19f   :  { %v2540_v47 = vpop.permute.xlu1 %2539  }
 0x1a0   :  { %3451 = vst.msk [vmem:[%s6168_s1 + $0x38] sm:$0xff] %vm2381_vm0, %v2540_v47  }
 0x1a2   :  { %v2517_v48 = vpop.permute.xlu0 %2516  }
 0x1a3   :  { %3446 = vst.msk [vmem:[%s6168_s1 + $0x18] sm:$0xff] %vm2381_vm0, %v2517_v48   ;;  %v2585_v50 = vpop.permute.xlu1 %2584  }
 0x1a4   :  { %3460 = vst.msk [vmem:[%s6168_s1 + $0x20] sm:$0xff] %vm2564_vm1, %v2585_v50  }
 0x1a6   :  { %v2563_v51 = vpop.permute.xlu0 %2562  }
 0x1a7   :  { %2565 = vst.msk [vmem:[%s6168_s1] sm:$0xff] %vm2564_vm1, %v2563_v51   ;;  %v2631_v52 = vpop.permute.xlu1 %2630  }
 0x1a8   :  { %3470 = vst.msk [vmem:[%s6168_s1 + $0x28] sm:$0xff] %vm2564_vm1, %v2631_v52  }
 0x1aa   :  { %v2608_v14 = vpop.permute.xlu0 %2607  }
 0x1ab   :  { %3465 = vst.msk [vmem:[%s6168_s1 + $0x8] sm:$0xff] %vm2564_vm1, %v2608_v14   ;;  %v2677_v53 = vpop.permute.xlu1 %2676  }
 0x1ac   :  { %3480 = vst.msk [vmem:[%s6168_s1 + $0x30] sm:$0xff] %vm2564_vm1, %v2677_v53  }
 0x1af   :  { %v2654_v55 = vpop.permute.xlu0 %2653  }
 0x1b0   :  { %3475 = vst.msk [vmem:[%s6168_s1 + $0x10] sm:$0xff] %vm2564_vm1, %v2654_v55  }
 0x1b3   :  { %v2723_v56 = vpop.permute.xlu1 %2722  }
 0x1b4   :  { %3490 = vst.msk [vmem:[%s6168_s1 + $0x38] sm:$0xff] %vm2564_vm1, %v2723_v56  }
 0x1b7   :  { %v2700_v44 = vpop.permute.xlu0 %2699   ;;  %v2768_v57 = vpop.permute.xlu1 %2767  }
 0x1b8   :  { %3485 = vst.msk [vmem:[%s6168_s1 + $0x18] sm:$0xff] %vm2564_vm1, %v2700_v44  }
 0x1b9   :  { %3499 = vst.msk [vmem:[%s6168_s1 + $0x20] sm:$0xff] %vm2747_vm2, %v2768_v57  }
 0x1bb   :  { %v2746_v58 = vpop.permute.xlu0 %2745   ;;  %v2814_v59 = vpop.permute.xlu1 %2813  }
 0x1bc   :  { %2748 = vst.msk [vmem:[%s6168_s1] sm:$0xff] %vm2747_vm2, %v2746_v58   ;;  %3509 = vst.msk [vmem:[%s6168_s1 + $0x28] sm:$0xff] %vm2747_vm2, %v2814_v59  }
 0x1bf   :  { %v2791_v62 = vpop.permute.xlu0 %2790   ;;  %v2860_v63 = vpop.permute.xlu1 %2859  }
 0x1c0   :  { %3504 = vst.msk [vmem:[%s6168_s1 + $0x8] sm:$0xff] %vm2747_vm2, %v2791_v62   ;;  %3519 = vst.msk [vmem:[%s6168_s1 + $0x30] sm:$0xff] %vm2747_vm2, %v2860_v63  }
 0x1c3   :  { %v2837_v0 = vpop.permute.xlu0 %2836  }
 0x1c4   :  { %3514 = vst.msk [vmem:[%s6168_s1 + $0x10] sm:$0xff] %vm2747_vm2, %v2837_v0  }
 0x1c6   :  { %v2906_v22 = vpop.permute.xlu1 %2905  }
 0x1c7   :  { %3529 = vst.msk [vmem:[%s6168_s1 + $0x38] sm:$0xff] %vm2747_vm2, %v2906_v22  }
 0x1ca   :  { %v2883_v49 = vpop.permute.xlu0 %2882  }
 0x1cb   :  { %3524 = vst.msk [vmem:[%s6168_s1 + $0x18] sm:$0xff] %vm2747_vm2, %v2883_v49  }

// kernel: tile.26
= control target key start
LH: loop header
LB: loop body
LE: loop exit
PB: predicated region body
PF: predicated region fallthrough
CT: control target
= control target key end

     0   :  { %s40_s0 = inlined_call_operand.vmem [shape: f32[4], index: 0, kind: input, shape index: {}]   ;;  %s41_s1 = inlined_call_operand.vmem [shape: f32[32,4], index: 1, kind: output, shape index: {}]  }
   0x1   :  { %v4_v0 = vld [vmem:[%s40_s0] ss:$0 sm:$0xff] }
   0x2   :  { %5 = vst [vmem:[%s41_s1] sm:$0xff] %v4_v0  ;;  %12 = vst [vmem:[%s41_s1 + $0x8] sm:$0xff] %v4_v0 }
   0x3   :  { %13 = vst [vmem:[%s41_s1 + $0x10] sm:$0xff] %v4_v0  ;;  %14 = vst [vmem:[%s41_s1 + $0x18] sm:$0xff] %v4_v0 }

// kernel: tile.27
= control target key start
LH: loop header
LB: loop body
LE: loop exit
PB: predicated region body
PF: predicated region fallthrough
CT: control target
= control target key end

     0   :  { %s259_s10 = smov 124   ;;  %s260_s11 = smov 116   ;;  %vm3_vm0 = vcmask 31744   ;;  %vm9_vm1 = vcmask 1048544   ;;  %vm15_vm2 = vcmask 1015744   ;;  %vm21_vm3 = vcmask 982944   ;;  %s399_s0 = inlined_call_operand.vmem [shape: f32[32,4], index: 0, kind: input, shape index: {}]   ;;  %s400_s1 = inlined_call_operand.vmem [shape: f32[1,128], index: 1, kind: output, shape index: {}]  }
   0x1   :  { %v197_v0 = vld [vmem:[%s399_s0 + $0x1f] sm:$0x1]   ;;  %v199_v1 = vld [vmem:[%s399_s0 + $0x1d] sm:$0x1]   ;;  %v198_v2 = vld [vmem:[%s399_s0 + $0x1e] sm:$0x1]  }
   0x2   :  { %7 = vrot.lane.b32.xlu0 %v197_v0, %s259_s10  ;;  %19 = vrot.lane.b32.xlu1 %v199_v1, %s260_s11  ;;  %v200_v3 = vld [vmem:[%s399_s0 + $0x1c] sm:$0x1]   ;;  %s261_s16 = smov 120   ;;  %s262_s17 = smov 112   ;;  %v201_v4 = vld [vmem:[%s399_s0 + $0x1b] sm:$0x1]  }
   0x3   :  { %v202_v5 = vld [vmem:[%s399_s0 + $0x1a] sm:$0x1]   ;;  %s263_s22 = smov 108   ;;  %s264_s23 = smov 104   ;;  %v203_v6 = vld [vmem:[%s399_s0 + $0x19] sm:$0x1]  }
   0x4   :  { %v204_v7 = vld [vmem:[%s399_s0 + $0x18] sm:$0x1]   ;;  %s265_s28 = smov 100   ;;  %s266_s29 = smov 96   ;;  %v205_v8 = vld [vmem:[%s399_s0 + $0x17] sm:$0x1]  }
   0x5   :  { %v206_v9 = vld [vmem:[%s399_s0 + $0x16] sm:$0x1]   ;;  %v2_v10 = vld [vmem:[%s399_s0] sm:$0x1]   ;;  %s267_s7 = smov 92   ;;  %s268_s8 = smov 88  }
   0x6   :  { %13 = vrot.lane.b32.xlu0 %v198_v2, %s261_s16  ;;  %25 = vrot.lane.b32.xlu1 %v200_v3, %s262_s17  ;;  %4 = vst.msk [vmem:[#allocation0] sm:$0x1] %vm3_vm0, %v2_v10   ;;  %v207_v11 = vld [vmem:[%s399_s0 + $0x15] sm:$0x1]   ;;  %v208_v12 = vld [vmem:[%s399_s0 + $0x14] sm:$0x1]  }
   0x7   :  { %s269_s13 = smov 84   ;;  %s270_s14 = smov 80   ;;  %v209_v13 = vld [vmem:[%s399_s0 + $0x13] sm:$0x1]   ;;  %v210_v14 = vld [vmem:[%s399_s0 + $0x12] sm:$0x1]  }
   0x8   :  { %s271_s19 = smov 76   ;;  %s272_s20 = smov 72   ;;  %v211_v15 = vld [vmem:[%s399_s0 + $0x11] sm:$0x1]   ;;  %v212_v16 = vld [vmem:[%s399_s0 + $0x10] sm:$0x1]  }
   0x9   :  { %s273_s25 = smov 68   ;;  %s274_s26 = smov 64   ;;  %v213_v17 = vld [vmem:[%s399_s0 + $0xf] sm:$0x1]   ;;  %v214_v18 = vld [vmem:[%s399_s0 + $0xe] sm:$0x1]  }
   0xa   :  { %31 = vrot.lane.b32.xlu0 %v201_v4, %s263_s22  ;;  %37 = vrot.lane.b32.xlu1 %v202_v5, %s264_s23  ;;  %s275_s2 = smov 60   ;;  %s276_s3 = smov 56   ;;  %v215_v19 = vld [vmem:[%s399_s0 + $0xd] sm:$0x1]   ;;  %v216_v20 = vld [vmem:[%s399_s0 + $0xc] sm:$0x1]  }
   0xb   :  { %s278_s9 = smov 48   ;;  %v217_v21 = vld [vmem:[%s399_s0 + $0xb] sm:$0x1]   ;;  %v218_v22 = vld [vmem:[%s399_s0 + $0xa] sm:$0x1]   ;;  %s280_s15 = smov 40  }
   0xc   :  { %v219_v23 = vld [vmem:[%s399_s0 + $0x9] sm:$0x1]   ;;  %v220_v24 = vld [vmem:[%s399_s0 + $0x8] sm:$0x1]   ;;  %s282_s21 = smov 32   ;;  %s284_s27 = smov 24  }
   0xd   :  { %v221_v25 = vld [vmem:[%s399_s0 + $0x7] sm:$0x1]   ;;  %v222_v26 = vld [vmem:[%s399_s0 + $0x6] sm:$0x1]   ;;  %v223_v27 = vld [vmem:[%s399_s0 + $0x5] sm:$0x1]  }
   0xe   :  { %43 = vrot.lane.b32.xlu0 %v203_v6, %s265_s28  ;;  %49 = vrot.lane.b32.xlu1 %v204_v7, %s266_s29  ;;  %v224_v28 = vld [vmem:[%s399_s0 + $0x4] sm:$0x1]   ;;  %s286_s4 = smov 16   ;;  %v225_v29 = vld [vmem:[%s399_s0 + $0x3] sm:$0x1]   ;;  %s288_s10 = smov 8  }
   0xf   :  { %v226_v30 = vld [vmem:[%s399_s0 + $0x2] sm:$0x1]   ;;  %v227_v31 = vld [vmem:[%s399_s0 + $0x1] sm:$0x1]   ;;  %s289_s0 = smov 4   ;;  %vm27_vm4 = vcmask 950144  }
  0x10   :  { %vm33_vm5 = vcmask 917344   ;;  %vm39_vm6 = vcmask 884544   ;;  %vm45_vm7 = vcmask 851744   ;;  %vm51_vm8 = vcmask 818944  }
  0x11   :  { %vm57_vm9 = vcmask 786144   ;;  %vm63_vm10 = vcmask 753344   ;;  %vm69_vm11 = vcmask 720544   ;;  %vm75_vm12 = vcmask 687744  }
  0x12   :  { %55 = vrot.lane.b32.xlu0 %v205_v8, %s267_s7  ;;  %61 = vrot.lane.b32.xlu1 %v206_v9, %s268_s8  ;;  %s277_s8 = smov 52   ;;  %vm81_vm13 = vcmask 654944   ;;  %vm87_vm14 = vcmask 622144   ;;  %vm93_vm15 = vcmask 589344   ;;  %vm99_vm0 = vcmask 556544  }
  0x16   :  { %67 = vrot.lane.b32.xlu0 %v207_v11, %s269_s13  ;;  %73 = vrot.lane.b32.xlu1 %v208_v12, %s270_s14  ;;  %s279_s14 = smov 44  }
  0x1a   :  { %79 = vrot.lane.b32.xlu0 %v209_v13, %s271_s19  ;;  %85 = vrot.lane.b32.xlu1 %v210_v14, %s272_s20  ;;  %s281_s20 = smov 36  }
  0x1e   :  { %91 = vrot.lane.b32.xlu0 %v211_v15, %s273_s25  ;;  %97 = vrot.lane.b32.xlu1 %v212_v16, %s274_s26  ;;  %s283_s26 = smov 28  }
  0x22   :  { %103 = vrot.lane.b32.xlu0 %v213_v17, %s275_s2  ;;  %109 = vrot.lane.b32.xlu1 %v214_v18, %s276_s3  ;;  %s285_s3 = smov 20  }
  0x26   :  { %115 = vrot.lane.b32.xlu0 %v215_v19, %s277_s8  ;;  %121 = vrot.lane.b32.xlu1 %v216_v20, %s278_s9  ;;  %s287_s9 = smov 12  }
  0x2a   :  { %127 = vrot.lane.b32.xlu0 %v217_v21, %s279_s14  ;;  %133 = vrot.lane.b32.xlu1 %v218_v22, %s280_s15 }
  0x2e   :  { %139 = vrot.lane.b32.xlu0 %v219_v23, %s281_s20  ;;  %145 = vrot.lane.b32.xlu1 %v220_v24, %s282_s21 }
  0x32   :  { %151 = vrot.lane.b32.xlu0 %v221_v25, %s283_s26  ;;  %157 = vrot.lane.b32.xlu1 %v222_v26, %s284_s27 }
  0x36   :  { %163 = vrot.lane.b32.xlu0 %v223_v27, %s285_s3  ;;  %169 = vrot.lane.b32.xlu1 %v224_v28, %s286_s4 }
  0x3a   :  { %175 = vrot.lane.b32.xlu0 %v225_v29, %s287_s9  ;;  %181 = vrot.lane.b32.xlu1 %v226_v30, %s288_s10 }
  0x3e   :  { %187 = vrot.lane.b32.xlu0 %v227_v31, %s289_s0 }
  0x74   :  { %v8_v32 = vpop.permute.xlu0 %7   ;;  %v20_v33 = vpop.permute.xlu1 %19  }
  0x75   :  { %10 = vst.msk [vmem:[#allocation0] sm:$0x1] %vm9_vm1, %v8_v32   ;;  %vm105_vm1 = vcmask 523744  }
  0x78   :  { %v14_v34 = vpop.permute.xlu0 %13   ;;  %v26_v35 = vpop.permute.xlu1 %25  }
  0x79   :  { %16 = vst.msk [vmem:[#allocation0] sm:$0x1] %vm15_vm2, %v14_v34   ;;  %vm111_vm2 = vcmask 490944  }
  0x7a   :  { %22 = vst.msk [vmem:[#allocation0] sm:$0x1] %vm21_vm3, %v20_v33   ;;  %vm117_vm3 = vcmask 458144  }
  0x7b   :  { %28 = vst.msk [vmem:[#allocation0] sm:$0x1] %vm27_vm4, %v26_v35   ;;  %vm123_vm4 = vcmask 425344  }
  0x7c   :  { %v32_v36 = vpop.permute.xlu0 %31   ;;  %v38_v37 = vpop.permute.xlu1 %37  }
  0x7d   :  { %34 = vst.msk [vmem:[#allocation0] sm:$0x1] %vm33_vm5, %v32_v36   ;;  %vm129_vm5 = vcmask 392544  }
  0x7e   :  { %40 = vst.msk [vmem:[#allocation0] sm:$0x1] %vm39_vm6, %v38_v37   ;;  %vm135_vm6 = vcmask 359744  }
  0x80   :  { %v44_v38 = vpop.permute.xlu0 %43   ;;  %v50_v39 = vpop.permute.xlu1 %49  }
  0x81   :  { %46 = vst.msk [vmem:[#allocation0] sm:$0x1] %vm45_vm7, %v44_v38   ;;  %vm141_vm7 = vcmask 326944  }
  0x82   :  { %52 = vst.msk [vmem:[#allocation0] sm:$0x1] %vm51_vm8, %v50_v39   ;;  %vm147_vm8 = vcmask 294144  }
  0x84   :  { %v56_v40 = vpop.permute.xlu0 %55   ;;  %v62_v41 = vpop.permute.xlu1 %61  }
  0x85   :  { %58 = vst.msk [vmem:[#allocation0] sm:$0x1] %vm57_vm9, %v56_v40   ;;  %vm153_vm9 = vcmask 261344  }
  0x86   :  { %64 = vst.msk [vmem:[#allocation0] sm:$0x1] %vm63_vm10, %v62_v41   ;;  %vm159_vm10 = vcmask 228544  }
  0x88   :  { %v68_v42 = vpop.permute.xlu0 %67   ;;  %v74_v43 = vpop.permute.xlu1 %73  }
  0x89   :  { %70 = vst.msk [vmem:[#allocation0] sm:$0x1] %vm69_vm11, %v68_v42   ;;  %vm165_vm11 = vcmask 195744  }
  0x8a   :  { %76 = vst.msk [vmem:[#allocation0] sm:$0x1] %vm75_vm12, %v74_v43   ;;  %vm171_vm12 = vcmask 162944  }
  0x8c   :  { %v80_v44 = vpop.permute.xlu0 %79   ;;  %v86_v45 = vpop.permute.xlu1 %85  }
  0x8d   :  { %82 = vst.msk [vmem:[#allocation0] sm:$0x1] %vm81_vm13, %v80_v44   ;;  %vm177_vm13 = vcmask 130144  }
  0x8e   :  { %88 = vst.msk [vmem:[#allocation0] sm:$0x1] %vm87_vm14, %v86_v45   ;;  %vm183_vm14 = vcmask 97344  }
  0x90   :  { %v92_v46 = vpop.permute.xlu0 %91   ;;  %v98_v47 = vpop.permute.xlu1 %97  }
  0x91   :  { %94 = vst.msk [vmem:[#allocation0] sm:$0x1] %vm93_vm15, %v92_v46   ;;  %vm189_vm15 = vcmask 64544  }
  0x92   :  { %100 = vst.msk [vmem:[#allocation0] sm:$0x1] %vm99_vm0, %v98_v47  }
  0x94   :  { %v104_v48 = vpop.permute.xlu0 %103   ;;  %v110_v49 = vpop.permute.xlu1 %109  }
  0x95   :  { %106 = vst.msk [vmem:[#allocation0] sm:$0x1] %vm105_vm1, %v104_v48  }
  0x96   :  { %112 = vst.msk [vmem:[#allocation0] sm:$0x1] %vm111_vm2, %v110_v49  }
  0x98   :  { %v116_v50 = vpop.permute.xlu0 %115   ;;  %v122_v51 = vpop.permute.xlu1 %121  }
  0x99   :  { %118 = vst.msk [vmem:[#allocation0] sm:$0x1] %vm117_vm3, %v116_v50  }
  0x9a   :  { %124 = vst.msk [vmem:[#allocation0] sm:$0x1] %vm123_vm4, %v122_v51  }
  0x9c   :  { %v128_v52 = vpop.permute.xlu0 %127   ;;  %v134_v53 = vpop.permute.xlu1 %133  }
  0x9d   :  { %130 = vst.msk [vmem:[#allocation0] sm:$0x1] %vm129_vm5, %v128_v52  }
  0x9e   :  { %136 = vst.msk [vmem:[#allocation0] sm:$0x1] %vm135_vm6, %v134_v53  }
  0xa0   :  { %v140_v54 = vpop.permute.xlu0 %139   ;;  %v146_v55 = vpop.permute.xlu1 %145  }
  0xa1   :  { %142 = vst.msk [vmem:[#allocation0] sm:$0x1] %vm141_vm7, %v140_v54  }
  0xa2   :  { %148 = vst.msk [vmem:[#allocation0] sm:$0x1] %vm147_vm8, %v146_v55  }
  0xa4   :  { %v152_v56 = vpop.permute.xlu0 %151   ;;  %v158_v57 = vpop.permute.xlu1 %157  }
  0xa5   :  { %154 = vst.msk [vmem:[#allocation0] sm:$0x1] %vm153_vm9, %v152_v56  }
  0xa6   :  { %160 = vst.msk [vmem:[#allocation0] sm:$0x1] %vm159_vm10, %v158_v57  }
  0xa8   :  { %v164_v58 = vpop.permute.xlu0 %163   ;;  %v170_v59 = vpop.permute.xlu1 %169  }
  0xa9   :  { %166 = vst.msk [vmem:[#allocation0] sm:$0x1] %vm165_vm11, %v164_v58  }
  0xaa   :  { %172 = vst.msk [vmem:[#allocation0] sm:$0x1] %vm171_vm12, %v170_v59  }
  0xac   :  { %v176_v60 = vpop.permute.xlu0 %175   ;;  %v182_v61 = vpop.permute.xlu1 %181  }
  0xad   :  { %178 = vst.msk [vmem:[#allocation0] sm:$0x1] %vm177_vm13, %v176_v60  }
  0xae   :  { %184 = vst.msk [vmem:[#allocation0] sm:$0x1] %vm183_vm14, %v182_v61  }
  0xb0   :  { %v188_v62 = vpop.permute.xlu0 %187  }
  0xb1   :  { %190 = vst.msk [vmem:[#allocation0] sm:$0x1] %vm189_vm15, %v188_v62  }
  0xb8   :  { %v194_v63 = vld [vmem:[#allocation0] sm:$0x1] }
  0xb9   :  { %196 = vst [vmem:[%s400_s1] sm:$0x1] %v194_v63 }

// kernel: sl_baseblock.1
= control target key start
LH: loop header
LB: loop body
LE: loop exit
PB: predicated region body
PF: predicated region fallthrough
CT: control target
= control target key end

     0   :  { %v37_v0 = vlaneseq  ;;  %vm97_vm2 = vcmask 130048   ;;  %v17655_v21 = vmov 0.0   ;;  %vm14510_vm12 = vmmov 0   ;;  %s17640_s0 = inlined_call_operand.vmem [shape: f32[16,128], index: 0, kind: input, shape index: {}]   ;;  %s17641_s1 = inlined_call_operand.vmem [shape: f32[3,128,128], index: 1, kind: input, shape index: {}]   ;;  %s17642_s9 = inlined_call_operand.vmem [shape: f32[128,128], index: 9, kind: input, shape index: {}]   ;;  %s17643_s3 = inlined_call_operand.vmem [shape: f32[1,128], index: 3, kind: input, shape index: {}]   ;;  %s17644_s4 = inlined_call_operand.vmem [shape: f32[1,128], index: 4, kind: input, shape index: {}]   ;;  %s17645_s5 = inlined_call_operand.vmem [shape: f32[1,128], index: 5, kind: input, shape index: {}]   ;;  %s17646_s2 = inlined_call_operand.vmem [shape: f32[3,128,128], index: 2, kind: input, shape index: {}]   ;;  %s17647_s6 = inlined_call_operand.vmem [shape: f32[1,128], index: 6, kind: input, shape index: {}]   ;;  %s17648_s7 = inlined_call_operand.vmem [shape: f32[1,128], index: 7, kind: input, shape index: {}]   ;;  %s17649_s8 = inlined_call_operand.vmem [shape: f32[1,128], index: 8, kind: input, shape index: {}]   ;;  %s17650_s10 = inlined_call_operand.vmem [shape: f32[16,128], index: 10, kind: output, shape index: {}]  }
   0x1   :  { %v35_v1 = vld [vmem:[%s17640_s0] sm:$0xff]  ;;  %v36_v2 = vld [vmem:[%s17640_s0 + $0x8] sm:$0xff]  ;;  %v14694_v43 = vld [vmem:[%s17641_s1 + $0x10] sm:$0xff] }
   0x2   :  { %v14572_v3 = vand.u32 4294901760, %v35_v1  ;;  %v14574_v4 = vand.u32 4294901760, %v36_v2  ;;  %v14576_v5 = vshrl.u32 %v37_v0, 7  ;;  %v14578_v6 = vand.u32 127, %v37_v0  ;;  %v1131_v38 = vld [vmem:[%s17641_s1] sm:$0xff]  ;;  %v1132_v39 = vld [vmem:[%s17641_s1 + $0x8] sm:$0xff] }
   0x3   :  { %v1148_v40 = vand.u32 4294901760, %v1131_v38  ;;  %v1151_v41 = vand.u32 4294901760, %v1132_v39  ;;  %v14699_v44 = vld [vmem:[%s17641_s1 + $0x18] sm:$0xff]  ;;  %v17654_v45 = vand.u32 4294901760, %v14694_v43  ;;  %v14714_v47 = vld [vmem:[%s17641_s1 + $0x20] sm:$0xff]  ;;  %v14719_v48 = vld [vmem:[%s17641_s1 + $0x28] sm:$0xff] }
   0x4   :  { %17796 = vst [vmem:[#allocation2_spill] sm:$0xff] %v14576_v5  ;;  %v14582_v7 = vpack.c.bf16 %v14574_v4, %v14572_v3  ;;  %v14585_v8 = vsub.f32 %v35_v1, %v14572_v3  ;;  %v14588_v9 = vsub.f32 %v36_v2, %v14574_v4  ;;  %v42_v10 = vsub.s32 %v14576_v5, %v14578_v6  ;;  %v1137_v53 = vld [vmem:[%s17641_s1 + $0x30] sm:$0xff]  ;;  %v1138_v54 = vld [vmem:[%s17641_s1 + $0x38] sm:$0xff]  ;;  %v1139_v57 = vld [vmem:[%s17641_s1 + $0x40] sm:$0xff] }
   0x5   :  { %v50_v11 = vand.u32 7, %v14576_v5  ;;  %v14594_v12 = vadd.s32 8, %v14576_v5  ;;  %v14689_v42 = vpack.c.bf16 %v1151_v41, %v1148_v40  ;;  %v17653_v46 = vand.u32 4294901760, %v14699_v44  ;;  %v1140_v58 = vld [vmem:[%s17641_s1 + $0x48] sm:$0xff]  ;;  %v1141_v63 = vld [vmem:[%s17641_s1 + $0x50] sm:$0xff]  ;;  %v1142_v0 = vld [vmem:[%s17641_s1 + $0x58] sm:$0xff] }
   0x6   :  { %v14598_v13 = vpack.c.bf16 %v14588_v9, %v14585_v8  ;;  %vm14600_vm0 = vcmp.eq.s32.totalorder %v42_v10, 1  ;;  %12529 = vmatprep.subr.bf16.mxu1 %v14582_v7  ;;  %v14606_v15 = vand.u32 4294901760, %v14585_v8  ;;  %v14609_v16 = vand.u32 4294901760, %v14588_v9  ;;  %v1144_v14 = vld [vmem:[%s17641_s1 + $0x68] sm:$0xff] }
   0x7   :  { %vm70_vm1 = vcmp.ne.s32.totalorder %v50_v11, 0  ;;  %v43_v17 = vsub.s32 %v14594_v12, %v14578_v6  ;;  %v57_v18 = vand.u32 7, %v14594_v12  ;;  %12531 = vmatpush3.bf16.msra.mxu1 %v14582_v7  ;;  %v14725_v49 = vpack.c.bf16 %v17653_v46, %v17654_v45  ;;  %v1143_v11 = vld [vmem:[%s17641_s1 + $0x60] sm:$0xff] }
   0x8   :  { %17799 = vst [vmem:[#allocation3_spill] sm:$0xff] %v14609_v16  ;;  %12537 = vmatprep.subr.bf16.mxu0 %v14598_v13  ;;  %vm72_vm3 = vmand %vm14600_vm0, %vm70_vm1  ;;  %v195_v19 = vsub.f32 %v14585_v8, %v14606_v15  ;;  %v202_v20 = vsub.f32 %v14588_v9, %v14609_v16  ;;  %v14652_v32 = vpack.c.bf16 %v14609_v16, %v14606_v15  ;;  %v17652_v50 = vand.u32 4294901760, %v14714_v47 }
   0x9   :  { %12539 = vmatpush3.bf16.msra.mxu0 %v14598_v13  ;;  %v14624_v22 = vsel %vm72_vm3, 1.0, %v17655_v21  ;;  %vm45_vm4 = vcmp.eq.s32.totalorder %v43_v17, 1  ;;  %vm71_vm5 = vcmp.ne.s32.totalorder %v57_v18, 0  ;;  %v17651_v51 = vand.u32 4294901760, %v14719_v48 }
   0xa   :  { %17800 = vst [vmem:[#allocation4_spill] sm:$0xff] %v14624_v22  ;;  %v99_v23 = vsel %vm97_vm2, %v14624_v22, 0  ;;  %vm73_vm6 = vmand %vm45_vm4, %vm71_vm5  ;;  %12541 = vmatprep.subr.bf16.mxu0 %v14582_v7  ;;  %v14629_v24 = vand.u32 4294901760, %v195_v19  ;;  %v14631_v25 = vand.u32 4294901760, %v202_v20  ;;  %v1166_v55 = vand.u32 4294901760, %v1137_v53 }
   0xb   :  { %v14633_v26 = vsub.f32 %v99_v23, %v99_v23  ;;  %v14636_v27 = vsel %vm73_vm6, 1.0, %v17655_v21  ;;  %v14737_v52 = vpack.c.bf16 %v17651_v51, %v17652_v50  ;;  %v1169_v56 = vand.u32 4294901760, %v1138_v54 }
   0xc   :  { %17802 = vst [vmem:[#allocation6_spill] sm:$0xff] %v14636_v27  ;;  %v102_v28 = vsel %vm97_vm2, %v14636_v27, 0  ;;  %v14642_v29 = vpack.c.bf16 %v14631_v25, %v14629_v24  ;;  %v1172_v60 = vand.u32 4294901760, %v1139_v57  ;;  %v1175_v61 = vand.u32 4294901760, %v1140_v58 }
   0xd   :  { %17801 = vst [vmem:[#allocation5_spill] sm:$0xff] %v14633_v26  ;;  %10278 = vmatprep.mubr.f32.mxu0 %v14633_v26  ;;  %v14645_v30 = vsub.f32 %v102_v28, %v102_v28  ;;  %v14648_v31 = vand.u32 4294901760, %v14633_v26  ;;  %v14754_v59 = vpack.c.bf16 %v1169_v56, %v1166_v55  ;;  %v1178_v1 = vand.u32 4294901760, %v1141_v63  ;;  %v1145_v28 = vld [vmem:[%s17641_s1 + $0x70] sm:$0xff] }
   0xe   :  { %12533 = vmatprep.subr.bf16.mxu1 %v14642_v29  ;;  %v14757_v62 = vpack.c.bf16 %v1175_v61, %v1172_v60  ;;  %v1181_v2 = vand.u32 4294901760, %v1142_v0  ;;  %v1184_v17 = vand.u32 4294901760, %v1143_v11  ;;  %v1187_v18 = vand.u32 4294901760, %v1144_v14 }
   0xf   :  { %17803 = vst [vmem:[#allocation7_spill] sm:$0xff] %v14645_v30  ;;  %17804 = vst [vmem:[#allocation8_spill] sm:$0xff] %v14648_v31  ;;  %10279 = vmatmul.mubr.f32.vlgmr.msra.gmra.mrb[0].mxu0 %v14645_v30  ;;  %v174_v33 = vsub.f32 %v14633_v26, %v14648_v31  ;;  %v14659_v34 = vand.u32 4294901760, %v14645_v30  ;;  %v14780_v20 = vsub.f32 %v1131_v38, %v1148_v40 }
  0x10   :  { %12543 = vmatpush3.bf16.msra.mxu0 %v14582_v7  ;;  %10285 = vmatprep.mubr.f32.mxu0 %v14648_v31  ;;  %v14768_v10 = vpack.c.bf16 %v1181_v2, %v1178_v1  ;;  %v14778_v19 = vpack.c.bf16 %v1187_v18, %v1184_v17  ;;  %v14782_v23 = vsub.f32 %v1132_v39, %v1151_v41 }
  0x11   :  { %17805 = vst [vmem:[#allocation9_spill] sm:$0xff] %v14659_v34  ;;  %v14663_v35 = vand.u32 4294901760, %v174_v33  ;;  %v184_v36 = vsub.f32 %v14645_v30, %v14659_v34  ;;  %12545 = vmatprep.subr.bf16.mxu0 %v14652_v32  ;;  %v1146_v33 = vld [vmem:[%s17641_s1 + $0x78] sm:$0xff]  ;;  %v17659_v50 = vand.u32 4294901760, %v14780_v20  ;;  %v14809_v31 = vsub.f32 %v1138_v54, %v1169_v56 }
  0x12   :  { %v1193_v51 = vand.u32 4294901760, %v1146_v33  ;;  %v17661_v46 = vand.u32 4294901760, %v14782_v23 }
  0x13   :  { %17806 = vst [vmem:[#allocation10_spill] sm:$0xff] %v14663_v35  ;;  %10264 = vmatprep.mubr.f32.mxu1 %v14663_v35  ;;  %v14669_v37 = vand.u32 4294901760, %v184_v36  ;;  %v1190_v36 = vand.u32 4294901760, %v1145_v28  ;;  %v1252_v39 = vsub.f32 %v14780_v20, %v17659_v50  ;;  %v17662_v30 = vand.u32 4294901760, %v14809_v31 }
  0x14   :  { %v1259_v40 = vsub.f32 %v14782_v23, %v17661_v46 }
  0x15   :  { %17807 = vst [vmem:[#allocation11_spill] sm:$0xff] %v14669_v37  ;;  %10265 = vmatmul.mubr.f32.vlgmr.msra.gmra.mrb[0].mxu1 %v14669_v37  ;;  %v14794_v38 = vpack.c.bf16 %v1193_v51, %v1190_v36  ;;  %v1253_v41 = vand.u32 4294901760, %v1252_v39  ;;  %v14816_v39 = vsub.f32 %v1139_v57, %v1172_v60  ;;  %v14833_v60 = vsub.f32 %v1142_v0, %v1181_v2 }
  0x16   :  { %12535 = vmatpush3.bf16.msra.mxu1 %v14642_v29  ;;  %10271 = vmatprep.mubr.msk.f32.mxu1 %vm97_vm2, %v14624_v22  ;;  %v1260_v45 = vand.u32 4294901760, %v1259_v40  ;;  %v14818_v40 = vsub.f32 %v1140_v58, %v1175_v61  ;;  %v14831_v58 = vsub.f32 %v1141_v63, %v1178_v1  ;;  %v14847_v0 = vsub.f32 %v1143_v11, %v1184_v17 }
  0x17   :  { %10286 = vmatmul.mubr.f32.vlgmr.msra.gmra.mrb[0].mxu0 %v14659_v34  ;;  %12553 = vmatprep.subr.bf16.mxu1 %v14582_v7  ;;  %v14807_v34 = vsub.f32 %v1137_v53, %v1166_v55  ;;  %v17665_v54 = vand.u32 4294901760, %v14816_v39  ;;  %v14849_v1 = vsub.f32 %v1144_v14, %v1187_v18 }
  0x18   :  { %12547 = vmatpush3.bf16.msra.mxu0 %v14652_v32  ;;  %10292 = vmatprep.mubr.msk.f32.mxu0 %vm97_vm2, %v14624_v22  ;;  %v14804_v21 = vpack.c.bf16 %v1260_v45, %v1253_v41  ;;  %v1301_v45 = vsub.f32 %v14809_v31, %v17662_v30  ;;  %v17672_v55 = vand.u32 4294901760, %v14818_v40 }
  0x19   :  { %12549 = vmatprep.subr.bf16.mxu0 %v14582_v7  ;;  %v17663_v50 = vand.u32 4294901760, %v14807_v34  ;;  %v1308_v41 = vsub.f32 %v14816_v39, %v17665_v54 }
  0x1a   :  { %v1302_v56 = vand.u32 4294901760, %v1301_v45  ;;  %v1315_v57 = vsub.f32 %v14818_v40, %v17672_v55  ;;  %v17671_v45 = vand.u32 4294901760, %v14833_v60 }
  0x1b   :  { %v1294_v46 = vsub.f32 %v14807_v34, %v17663_v50  ;;  %v17666_v50 = vand.u32 4294901760, %v14831_v58 }
  0x1c   :  { %v1316_v30 = vand.u32 4294901760, %v1315_v57  ;;  %v1329_v63 = vsub.f32 %v14833_v60, %v17671_v45 }
  0x1d   :  { %10272 = vmatmul.mubr.msk.f32.vlgmr.msra.gmra.mrb[0].mxu1 %vm97_vm2, %v14636_v27  ;;  %v1295_v53 = vand.u32 4294901760, %v1294_v46  ;;  %v1309_v46 = vand.u32 4294901760, %v1308_v41  ;;  %v1322_v54 = vsub.f32 %v14831_v58, %v17666_v50  ;;  %v17669_v41 = vand.u32 4294901760, %v14849_v1 }
  0x1e   :  { %12555 = vmatpush3.bf16.msra.mxu1 %v14582_v7  ;;  %v14860_v50 = vsub.f32 %v1146_v33, %v1193_v51 }
  0x1f   :  { %10293 = vmatmul.mubr.msk.f32.vlgmr.msra.gmra.mrb[0].mxu0 %vm97_vm2, %v14636_v27  ;;  %12557 = vmatprep.subr.bf16.mxu1 %v14642_v29  ;;  %v14835_v61 = vpack.c.bf16 %v1302_v56, %v1295_v53  ;;  %v14839_v26 = vpack.c.bf16 %v1316_v30, %v1309_v46  ;;  %v1323_v2 = vand.u32 4294901760, %v1322_v54  ;;  %v1330_v53 = vand.u32 4294901760, %v1329_v63 }
  0x20   :  { %12551 = vmatpush3.bf16.msra.mxu0 %v14582_v7  ;;  %10299 = vmatprep.mubr.msk.f32.mxu0 %vm97_vm2, %v14624_v22  ;;  %v17670_v56 = vand.u32 4294901760, %v14847_v0  ;;  %v14858_v46 = vsub.f32 %v1145_v28, %v1190_v36  ;;  %v1343_v11 = vsub.f32 %v14849_v1, %v17669_v41  ;;  %v17667_v18 = vand.u32 4294901760, %v14860_v50 }
  0x21   :  { %12577 = vmatprep.subr.bf16.mxu0 %v14689_v42  ;;  %v14853_v30 = vpack.c.bf16 %v1330_v53, %v1323_v2  ;;  %v14879_v53 = vpack.c.bf16 %v14782_v23, %v14780_v20 }
  0x22   :  { %v1336_v57 = vsub.f32 %v14847_v0, %v17670_v56  ;;  %v17668_v17 = vand.u32 4294901760, %v14858_v46  ;;  %v1344_v54 = vand.u32 4294901760, %v1343_v11  ;;  %v1357_v28 = vsub.f32 %v14860_v50, %v17667_v18 }
  0x23   :  { %v14887_v11 = vpack.c.bf16 %v14818_v40, %v14816_v39  ;;  %v17808_v18 = vmov 0.0  }
  0x24   :  { %v1337_v14 = vand.u32 4294901760, %v1336_v57  ;;  %v1350_v63 = vsub.f32 %v14858_v46, %v17668_v17  ;;  %v1358_v36 = vand.u32 4294901760, %v1357_v28  ;;  %v14883_v57 = vpack.c.bf16 %v14809_v31, %v14807_v34 }
  0x25   :  { %v76_v28 = vsub.s32 %v14578_v6, %v14576_v5 }
  0x26   :  { %v14873_v51 = vpack.c.bf16 %v1344_v54, %v1337_v14  ;;  %v1351_v33 = vand.u32 4294901760, %v1350_v63  ;;  %v14891_v14 = vpack.c.bf16 %v14833_v60, %v14831_v58  ;;  %v14895_v54 = vpack.c.bf16 %v14849_v1, %v14847_v0 }
  0x27   :  { %10300 = vmatmul.mubr.msk.f32.vlgmr.msra.gmra.mrb[0].mxu0 %vm97_vm2, %v14636_v27  ;;  %v14899_v63 = vpack.c.bf16 %v14860_v50, %v14858_v46  ;;  %vm78_vm7 = vcmp.eq.s32.totalorder %v76_v28, 1 }
  0x28   :  { %12579 = vmatpush3.bf16.msra.mxu0 %v14689_v42  ;;  %v14875_v2 = vpack.c.bf16 %v1358_v36, %v1351_v33  ;;  %v84_v33 = vand.u32 7, %v14578_v6  ;;  %v77_v36 = vsub.s32 %v14578_v6, %v14594_v12 }
  0x29   :  { %12581 = vmatprep.subr.bf16.mxu0 %v14725_v49 }
  0x2a   :  { %vm92_vm8 = vcmp.ne.s32.totalorder %v84_v33, 0  ;;  %vm79_vm9 = vcmp.eq.s32.totalorder %v77_v36, 1 }
  0x2b   :  { %vm93_vm10 = vmand %vm78_vm7, %vm92_vm8 }
  0x2c   :  { %12583 = vmatpush3.bf16.msra.mxu0 %v14725_v49  ;;  %vm94_vm11 = vmand %vm79_vm9, %vm92_vm8  ;;  %v14907_v17 = vsel %vm93_vm10, 1.0, %v17808_v18 }
  0x2d   :  { %12585 = vmatprep.subr.bf16.mxu0 %v14737_v52  ;;  %17809 = vst [vmem:[#allocation12_spill] sm:$0xff] %v14907_v17  ;;  %v607_v41 = vsel %vm97_vm2, %v14907_v17, 0  ;;  %v14912_v56 = vsel %vm94_vm11, 1.0, %v17808_v18 }
  0x2e   :  { %17810 = vst [vmem:[#allocation13_spill] sm:$0xff] %v14912_v56  ;;  %v14914_v45 = vsub.f32 %v607_v41, %v607_v41  ;;  %v610_v55 = vsel %vm97_vm2, %v14912_v56, 0 }
  0x2f   :  { %v14918_v6 = vsub.f32 %v610_v55, %v610_v55  ;;  %v17817_v55 = vand.u32 4294901760, %v14694_v43 }
  0x30   :  { %12587 = vmatpush3.bf16.msra.mxu0 %v14737_v52  ;;  %17811 = vst [vmem:[#allocation14_spill] sm:$0xff] %v14914_v45  ;;  %v14921_v12 = vand.u32 4294901760, %v14914_v45 }
  0x31   :  { %12589 = vmatprep.subr.bf16.mxu0 %v14754_v59  ;;  %17812 = vst [vmem:[#allocation15_spill] sm:$0xff] %v14918_v6  ;;  %v14924_v28 = vand.u32 4294901760, %v14918_v6 }
  0x32   :  { %17813 = vst [vmem:[#allocation16_spill] sm:$0xff] %v14921_v12  ;;  %v682_v33 = vsub.f32 %v14914_v45, %v14921_v12 }
  0x33   :  { %17814 = vst [vmem:[#allocation17_spill] sm:$0xff] %v14924_v28  ;;  %v692_v36 = vsub.f32 %v14918_v6, %v14924_v28 }
  0x34   :  { %12591 = vmatpush3.bf16.msra.mxu0 %v14754_v59  ;;  %v14930_v27 = vand.u32 4294901760, %v682_v33  ;;  %v14959_v33 = vsub.f32 %v14694_v43, %v17817_v55  ;;  %v17819_v43 = vand.u32 4294901760, %v14714_v47 }
  0x35   :  { %12593 = vmatprep.subr.bf16.mxu0 %v14757_v62  ;;  %v14932_v41 = vand.u32 4294901760, %v692_v36 }
  0x36   :  { %17815 = vst [vmem:[#allocation18_spill] sm:$0xff] %v14930_v27  ;;  %10306 = vmatprep.mubr.f32.mxu1 %v14930_v27  ;;  %v14974_v55 = vsub.f32 %v14714_v47, %v17819_v43 }
  0x37   :  { %17816 = vst [vmem:[#allocation19_spill] sm:$0xff] %v14932_v41  ;;  %10307 = vmatmul.mubr.f32.vlgmr.msra.gmra.mrb[2].mxu1 %v14932_v41 }
  0x38   :  { %12595 = vmatpush3.bf16.msra.mxu0 %v14757_v62  ;;  %12559 = vmatpush3.bf16.msra.mxu1 %v14642_v29 }
  0x39   :  { %12597 = vmatprep.subr.bf16.mxu0 %v14768_v10  ;;  %10313 = vmatprep.mubr.msk.f32.mxu1 %vm97_vm2, %v14907_v17 }
  0x3a   :  { %12561 = vmatprep.subr.bf16.mxu1 %v14598_v13 }
  0x3c   :  { %12599 = vmatpush3.bf16.msra.mxu0 %v14768_v10 }
  0x3d   :  { %12601 = vmatprep.subr.bf16.mxu0 %v14778_v19 }
  0x3f   :  { %10314 = vmatmul.mubr.msk.f32.vlgmr.msra.gmra.mrb[2].mxu1 %vm97_vm2, %v14912_v56 }
  0x40   :  { %12603 = vmatpush3.bf16.msra.mxu0 %v14778_v19  ;;  %12563 = vmatpush3.bf16.msra.mxu1 %v14598_v13 }
  0x41   :  { %12605 = vmatprep.subr.bf16.mxu0 %v14794_v38  ;;  %10320 = vmatprep.mubr.f32.mxu1 %v14914_v45 }
  0x42   :  { %12565 = vmatprep.subr.bf16.mxu1 %v14582_v7 }
  0x44   :  { %12607 = vmatpush3.bf16.msra.mxu0 %v14794_v38 }
  0x45   :  { %12609 = vmatprep.subr.bf16.mxu0 %v14804_v21 }
  0x47   :  { %10321 = vmatmul.mubr.f32.vlgmr.msra.gmra.mrb[2].mxu1 %v14918_v6 }
  0x48   :  { %12567 = vmatpush3.bf16.msra.mxu1 %v14582_v7  ;;  %10327 = vmatprep.mubr.f32.mxu1 %v14921_v12  ;;  %v17685_v12 = vand.u32 4294901760, %v14959_v33 }
  0x49   :  { %12569 = vmatprep.subr.bf16.mxu1 %v14652_v32 }
  0x4f   :  { %10328 = vmatmul.mubr.f32.vlgmr.msra.gmra.mrb[2].mxu1 %v14924_v28 }
  0x50   :  { %12571 = vmatpush3.bf16.msra.mxu1 %v14652_v32  ;;  %10334 = vmatprep.mubr.msk.f32.mxu1 %vm97_vm2, %v14907_v17  ;;  %v17818_v32 = vand.u32 4294901760, %v14699_v44 }
  0x51   :  { %12573 = vmatprep.subr.bf16.mxu1 %v14582_v7 }
  0x52   :  { %v14967_v36 = vsub.f32 %v14699_v44, %v17818_v32 }
  0x54   :  { %v17688_v41 = vand.u32 4294901760, %v14967_v36 }
  0x57   :  { %10335 = vmatmul.mubr.msk.f32.vlgmr.msra.gmra.mrb[2].mxu1 %vm97_vm2, %v14912_v56 }
  0x58   :  { %12575 = vmatpush3.bf16.msra.mxu1 %v14582_v7  ;;  %10341 = vmatprep.mubr.msk.f32.mxu1 %vm97_vm2, %v14907_v17  ;;  %v17820_v7 = vand.u32 4294901760, %v14719_v48 }
  0x5a   :  { %v14979_v17 = vsub.f32 %v14719_v48, %v17820_v7  ;;  %v1273_v48 = vsub.f32 %v14967_v36, %v17688_v41 }
  0x5f   :  { %10342 = vmatmul.mubr.msk.f32.vlgmr.msra.gmra.mrb[2].mxu1 %vm97_vm2, %v14912_v56 }
  0xf0   :  { %v10273_v13 = vpop.f32.mrb[0].mxu1 }
  0xf1   :  { %v268_v29 = vpop.f32.mrb[1].mxu1 }
  0xfa   :  { %v10301_v28 = vpop.f32.mrb[0].mxu0 }
  0xfb   :  { %v14352_v6 = vadd.f32 %v10301_v28, %v10273_v13  ;;  %v596_v45 = vpop.f32.mrb[1].mxu0  ;;  %v1266_v13 = vsub.f32 %v14959_v33, %v17685_v12 }
  0xfc   :  { %v14353_v27 = vadd.f32 %v596_v45, %v268_v29  ;;  %v1279_v45 = vand.u32 4294901760, %v14974_v55  ;;  %v1286_v29 = vand.u32 4294901760, %v14979_v17 }
  0xfd   :  { %v14981_v44 = vand.u32 4294901760, %v14352_v6  ;;  %v1267_v56 = vand.u32 4294901760, %v1266_v13 }
  0xfe   :  { %v14985_v28 = vand.u32 4294901760, %v14353_v27  ;;  %v1280_v22 = vsub.f32 %v14974_v55, %v1279_v45  ;;  %v1287_v41 = vsub.f32 %v14979_v17, %v1286_v29 }
  0xff   :  { %v14991_v47 = vsub.f32 %v14352_v6, %v14981_v44  ;;  %v1274_v6 = vand.u32 4294901760, %v1273_v48  ;;  %v9041_v48 = vld [vmem:[%s17641_s1 + $0xd8] sm:$0xff] }
 0x100   :  { %v1229_v32 = vsub.f32 %v14353_v27, %v14985_v28  ;;  %v1281_v18 = vand.u32 4294901760, %v1280_v22  ;;  %v1288_v16 = vand.u32 4294901760, %v1287_v41  ;;  %v17822_v22 = vand.u32 4294901760, %v14782_v23 }
 0x101   :  { %v1240_v43 = vand.u32 4294901760, %v14991_v47  ;;  %v12612_v35 = vpack.c.bf16 %v1274_v6, %v1267_v56  ;;  %v17825_v23 = vand.u32 4294901760, %v14807_v34  ;;  %v17826_v56 = vand.u32 4294901760, %v14809_v31 }
 0x102   :  { %v1230_v7 = vand.u32 4294901760, %v1229_v32  ;;  %v12616_v13 = vpack.c.bf16 %v1288_v16, %v1281_v18  ;;  %v12648_v16 = vpack.c.bf16 %v14979_v17, %v14974_v55  ;;  %v17827_v18 = vand.u32 4294901760, %v14816_v39  ;;  %v9039_v55 = vld [vmem:[%s17641_s1 + $0xc8] sm:$0xff] }
 0x103   :  { %v1241_v12 = vsub.f32 %v14991_v47, %v1240_v43  ;;  %v17830_v17 = vand.u32 4294901760, %v14833_v60  ;;  %v17831_v34 = vand.u32 4294901760, %v14847_v0  ;;  %v17832_v31 = vand.u32 4294901760, %v14849_v1  ;;  %v9034_v0 = vld [vmem:[%s17641_s1 + $0xa0] sm:$0xff]  ;;  %v9035_v1 = vld [vmem:[%s17641_s1 + $0xa8] sm:$0xff] }
 0x104   :  { %v1231_v37 = vsub.f32 %v1229_v32, %v1230_v7  ;;  %v17833_v39 = vand.u32 4294901760, %v14858_v46 }
 0x105   :  { %v1242_v27 = vand.u32 4294901760, %v1241_v12  ;;  %v9037_v12 = vld [vmem:[%s17641_s1 + $0xb8] sm:$0xff] }
 0x106   :  { %v1232_v5 = vand.u32 4294901760, %v1231_v37  ;;  %v17824_v37 = vand.u32 4294901760, %v14967_v36 }
 0x108   :  { %10376 = vmatprep.mubr.f32.mxu0 %v1232_v5  ;;  %v12644_v5 = vpack.c.bf16 %v14967_v36, %v14959_v33  ;;  %v9038_v36 = vld [vmem:[%s17641_s1 + $0xc0] sm:$0xff] }
 0x109   :  { %10377 = vmatmul.mubr.f32.vlgmr.msra.gmra.mrb[2].mxu0 %v1242_v27  ;;  %v1865_v27 = vand.u32 4294901760, %v9041_v48 }
 0x10a   :  { %12611 = vmatpush3.bf16.msra.mxu0 %v14804_v21  ;;  %10411 = vmatprep.mubr.f32.mxu0 %v14985_v28  ;;  %v17821_v21 = vand.u32 4294901760, %v14780_v20  ;;  %v12712_v20 = vpack.c.bf16 %v1286_v29, %v1279_v45  ;;  %v15163_v45 = vld [vmem:[%s17641_s1 + $0xe0] sm:$0xff]  ;;  %v15168_v29 = vld [vmem:[%s17641_s1 + $0xe8] sm:$0xff] }
 0x10b   :  { %12613 = vmatprep.subr.bf16.mxu0 %v12612_v35 }
 0x10e   :  { %12615 = vmatpush3.bf16.msra.mxu0 %v12612_v35  ;;  %v17823_v35 = vand.u32 4294901760, %v14959_v33  ;;  %v1853_v33 = vand.u32 4294901760, %v9037_v12 }
 0x10f   :  { %12617 = vmatprep.subr.bf16.mxu0 %v12616_v13 }
 0x112   :  { %12619 = vmatpush3.bf16.msra.mxu0 %v12616_v13  ;;  %v1868_v13 = vand.u32 4294901760, %v15163_v45 }
 0x113   :  { %12621 = vmatprep.subr.bf16.mxu0 %v14835_v61 }
 0x116   :  { %12623 = vmatpush3.bf16.msra.mxu0 %v14835_v61  ;;  %v12708_v61 = vpack.c.bf16 %v17824_v37, %v17823_v35  ;;  %v15193_v35 = vld [vmem:[%s17641_s1 + $0xf8] sm:$0xff] }
 0x117   :  { %12625 = vmatprep.subr.bf16.mxu0 %v14839_v26 }
 0x11a   :  { %12627 = vmatpush3.bf16.msra.mxu0 %v14839_v26  ;;  %v12704_v26 = vpack.c.bf16 %v17822_v22, %v17821_v21 }
 0x11b   :  { %12629 = vmatprep.subr.bf16.mxu0 %v14853_v30 }
 0x11e   :  { %12631 = vmatpush3.bf16.msra.mxu0 %v14853_v30  ;;  %v12716_v30 = vpack.c.bf16 %v17826_v56, %v17825_v23  ;;  %v1877_v56 = vand.u32 4294901760, %v15193_v35 }
 0x11f   :  { %12633 = vmatprep.subr.bf16.mxu0 %v14873_v51 }
 0x122   :  { %12635 = vmatpush3.bf16.msra.mxu0 %v14873_v51  ;;  %v17828_v51 = vand.u32 4294901760, %v14818_v40  ;;  %v17834_v40 = vand.u32 4294901760, %v14860_v50 }
 0x123   :  { %12637 = vmatprep.subr.bf16.mxu0 %v14875_v2 }
 0x126   :  { %12639 = vmatpush3.bf16.msra.mxu0 %v14875_v2  ;;  %v12720_v2 = vpack.c.bf16 %v17828_v51, %v17827_v18 }
 0x127   :  { %12641 = vmatprep.subr.bf16.mxu0 %v14879_v53 }
 0x129   :  { %10412 = vmatmul.mubr.f32.vlgmr.msra.gmra.mrb[2].mxu0 %v14981_v44 }
 0x12a   :  { %12643 = vmatpush3.bf16.msra.mxu0 %v14879_v53  ;;  %10446 = vmatprep.mubr.f32.mxu0 %v1229_v32  ;;  %v17829_v53 = vand.u32 4294901760, %v14831_v58 }
 0x12b   :  { %12645 = vmatprep.subr.bf16.mxu0 %v12644_v5 }
 0x12e   :  { %12647 = vmatpush3.bf16.msra.mxu0 %v12644_v5  ;;  %v1871_v5 = vand.u32 4294901760, %v15168_v29 }
 0x12f   :  { %12649 = vmatprep.subr.bf16.mxu0 %v12648_v16 }
 0x132   :  { %12651 = vmatpush3.bf16.msra.mxu0 %v12648_v16 }
 0x133   :  { %12653 = vmatprep.subr.bf16.mxu0 %v14883_v57 }
 0x136   :  { %12655 = vmatpush3.bf16.msra.mxu0 %v14883_v57  ;;  %v12724_v57 = vpack.c.bf16 %v17830_v17, %v17829_v53 }
 0x137   :  { %12657 = vmatprep.subr.bf16.mxu0 %v14887_v11 }
 0x13a   :  { %12659 = vmatpush3.bf16.msra.mxu0 %v14887_v11  ;;  %v12728_v11 = vpack.c.bf16 %v17832_v31, %v17831_v34  ;;  %v15223_v34 = vsub.f32 %v9037_v12, %v1853_v33 }
 0x13b   :  { %12661 = vmatprep.subr.bf16.mxu0 %v14891_v14 }
 0x13e   :  { %12663 = vmatpush3.bf16.msra.mxu0 %v14891_v14  ;;  %v12732_v14 = vpack.c.bf16 %v17834_v40, %v17833_v39 }
 0x13f   :  { %12665 = vmatprep.subr.bf16.mxu0 %v14895_v54 }
 0x142   :  { %12667 = vmatpush3.bf16.msra.mxu0 %v14895_v54  ;;  %v1847_v54 = vand.u32 4294901760, %v9035_v1 }
 0x143   :  { %12669 = vmatprep.subr.bf16.mxu0 %v14899_v63 }
 0x144   :  { %v15219_v17 = vsub.f32 %v9035_v1, %v1847_v54 }
 0x146   :  { %12671 = vmatpush3.bf16.msra.mxu0 %v14899_v63  ;;  %v9036_v63 = vld [vmem:[%s17641_s1 + $0xb0] sm:$0xff] }
 0x147   :  { %12673 = vmatprep.subr.bf16.mxu0 %v14689_v42  ;;  %v1850_v41 = vand.u32 4294901760, %v9036_v63 }
 0x149   :  { %10447 = vmatmul.mubr.f32.vlgmr.msra.gmra.mrb[2].mxu0 %v14991_v47  ;;  %v9040_v47 = vld [vmem:[%s17641_s1 + $0xd0] sm:$0xff] }
 0x14a   :  { %12675 = vmatpush3.bf16.msra.mxu0 %v14689_v42  ;;  %10481 = vmatprep.mubr.f32.mxu0 %v1230_v7  ;;  %v1862_v6 = vand.u32 4294901760, %v9040_v47 }
 0x14b   :  { %12677 = vmatprep.subr.bf16.mxu0 %v14725_v49 }
 0x14c   :  { %v15183_v22 = vpack.c.bf16 %v1865_v27, %v1862_v6 }
 0x14e   :  { %12679 = vmatpush3.bf16.msra.mxu0 %v14725_v49 }
 0x14f   :  { %12681 = vmatprep.subr.bf16.mxu0 %v14737_v52 }
 0x152   :  { %12683 = vmatpush3.bf16.msra.mxu0 %v14737_v52 }
 0x153   :  { %12685 = vmatprep.subr.bf16.mxu0 %v14754_v59 }
 0x156   :  { %12687 = vmatpush3.bf16.msra.mxu0 %v14754_v59 }
 0x157   :  { %12689 = vmatprep.subr.bf16.mxu0 %v14757_v62 }
 0x15a   :  { %12691 = vmatpush3.bf16.msra.mxu0 %v14757_v62 }
 0x15b   :  { %12693 = vmatprep.subr.bf16.mxu0 %v14768_v10 }
 0x15e   :  { %12695 = vmatpush3.bf16.msra.mxu0 %v14768_v10 }
 0x15f   :  { %12697 = vmatprep.subr.bf16.mxu0 %v14778_v19 }
 0x162   :  { %12699 = vmatpush3.bf16.msra.mxu0 %v14778_v19 }
 0x163   :  { %12701 = vmatprep.subr.bf16.mxu0 %v14794_v38 }
 0x166   :  { %12703 = vmatpush3.bf16.msra.mxu0 %v14794_v38 }
 0x167   :  { %12705 = vmatprep.subr.bf16.mxu0 %v12704_v26 }
 0x169   :  { %10482 = vmatmul.mubr.f32.vlgmr.msra.gmra.mrb[2].mxu0 %v1240_v43 }
 0x16a   :  { %12707 = vmatpush3.bf16.msra.mxu0 %v12704_v26  ;;  %10516 = vmatprep.mubr.f32.mxu0 %v14985_v28  ;;  %v15188_v26 = vld [vmem:[%s17641_s1 + $0xf0] sm:$0xff] }
 0x16b   :  { %12709 = vmatprep.subr.bf16.mxu0 %v12708_v61  ;;  %v1874_v23 = vand.u32 4294901760, %v15188_v26 }
 0x16d   :  { %v15230_v31 = vpack.c.bf16 %v1877_v56, %v1874_v23 }
 0x16e   :  { %12711 = vmatpush3.bf16.msra.mxu0 %v12708_v61 }
 0x16f   :  { %12713 = vmatprep.subr.bf16.mxu0 %v12712_v20 }
 0x172   :  { %12715 = vmatpush3.bf16.msra.mxu0 %v12712_v20  ;;  %v15203_v20 = vpack.c.bf16 %v1871_v5, %v1868_v13 }
 0x173   :  { %12717 = vmatprep.subr.bf16.mxu0 %v12716_v30 }
 0x176   :  { %12719 = vmatpush3.bf16.msra.mxu0 %v12716_v30 }
 0x177   :  { %12721 = vmatprep.subr.bf16.mxu0 %v12720_v2 }
 0x17a   :  { %12723 = vmatpush3.bf16.msra.mxu0 %v12720_v2 }
 0x17b   :  { %12725 = vmatprep.subr.bf16.mxu0 %v12724_v57 }
 0x17e   :  { %12727 = vmatpush3.bf16.msra.mxu0 %v12724_v57  ;;  %v15221_v57 = vsub.f32 %v9036_v63, %v1850_v41 }
 0x17f   :  { %12729 = vmatprep.subr.bf16.mxu0 %v12728_v11 }
 0x182   :  { %12731 = vmatpush3.bf16.msra.mxu0 %v12728_v11 }
 0x183   :  { %12733 = vmatprep.subr.bf16.mxu0 %v12732_v14 }
 0x186   :  { %12735 = vmatpush3.bf16.msra.mxu0 %v12732_v14 }
 0x187   :  { %12737 = vmatprep.subr.bf16.mxu0 %v14689_v42 }
 0x189   :  { %10517 = vmatmul.mubr.f32.vlgmr.msra.gmra.mrb[2].mxu0 %v14981_v44 }
 0x18a   :  { %12739 = vmatpush3.bf16.msra.mxu0 %v14689_v42  ;;  %10551 = vmatprep.mubr.f32.mxu0 %v14985_v28  ;;  %v9030_v42 = vld [vmem:[%s17641_s1 + $0x80] sm:$0xff]  ;;  %v1859_v28 = vand.u32 4294901760, %v9039_v55 }
 0x18b   :  { %12741 = vmatprep.subr.bf16.mxu0 %v14725_v49  ;;  %v1832_v50 = vand.u32 4294901760, %v9030_v42 }
 0x18d   :  { %v15170_v32 = vsub.f32 %v9030_v42, %v1832_v50 }
 0x18e   :  { %12743 = vmatpush3.bf16.msra.mxu0 %v14725_v49  ;;  %v9031_v49 = vld [vmem:[%s17641_s1 + $0x88] sm:$0xff] }
 0x18f   :  { %12745 = vmatprep.subr.bf16.mxu0 %v14737_v52  ;;  %v1935_v16 = vand.u32 4294901760, %v15170_v32 }
 0x191   :  { %v1936_v30 = vsub.f32 %v15170_v32, %v1935_v16 }
 0x192   :  { %12747 = vmatpush3.bf16.msra.mxu0 %v14737_v52  ;;  %v1835_v52 = vand.u32 4294901760, %v9031_v49 }
 0x193   :  { %12749 = vmatprep.subr.bf16.mxu0 %v14754_v59  ;;  %v1937_v11 = vand.u32 4294901760, %v1936_v30 }
 0x194   :  { %v15119_v58 = vpack.c.bf16 %v1835_v52, %v1832_v50  ;;  %v15172_v43 = vsub.f32 %v9031_v49, %v1835_v52  ;;  %v1970_v49 = vand.u32 4294901760, %v15219_v17  ;;  %v1977_v50 = vand.u32 4294901760, %v15221_v57 }
 0x195   :  { %v1984_v52 = vand.u32 4294901760, %v15223_v34 }
 0x196   :  { %12751 = vmatpush3.bf16.msra.mxu0 %v14754_v59  ;;  %v9032_v59 = vld [vmem:[%s17641_s1 + $0x90] sm:$0xff]  ;;  %v1942_v21 = vand.u32 4294901760, %v15172_v43 }
 0x197   :  { %12753 = vmatprep.subr.bf16.mxu0 %v14757_v62  ;;  %v1838_v60 = vand.u32 4294901760, %v9032_v59  ;;  %v1985_v63 = vsub.f32 %v15223_v34, %v1984_v52 }
 0x198   :  { %v1943_v18 = vsub.f32 %v15172_v43, %v1942_v21 }
 0x199   :  { %v15195_v37 = vsub.f32 %v9032_v59, %v1838_v60 }
 0x19a   :  { %12755 = vmatpush3.bf16.msra.mxu0 %v14757_v62  ;;  %v9033_v62 = vld [vmem:[%s17641_s1 + $0x98] sm:$0xff]  ;;  %v1944_v39 = vand.u32 4294901760, %v1943_v18  ;;  %v1986_v18 = vand.u32 4294901760, %v1985_v63 }
 0x19b   :  { %12757 = vmatprep.subr.bf16.mxu0 %v14768_v10  ;;  %v1949_v51 = vand.u32 4294901760, %v15195_v37 }
 0x19c   :  { %v12800_v59 = vpack.c.bf16 %v1944_v39, %v1937_v11  ;;  %v15286_v39 = vsub.f32 %v15168_v29, %v1871_v5  ;;  %v15299_v29 = vsub.f32 %v15188_v26, %v1874_v23  ;;  %v15304_v5 = vsub.f32 %v15193_v35, %v1877_v56 }
 0x19d   :  { %v1950_v40 = vsub.f32 %v15195_v37, %v1949_v51 }
 0x19e   :  { %12759 = vmatpush3.bf16.msra.mxu0 %v14768_v10  ;;  %v1841_v10 = vand.u32 4294901760, %v9033_v62  ;;  %v2033_v35 = vand.u32 4294901760, %v15299_v29  ;;  %v2040_v23 = vand.u32 4294901760, %v15304_v5 }
 0x19f   :  { %12761 = vmatprep.subr.bf16.mxu0 %v14778_v19 }
 0x1a0   :  { %v15129_v46 = vpack.c.bf16 %v1841_v10, %v1838_v60  ;;  %v15197_v61 = vsub.f32 %v9033_v62, %v1841_v10  ;;  %v15246_v60 = vsub.f32 %v9039_v55, %v1859_v28  ;;  %v1951_v10 = vand.u32 4294901760, %v1950_v40 }
 0x1a2   :  { %12763 = vmatpush3.bf16.msra.mxu0 %v14778_v19  ;;  %v1844_v19 = vand.u32 4294901760, %v9034_v0  ;;  %v1956_v2 = vand.u32 4294901760, %v15197_v61 }
 0x1a3   :  { %12765 = vmatprep.subr.bf16.mxu0 %v14794_v38 }
 0x1a4   :  { %v15217_v53 = vsub.f32 %v9034_v0, %v1844_v19  ;;  %v1957_v14 = vsub.f32 %v15197_v61, %v1956_v2 }
 0x1a6   :  { %12767 = vmatpush3.bf16.msra.mxu0 %v14794_v38  ;;  %v15141_v38 = vpack.c.bf16 %v1847_v54, %v1844_v19  ;;  %v1963_v42 = vand.u32 4294901760, %v15217_v53  ;;  %v1958_v0 = vand.u32 4294901760, %v1957_v14  ;;  %v1971_v19 = vsub.f32 %v15219_v17, %v1970_v49 }
 0x1a7   :  { %12769 = vmatprep.subr.bf16.mxu0 %v15119_v58  ;;  %v1978_v54 = vsub.f32 %v15221_v57, %v1977_v50 }
 0x1a8   :  { %v1964_v1 = vsub.f32 %v15217_v53, %v1963_v42  ;;  %v12804_v55 = vpack.c.bf16 %v1958_v0, %v1951_v10 }
 0x1a9   :  { %10552 = vmatmul.mubr.f32.vlgmr.msra.gmra.mrb[2].mxu0 %v14981_v44  ;;  %v15151_v44 = vpack.c.bf16 %v1853_v33, %v1850_v41  ;;  %v1998_v41 = vand.u32 4294901760, %v15246_v60  ;;  %v15264_v33 = vsub.f32 %v9040_v47, %v1862_v6  ;;  %v1979_v30 = vand.u32 4294901760, %v1978_v54 }
 0x1aa   :  { %12771 = vmatpush3.bf16.msra.mxu0 %v15119_v58  ;;  %10586 = vmatprep.mubr.f32.mxu0 %v14629_v24  ;;  %v1856_v24 = vand.u32 4294901760, %v9038_v36 }
 0x1ab   :  { %12773 = vmatprep.subr.bf16.mxu0 %v15129_v46  ;;  %v1999_v47 = vsub.f32 %v15246_v60, %v1998_v41  ;;  %v12812_v40 = vpack.c.bf16 %v1986_v18, %v1979_v30  ;;  %v2034_v18 = vsub.f32 %v15299_v29, %v2033_v35 }
 0x1ac   :  { %v15175_v7 = vpack.c.bf16 %v1859_v28, %v1856_v24  ;;  %v15244_v62 = vsub.f32 %v9038_v36, %v1856_v24  ;;  %v15266_v36 = vsub.f32 %v9041_v48, %v1865_v27  ;;  %v1965_v24 = vand.u32 4294901760, %v1964_v1  ;;  %v15306_v1 = vpop.f32.mrb[2].mxu1 }
 0x1ad   :  { %v1972_v28 = vand.u32 4294901760, %v1971_v19  ;;  %v2005_v48 = vand.u32 4294901760, %v15264_v33  ;;  %v15308_v19 = vpop.f32.mrb[3].mxu1 }
 0x1ae   :  { %12775 = vmatpush3.bf16.msra.mxu0 %v15129_v46  ;;  %v1991_v12 = vand.u32 4294901760, %v15244_v62  ;;  %v2012_v6 = vand.u32 4294901760, %v15266_v36 }
 0x1af   :  { %12777 = vmatprep.subr.bf16.mxu0 %v15141_v38  ;;  %v12808_v27 = vpack.c.bf16 %v1972_v28, %v1965_v24  ;;  %v2006_v10 = vsub.f32 %v15264_v33, %v2005_v48 }
 0x1b0   :  { %v1992_v11 = vsub.f32 %v15244_v62, %v1991_v12  ;;  %v2013_v0 = vsub.f32 %v15266_v36, %v2012_v6 }
 0x1b1   :  { %v2007_v63 = vand.u32 4294901760, %v2006_v10  ;;  %v12836_v10 = vpack.c.bf16 %v15197_v61, %v15195_v37  ;;  %v12924_v61 = vpack.c.bf16 %v2040_v23, %v2033_v35 }
 0x1b2   :  { %12779 = vmatpush3.bf16.msra.mxu0 %v15141_v38  ;;  %v1993_v14 = vand.u32 4294901760, %v1992_v11  ;;  %v2041_v11 = vsub.f32 %v15304_v5, %v2040_v23 }
 0x1b3   :  { %12781 = vmatprep.subr.bf16.mxu0 %v15151_v44 }
 0x1b6   :  { %12783 = vmatpush3.bf16.msra.mxu0 %v15151_v44 }
 0x1b7   :  { %12785 = vmatprep.subr.bf16.mxu0 %v15175_v7 }
 0x1ba   :  { %12787 = vmatpush3.bf16.msra.mxu0 %v15175_v7 }
 0x1bb   :  { %12789 = vmatprep.subr.bf16.mxu0 %v15183_v22 }
 0x1be   :  { %12791 = vmatpush3.bf16.msra.mxu0 %v15183_v22 }
 0x1bf   :  { %12793 = vmatprep.subr.bf16.mxu0 %v15203_v20 }
 0x1c2   :  { %12795 = vmatpush3.bf16.msra.mxu0 %v15203_v20 }
 0x1c3   :  { %12797 = vmatprep.subr.bf16.mxu0 %v15230_v31 }
 0x1c6   :  { %12799 = vmatpush3.bf16.msra.mxu0 %v15230_v31 }
 0x1c7   :  { %12801 = vmatprep.subr.bf16.mxu0 %v12800_v59 }
 0x1c9   :  { %10587 = vmatmul.mubr.f32.vlgmr.msra.gmra.mrb[2].mxu0 %v14631_v25  ;;  %v15281_v25 = vsub.f32 %v15163_v45, %v1868_v13  ;;  %v2026_v13 = vand.u32 4294901760, %v15286_v39 }
 0x1ca   :  { %12803 = vmatpush3.bf16.msra.mxu0 %v12800_v59  ;;  %10621 = vmatprep.mubr.f32.mxu0 %v14572_v3  ;;  %v2000_v59 = vand.u32 4294901760, %v1999_v47 }
 0x1cb   :  { %12805 = vmatprep.subr.bf16.mxu0 %v12804_v55  ;;  %v2019_v45 = vand.u32 4294901760, %v15281_v25  ;;  %v2027_v26 = vsub.f32 %v15286_v39, %v2026_v13 }
 0x1cc   :  { %v12816_v54 = vpack.c.bf16 %v2000_v59, %v1993_v14  ;;  %v2042_v14 = vand.u32 4294901760, %v2041_v11  ;;  %v12832_v59 = vpack.c.bf16 %v15172_v43, %v15170_v32  ;;  %v12904_v32 = vpack.c.bf16 %v1970_v49, %v1963_v42  ;;  %v9050_v42 = vld [vmem:[%s17641_s1 + $0x120] sm:$0xff]  ;;  %v9051_v49 = vld [vmem:[%s17641_s1 + $0x128] sm:$0xff] }
 0x1cd   :  { %v2020_v24 = vsub.f32 %v15281_v25, %v2019_v45  ;;  %v2028_v30 = vand.u32 4294901760, %v2027_v26  ;;  %v17835_v26 = vld [vmem:[#allocation3_spill] sm:$0xff]  ;;  %v12908_v43 = vpack.c.bf16 %v1984_v52, %v1977_v50  ;;  %v12920_v37 = vpack.c.bf16 %v2026_v13, %v2019_v45  ;;  %v15475_v45 = vld [vmem:[%s17641_s1 + $0x158] sm:$0xff]  ;;  %v15481_v13 = vld [vmem:[%s17641_s1 + $0x160] sm:$0xff] }
 0x1ce   :  { %12807 = vmatpush3.bf16.msra.mxu0 %v12804_v55  ;;  %v2014_v55 = vand.u32 4294901760, %v2013_v0  ;;  %v12840_v0 = vpack.c.bf16 %v15219_v17, %v15217_v53  ;;  %v9049_v53 = vld [vmem:[%s17641_s1 + $0x118] sm:$0xff]  ;;  %v2545_v50 = vand.u32 4294901760, %v9050_v42  ;;  %v2548_v52 = vand.u32 4294901760, %v9051_v49 }
 0x1cf   :  { %12809 = vmatprep.subr.bf16.mxu0 %v12808_v27  ;;  %v2021_v28 = vand.u32 4294901760, %v2020_v24  ;;  %v12860_v24 = vpack.c.bf16 %v15304_v5, %v15299_v29  ;;  %v15486_v29 = vld [vmem:[%s17641_s1 + $0x168] sm:$0xff] }
 0x1d0   :  { %v12820_v56 = vpack.c.bf16 %v2014_v55, %v2007_v63  ;;  %v12848_v63 = vpack.c.bf16 %v15246_v60, %v15244_v62  ;;  %v12852_v55 = vpack.c.bf16 %v15266_v36, %v15264_v33  ;;  %v9052_v60 = vld [vmem:[%s17641_s1 + $0x130] sm:$0xff]  ;;  %v9054_v36 = vld [vmem:[%s17641_s1 + $0x140] sm:$0xff] }
 0x1d1   :  { %v12824_v47 = vpack.c.bf16 %v2028_v30, %v2021_v28  ;;  %v15498_v28 = vand.u32 4294901760, %v15306_v1  ;;  %v2569_v30 = vand.u32 4294901760, %v15481_v13 }
 0x1d2   :  { %12811 = vmatpush3.bf16.msra.mxu0 %v12808_v27  ;;  %v2035_v27 = vand.u32 4294901760, %v2034_v18  ;;  %v2572_v18 = vand.u32 4294901760, %v15486_v29 }
 0x1d3   :  { %12813 = vmatprep.subr.bf16.mxu0 %v12812_v40 }
 0x1d6   :  { %12815 = vmatpush3.bf16.msra.mxu0 %v12812_v40  ;;  %v12828_v40 = vpack.c.bf16 %v2042_v14, %v2035_v27  ;;  %v15511_v14 = vld [vmem:[%s17641_s1 + $0x170] sm:$0xff] }
 0x1d7   :  { %12817 = vmatprep.subr.bf16.mxu0 %v12816_v54 }
 0x1da   :  { %12819 = vmatpush3.bf16.msra.mxu0 %v12816_v54  ;;  %v12844_v54 = vpack.c.bf16 %v15223_v34, %v15221_v57  ;;  %v2542_v57 = vand.u32 4294901760, %v9049_v53 }
 0x1db   :  { %12821 = vmatprep.subr.bf16.mxu0 %v12820_v56 }
 0x1de   :  { %12823 = vmatpush3.bf16.msra.mxu0 %v12820_v56  ;;  %v2566_v56 = vand.u32 4294901760, %v15475_v45 }
 0x1df   :  { %12825 = vmatprep.subr.bf16.mxu0 %v12824_v47 }
 0x1e2   :  { %12827 = vmatpush3.bf16.msra.mxu0 %v12824_v47 }
 0x1e3   :  { %12829 = vmatprep.subr.bf16.mxu0 %v12828_v40 }
 0x1e6   :  { %12831 = vmatpush3.bf16.msra.mxu0 %v12828_v40  ;;  %v15516_v40 = vld [vmem:[%s17641_s1 + $0x178] sm:$0xff] }
 0x1e7   :  { %12833 = vmatprep.subr.bf16.mxu0 %v12832_v59 }
 0x1e9   :  { %10622 = vmatmul.mubr.f32.vlgmr.msra.gmra.mrb[2].mxu0 %v14574_v4 }
 0x1ea   :  { %12835 = vmatpush3.bf16.msra.mxu0 %v12832_v59  ;;  %10656 = vmatprep.mubr.f32.mxu0 %v14585_v8  ;;  %v12856_v8 = vpack.c.bf16 %v15286_v39, %v15281_v25  ;;  %v15470_v39 = vld [vmem:[%s17641_s1 + $0x150] sm:$0xff] }
 0x1eb   :  { %12837 = vmatprep.subr.bf16.mxu0 %v12836_v10  ;;  %v2563_v23 = vand.u32 4294901760, %v15470_v39 }
 0x1ed   :  { %v15506_v27 = vpack.c.bf16 %v2566_v56, %v2563_v23 }
 0x1ee   :  { %12839 = vmatpush3.bf16.msra.mxu0 %v12836_v10  ;;  %v15520_v10 = vsub.f32 %v9049_v53, %v2542_v57 }
 0x1ef   :  { %12841 = vmatprep.subr.bf16.mxu0 %v12840_v0 }
 0x1f2   :  { %12843 = vmatpush3.bf16.msra.mxu0 %v12840_v0  ;;  %v15524_v0 = vsub.f32 %v15306_v1, %v15498_v28 }
 0x1f3   :  { %12845 = vmatprep.subr.bf16.mxu0 %v12844_v54 }
 0x1f6   :  { %12847 = vmatpush3.bf16.msra.mxu0 %v12844_v54  ;;  %v15530_v54 = vpack.c.bf16 %v2572_v18, %v2569_v30 }
 0x1f7   :  { %12849 = vmatprep.subr.bf16.mxu0 %v12848_v63 }
 0x1fa   :  { %12851 = vmatpush3.bf16.msra.mxu0 %v12848_v63  ;;  %v2575_v63 = vand.u32 4294901760, %v15511_v14 }
 0x1fb   :  { %12853 = vmatprep.subr.bf16.mxu0 %v12852_v55 }
 0x1fe   :  { %12855 = vmatpush3.bf16.msra.mxu0 %v12852_v55  ;;  %v2578_v55 = vand.u32 4294901760, %v15516_v40 }
 0x1ff   :  { %12857 = vmatprep.subr.bf16.mxu0 %v12856_v8 }
 0x202   :  { %12859 = vmatpush3.bf16.msra.mxu0 %v12856_v8 }
 0x203   :  { %12861 = vmatprep.subr.bf16.mxu0 %v12860_v24 }
 0x206   :  { %12863 = vmatpush3.bf16.msra.mxu0 %v12860_v24 }
 0x207   :  { %12865 = vmatprep.subr.bf16.mxu0 %v15119_v58 }
 0x209   :  { %10657 = vmatmul.mubr.f32.vlgmr.msra.gmra.mrb[2].mxu0 %v14588_v9  ;;  %v12896_v9 = vpack.c.bf16 %v1942_v21, %v1935_v16  ;;  %v12912_v16 = vpack.c.bf16 %v1998_v41, %v1991_v12  ;;  %v12916_v21 = vpack.c.bf16 %v2012_v6, %v2005_v48  ;;  %v9053_v12 = vld [vmem:[%s17641_s1 + $0x138] sm:$0xff]  ;;  %v2551_v41 = vand.u32 4294901760, %v9052_v60  ;;  %v9055_v48 = vld [vmem:[%s17641_s1 + $0x148] sm:$0xff] }
 0x20a   :  { %12867 = vmatpush3.bf16.msra.mxu0 %v15119_v58  ;;  %10691 = vmatprep.mubr.f32.mxu0 %v14606_v15  ;;  %v12900_v15 = vpack.c.bf16 %v1956_v2, %v1949_v51  ;;  %v15406_v51 = vand.u32 4294901760, %v15308_v19  ;;  %v9048_v2 = vld [vmem:[%s17641_s1 + $0x110] sm:$0xff]  ;;  %v2554_v33 = vand.u32 4294901760, %v9053_v12  ;;  %v2557_v6 = vand.u32 4294901760, %v9054_v36 }
 0x20b   :  { %12869 = vmatprep.subr.bf16.mxu0 %v15129_v46  ;;  %v2560_v25 = vand.u32 4294901760, %v9055_v48 }
 0x20d   :  { %v15493_v35 = vpack.c.bf16 %v2560_v25, %v2557_v6 }
 0x20e   :  { %12871 = vmatpush3.bf16.msra.mxu0 %v15129_v46 }
 0x20f   :  { %12873 = vmatprep.subr.bf16.mxu0 %v15141_v38 }
 0x212   :  { %12875 = vmatpush3.bf16.msra.mxu0 %v15141_v38 }
 0x213   :  { %12877 = vmatprep.subr.bf16.mxu0 %v15151_v44 }
 0x216   :  { %12879 = vmatpush3.bf16.msra.mxu0 %v15151_v44 }
 0x217   :  { %12881 = vmatprep.subr.bf16.mxu0 %v15175_v7 }
 0x21a   :  { %12883 = vmatpush3.bf16.msra.mxu0 %v15175_v7 }
 0x21b   :  { %12885 = vmatprep.subr.bf16.mxu0 %v15183_v22 }
 0x21e   :  { %12887 = vmatpush3.bf16.msra.mxu0 %v15183_v22 }
 0x21f   :  { %12889 = vmatprep.subr.bf16.mxu0 %v15203_v20 }
 0x222   :  { %12891 = vmatpush3.bf16.msra.mxu0 %v15203_v20 }
 0x223   :  { %12893 = vmatprep.subr.bf16.mxu0 %v15230_v31 }
 0x226   :  { %12895 = vmatpush3.bf16.msra.mxu0 %v15230_v31 }
 0x227   :  { %12897 = vmatprep.subr.bf16.mxu0 %v12896_v9 }
 0x229   :  { %10692 = vmatmul.mubr.f32.vlgmr.msra.gmra.mrb[2].mxu0 %v17835_v26  ;;  %v15546_v26 = vsub.f32 %v9051_v49, %v2548_v52 }
 0x22a   :  { %12899 = vmatpush3.bf16.msra.mxu0 %v12896_v9  ;;  %10726 = vmatprep.mubr.f32.mxu0 %v14572_v3  ;;  %v2657_v9 = vand.u32 4294901760, %v15520_v10 }
 0x22b   :  { %12901 = vmatprep.subr.bf16.mxu0 %v12900_v15 }
 0x22e   :  { %12903 = vmatpush3.bf16.msra.mxu0 %v12900_v15  ;;  %v15544_v15 = vsub.f32 %v9050_v42, %v2545_v50  ;;  %v15577_v42 = vsub.f32 %v9055_v48, %v2560_v25  ;;  %v15599_v48 = vsub.f32 %v15475_v45, %v2566_v56 }
 0x22f   :  { %12905 = vmatprep.subr.bf16.mxu0 %v12904_v32 }
 0x232   :  { %12907 = vmatpush3.bf16.msra.mxu0 %v12904_v32  ;;  %v15548_v32 = vsub.f32 %v9052_v60, %v2551_v41 }
 0x233   :  { %12909 = vmatprep.subr.bf16.mxu0 %v12908_v43 }
 0x236   :  { %12911 = vmatpush3.bf16.msra.mxu0 %v12908_v43  ;;  %v15550_v43 = vsub.f32 %v9053_v12, %v2554_v33 }
 0x237   :  { %12913 = vmatprep.subr.bf16.mxu0 %v12912_v16 }
 0x238   :  { %v17706_v53 = vand.u32 4294901760, %v15550_v43 }
 0x23a   :  { %12915 = vmatpush3.bf16.msra.mxu0 %v12912_v16  ;;  %v2625_v16 = vand.u32 4294901760, %v15524_v0  ;;  %v2686_v12 = vsub.f32 %v15550_v43, %v17706_v53 }
 0x23b   :  { %12917 = vmatprep.subr.bf16.mxu0 %v12916_v21 }
 0x23e   :  { %12919 = vmatpush3.bf16.msra.mxu0 %v12916_v21  ;;  %v15558_v21 = vpack.c.bf16 %v2578_v55, %v2575_v63 }
 0x23f   :  { %12921 = vmatprep.subr.bf16.mxu0 %v12920_v37 }
 0x242   :  { %12923 = vmatpush3.bf16.msra.mxu0 %v12920_v37 }
 0x243   :  { %12925 = vmatprep.subr.bf16.mxu0 %v12924_v61 }
 0x246   :  { %12927 = vmatpush3.bf16.msra.mxu0 %v12924_v61 }
 0x247   :  { %12929 = vmatprep.subr.bf16.mxu0 %v15119_v58 }
 0x249   :  { %10727 = vmatmul.mubr.f32.vlgmr.msra.gmra.mrb[2].mxu0 %v14574_v4 }
 0x24a   :  { %12931 = vmatpush3.bf16.msra.mxu0 %v15119_v58  ;;  %10761 = vmatprep.mubr.f32.mxu0 %v14572_v3  ;;  %v15412_v3 = vsub.f32 %v15308_v19, %v15406_v51  ;;  %v9046_v58 = vld [vmem:[%s17641_s1 + $0x100] sm:$0xff] }
 0x24b   :  { %12933 = vmatprep.subr.bf16.mxu0 %v15129_v46 }
 0x24e   :  { %12935 = vmatpush3.bf16.msra.mxu0 %v15129_v46  ;;  %v9047_v46 = vld [vmem:[%s17641_s1 + $0x108] sm:$0xff] }
 0x24f   :  { %12937 = vmatprep.subr.bf16.mxu0 %v15141_v38 }
 0x252   :  { %12939 = vmatpush3.bf16.msra.mxu0 %v15141_v38  ;;  %v2533_v38 = vand.u32 4294901760, %v9046_v58 }
 0x253   :  { %12941 = vmatprep.subr.bf16.mxu0 %v15151_v44 }
 0x254   :  { %v15488_v5 = vsub.f32 %v9046_v58, %v2533_v38 }
 0x256   :  { %12943 = vmatpush3.bf16.msra.mxu0 %v15151_v44  ;;  %v2536_v44 = vand.u32 4294901760, %v9047_v46  ;;  %v2636_v11 = vand.u32 4294901760, %v15488_v5 }
 0x257   :  { %12945 = vmatprep.subr.bf16.mxu0 %v15175_v7 }
 0x258   :  { %v15431_v17 = vpack.c.bf16 %v2536_v44, %v2533_v38  ;;  %v15490_v19 = vsub.f32 %v9047_v46, %v2536_v44  ;;  %v2637_v8 = vsub.f32 %v15488_v5, %v2636_v11  ;;  %v2658_v46 = vsub.f32 %v15520_v10, %v2657_v9 }
 0x259   :  { %v2664_v38 = vand.u32 4294901760, %v15544_v15  ;;  %v2671_v44 = vand.u32 4294901760, %v15546_v26 }
 0x25a   :  { %12947 = vmatpush3.bf16.msra.mxu0 %v15175_v7  ;;  %v2615_v7 = vand.u32 4294901760, %v15412_v3  ;;  %v2643_v47 = vand.u32 4294901760, %v15490_v19  ;;  %v2638_v37 = vand.u32 4294901760, %v2637_v8 }
 0x25b   :  { %12949 = vmatprep.subr.bf16.mxu0 %v15183_v22 }
 0x25c   :  { %v2616_v34 = vsub.f32 %v15412_v3, %v2615_v7  ;;  %v2644_v1 = vsub.f32 %v15490_v19, %v2643_v47 }
 0x25e   :  { %12951 = vmatpush3.bf16.msra.mxu0 %v15183_v22  ;;  %v2539_v22 = vand.u32 4294901760, %v9048_v2  ;;  %v2617_v62 = vand.u32 4294901760, %v2616_v34  ;;  %v2645_v61 = vand.u32 4294901760, %v2644_v1  ;;  %v15575_v34 = vsub.f32 %v9054_v36, %v2557_v6 }
 0x25f   :  { %12953 = vmatprep.subr.bf16.mxu0 %v15203_v20  ;;  %v15596_v36 = vsub.f32 %v15470_v39, %v2563_v23  ;;  %v17698_v23 = vand.u32 4294901760, %v15599_v48 }
 0x260   :  { %v15518_v59 = vsub.f32 %v9048_v2, %v2539_v22  ;;  %v2678_v2 = vand.u32 4294901760, %v15548_v32 }
 0x261   :  { %v17699_v45 = vand.u32 4294901760, %v15596_v36 }
 0x262   :  { %12955 = vmatpush3.bf16.msra.mxu0 %v15203_v20  ;;  %v15444_v20 = vpack.c.bf16 %v2542_v57, %v2539_v22  ;;  %v2650_v24 = vand.u32 4294901760, %v15518_v59  ;;  %v2626_v22 = vsub.f32 %v15524_v0, %v2625_v16  ;;  %v12992_v57 = vpack.c.bf16 %v2645_v61, %v2638_v37 }
 0x263   :  { %12957 = vmatprep.subr.bf16.mxu0 %v15230_v31  ;;  %v2679_v60 = vsub.f32 %v15548_v32, %v2678_v2  ;;  %v2687_v61 = vand.u32 4294901760, %v2686_v12 }
 0x264   :  { %v2651_v58 = vsub.f32 %v15518_v59, %v2650_v24  ;;  %v2627_v6 = vand.u32 4294901760, %v2626_v22  ;;  %v15618_v22 = vsub.f32 %v15486_v29, %v2572_v18  ;;  %v15631_v29 = vsub.f32 %v15511_v14, %v2575_v63 }
 0x265   :  { %v2680_v37 = vand.u32 4294901760, %v2679_v60  ;;  %v15636_v18 = vsub.f32 %v15516_v40, %v2578_v55 }
 0x266   :  { %12959 = vmatpush3.bf16.msra.mxu0 %v15230_v31  ;;  %v15455_v31 = vpack.c.bf16 %v2548_v52, %v2545_v50  ;;  %v2652_v49 = vand.u32 4294901760, %v2651_v58  ;;  %v2659_v50 = vand.u32 4294901760, %v2658_v46  ;;  %v2665_v52 = vsub.f32 %v15544_v15, %v2664_v38 }
 0x267   :  { %12961 = vmatprep.subr.bf16.mxu0 %v15431_v17  ;;  %v15613_v46 = vsub.f32 %v15481_v13, %v2569_v30  ;;  %v17696_v30 = vand.u32 4294901760, %v15618_v22  ;;  %v17695_v14 = vand.u32 4294901760, %v15631_v29  ;;  %v17694_v63 = vand.u32 4294901760, %v15636_v18 }
 0x268   :  { %v12996_v25 = vpack.c.bf16 %v2659_v50, %v2652_v49  ;;  %v2666_v8 = vand.u32 4294901760, %v2665_v52  ;;  %v2707_v52 = vsub.f32 %v15596_v36, %v17699_v45 }
 0x269   :  { %10762 = vmatmul.mubr.f32.vlgmr.msra.gmra.mrb[2].mxu0 %v14574_v4  ;;  %v15465_v4 = vpack.c.bf16 %v2554_v33, %v2551_v41  ;;  %v17701_v41 = vand.u32 4294901760, %v15575_v34  ;;  %v17700_v33 = vand.u32 4294901760, %v15577_v42  ;;  %v17697_v13 = vand.u32 4294901760, %v15613_v46 }
 0x26a   :  { %12963 = vmatpush3.bf16.msra.mxu0 %v15431_v17  ;;  %10796 = vmatprep.mubr.f32.mxu0 %v2617_v62  ;;  %v2672_v62 = vsub.f32 %v15546_v26, %v2671_v44  ;;  %v2708_v12 = vand.u32 4294901760, %v2707_v52  ;;  %v3243_v52 = vld [vmem:[%s17642_s9] sm:$0xff] }
 0x26b   :  { %12965 = vmatprep.subr.bf16.mxu0 %v15444_v20  ;;  %v2693_v58 = vsub.f32 %v15575_v34, %v17701_v41  ;;  %v2700_v39 = vsub.f32 %v15577_v42, %v17700_v33 }
 0x26c   :  { %v2673_v1 = vand.u32 4294901760, %v2672_v62  ;;  %v2714_v62 = vsub.f32 %v15599_v48, %v17698_v23 }
 0x26d   :  { %v2694_v49 = vand.u32 4294901760, %v2693_v58  ;;  %v2701_v50 = vand.u32 4294901760, %v2700_v39 }
 0x26e   :  { %12967 = vmatpush3.bf16.msra.mxu0 %v15444_v20  ;;  %v13000_v56 = vpack.c.bf16 %v2673_v1, %v2666_v8  ;;  %v2728_v8 = vsub.f32 %v15618_v22, %v17696_v30 }
 0x26f   :  { %12969 = vmatprep.subr.bf16.mxu0 %v15455_v31  ;;  %v13008_v60 = vpack.c.bf16 %v2701_v50, %v2694_v49  ;;  %v13024_v49 = vpack.c.bf16 %v15490_v19, %v15488_v5  ;;  %v13028_v50 = vpack.c.bf16 %v15520_v10, %v15518_v59  ;;  %v13096_v5 = vpack.c.bf16 %v2671_v44, %v2664_v38 }
 0x270   :  { %v2729_v1 = vand.u32 4294901760, %v2728_v8  ;;  %v17841_v19 = vand.u32 4294901760, %v15550_v43  ;;  %v17843_v59 = vand.u32 4294901760, %v15577_v42 }
 0x272   :  { %12971 = vmatpush3.bf16.msra.mxu0 %v15455_v31 }
 0x273   :  { %12973 = vmatprep.subr.bf16.mxu0 %v15465_v4 }
 0x276   :  { %12975 = vmatpush3.bf16.msra.mxu0 %v15465_v4 }
 0x277   :  { %12977 = vmatprep.subr.bf16.mxu0 %v15493_v35 }
 0x27a   :  { %12979 = vmatpush3.bf16.msra.mxu0 %v15493_v35 }
 0x27b   :  { %12981 = vmatprep.subr.bf16.mxu0 %v15506_v27 }
 0x27e   :  { %12983 = vmatpush3.bf16.msra.mxu0 %v15506_v27 }
 0x27f   :  { %12985 = vmatprep.subr.bf16.mxu0 %v15530_v54 }
 0x282   :  { %12987 = vmatpush3.bf16.msra.mxu0 %v15530_v54 }
 0x283   :  { %12989 = vmatprep.subr.bf16.mxu0 %v15558_v21 }
 0x286   :  { %12991 = vmatpush3.bf16.msra.mxu0 %v15558_v21 }
 0x287   :  { %12993 = vmatprep.subr.bf16.mxu0 %v12992_v57 }
 0x289   :  { %10797 = vmatmul.mubr.f32.vlgmr.msra.gmra.mrb[2].mxu0 %v2627_v6  ;;  %v2715_v6 = vand.u32 4294901760, %v2714_v62  ;;  %v3244_v62 = vld [vmem:[%s17642_s9 + $0x8] sm:$0xff] }
 0x28a   :  { %12995 = vmatpush3.bf16.msra.mxu0 %v12992_v57  ;;  %10831 = vmatprep.mubr.f32.mxu0 %v15406_v51  ;;  %v13004_v57 = vpack.c.bf16 %v2687_v61, %v2680_v37  ;;  %v2735_v37 = vsub.f32 %v15631_v29, %v17695_v14  ;;  %v2742_v61 = vsub.f32 %v15636_v18, %v17694_v63  ;;  %v3263_v8 = vand.u32 4294901760, %v3244_v62 }
 0x28b   :  { %12997 = vmatprep.subr.bf16.mxu0 %v12996_v25  ;;  %v13012_v40 = vpack.c.bf16 %v2715_v6, %v2708_v12  ;;  %v13032_v12 = vpack.c.bf16 %v15546_v26, %v15544_v15  ;;  %v17708_v6 = vmov 0.0|0.0   ;;  %v17846_v15 = vand.u32 4294901760, %v15613_v46 }
 0x28c   :  { %v2736_v39 = vand.u32 4294901760, %v2735_v37  ;;  %13176 = vmatprep.subr.bf16.mxu1 %v17708_v6  ;;  %v3248_v37 = vld [vmem:[%s17642_s9 + $0x28] sm:$0xff]  ;;  %v15685_v63 = vsub.f32 %v3244_v62, %v3263_v8  ;;  %v17847_v26 = vand.u32 4294901760, %v15618_v22 }
 0x28e   :  { %12999 = vmatpush3.bf16.msra.mxu0 %v12996_v25  ;;  %v2721_v25 = vsub.f32 %v15613_v46, %v17697_v13  ;;  %v17702_v41 = vand.u32 4294901760, %v15685_v63 }
 0x28f   :  { %13001 = vmatprep.subr.bf16.mxu0 %v13000_v56 }
 0x290   :  { %v2722_v55 = vand.u32 4294901760, %v2721_v25  ;;  %v3260_v25 = vand.u32 4294901760, %v3243_v52 }
 0x292   :  { %13003 = vmatpush3.bf16.msra.mxu0 %v13000_v56  ;;  %v13016_v58 = vpack.c.bf16 %v2729_v1, %v2722_v55  ;;  %v2743_v56 = vand.u32 4294901760, %v2742_v61  ;;  %v3247_v1 = vld [vmem:[%s17642_s9 + $0x20] sm:$0xff]  ;;  %v13036_v61 = vpack.c.bf16 %v15550_v43, %v15548_v32  ;;  %v13112_v32 = vpack.c.bf16 %v17847_v26, %v17846_v15  ;;  %v3258_v15 = vld [vmem:[%s17642_s9 + $0x78] sm:$0xff] }
 0x293   :  { %13005 = vmatprep.subr.bf16.mxu0 %v13004_v57  ;;  %v17848_v43 = vand.u32 4294901760, %v15631_v29 }
 0x296   :  { %13007 = vmatpush3.bf16.msra.mxu0 %v13004_v57  ;;  %v13020_v57 = vpack.c.bf16 %v2743_v56, %v2736_v39  ;;  %v3272_v39 = vand.u32 4294901760, %v3247_v1  ;;  %v3275_v56 = vand.u32 4294901760, %v3248_v37 }
 0x297   :  { %13009 = vmatprep.subr.bf16.mxu0 %v13008_v60 }
 0x298   :  { %v15693_v23 = vpack.c.bf16 %v3275_v56, %v3272_v39  ;;  %v15695_v45 = vsub.f32 %v3247_v1, %v3272_v39  ;;  %v15700_v62 = vsub.f32 %v3248_v37, %v3275_v56  ;;  %v13040_v1 = vpack.c.bf16 %v15577_v42, %v15575_v34 }
 0x29a   :  { %13011 = vmatpush3.bf16.msra.mxu0 %v13008_v60  ;;  %v3245_v60 = vld [vmem:[%s17642_s9 + $0x10] sm:$0xff]  ;;  %17838 = vst [vmem:[#allocation21_spill] sm:$0xff] %v15693_v23 }
 0x29b   :  { %13013 = vmatprep.subr.bf16.mxu0 %v13012_v40  ;;  %v3266_v55 = vand.u32 4294901760, %v3245_v60 }
 0x29d   :  { %v15687_v14 = vsub.f32 %v3245_v60, %v3266_v55 }
 0x29e   :  { %13015 = vmatpush3.bf16.msra.mxu0 %v13012_v40  ;;  %v3246_v40 = vld [vmem:[%s17642_s9 + $0x18] sm:$0xff] }
 0x29f   :  { %13017 = vmatprep.subr.bf16.mxu0 %v13016_v58 }
 0x2a2   :  { %13019 = vmatpush3.bf16.msra.mxu0 %v13016_v58  ;;  %v3269_v58 = vand.u32 4294901760, %v3246_v40 }
 0x2a3   :  { %13021 = vmatprep.subr.bf16.mxu0 %v13020_v57 }
 0x2a4   :  { %v15689_v30 = vpack.c.bf16 %v3269_v58, %v3266_v55  ;;  %v15691_v13 = vsub.f32 %v3246_v40, %v3269_v58  ;;  %v3388_v55 = vand.u32 4294901760, %v15700_v62 }
 0x2a6   :  { %13023 = vmatpush3.bf16.msra.mxu0 %v13020_v57  ;;  %v15681_v57 = vpack.c.bf16 %v3263_v8, %v3260_v25  ;;  %17837 = vst [vmem:[#allocation20_spill] sm:$0xff] %v15689_v30  ;;  %v17705_v60 = vand.u32 4294901760, %v15691_v13  ;;  %v3361_v8 = vsub.f32 %v15685_v63, %v17702_v41 }
 0x2a7   :  { %13025 = vmatprep.subr.bf16.mxu0 %v13024_v49 }
 0x2a8   :  { %17836 = vst [vmem:[#allocation3_spill] sm:$0xff] %v15681_v57  ;;  %v3375_v37 = vsub.f32 %v15691_v13, %v17705_v60  ;;  %v3362_v56 = vand.u32 4294901760, %v3361_v8  ;;  %v13044_v60 = vpack.c.bf16 %v15599_v48, %v15596_v36  ;;  %v13048_v8 = vpack.c.bf16 %v15618_v22, %v15613_v46  ;;  %v15862_v46 = vld [vmem:[%s17642_s9 + $0x50] sm:$0xff]  ;;  %v15867_v22 = vld [vmem:[%s17642_s9 + $0x58] sm:$0xff] }
 0x2a9   :  { %10832 = vmatmul.mubr.f32.vlgmr.msra.gmra.mrb[2].mxu0 %v15498_v28 }
 0x2aa   :  { %13027 = vmatpush3.bf16.msra.mxu0 %v13024_v49  ;;  %10866 = vmatprep.mubr.f32.mxu0 %v15412_v3  ;;  %v15683_v49 = vsub.f32 %v3243_v52, %v3260_v25  ;;  %v17703_v52 = vand.u32 4294901760, %v15687_v14  ;;  %v13088_v3 = vpack.c.bf16 %v2643_v47, %v2636_v11  ;;  %v13100_v11 = vpack.c.bf16 %v17841_v19, %v2678_v2 }
 0x2ab   :  { %13029 = vmatprep.subr.bf16.mxu0 %v13028_v50  ;;  %v17842_v47 = vand.u32 4294901760, %v15575_v34 }
 0x2ac   :  { %v17704_v33 = vand.u32 4294901760, %v15683_v49  ;;  %v3368_v40 = vsub.f32 %v15687_v14, %v17703_v52  ;;  %v3389_v52 = vsub.f32 %v15700_v62, %v3388_v55 }
 0x2ad   :  { %v13104_v10 = vpack.c.bf16 %v17843_v59, %v17842_v47 }
 0x2ae   :  { %13031 = vmatpush3.bf16.msra.mxu0 %v13028_v50  ;;  %v17707_v50 = vand.u32 4294901760, %v15695_v45  ;;  %v3354_v25 = vsub.f32 %v15683_v49, %v17704_v33  ;;  %v3369_v41 = vand.u32 4294901760, %v3368_v40  ;;  %v3293_v40 = vand.u32 4294901760, %v15867_v22 }
 0x2af   :  { %13033 = vmatprep.subr.bf16.mxu0 %v13032_v12 }
 0x2b0   :  { %v3382_v58 = vsub.f32 %v15695_v45, %v17707_v50  ;;  %v3355_v39 = vand.u32 4294901760, %v3354_v25  ;;  %v3390_v25 = vand.u32 4294901760, %v3389_v52 }
 0x2b2   :  { %13035 = vmatpush3.bf16.msra.mxu0 %v13032_v12  ;;  %v3376_v12 = vand.u32 4294901760, %v3375_v37  ;;  %v15725_v33 = vpack.c.bf16 %v3362_v56, %v3355_v39  ;;  %v3383_v50 = vand.u32 4294901760, %v3382_v58  ;;  %v15885_v56 = vsub.f32 %v15867_v22, %v3293_v40 }
 0x2b3   :  { %13037 = vmatprep.subr.bf16.mxu0 %v13036_v61 }
 0x2b4   :  { %13178 = vmatpush3.bf16.msra.mxu1 %v15725_v33  ;;  %v15730_v53 = vpack.c.bf16 %v3376_v12, %v3369_v41  ;;  %v13052_v41 = vpack.c.bf16 %v15636_v18, %v15631_v29  ;;  %v3255_v12 = vld [vmem:[%s17642_s9 + $0x60] sm:$0xff]  ;;  %v3430_v19 = vand.u32 4294901760, %v15885_v56 }
 0x2b5   :  { %13179 = vmatprep.subr.bf16.mxu1 %v17708_v6 }
 0x2b6   :  { %13039 = vmatpush3.bf16.msra.mxu0 %v13036_v61  ;;  %17839 = vst [vmem:[#allocation22_spill] sm:$0xff] %v15730_v53  ;;  %v15736_v61 = vpack.c.bf16 %v3390_v25, %v3383_v50  ;;  %v3290_v50 = vand.u32 4294901760, %v15862_v46  ;;  %v3256_v25 = vld [vmem:[%s17642_s9 + $0x68] sm:$0xff] }
 0x2b7   :  { %13041 = vmatprep.subr.bf16.mxu0 %v13040_v1 }
 0x2b8   :  { %13181 = vmatpush3.bf16.msra.mxu1 %v15730_v53  ;;  %17840 = vst [vmem:[#allocation23_spill] sm:$0xff] %v15736_v61  ;;  %v15882_v39 = vsub.f32 %v15862_v46, %v3290_v50 }
 0x2b9   :  { %13182 = vmatprep.subr.bf16.mxu1 %v17708_v6 }
 0x2ba   :  { %13043 = vmatpush3.bf16.msra.mxu0 %v13040_v1 }
 0x2bb   :  { %13045 = vmatprep.subr.bf16.mxu0 %v13044_v60 }
 0x2bc   :  { %13184 = vmatpush3.bf16.msra.mxu1 %v15736_v61 }
 0x2bd   :  { %13185 = vmatprep.subr.bf16.mxu1 %v17708_v6 }
 0x2be   :  { %13047 = vmatpush3.bf16.msra.mxu0 %v13044_v60 }
 0x2bf   :  { %13049 = vmatprep.subr.bf16.mxu0 %v13048_v8 }
 0x2c2   :  { %13051 = vmatpush3.bf16.msra.mxu0 %v13048_v8 }
 0x2c3   :  { %13053 = vmatprep.subr.bf16.mxu0 %v13052_v41 }
 0x2c6   :  { %13055 = vmatpush3.bf16.msra.mxu0 %v13052_v41 }
 0x2c7   :  { %13057 = vmatprep.subr.bf16.mxu0 %v15431_v17 }
 0x2c9   :  { %10867 = vmatmul.mubr.f32.vlgmr.msra.gmra.mrb[2].mxu0 %v15524_v0  ;;  %v17844_v0 = vand.u32 4294901760, %v15596_v36 }
 0x2ca   :  { %13059 = vmatpush3.bf16.msra.mxu0 %v15431_v17  ;;  %10901 = vmatprep.mubr.f32.mxu0 %v2615_v7  ;;  %v13092_v7 = vpack.c.bf16 %v2657_v9, %v2650_v24  ;;  %v17845_v24 = vand.u32 4294901760, %v15599_v48 }
 0x2cb   :  { %13061 = vmatprep.subr.bf16.mxu0 %v15444_v20 }
 0x2cc   :  { %v13108_v9 = vpack.c.bf16 %v17845_v24, %v17844_v0  ;;  %v3431_v24 = vsub.f32 %v15885_v56, %v3430_v19 }
 0x2ce   :  { %13063 = vmatpush3.bf16.msra.mxu0 %v15444_v20 }
 0x2cf   :  { %13065 = vmatprep.subr.bf16.mxu0 %v15455_v31 }
 0x2d2   :  { %13067 = vmatpush3.bf16.msra.mxu0 %v15455_v31 }
 0x2d3   :  { %13069 = vmatprep.subr.bf16.mxu0 %v15465_v4 }
 0x2d6   :  { %13071 = vmatpush3.bf16.msra.mxu0 %v15465_v4 }
 0x2d7   :  { %13073 = vmatprep.subr.bf16.mxu0 %v15493_v35 }
 0x2da   :  { %13075 = vmatpush3.bf16.msra.mxu0 %v15493_v35 }
 0x2db   :  { %13077 = vmatprep.subr.bf16.mxu0 %v15506_v27 }
 0x2de   :  { %13079 = vmatpush3.bf16.msra.mxu0 %v15506_v27 }
 0x2df   :  { %13081 = vmatprep.subr.bf16.mxu0 %v15530_v54 }
 0x2e2   :  { %13083 = vmatpush3.bf16.msra.mxu0 %v15530_v54 }
 0x2e3   :  { %13085 = vmatprep.subr.bf16.mxu0 %v15558_v21 }
 0x2e6   :  { %13087 = vmatpush3.bf16.msra.mxu0 %v15558_v21 }
 0x2e7   :  { %13089 = vmatprep.subr.bf16.mxu0 %v13088_v3 }
 0x2e9   :  { %10902 = vmatmul.mubr.f32.vlgmr.msra.gmra.mrb[2].mxu0 %v2625_v16  ;;  %v17849_v16 = vand.u32 4294901760, %v15636_v18 }
 0x2ea   :  { %13091 = vmatpush3.bf16.msra.mxu0 %v13088_v3  ;;  %10936 = vmatprep.mubr.f32.mxu0 %v15406_v51  ;;  %v3296_v3 = vand.u32 4294901760, %v3255_v12 }
 0x2eb   :  { %13093 = vmatprep.subr.bf16.mxu0 %v13092_v7  ;;  %v13116_v38 = vpack.c.bf16 %v17849_v16, %v17848_v43  ;;  %v3305_v16 = vand.u32 4294901760, %v3258_v15 }
 0x2ec   :  { %v15899_v47 = vsub.f32 %v3255_v12, %v3296_v3 }
 0x2ee   :  { %13095 = vmatpush3.bf16.msra.mxu0 %v13092_v7  ;;  %v3299_v7 = vand.u32 4294901760, %v3256_v25  ;;  %v3437_v26 = vand.u32 4294901760, %v15899_v47 }
 0x2ef   :  { %13097 = vmatprep.subr.bf16.mxu0 %v13096_v5 }
 0x2f0   :  { %v15901_v59 = vsub.f32 %v3256_v25, %v3299_v7 }
 0x2f2   :  { %13099 = vmatpush3.bf16.msra.mxu0 %v13096_v5  ;;  %v3423_v5 = vand.u32 4294901760, %v15882_v39 }
 0x2f3   :  { %13101 = vmatprep.subr.bf16.mxu0 %v13100_v11 }
 0x2f4   :  { %v3424_v0 = vsub.f32 %v15882_v39, %v3423_v5 }
 0x2f6   :  { %13103 = vmatpush3.bf16.msra.mxu0 %v13100_v11 }
 0x2f7   :  { %13105 = vmatprep.subr.bf16.mxu0 %v13104_v10 }
 0x2fa   :  { %13107 = vmatpush3.bf16.msra.mxu0 %v13104_v10 }
 0x2fb   :  { %13109 = vmatprep.subr.bf16.mxu0 %v13108_v9 }
 0x2fe   :  { %13111 = vmatpush3.bf16.msra.mxu0 %v13108_v9  ;;  %v3257_v9 = vld [vmem:[%s17642_s9 + $0x70] sm:$0xff] }
 0x2ff   :  { %13113 = vmatprep.subr.bf16.mxu0 %v13112_v32  ;;  %v3302_v43 = vand.u32 4294901760, %v3257_v9 }
 0x302   :  { %13115 = vmatpush3.bf16.msra.mxu0 %v13112_v32  ;;  %v3444_v32 = vand.u32 4294901760, %v15901_v59 }
 0x303   :  { %13117 = vmatprep.subr.bf16.mxu0 %v13116_v38 }
 0x306   :  { %13119 = vmatpush3.bf16.msra.mxu0 %v13116_v38  ;;  %v3425_v38 = vand.u32 4294901760, %v3424_v0  ;;  %v15967_v0 = vpack.c.bf16 %v3305_v16, %v3302_v43 }
 0x307   :  { %13121 = vmatprep.subr.bf16.mxu0 %v15431_v17 }
 0x308   :  { %17860 = vst [vmem:[#allocation33_spill] sm:$0xff] %v15967_v0 }
 0x309   :  { %10937 = vmatmul.mubr.f32.vlgmr.msra.gmra.mrb[2].mxu0 %v15498_v28 }
 0x30a   :  { %13123 = vmatpush3.bf16.msra.mxu0 %v15431_v17  ;;  %10971 = vmatprep.mubr.f32.mxu0 %v15406_v51  ;;  %v3249_v51 = vld [vmem:[%s17642_s9 + $0x30] sm:$0xff]  ;;  %v3250_v17 = vld [vmem:[%s17642_s9 + $0x38] sm:$0xff] }
 0x30b   :  { %13125 = vmatprep.subr.bf16.mxu0 %v15444_v20 }
 0x30e   :  { %13127 = vmatpush3.bf16.msra.mxu0 %v15444_v20  ;;  %v3278_v20 = vand.u32 4294901760, %v3249_v51 }
 0x30f   :  { %13129 = vmatprep.subr.bf16.mxu0 %v15455_v31 }
 0x312   :  { %13131 = vmatpush3.bf16.msra.mxu0 %v15455_v31  ;;  %v3281_v31 = vand.u32 4294901760, %v3250_v17 }
 0x313   :  { %13133 = vmatprep.subr.bf16.mxu0 %v15465_v4 }
 0x314   :  { %v15903_v10 = vpack.c.bf16 %v3281_v31, %v3278_v20 }
 0x316   :  { %13135 = vmatpush3.bf16.msra.mxu0 %v15465_v4  ;;  %v15829_v4 = vsub.f32 %v3249_v51, %v3278_v20  ;;  %17852 = vst [vmem:[#allocation26_spill] sm:$0xff] %v15903_v10  ;;  %v3432_v51 = vand.u32 4294901760, %v3431_v24  ;;  %v3445_v20 = vsub.f32 %v15901_v59, %v3444_v32 }
 0x317   :  { %13137 = vmatprep.subr.bf16.mxu0 %v15493_v35 }
 0x31a   :  { %13139 = vmatpush3.bf16.msra.mxu0 %v15493_v35  ;;  %v15831_v35 = vsub.f32 %v3250_v17, %v3281_v31  ;;  %v3438_v17 = vsub.f32 %v15899_v47, %v3437_v26  ;;  %v15929_v31 = vsub.f32 %v3257_v9, %v3302_v43  ;;  %v9062_v9 = vld [vmem:[%s17643_s3] ss:$0 sm:$0xff] }
 0x31b   :  { %13141 = vmatprep.subr.bf16.mxu0 %v15506_v27 }
 0x31c   :  { %v3451_v46 = vand.u32 4294901760, %v15929_v31 }
 0x31e   :  { %13143 = vmatpush3.bf16.msra.mxu0 %v15506_v27  ;;  %v15841_v27 = vld [vmem:[%s17642_s9 + $0x48] sm:$0xff] }
 0x31f   :  { %13145 = vmatprep.subr.bf16.mxu0 %v15530_v54  ;;  %v3287_v2 = vand.u32 4294901760, %v15841_v27 }
 0x321   :  { %v15857_v48 = vsub.f32 %v15841_v27, %v3287_v2  ;;  %v15933_v27 = vpack.c.bf16 %v3432_v51, %v3425_v38 }
 0x322   :  { %13147 = vmatpush3.bf16.msra.mxu0 %v15530_v54  ;;  %v3395_v54 = vand.u32 4294901760, %v15829_v4 }
 0x323   :  { %13149 = vmatprep.subr.bf16.mxu0 %v15558_v21  ;;  %v3416_v60 = vand.u32 4294901760, %v15857_v48  ;;  %17853 = vst [vmem:[#allocation27_spill] sm:$0xff] %v15933_v27 }
 0x324   :  { %v3396_v34 = vsub.f32 %v15829_v4, %v3395_v54 }
 0x325   :  { %v3417_v58 = vsub.f32 %v15857_v48, %v3416_v60 }
 0x326   :  { %13151 = vmatpush3.bf16.msra.mxu0 %v15558_v21  ;;  %v3402_v21 = vand.u32 4294901760, %v15831_v35  ;;  %v3397_v29 = vand.u32 4294901760, %v3396_v34  ;;  %v3439_v34 = vand.u32 4294901760, %v3438_v17 }
 0x327   :  { %13152 = vmatprep.subr.bf16.mxu0 %v17708_v6  ;;  %v3418_v41 = vand.u32 4294901760, %v3417_v58 }
 0x328   :  { %v3403_v42 = vsub.f32 %v15831_v35, %v3402_v21 }
 0x329   :  { %10972 = vmatmul.mubr.f32.vlgmr.msra.gmra.mrb[2].mxu0 %v15498_v28  ;;  %v15836_v28 = vld [vmem:[%s17642_s9 + $0x40] sm:$0xff] }
 0x32a   :  { %13154 = vmatpush3.bf16.msra.mxu0 %v15681_v57  ;;  %v3284_v44 = vand.u32 4294901760, %v15836_v28  ;;  %v3404_v18 = vand.u32 4294901760, %v3403_v42  ;;  %v3446_v42 = vand.u32 4294901760, %v3445_v20 }
 0x32b   :  { %13155 = vmatprep.subr.bf16.mxu0 %v17708_v6 }
 0x32c   :  { %v15854_v36 = vsub.f32 %v15836_v28, %v3284_v44  ;;  %v15873_v1 = vpack.c.bf16 %v3404_v18, %v3397_v29  ;;  %v15931_v28 = vsub.f32 %v3258_v15, %v3305_v16  ;;  %v15939_v29 = vpack.c.bf16 %v3446_v42, %v3439_v34 }
 0x32d   :  { %v3452_v18 = vsub.f32 %v15929_v31, %v3451_v46  ;;  %v15947_v58 = vpack.c.bf16 %v3287_v2, %v3284_v44  ;;  %v15961_v44 = vpack.c.bf16 %v3299_v7, %v3296_v3  ;;  %v17859_v2 = vmov 0.0  }
 0x32e   :  { %13157 = vmatpush3.bf16.msra.mxu0 %v15689_v30  ;;  %v3409_v52 = vand.u32 4294901760, %v15854_v36  ;;  %17850 = vst [vmem:[#allocation24_spill] sm:$0xff] %v15873_v1  ;;  %13187 = vmatpush3.bf16.msra.mxu1 %v15873_v1  ;;  %v3458_v22 = vand.u32 4294901760, %v15931_v28  ;;  %17854 = vst [vmem:[#allocation28_spill] sm:$0xff] %v15939_v29  ;;  %v15983_v3 = vpack.c.bf16 %v15885_v56, %v15882_v39 }
 0x32f   :  { %13158 = vmatprep.subr.bf16.mxu0 %v17708_v6  ;;  %13188 = vmatprep.subr.bf16.mxu1 %v17708_v6  ;;  %17855 = vst [vmem:[#allocation29_spill] sm:$0xff] %v15947_v58  ;;  %v3453_v12 = vand.u32 4294901760, %v3452_v18  ;;  %17858 = vst [vmem:[#allocation32_spill] sm:$0xff] %v15961_v44  ;;  %v15987_v7 = vpack.c.bf16 %v15901_v59, %v15899_v47  ;;  %v15991_v24 = vpack.c.bf16 %v15931_v28, %v15929_v31  ;;  %v17882_v31 = vld [vmem:[#allocation10_spill] sm:$0xff] }
 0x330   :  { %v3410_v37 = vsub.f32 %v15854_v36, %v3409_v52  ;;  %11041 = vmatprep.mubr.msk.f32.mxu1 %vm14510_vm12, %v17859_v2  ;;  %11006 = vmatprep.mubr.msk.f32.mxu0 %vm14510_vm12, %v17859_v2  ;;  %17863 = vst [vmem:[#allocation36_spill] sm:$0xff] %v15983_v3 }
 0x331   :  { %17864 = vst [vmem:[#allocation37_spill] sm:$0xff] %v15987_v7  ;;  %17865 = vst [vmem:[#allocation38_spill] sm:$0xff] %v15991_v24 }
 0x332   :  { %13160 = vmatpush3.bf16.msra.mxu0 %v15693_v23  ;;  %v3411_v8 = vand.u32 4294901760, %v3410_v37  ;;  %v3459_v37 = vsub.f32 %v15931_v28, %v3458_v22 }
 0x333   :  { %13161 = vmatprep.subr.bf16.mxu0 %v17708_v6 }
 0x334   :  { %v15897_v11 = vpack.c.bf16 %v3418_v41, %v3411_v8  ;;  %v3460_v25 = vand.u32 4294901760, %v3459_v37  ;;  %v15955_v41 = vpack.c.bf16 %v3293_v40, %v3290_v50  ;;  %v15975_v50 = vpack.c.bf16 %v15831_v35, %v15829_v4 }
 0x335   :  { %v15979_v40 = vpack.c.bf16 %v15857_v48, %v15854_v36 }
 0x336   :  { %17851 = vst [vmem:[#allocation25_spill] sm:$0xff] %v15897_v11  ;;  %13190 = vmatpush3.bf16.msra.mxu1 %v15897_v11  ;;  %13163 = vmatpush3.bf16.msra.mxu0 %v15903_v10  ;;  %v15953_v8 = vpack.c.bf16 %v3460_v25, %v3453_v12  ;;  %17857 = vst [vmem:[#allocation31_spill] sm:$0xff] %v15955_v41  ;;  %v16004_v12 = vpack.c.bf16 %v15685_v63, %v15683_v49 }
 0x337   :  { %13191 = vmatprep.subr.bf16.mxu1 %v17708_v6  ;;  %13164 = vmatprep.subr.bf16.mxu0 %v17708_v6  ;;  %17861 = vst [vmem:[#allocation34_spill] sm:$0xff] %v15975_v50  ;;  %17862 = vst [vmem:[#allocation35_spill] sm:$0xff] %v15979_v40 }
 0x338   :  { %17856 = vst [vmem:[#allocation30_spill] sm:$0xff] %v15953_v8  ;;  %17866 = vst [vmem:[#allocation39_spill] sm:$0xff] %v16004_v12 }
 0x33a   :  { %13193 = vmatpush3.bf16.msra.mxu1 %v15933_v27  ;;  %13166 = vmatpush3.bf16.msra.mxu0 %v15947_v58 }
 0x33b   :  { %13194 = vmatprep.subr.bf16.mxu1 %v17708_v6  ;;  %13167 = vmatprep.subr.bf16.mxu0 %v17708_v6 }
 0x33e   :  { %13196 = vmatpush3.bf16.msra.mxu1 %v15939_v29  ;;  %13169 = vmatpush3.bf16.msra.mxu0 %v15955_v41 }
 0x33f   :  { %13197 = vmatprep.subr.bf16.mxu1 %v17708_v6  ;;  %13170 = vmatprep.subr.bf16.mxu0 %v17708_v6 }
 0x342   :  { %13199 = vmatpush3.bf16.msra.mxu1 %v15953_v8  ;;  %13172 = vmatpush3.bf16.msra.mxu0 %v15961_v44 }
 0x343   :  { %13200 = vmatprep.subr.bf16.mxu1 %v17708_v6  ;;  %13173 = vmatprep.subr.bf16.mxu0 %v17708_v6 }
 0x346   :  { %13175 = vmatpush3.bf16.msra.mxu0 %v15967_v0 }
 0x347   :  { %14064 = vmatprep.subr.bf16.mxu0 %v17708_v6 }
 0x3fc   :  { %v10973_v15 = vpop.f32.mrb[2].mxu0 }
 0x3fd   :  { %v15996_v43 = vadd.f32 %v10973_v15, %v9062_v9  ;;  %v3206_v16 = vpop.f32.mrb[3].mxu0 }
 0x3fe   :  { %v15998_v38 = vadd.f32 %v9062_v9, %v3206_v16  ;;  %v16013_v9 = vpack.c.bf16 %v15691_v13, %v15687_v14 }
 0x3ff   :  { %v3235_v4 = vmul.f32 %v15996_v43, %v15996_v43 }
 0x400   :  { %v3227_v51 = vadd.f32 %v15996_v43, %v15998_v38  ;;  %17867 = vst [vmem:[#allocation40_spill] sm:$0xff] %v16013_v9  ;;  %v3234_v35 = vmul.f32 %v15998_v38, %v15998_v38 }
 0x402   :  { %v3228_v17 = vrot.slane %v3227_v51, 4 }
 0x404   :  { %v3229_v20 = vadd.f32 %v3228_v17, %v3227_v51  ;;  %v16021_v17 = vpack.c.bf16 %v15700_v62, %v15695_v45  ;;  %v16125_v62 = vpack.c.bf16 %v3444_v32, %v3437_v26 }
 0x406   :  { %v3230_v34 = vrot.slane %v3229_v20, 2  ;;  %17868 = vst [vmem:[#allocation41_spill] sm:$0xff] %v16021_v17  ;;  %17880 = vst [vmem:[#allocation48_spill] sm:$0xff] %v16125_v62 }
 0x408   :  { %v3231_v42 = vadd.f32 %v3230_v34, %v3229_v20  ;;  %v17869_v34 = vand.u32 4294901760, %v15683_v49 }
 0x40a   :  { %v3232_v18 = vrot.slane %v3231_v42, 1 }
 0x40c   :  { %v3233_v37 = vadd.f32 %v3232_v18, %v3231_v42  ;;  %v17870_v42 = vand.u32 4294901760, %v15685_v63  ;;  %v17875_v63 = vand.u32 4294901760, %v15695_v45  ;;  %v16109_v45 = vpack.c.bf16 %v3416_v60, %v3409_v52 }
 0x40e   :  { %v16006_v25 = vand.u32 4294901760, %v3233_v37  ;;  %v16075_v18 = vpack.c.bf16 %v17870_v42, %v17869_v34  ;;  %v16093_v49 = vpack.c.bf16 %v3388_v55, %v17875_v63  ;;  %17878 = vst [vmem:[#allocation46_spill] sm:$0xff] %v16109_v45  ;;  %v16133_v55 = vpack.c.bf16 %v3458_v22, %v3451_v46 }
 0x410   :  { %v3341_v15 = vsub.f32 %v3233_v37, %v16006_v25  ;;  %11042 = vmatmul.mubr.f32.vlgmr.msra.gmra.mrb[4].mxu1 %v16006_v25  ;;  %17871 = vst [vmem:[#allocation42_spill] sm:$0xff] %v16075_v18  ;;  %v17872_v37 = vand.u32 4294901760, %v15687_v14  ;;  %17876 = vst [vmem:[#allocation44_spill] sm:$0xff] %v16093_v49  ;;  %v16117_v14 = vpack.c.bf16 %v3430_v19, %v3423_v5 }
 0x411   :  { %13202 = vmatpush3.bf16.msra.mxu1 %v16004_v12  ;;  %11076 = vmatprep.mubr.msk.f32.mxu1 %vm14510_vm12, %v17859_v2  ;;  %17881 = vst [vmem:[#allocation49_spill] sm:$0xff] %v16133_v55 }
 0x412   :  { %13203 = vmatprep.subr.bf16.mxu1 %v17708_v6  ;;  %v3342_v16 = vand.u32 4294901760, %v3341_v15  ;;  %17879 = vst [vmem:[#allocation47_spill] sm:$0xff] %v16117_v14 }
 0x414   :  { %v3343_v51 = vsub.f32 %v3341_v15, %v3342_v16 }
 0x415   :  { %13205 = vmatpush3.bf16.msra.mxu1 %v16013_v9 }
 0x416   :  { %13206 = vmatprep.subr.bf16.mxu1 %v17708_v6  ;;  %v3344_v20 = vand.u32 4294901760, %v3343_v51 }
 0x418   :  { %11007 = vmatmul.mubr.f32.vlgmr.msra.gmra.mrb[4].mxu0 %v3344_v20 }
 0x419   :  { %13208 = vmatpush3.bf16.msra.mxu1 %v16021_v17  ;;  %14066 = vmatpush3.bf16.msra.mxu0 %v15681_v57 }
 0x41a   :  { %13209 = vmatprep.subr.bf16.mxu1 %v17708_v6  ;;  %14067 = vmatprep.subr.bf16.mxu0 %v17708_v6 }
 0x41b   :  { %12140 = vmatprep.mubr.msk.f32.mxu0 %vm14510_vm12, %v17859_v2 }
 0x41d   :  { %13211 = vmatpush3.bf16.msra.mxu1 %v15975_v50  ;;  %14069 = vmatpush3.bf16.msra.mxu0 %v15689_v30 }
 0x41e   :  { %13212 = vmatprep.subr.bf16.mxu1 %v17708_v6  ;;  %14070 = vmatprep.subr.bf16.mxu0 %v17708_v6 }
 0x421   :  { %13214 = vmatpush3.bf16.msra.mxu1 %v15979_v40  ;;  %14072 = vmatpush3.bf16.msra.mxu0 %v15693_v23 }
 0x422   :  { %13215 = vmatprep.subr.bf16.mxu1 %v17708_v6  ;;  %14073 = vmatprep.subr.bf16.mxu0 %v17708_v6 }
 0x425   :  { %13217 = vmatpush3.bf16.msra.mxu1 %v15983_v3  ;;  %14075 = vmatpush3.bf16.msra.mxu0 %v15903_v10 }
 0x426   :  { %13218 = vmatprep.subr.bf16.mxu1 %v17708_v6  ;;  %14076 = vmatprep.subr.bf16.mxu0 %v17708_v6 }
 0x429   :  { %13220 = vmatpush3.bf16.msra.mxu1 %v15987_v7  ;;  %14078 = vmatpush3.bf16.msra.mxu0 %v15947_v58 }
 0x42a   :  { %13221 = vmatprep.subr.bf16.mxu1 %v17708_v6  ;;  %14079 = vmatprep.subr.bf16.mxu0 %v17708_v6 }
 0x42d   :  { %13223 = vmatpush3.bf16.msra.mxu1 %v15991_v24  ;;  %14081 = vmatpush3.bf16.msra.mxu0 %v15955_v41 }
 0x42e   :  { %13224 = vmatprep.subr.bf16.mxu1 %v17708_v6  ;;  %14082 = vmatprep.subr.bf16.mxu0 %v17708_v6 }
 0x430   :  { %11077 = vmatmul.mubr.f32.vlgmr.msra.gmra.mrb[4].mxu1 %v3341_v15  ;;  %v17873_v15 = vand.u32 4294901760, %v15691_v13  ;;  %v16101_v13 = vpack.c.bf16 %v3402_v21, %v3395_v54  ;;  %v3236_v54 = vadd.f32 %v3235_v4, %v3234_v35 }
 0x431   :  { %13226 = vmatpush3.bf16.msra.mxu1 %v15681_v57  ;;  %11111 = vmatprep.mubr.msk.f32.mxu1 %vm14510_vm12, %v17859_v2 }
 0x432   :  { %13227 = vmatprep.subr.bf16.mxu1 %v17708_v6  ;;  %14084 = vmatpush3.bf16.msra.mxu0 %v15961_v44  ;;  %v16083_v51 = vpack.c.bf16 %v17873_v15, %v17872_v37  ;;  %17877 = vst [vmem:[#allocation45_spill] sm:$0xff] %v16101_v13  ;;  %v3237_v21 = vrot.slane %v3236_v54, 4  ;;  %v4543_v37 = vld [vmem:[%s17644_s4] sm:$0x1] }
 0x433   :  { %14085 = vmatprep.subr.bf16.mxu0 %v17708_v6  ;;  %v17883_v15 = vld [vmem:[#allocation2_spill] sm:$0xff] }
 0x434   :  { %17874 = vst [vmem:[#allocation43_spill] sm:$0xff] %v16083_v51  ;;  %v3238_v36 = vadd.f32 %v3237_v21, %v3236_v54  ;;  %v16285_v63 = vsub.s32 0, %v17883_v15  ;;  %v4547_v54 = vld [vmem:[%s17645_s5] sm:$0x1] }
 0x435   :  { %13229 = vmatpush3.bf16.msra.mxu1 %v15689_v30  ;;  %v17887_v15 = vld [vmem:[#allocation6_spill] sm:$0xff] }
 0x436   :  { %13230 = vmatprep.subr.bf16.mxu1 %v17708_v6  ;;  %14087 = vmatpush3.bf16.msra.mxu0 %v15967_v0  ;;  %v3239_v48 = vrot.slane %v3238_v36, 2  ;;  %17884 = vst [vmem:[#allocation10_spill] sm:$0xff] %v16285_v63 }
 0x437   :  { %14088 = vmatprep.subr.bf16.mxu0 %v17708_v6 }
 0x438   :  { %v3240_v52 = vadd.f32 %v3239_v48, %v3238_v36 }
 0x439   :  { %13232 = vmatpush3.bf16.msra.mxu1 %v15693_v23 }
 0x43a   :  { %13233 = vmatprep.subr.bf16.mxu1 %v17708_v6  ;;  %v3241_v60 = vrot.slane %v3240_v52, 1 }
 0x43c   :  { %v3242_v39 = vadd.f32 %v3241_v60, %v3240_v52 }
 0x43d   :  { %13235 = vmatpush3.bf16.msra.mxu1 %v15903_v10 }
 0x43e   :  { %13236 = vmatprep.subr.bf16.mxu1 %v17708_v6  ;;  %v16171_v56 = vand.u32 4294901760, %v3242_v39 }
 0x440   :  { %v16177_v5 = vsub.f32 %v3242_v39, %v16171_v56 }
 0x441   :  { %13238 = vmatpush3.bf16.msra.mxu1 %v15947_v58 }
 0x442   :  { %13239 = vmatprep.subr.bf16.mxu1 %v17708_v6  ;;  %v3983_v19 = vand.u32 4294901760, %v16177_v5 }
 0x444   :  { %v3984_v47 = vsub.f32 %v16177_v5, %v3983_v19 }
 0x445   :  { %13241 = vmatpush3.bf16.msra.mxu1 %v15955_v41 }
 0x446   :  { %13242 = vmatprep.subr.bf16.mxu1 %v17708_v6  ;;  %v3985_v59 = vand.u32 4294901760, %v3984_v47 }
 0x449   :  { %13244 = vmatpush3.bf16.msra.mxu1 %v15961_v44 }
 0x44a   :  { %13245 = vmatprep.subr.bf16.mxu1 %v17708_v6 }
 0x44d   :  { %13247 = vmatpush3.bf16.msra.mxu1 %v15967_v0 }
 0x44e   :  { %13248 = vmatprep.subr.bf16.mxu1 %v17708_v6 }
 0x450   :  { %11112 = vmatmul.mubr.f32.vlgmr.msra.gmra.mrb[4].mxu1 %v3342_v16 }
 0x451   :  { %13250 = vmatpush3.bf16.msra.mxu1 %v16075_v18  ;;  %11146 = vmatprep.mubr.msk.f32.mxu1 %vm14510_vm12, %v17859_v2 }
 0x452   :  { %13251 = vmatprep.subr.bf16.mxu1 %v17708_v6 }
 0x455   :  { %13253 = vmatpush3.bf16.msra.mxu1 %v16083_v51 }
 0x456   :  { %13254 = vmatprep.subr.bf16.mxu1 %v17708_v6 }
 0x459   :  { %13256 = vmatpush3.bf16.msra.mxu1 %v16093_v49 }
 0x45a   :  { %13257 = vmatprep.subr.bf16.mxu1 %v17708_v6 }
 0x45d   :  { %13259 = vmatpush3.bf16.msra.mxu1 %v16101_v13 }
 0x45e   :  { %13260 = vmatprep.subr.bf16.mxu1 %v17708_v6 }
 0x461   :  { %13262 = vmatpush3.bf16.msra.mxu1 %v16109_v45 }
 0x462   :  { %13263 = vmatprep.subr.bf16.mxu1 %v17708_v6 }
 0x465   :  { %13265 = vmatpush3.bf16.msra.mxu1 %v16117_v14 }
 0x466   :  { %13266 = vmatprep.subr.bf16.mxu1 %v17708_v6 }
 0x469   :  { %13268 = vmatpush3.bf16.msra.mxu1 %v16125_v62 }
 0x46a   :  { %13269 = vmatprep.subr.bf16.mxu1 %v17708_v6 }
 0x46d   :  { %13271 = vmatpush3.bf16.msra.mxu1 %v16133_v55 }
 0x46e   :  { %13272 = vmatprep.subr.bf16.mxu1 %v17708_v6 }
 0x470   :  { %11147 = vmatmul.mubr.f32.vlgmr.msra.gmra.mrb[4].mxu1 %v16006_v25 }
 0x471   :  { %13274 = vmatpush3.bf16.msra.mxu1 %v15681_v57  ;;  %11181 = vmatprep.mubr.msk.f32.mxu1 %vm14510_vm12, %v17859_v2 }
 0x472   :  { %13275 = vmatprep.subr.bf16.mxu1 %v17708_v6 }
 0x475   :  { %13277 = vmatpush3.bf16.msra.mxu1 %v15689_v30 }
 0x476   :  { %13278 = vmatprep.subr.bf16.mxu1 %v17708_v6 }
 0x479   :  { %13280 = vmatpush3.bf16.msra.mxu1 %v15693_v23 }
 0x47a   :  { %13281 = vmatprep.subr.bf16.mxu1 %v17708_v6 }
 0x47d   :  { %13283 = vmatpush3.bf16.msra.mxu1 %v15903_v10 }
 0x47e   :  { %13284 = vmatprep.subr.bf16.mxu1 %v17708_v6 }
 0x481   :  { %13286 = vmatpush3.bf16.msra.mxu1 %v15947_v58 }
 0x482   :  { %13287 = vmatprep.subr.bf16.mxu1 %v17708_v6 }
 0x485   :  { %13289 = vmatpush3.bf16.msra.mxu1 %v15955_v41 }
 0x486   :  { %13290 = vmatprep.subr.bf16.mxu1 %v17708_v6 }
 0x489   :  { %13292 = vmatpush3.bf16.msra.mxu1 %v15961_v44 }
 0x48a   :  { %13293 = vmatprep.subr.bf16.mxu1 %v17708_v6 }
 0x48d   :  { %13295 = vmatpush3.bf16.msra.mxu1 %v15967_v0 }
 0x48e   :  { %13296 = vmatprep.subr.bf16.mxu1 %v17708_v6 }
 0x490   :  { %11182 = vmatmul.mubr.f32.vlgmr.msra.gmra.mrb[4].mxu1 %v16006_v25 }
 0x491   :  { %13298 = vmatpush3.bf16.msra.mxu1 %v15681_v57  ;;  %11216 = vmatprep.mubr.msk.f32.mxu1 %vm14510_vm12, %v17859_v2 }
 0x492   :  { %13299 = vmatprep.subr.bf16.mxu1 %v17708_v6 }
 0x495   :  { %13301 = vmatpush3.bf16.msra.mxu1 %v15689_v30 }
 0x496   :  { %13302 = vmatprep.subr.bf16.mxu1 %v17708_v6 }
 0x499   :  { %13304 = vmatpush3.bf16.msra.mxu1 %v15693_v23 }
 0x49a   :  { %13305 = vmatprep.subr.bf16.mxu1 %v17708_v6 }
 0x49d   :  { %13307 = vmatpush3.bf16.msra.mxu1 %v15903_v10 }
 0x49e   :  { %13308 = vmatprep.subr.bf16.mxu1 %v17708_v6 }
 0x4a1   :  { %13310 = vmatpush3.bf16.msra.mxu1 %v15947_v58 }
 0x4a2   :  { %13311 = vmatprep.subr.bf16.mxu1 %v17708_v6 }
 0x4a5   :  { %13313 = vmatpush3.bf16.msra.mxu1 %v15955_v41 }
 0x4a6   :  { %13314 = vmatprep.subr.bf16.mxu1 %v17708_v6 }
 0x4a9   :  { %13316 = vmatpush3.bf16.msra.mxu1 %v15961_v44 }
 0x4aa   :  { %13317 = vmatprep.subr.bf16.mxu1 %v17708_v6 }
 0x4ad   :  { %13319 = vmatpush3.bf16.msra.mxu1 %v15967_v0 }
 0x4ae   :  { %13320 = vmatprep.subr.bf16.mxu1 %v17708_v6 }
 0x4b0   :  { %11217 = vmatmul.mubr.f32.vlgmr.msra.gmra.mrb[6].mxu1 %v3985_v59 }
 0x4b1   :  { %13322 = vmatpush3.bf16.msra.mxu1 %v15725_v33  ;;  %11251 = vmatprep.mubr.msk.f32.mxu1 %vm14510_vm12, %v17859_v2 }
 0x4b2   :  { %13323 = vmatprep.subr.bf16.mxu1 %v17708_v6 }
 0x4b5   :  { %13325 = vmatpush3.bf16.msra.mxu1 %v15730_v53 }
 0x4b6   :  { %13326 = vmatprep.subr.bf16.mxu1 %v17708_v6 }
 0x4b9   :  { %13328 = vmatpush3.bf16.msra.mxu1 %v15736_v61 }
 0x4ba   :  { %13329 = vmatprep.subr.bf16.mxu1 %v17708_v6 }
 0x4bd   :  { %13331 = vmatpush3.bf16.msra.mxu1 %v15873_v1 }
 0x4be   :  { %13332 = vmatprep.subr.bf16.mxu1 %v17708_v6 }
 0x4c1   :  { %13334 = vmatpush3.bf16.msra.mxu1 %v15897_v11 }
 0x4c2   :  { %13335 = vmatprep.subr.bf16.mxu1 %v17708_v6 }
 0x4c5   :  { %13337 = vmatpush3.bf16.msra.mxu1 %v15933_v27 }
 0x4c6   :  { %13338 = vmatprep.subr.bf16.mxu1 %v17708_v6 }
 0x4c9   :  { %13340 = vmatpush3.bf16.msra.mxu1 %v15939_v29 }
 0x4ca   :  { %13341 = vmatprep.subr.bf16.mxu1 %v17708_v6 }
 0x4cd   :  { %13343 = vmatpush3.bf16.msra.mxu1 %v15953_v8 }
 0x4ce   :  { %13344 = vmatprep.subr.bf16.mxu1 %v17708_v6 }
 0x4d0   :  { %11252 = vmatmul.mubr.f32.vlgmr.msra.gmra.mrb[6].mxu1 %v16171_v56 }
 0x4d1   :  { %13346 = vmatpush3.bf16.msra.mxu1 %v16004_v12  ;;  %11286 = vmatprep.mubr.msk.f32.mxu1 %vm14510_vm12, %v17859_v2 }
 0x4d2   :  { %13347 = vmatprep.subr.bf16.mxu1 %v17708_v6 }
 0x4d5   :  { %13349 = vmatpush3.bf16.msra.mxu1 %v16013_v9 }
 0x4d6   :  { %13350 = vmatprep.subr.bf16.mxu1 %v17708_v6 }
 0x4d9   :  { %13352 = vmatpush3.bf16.msra.mxu1 %v16021_v17 }
 0x4da   :  { %13353 = vmatprep.subr.bf16.mxu1 %v17708_v6 }
 0x4dd   :  { %13355 = vmatpush3.bf16.msra.mxu1 %v15975_v50 }
 0x4de   :  { %13356 = vmatprep.subr.bf16.mxu1 %v17708_v6 }
 0x4e1   :  { %13358 = vmatpush3.bf16.msra.mxu1 %v15979_v40 }
 0x4e2   :  { %13359 = vmatprep.subr.bf16.mxu1 %v17708_v6 }
 0x4e5   :  { %13361 = vmatpush3.bf16.msra.mxu1 %v15983_v3 }
 0x4e6   :  { %13362 = vmatprep.subr.bf16.mxu1 %v17708_v6 }
 0x4e9   :  { %13364 = vmatpush3.bf16.msra.mxu1 %v15987_v7 }
 0x4ea   :  { %13365 = vmatprep.subr.bf16.mxu1 %v17708_v6 }
 0x4eb   :  { %v3346_v26 = vpop.f32.mrb[4].mxu0 }
 0x4ec   :  { %v11008_v32 = vpop.f32.mrb[5].mxu0 }
 0x4ed   :  { %13367 = vmatpush3.bf16.msra.mxu1 %v15991_v24 }
 0x4ee   :  { %13368 = vmatprep.subr.bf16.mxu1 %v17708_v6 }
 0x4f0   :  { %11287 = vmatmul.mubr.f32.vlgmr.msra.gmra.mrb[6].mxu1 %v16177_v5 }
 0x4f1   :  { %13370 = vmatpush3.bf16.msra.mxu1 %v15681_v57  ;;  %11321 = vmatprep.mubr.msk.f32.mxu1 %vm14510_vm12, %v17859_v2 }
 0x4f2   :  { %13371 = vmatprep.subr.bf16.mxu1 %v17708_v6 }
 0x4f5   :  { %13373 = vmatpush3.bf16.msra.mxu1 %v15689_v30 }
 0x4f6   :  { %13374 = vmatprep.subr.bf16.mxu1 %v17708_v6 }
 0x4f9   :  { %13376 = vmatpush3.bf16.msra.mxu1 %v15693_v23 }
 0x4fa   :  { %13377 = vmatprep.subr.bf16.mxu1 %v17708_v6 }
 0x4fd   :  { %13379 = vmatpush3.bf16.msra.mxu1 %v15903_v10 }
 0x4fe   :  { %13380 = vmatprep.subr.bf16.mxu1 %v17708_v6 }
 0x501   :  { %13382 = vmatpush3.bf16.msra.mxu1 %v15947_v58 }
 0x502   :  { %13383 = vmatprep.subr.bf16.mxu1 %v17708_v6 }
 0x505   :  { %13385 = vmatpush3.bf16.msra.mxu1 %v15955_v41 }
 0x506   :  { %13386 = vmatprep.subr.bf16.mxu1 %v17708_v6 }
 0x509   :  { %13388 = vmatpush3.bf16.msra.mxu1 %v15961_v44 }
 0x50a   :  { %13389 = vmatprep.subr.bf16.mxu1 %v17708_v6 }
 0x50d   :  { %13391 = vmatpush3.bf16.msra.mxu1 %v15967_v0 }
 0x50e   :  { %13392 = vmatprep.subr.bf16.mxu1 %v17708_v6 }
 0x510   :  { %11322 = vmatmul.mubr.f32.vlgmr.msra.gmra.mrb[6].mxu1 %v3983_v19 }
 0x511   :  { %13394 = vmatpush3.bf16.msra.mxu1 %v16075_v18  ;;  %11356 = vmatprep.mubr.msk.f32.mxu1 %vm14510_vm12, %v17859_v2  ;;  %v5604_v18 = vld [vmem:[%s17646_s2 + $0x78] sm:$0xff] }
 0x512   :  { %13395 = vmatprep.subr.bf16.mxu1 %v17708_v6 }
 0x515   :  { %13397 = vmatpush3.bf16.msra.mxu1 %v16083_v51  ;;  %v5603_v51 = vld [vmem:[%s17646_s2 + $0x70] sm:$0xff] }
 0x516   :  { %13398 = vmatprep.subr.bf16.mxu1 %v17708_v6 }
 0x519   :  { %13400 = vmatpush3.bf16.msra.mxu1 %v16093_v49 }
 0x51a   :  { %13401 = vmatprep.subr.bf16.mxu1 %v17708_v6 }
 0x51d   :  { %13403 = vmatpush3.bf16.msra.mxu1 %v16101_v13 }
 0x51e   :  { %13404 = vmatprep.subr.bf16.mxu1 %v17708_v6 }
 0x521   :  { %13406 = vmatpush3.bf16.msra.mxu1 %v16109_v45 }
 0x522   :  { %13407 = vmatprep.subr.bf16.mxu1 %v17708_v6 }
 0x525   :  { %13409 = vmatpush3.bf16.msra.mxu1 %v16117_v14 }
 0x526   :  { %13410 = vmatprep.subr.bf16.mxu1 %v17708_v6 }
 0x529   :  { %13412 = vmatpush3.bf16.msra.mxu1 %v16125_v62 }
 0x52a   :  { %13413 = vmatprep.subr.bf16.mxu1 %v17708_v6 }
 0x52d   :  { %13415 = vmatpush3.bf16.msra.mxu1 %v16133_v55 }
 0x52e   :  { %13416 = vmatprep.subr.bf16.mxu1 %v17708_v6 }
 0x530   :  { %11357 = vmatmul.mubr.f32.vlgmr.msra.gmra.mrb[6].mxu1 %v16171_v56 }
 0x531   :  { %13418 = vmatpush3.bf16.msra.mxu1 %v15681_v57  ;;  %11391 = vmatprep.mubr.msk.f32.mxu1 %vm14510_vm12, %v17859_v2 }
 0x532   :  { %13419 = vmatprep.subr.bf16.mxu1 %v17708_v6 }
 0x535   :  { %13421 = vmatpush3.bf16.msra.mxu1 %v15689_v30 }
 0x536   :  { %13422 = vmatprep.subr.bf16.mxu1 %v17708_v6 }
 0x539   :  { %13424 = vmatpush3.bf16.msra.mxu1 %v15693_v23 }
 0x53a   :  { %13425 = vmatprep.subr.bf16.mxu1 %v17708_v6 }
 0x53d   :  { %13427 = vmatpush3.bf16.msra.mxu1 %v15903_v10 }
 0x53e   :  { %13428 = vmatprep.subr.bf16.mxu1 %v17708_v6 }
 0x541   :  { %13430 = vmatpush3.bf16.msra.mxu1 %v15947_v58 }
 0x542   :  { %13431 = vmatprep.subr.bf16.mxu1 %v17708_v6 }
 0x545   :  { %13433 = vmatpush3.bf16.msra.mxu1 %v15955_v41 }
 0x546   :  { %13434 = vmatprep.subr.bf16.mxu1 %v17708_v6 }
 0x549   :  { %13436 = vmatpush3.bf16.msra.mxu1 %v15961_v44  ;;  %v5651_v44 = vand.u32 4294901760, %v5604_v18 }
 0x54a   :  { %13437 = vmatprep.subr.bf16.mxu1 %v17708_v6 }
 0x54d   :  { %13439 = vmatpush3.bf16.msra.mxu1 %v15967_v0  ;;  %v5648_v0 = vand.u32 4294901760, %v5603_v51 }
 0x550   :  { %11392 = vmatmul.mubr.f32.vlgmr.msra.gmra.mrb[6].mxu1 %v16171_v56 }
 0x551   :  { %11398 = vmatprep.mubr.f32.mxu1 %v17882_v31 }
 0x563   :  { %v3896_v28 = vpop.f32.mrb[4].mxu1 }
 0x564   :  { %v14354_v46 = vadd.f32 %v3896_v28, %v3346_v26  ;;  %v11183_v22 = vpop.f32.mrb[5].mxu1 }
 0x566   :  { %v4541_v25 = vmul.f32 %v14354_v46, %v14354_v46 }
 0x623   :  { %v4537_v16 = vpop.f32.mrb[6].mxu1 }
 0x624   :  { %v4542_v20 = vsub.f32 %v4537_v16, %v4541_v25  ;;  %v11393_v34 = vpop.f32.mrb[7].mxu1  ;;  %v17885_v25 = vld [vmem:[#allocation11_spill] sm:$0xff] }
 0x625   :  { %v17886_v34 = vld [vmem:[#allocation4_spill] sm:$0xff] }
 0x626   :  { %v4544_v42 = vadd.f32 1e-05, %v4542_v20 }
 0x628   :  { %14502 = vrsqrt.f32 %v4544_v42 }
 0x632   :  { %v14503_v4 = vpop.eup %14502 }
 0x633   :  { %v4546_v35 = vmul.f32 %v14503_v4, %v4543_v37  ;;  %v17888_v4 = vld [vmem:[#allocation5_spill] sm:$0xff] }
 0x635   :  { %v4548_v21 = vmul.f32 %v14354_v46, %v4546_v35  ;;  %v4554_v36 = vrot.slane %v4546_v35, %v16285_v63  ;;  %v17889_v35 = vld [vmem:[#allocation7_spill] sm:$0xff] }
 0x637   :  { %v4549_v48 = vsub.f32 %v4547_v54, %v4548_v21  ;;  %v4556_v52 = vmul.f32 %v4554_v36, %v15998_v38  ;;  %v4557_v60 = vmul.f32 %v4554_v36, %v15996_v43  ;;  %v17890_v21 = vld [vmem:[#allocation8_spill] sm:$0xff]  ;;  %v17891_v36 = vld [vmem:[#allocation9_spill] sm:$0xff] }
 0x639   :  { %v4562_v39 = vrot.slane %v4549_v48, %v16285_v63  ;;  %v17892_v48 = vld [vmem:[#allocation18_spill] sm:$0xff] }
 0x63b   :  { %v4564_v56 = vadd.f32 %v4562_v39, %v4556_v52  ;;  %v4565_v5 = vadd.f32 %v4562_v39, %v4557_v60  ;;  %v17893_v52 = vld [vmem:[#allocation19_spill] sm:$0xff]  ;;  %v17894_v60 = vld [vmem:[#allocation12_spill] sm:$0xff]  ;;  %v17895_v39 = vld [vmem:[#allocation13_spill] sm:$0xff] }
 0x63d   :  { %v4566_v19 = vmax.f32 %v4564_v56, 0.0  ;;  %v4567_v47 = vmax.f32 %v4565_v5, 0.0  ;;  %v17896_v56 = vld [vmem:[#allocation14_spill] sm:$0xff]  ;;  %v17897_v5 = vld [vmem:[#allocation15_spill] sm:$0xff] }
 0x63f   :  { %v16294_v59 = vand.u32 4294901760, %v4566_v19  ;;  %v16296_v26 = vand.u32 4294901760, %v4567_v47 }
 0x641   :  { %v16300_v32 = vpack.c.bf16 %v16296_v26, %v16294_v59  ;;  %v16303_v31 = vsub.f32 %v4566_v19, %v16294_v59  ;;  %v16306_v38 = vsub.f32 %v4567_v47, %v16296_v26  ;;  %v17898_v19 = vld [vmem:[#allocation16_spill] sm:$0xff]  ;;  %v5589_v47 = vld [vmem:[%s17646_s2] sm:$0xff] }
 0x643   :  { %13441 = vmatprep.subr.bf16.mxu1 %v16300_v32  ;;  %v16310_v43 = vand.u32 4294901760, %v16303_v31  ;;  %v16313_v28 = vand.u32 4294901760, %v16306_v38  ;;  %v13448_v37 = vpack.c.bf16 %v16306_v38, %v16303_v31 }
 0x644   :  { %13443 = vmatpush3.bf16.msra.mxu1 %v16300_v32 }
 0x645   :  { %v4659_v46 = vsub.f32 %v16303_v31, %v16310_v43  ;;  %v4666_v22 = vsub.f32 %v16306_v38, %v16313_v28  ;;  %v13456_v54 = vpack.c.bf16 %v16313_v28, %v16310_v43 }
 0x647   :  { %11399 = vmatmul.mubr.f32.vlgmr.msra.gmra.mrb[8].mxu1 %v17885_v25  ;;  %v16321_v16 = vand.u32 4294901760, %v4659_v46  ;;  %v16323_v20 = vand.u32 4294901760, %v4666_v22  ;;  %v5590_v46 = vld [vmem:[%s17646_s2 + $0x8] sm:$0xff]  ;;  %v17899_v22 = vld [vmem:[#allocation17_spill] sm:$0xff]  ;;  %v5606_v25 = vand.u32 4294901760, %v5589_v47 }
 0x648   :  { %11405 = vmatprep.mubr.msk.f32.mxu1 %vm97_vm2, %v17886_v34 }
 0x649   :  { %v13444_v42 = vpack.c.bf16 %v16323_v20, %v16321_v16  ;;  %v16483_v13 = vsub.f32 %v5589_v47, %v5606_v25  ;;  %v16497_v47 = vpack.c.bf16 %v5651_v44, %v5648_v0 }
 0x64b   :  { %13445 = vmatprep.subr.bf16.mxu1 %v13444_v42  ;;  %v17752_v41 = vand.u32 4294901760, %v16483_v13 }
 0x64c   :  { %13447 = vmatpush3.bf16.msra.mxu1 %v13444_v42 }
 0x64d   :  { %13449 = vmatprep.subr.bf16.mxu1 %v13448_v37 }
 0x64f   :  { %11406 = vmatmul.mubr.msk.f32.vlgmr.msra.gmra.mrb[8].mxu1 %vm97_vm2, %v17887_v15 }
 0x650   :  { %13451 = vmatpush3.bf16.msra.mxu1 %v13448_v37  ;;  %11412 = vmatprep.mubr.f32.mxu1 %v17888_v4 }
 0x651   :  { %13453 = vmatprep.subr.bf16.mxu1 %v16300_v32 }
 0x657   :  { %11413 = vmatmul.mubr.f32.vlgmr.msra.gmra.mrb[8].mxu1 %v17889_v35 }
 0x658   :  { %13455 = vmatpush3.bf16.msra.mxu1 %v16300_v32  ;;  %11419 = vmatprep.mubr.f32.mxu1 %v17890_v21  ;;  %v16402_v21 = vld [vmem:[%s17646_s2 + $0x28] sm:$0xff] }
 0x659   :  { %13457 = vmatprep.subr.bf16.mxu1 %v13456_v54  ;;  %v17903_v7 = vand.u32 4294901760, %v16402_v21 }
 0x65b   :  { %v16588_v3 = vsub.f32 %v16402_v21, %v17903_v7 }
 0x65f   :  { %11420 = vmatmul.mubr.f32.vlgmr.msra.gmra.mrb[8].mxu1 %v17891_v36 }
 0x660   :  { %13459 = vmatpush3.bf16.msra.mxu1 %v13456_v54  ;;  %11426 = vmatprep.mubr.msk.f32.mxu1 %vm97_vm2, %v17886_v34 }
 0x661   :  { %13461 = vmatprep.subr.bf16.mxu1 %v16300_v32 }
 0x667   :  { %11427 = vmatmul.mubr.msk.f32.vlgmr.msra.gmra.mrb[8].mxu1 %vm97_vm2, %v17887_v15 }
 0x668   :  { %13463 = vmatpush3.bf16.msra.mxu1 %v16300_v32  ;;  %11433 = vmatprep.mubr.msk.f32.mxu1 %vm97_vm2, %v17886_v34  ;;  %v5609_v34 = vand.u32 4294901760, %v5590_v46 }
 0x669   :  { %13465 = vmatprep.subr.bf16.mxu1 %v16300_v32 }
 0x66a   :  { %v16485_v49 = vsub.f32 %v5590_v46, %v5609_v34  ;;  %v5710_v46 = vsub.f32 %v16483_v13, %v17752_v41 }
 0x66c   :  { %v17755_v58 = vand.u32 4294901760, %v16485_v49 }
 0x66f   :  { %11434 = vmatmul.mubr.msk.f32.vlgmr.msra.gmra.mrb[8].mxu1 %vm97_vm2, %v17887_v15  ;;  %v16384_v15 = vld [vmem:[%s17646_s2 + $0x18] sm:$0xff] }
 0x670   :  { %13467 = vmatpush3.bf16.msra.mxu1 %v16300_v32  ;;  %11440 = vmatprep.mubr.f32.mxu1 %v17892_v48  ;;  %v17712_v35 = vand.u32 4294901760, %v16384_v15  ;;  %v17710_v48 = vand.u32 4294901760, %v16402_v21 }
 0x671   :  { %13469 = vmatprep.subr.bf16.mxu1 %v13444_v42 }
 0x673   :  { %11441 = vmatmul.mubr.f32.vlgmr.msra.gmra.mrb[10].mxu1 %v17893_v52  ;;  %v16415_v52 = vld [vmem:[%s17646_s2 + $0x30] sm:$0xff] }
 0x674   :  { %13471 = vmatpush3.bf16.msra.mxu1 %v13444_v42  ;;  %11447 = vmatprep.mubr.msk.f32.mxu1 %vm97_vm2, %v17894_v60  ;;  %v16374_v42 = vpack.c.bf16 %v5609_v34, %v5606_v25  ;;  %v5717_v25 = vsub.f32 %v16485_v49, %v17755_v58  ;;  %v5711_v34 = vand.u32 4294901760, %v5710_v46  ;;  %v17904_v7 = vand.u32 4294901760, %v16415_v52 }
 0x675   :  { %13473 = vmatprep.subr.bf16.mxu1 %v13448_v37 }
 0x676   :  { %v5718_v10 = vand.u32 4294901760, %v5717_v25  ;;  %v16605_v21 = vsub.f32 %v16415_v52, %v17904_v7 }
 0x678   :  { %v16507_v23 = vpack.c.bf16 %v5718_v10, %v5711_v34 }
 0x67b   :  { %11448 = vmatmul.mubr.msk.f32.vlgmr.msra.gmra.mrb[10].mxu1 %vm97_vm2, %v17895_v39 }
 0x67c   :  { %13475 = vmatpush3.bf16.msra.mxu1 %v13448_v37  ;;  %11454 = vmatprep.mubr.f32.mxu1 %v17896_v56  ;;  %v16379_v37 = vld [vmem:[%s17646_s2 + $0x10] sm:$0xff] }
 0x67d   :  { %13477 = vmatprep.subr.bf16.mxu1 %v16300_v32  ;;  %v17715_v4 = vand.u32 4294901760, %v16379_v37 }
 0x683   :  { %11455 = vmatmul.mubr.f32.vlgmr.msra.gmra.mrb[10].mxu1 %v17897_v5  ;;  %v17714_v5 = vand.u32 4294901760, %v16415_v52 }
 0x684   :  { %13479 = vmatpush3.bf16.msra.mxu1 %v16300_v32  ;;  %11461 = vmatprep.mubr.f32.mxu1 %v17898_v19 }
 0x685   :  { %13481 = vmatprep.subr.bf16.mxu1 %v13456_v54 }
 0x68b   :  { %11462 = vmatmul.mubr.f32.vlgmr.msra.gmra.mrb[10].mxu1 %v17899_v22  ;;  %v16437_v22 = vld [vmem:[%s17646_s2 + $0x40] sm:$0xff] }
 0x68c   :  { %13483 = vmatpush3.bf16.msra.mxu1 %v13456_v54  ;;  %11468 = vmatprep.mubr.msk.f32.mxu1 %vm97_vm2, %v17894_v60  ;;  %v16397_v54 = vld [vmem:[%s17646_s2 + $0x20] sm:$0xff] }
 0x68d   :  { %13485 = vmatprep.subr.bf16.mxu1 %v16300_v32  ;;  %v17711_v36 = vand.u32 4294901760, %v16397_v54 }
 0x68f   :  { %v16430_v56 = vpack.c.bf16 %v17710_v48, %v17711_v36  ;;  %v17721_v48 = vand.u32 4294901760, %v16437_v22 }
 0x693   :  { %11469 = vmatmul.mubr.msk.f32.vlgmr.msra.gmra.mrb[10].mxu1 %vm97_vm2, %v17895_v39 }
 0x694   :  { %13487 = vmatpush3.bf16.msra.mxu1 %v16300_v32  ;;  %11475 = vmatprep.mubr.msk.f32.mxu1 %vm97_vm2, %v17894_v60  ;;  %v16408_v32 = vpack.c.bf16 %v17712_v35, %v17715_v4  ;;  %v16420_v60 = vld [vmem:[%s17646_s2 + $0x38] sm:$0xff] }
 0x695   :  { %13489 = vmatprep.subr.bf16.mxu1 %v16374_v42  ;;  %v17713_v19 = vand.u32 4294901760, %v16420_v60 }
 0x697   :  { %v16450_v6 = vpack.c.bf16 %v17713_v19, %v17714_v5  ;;  %v5599_v19 = vld [vmem:[%s17646_s2 + $0x50] sm:$0xff]  ;;  %v5600_v5 = vld [vmem:[%s17646_s2 + $0x58] sm:$0xff] }
 0x698   :  { %v5636_v4 = vand.u32 4294901760, %v5599_v19  ;;  %v5639_v63 = vand.u32 4294901760, %v5600_v5 }
 0x69a   :  { %v16471_v55 = vpack.c.bf16 %v5639_v63, %v5636_v4  ;;  %v16510_v30 = vsub.f32 %v5599_v19, %v5636_v4  ;;  %v16512_v57 = vsub.f32 %v5600_v5, %v5639_v63 }
 0x69b   :  { %11476 = vmatmul.mubr.msk.f32.vlgmr.msra.gmra.mrb[10].mxu1 %vm97_vm2, %v17895_v39  ;;  %v16442_v39 = vld [vmem:[%s17646_s2 + $0x48] sm:$0xff] }
 0x69c   :  { %13491 = vmatpush3.bf16.msra.mxu1 %v16374_v42  ;;  %v17720_v36 = vand.u32 4294901760, %v16442_v39  ;;  %v17756_v41 = vand.u32 4294901760, %v16510_v30  ;;  %v17757_v24 = vand.u32 4294901760, %v16512_v57  ;;  %v17909_v8 = vand.u32 4294901760, %v16442_v39 }
 0x69d   :  { %13493 = vmatprep.subr.bf16.mxu1 %v16408_v32 }
 0x69e   :  { %v16460_v35 = vpack.c.bf16 %v17720_v36, %v17721_v48  ;;  %v5601_v36 = vld [vmem:[%s17646_s2 + $0x60] sm:$0xff]  ;;  %v5602_v48 = vld [vmem:[%s17646_s2 + $0x68] sm:$0xff]  ;;  %v5780_v58 = vsub.f32 %v16510_v30, %v17756_v41  ;;  %v5787_v46 = vsub.f32 %v16512_v57, %v17757_v24 }
 0x69f   :  { %v5642_v62 = vand.u32 4294901760, %v5601_v36  ;;  %v5645_v14 = vand.u32 4294901760, %v5602_v48 }
 0x6a0   :  { %13495 = vmatpush3.bf16.msra.mxu1 %v16408_v32  ;;  %v5781_v4 = vand.u32 4294901760, %v5780_v58  ;;  %v5788_v19 = vand.u32 4294901760, %v5787_v46 }
 0x6a1   :  { %13497 = vmatprep.subr.bf16.mxu1 %v16430_v56  ;;  %v16481_v45 = vpack.c.bf16 %v5645_v14, %v5642_v62  ;;  %v16522_v10 = vsub.f32 %v5601_v36, %v5642_v62  ;;  %v16524_v25 = vsub.f32 %v5602_v48, %v5645_v14  ;;  %v16536_v62 = vsub.f32 %v5603_v51, %v5648_v0 }
 0x6a2   :  { %v16528_v34 = vpack.c.bf16 %v5788_v19, %v5781_v4  ;;  %v16538_v14 = vsub.f32 %v5604_v18, %v5651_v44 }
 0x6a3   :  { %v17761_v63 = vand.u32 4294901760, %v16522_v10  ;;  %v17758_v5 = vand.u32 4294901760, %v16524_v25  ;;  %v17760_v48 = vand.u32 4294901760, %v16536_v62  ;;  %v16562_v18 = vpack.c.bf16 %v16524_v25, %v16522_v10 }
 0x6a4   :  { %13499 = vmatpush3.bf16.msra.mxu1 %v16430_v56  ;;  %v17759_v46 = vand.u32 4294901760, %v16538_v14 }
 0x6a5   :  { %13501 = vmatprep.subr.bf16.mxu1 %v16450_v6  ;;  %v5794_v41 = vsub.f32 %v16522_v10, %v17761_v63  ;;  %v5801_v24 = vsub.f32 %v16524_v25, %v17758_v5  ;;  %v5808_v19 = vsub.f32 %v16536_v62, %v17760_v48  ;;  %v17902_v48 = vand.u32 4294901760, %v16397_v54 }
 0x6a6   :  { %v5815_v5 = vsub.f32 %v16538_v14, %v17759_v46 }
 0x6a7   :  { %v5795_v58 = vand.u32 4294901760, %v5794_v41  ;;  %v5802_v36 = vand.u32 4294901760, %v5801_v24  ;;  %v5809_v0 = vand.u32 4294901760, %v5808_v19  ;;  %v16554_v41 = vpack.c.bf16 %v16485_v49, %v16483_v13 }
 0x6a8   :  { %13503 = vmatpush3.bf16.msra.mxu1 %v16450_v6  ;;  %v5816_v51 = vand.u32 4294901760, %v5815_v5  ;;  %v16558_v24 = vpack.c.bf16 %v16512_v57, %v16510_v30  ;;  %v17900_v5 = vand.u32 4294901760, %v16379_v37  ;;  %v17901_v19 = vand.u32 4294901760, %v16384_v15 }
 0x6a9   :  { %13505 = vmatprep.subr.bf16.mxu1 %v16460_v35  ;;  %v16542_v4 = vpack.c.bf16 %v5802_v36, %v5795_v58  ;;  %v16566_v58 = vpack.c.bf16 %v16538_v14, %v16536_v62  ;;  %v16583_v63 = vsub.f32 %v16397_v54, %v17902_v48 }
 0x6aa   :  { %v16550_v44 = vpack.c.bf16 %v5816_v51, %v5809_v0  ;;  %v16571_v36 = vsub.f32 %v16379_v37, %v17900_v5  ;;  %v16576_v0 = vsub.f32 %v16384_v15, %v17901_v19 }
 0x6ab   :  { %v17906_v52 = vand.u32 4294901760, %v16583_v63 }
 0x6ac   :  { %13507 = vmatpush3.bf16.msra.mxu1 %v16460_v35  ;;  %v17772_v51 = vand.u32 4294901760, %v16571_v36  ;;  %v17775_v46 = vand.u32 4294901760, %v16576_v0 }
 0x6ad   :  { %13509 = vmatprep.subr.bf16.mxu1 %v16471_v55  ;;  %v5738_v7 = vsub.f32 %v16583_v63, %v17906_v52  ;;  %v16639_v52 = vsub.f32 %v16442_v39, %v17909_v8 }
 0x6ae   :  { %v5724_v15 = vsub.f32 %v16571_v36, %v17772_v51  ;;  %v5731_v19 = vsub.f32 %v16576_v0, %v17775_v46  ;;  %v17905_v51 = vand.u32 4294901760, %v16420_v60 }
 0x6af   :  { %v5739_v1 = vand.u32 4294901760, %v5738_v7  ;;  %v5772_v39 = vand.u32 4294901760, %v16639_v52 }
 0x6b0   :  { %13511 = vmatpush3.bf16.msra.mxu1 %v16471_v55  ;;  %v16613_v9 = vsub.f32 %v16420_v60, %v17905_v51  ;;  %v5725_v12 = vand.u32 4294901760, %v5724_v15  ;;  %v5732_v48 = vand.u32 4294901760, %v5731_v19  ;;  %v17908_v15 = vand.u32 4294901760, %v16437_v22 }
 0x6b1   :  { %13513 = vmatprep.subr.bf16.mxu1 %v16481_v45  ;;  %v17911_v51 = vand.u32 4294901760, %v16605_v21 }
 0x6b2   :  { %v16634_v19 = vsub.f32 %v16437_v22, %v17908_v15  ;;  %v13524_v27 = vpack.c.bf16 %v5732_v48, %v5725_v12  ;;  %v17912_v22 = vand.u32 4294901760, %v16613_v9 }
 0x6b3   :  { %v5752_v61 = vsub.f32 %v16605_v21, %v17911_v51 }
 0x6b4   :  { %13515 = vmatpush3.bf16.msra.mxu1 %v16481_v45  ;;  %v5759_v15 = vsub.f32 %v16613_v9, %v17912_v22  ;;  %v5765_v8 = vand.u32 4294901760, %v16634_v19 }
 0x6b5   :  { %13517 = vmatprep.subr.bf16.mxu1 %v16497_v47  ;;  %v5753_v12 = vand.u32 4294901760, %v5752_v61  ;;  %v13556_v61 = vpack.c.bf16 %v16576_v0, %v16571_v36 }
 0x6b6   :  { %v5760_v48 = vand.u32 4294901760, %v5759_v15  ;;  %v5766_v7 = vsub.f32 %v16634_v19, %v5765_v8  ;;  %v17921_v15 = vand.u32 4294901760, %v16605_v21 }
 0x6b8   :  { %13519 = vmatpush3.bf16.msra.mxu1 %v16497_v47 }
 0x6b9   :  { %13521 = vmatprep.subr.bf16.mxu1 %v16507_v23 }
 0x742   :  { %v11435_v37 = vpop.f32.mrb[8].mxu1 }
 0x743   :  { %v16590_v5 = vand.u32 4294901760, %v11435_v37  ;;  %v5060_v40 = vpop.f32.mrb[9].mxu1 }
 0x744   :  { %v16598_v50 = vand.u32 4294901760, %v5060_v40 }
 0x745   :  { %v16608_v17 = vsub.f32 %v11435_v37, %v16590_v5  ;;  %v17907_v37 = vand.u32 4294901760, %v16588_v3 }
 0x746   :  { %v16616_v46 = vsub.f32 %v5060_v40, %v16598_v50 }
 0x747   :  { %v17788_v54 = vand.u32 4294901760, %v16608_v17  ;;  %v5745_v29 = vsub.f32 %v16588_v3, %v17907_v37 }
 0x748   :  { %v17910_v37 = vand.u32 4294901760, %v16616_v46 }
 0x749   :  { %v5699_v40 = vsub.f32 %v16608_v17, %v17788_v54  ;;  %v5746_v54 = vand.u32 4294901760, %v5745_v29 }
 0x74a   :  { %v5689_v60 = vsub.f32 %v16616_v46, %v17910_v37 }
 0x74b   :  { %v5700_v53 = vand.u32 4294901760, %v5699_v40  ;;  %v13528_v29 = vpack.c.bf16 %v5746_v54, %v5739_v1  ;;  %v17917_v54 = vand.u32 4294901760, %v16576_v0 }
 0x74c   :  { %v5690_v11 = vand.u32 4294901760, %v5689_v60  ;;  %v5773_v60 = vsub.f32 %v16639_v52, %v5772_v39 }
 0x74e   :  { %11510 = vmatprep.mubr.f32.mxu1 %v5690_v11  ;;  %v13532_v11 = vpack.c.bf16 %v5760_v48, %v5753_v12  ;;  %v5774_v40 = vand.u32 4294901760, %v5773_v60  ;;  %v9082_v48 = vld [vmem:[%s17646_s2 + $0xb8] sm:$0xff] }
 0x74f   :  { %11511 = vmatmul.mubr.f32.vlgmr.msra.gmra.mrb[12].mxu1 %v5700_v53  ;;  %v5767_v53 = vand.u32 4294901760, %v5766_v7  ;;  %v6311_v60 = vand.u32 4294901760, %v9082_v48 }
 0x750   :  { %13523 = vmatpush3.bf16.msra.mxu1 %v16507_v23  ;;  %11545 = vmatprep.mubr.f32.mxu1 %v16598_v50 }
 0x751   :  { %13525 = vmatprep.subr.bf16.mxu1 %v13524_v27  ;;  %v13536_v23 = vpack.c.bf16 %v5774_v40, %v5767_v53  ;;  %v9084_v53 = vld [vmem:[%s17646_s2 + $0xc8] sm:$0xff] }
 0x752   :  { %v6317_v40 = vand.u32 4294901760, %v9084_v53 }
 0x754   :  { %13527 = vmatpush3.bf16.msra.mxu1 %v13524_v27 }
 0x755   :  { %13529 = vmatprep.subr.bf16.mxu1 %v13528_v29 }
 0x758   :  { %13531 = vmatpush3.bf16.msra.mxu1 %v13528_v29 }
 0x759   :  { %13533 = vmatprep.subr.bf16.mxu1 %v13532_v11 }
 0x75c   :  { %13535 = vmatpush3.bf16.msra.mxu1 %v13532_v11  ;;  %v9083_v11 = vld [vmem:[%s17646_s2 + $0xc0] sm:$0xff] }
 0x75d   :  { %13537 = vmatprep.subr.bf16.mxu1 %v13536_v23 }
 0x760   :  { %13539 = vmatpush3.bf16.msra.mxu1 %v13536_v23  ;;  %v9085_v23 = vld [vmem:[%s17646_s2 + $0xd0] sm:$0xff] }
 0x761   :  { %13541 = vmatprep.subr.bf16.mxu1 %v16528_v34 }
 0x764   :  { %13543 = vmatpush3.bf16.msra.mxu1 %v16528_v34  ;;  %v13560_v34 = vpack.c.bf16 %v16588_v3, %v16583_v63 }
 0x765   :  { %13545 = vmatprep.subr.bf16.mxu1 %v16542_v4 }
 0x768   :  { %13547 = vmatpush3.bf16.msra.mxu1 %v16542_v4  ;;  %v13564_v4 = vpack.c.bf16 %v16613_v9, %v16605_v21  ;;  %v17925_v21 = vand.u32 4294901760, %v16522_v10  ;;  %v9079_v10 = vld [vmem:[%s17646_s2 + $0xa0] sm:$0xff] }
 0x769   :  { %13549 = vmatprep.subr.bf16.mxu1 %v16550_v44 }
 0x76c   :  { %13551 = vmatpush3.bf16.msra.mxu1 %v16550_v44  ;;  %v13568_v44 = vpack.c.bf16 %v16639_v52, %v16634_v19  ;;  %v17927_v19 = vand.u32 4294901760, %v16536_v62  ;;  %v17928_v52 = vand.u32 4294901760, %v16538_v14 }
 0x76d   :  { %13553 = vmatprep.subr.bf16.mxu1 %v16554_v41 }
 0x76e   :  { %v16669_v1 = vpop.f32.mrb[10].mxu1 }
 0x76f   :  { %11546 = vmatmul.mubr.f32.vlgmr.msra.gmra.mrb[12].mxu1 %v16590_v5  ;;  %v16672_v27 = vpop.f32.mrb[11].mxu1 }
 0x770   :  { %13555 = vmatpush3.bf16.msra.mxu1 %v16554_v41  ;;  %11580 = vmatprep.mubr.f32.mxu1 %v16616_v46  ;;  %v17913_v41 = vmov %v17910_v37  ;;  %v17914_v46 = vand.u32 4294901760, %v16483_v13  ;;  %v17918_v37 = vand.u32 4294901760, %v16608_v17  ;;  %v17919_v13 = vand.u32 4294901760, %v16583_v63 }
 0x771   :  { %13557 = vmatprep.subr.bf16.mxu1 %v13556_v61  ;;  %v17923_v63 = vand.u32 4294901760, %v16510_v30  ;;  %v9075_v30 = vld [vmem:[%s17646_s2 + $0x80] sm:$0xff] }
 0x774   :  { %13559 = vmatpush3.bf16.msra.mxu1 %v13556_v61  ;;  %v9086_v61 = vld [vmem:[%s17646_s2 + $0xd8] sm:$0xff] }
 0x775   :  { %13561 = vmatprep.subr.bf16.mxu1 %v13560_v34 }
 0x778   :  { %13563 = vmatpush3.bf16.msra.mxu1 %v13560_v34  ;;  %v16815_v34 = vld [vmem:[%s17646_s2 + $0xe0] sm:$0xff] }
 0x779   :  { %13565 = vmatprep.subr.bf16.mxu1 %v13564_v4 }
 0x77c   :  { %13567 = vmatpush3.bf16.msra.mxu1 %v13564_v4  ;;  %v16820_v4 = vld [vmem:[%s17646_s2 + $0xe8] sm:$0xff] }
 0x77d   :  { %13569 = vmatprep.subr.bf16.mxu1 %v13568_v44 }
 0x780   :  { %13571 = vmatpush3.bf16.msra.mxu1 %v13568_v44 }
 0x781   :  { %13573 = vmatprep.subr.bf16.mxu1 %v16558_v24 }
 0x784   :  { %13575 = vmatpush3.bf16.msra.mxu1 %v16558_v24  ;;  %v17915_v24 = vand.u32 4294901760, %v16485_v49  ;;  %v17920_v49 = vand.u32 4294901760, %v16588_v3  ;;  %v17924_v3 = vand.u32 4294901760, %v16512_v57  ;;  %v9076_v57 = vld [vmem:[%s17646_s2 + $0x88] sm:$0xff] }
 0x785   :  { %13577 = vmatprep.subr.bf16.mxu1 %v16562_v18 }
 0x786   :  { %v13624_v22 = vpack.c.bf16 %v17920_v49, %v17919_v13  ;;  %v13636_v29 = vpack.c.bf16 %v17924_v3, %v17923_v63  ;;  %v16840_v49 = vld [vmem:[%s17646_s2 + $0xf0] sm:$0xff] }
 0x788   :  { %13579 = vmatpush3.bf16.msra.mxu1 %v16562_v18  ;;  %v13616_v18 = vpack.c.bf16 %v17915_v24, %v17914_v46  ;;  %v6320_v24 = vand.u32 4294901760, %v9085_v23 }
 0x789   :  { %13581 = vmatprep.subr.bf16.mxu1 %v16566_v58 }
 0x78c   :  { %13583 = vmatpush3.bf16.msra.mxu1 %v16566_v58  ;;  %v17916_v58 = vand.u32 4294901760, %v16571_v36  ;;  %v17922_v36 = vand.u32 4294901760, %v16613_v9  ;;  %v17926_v9 = vand.u32 4294901760, %v16524_v25  ;;  %v9080_v25 = vld [vmem:[%s17646_s2 + $0xa8] sm:$0xff] }
 0x78d   :  { %13585 = vmatprep.subr.bf16.mxu1 %v16374_v42  ;;  %v6305_v14 = vand.u32 4294901760, %v9080_v25 }
 0x78e   :  { %v13620_v51 = vpack.c.bf16 %v17917_v54, %v17916_v58  ;;  %v13628_v0 = vpack.c.bf16 %v17922_v36, %v17921_v15  ;;  %v13640_v12 = vpack.c.bf16 %v17926_v9, %v17925_v21  ;;  %v6326_v58 = vand.u32 4294901760, %v16815_v34 }
 0x78f   :  { %11581 = vmatmul.mubr.f32.vlgmr.msra.gmra.mrb[12].mxu1 %v16608_v17  ;;  %v13632_v17 = vpack.c.bf16 %v5772_v39, %v5765_v8  ;;  %v13644_v8 = vpack.c.bf16 %v17928_v52, %v17927_v19  ;;  %v9081_v39 = vld [vmem:[%s17646_s2 + $0xb0] sm:$0xff]  ;;  %v6329_v54 = vand.u32 4294901760, %v16820_v4  ;;  %v16871_v19 = vsub.f32 %v9080_v25, %v6305_v14 }
 0x790   :  { %13587 = vmatpush3.bf16.msra.mxu1 %v16374_v42  ;;  %11615 = vmatprep.mubr.f32.mxu1 %v17913_v41  ;;  %v6308_v7 = vand.u32 4294901760, %v9081_v39 }
 0x791   :  { %13589 = vmatprep.subr.bf16.mxu1 %v16408_v32 }
 0x792   :  { %v16873_v52 = vsub.f32 %v9081_v39, %v6308_v7 }
 0x794   :  { %13591 = vmatpush3.bf16.msra.mxu1 %v16408_v32 }
 0x795   :  { %13593 = vmatprep.subr.bf16.mxu1 %v16430_v56 }
 0x798   :  { %13595 = vmatpush3.bf16.msra.mxu1 %v16430_v56 }
 0x799   :  { %13597 = vmatprep.subr.bf16.mxu1 %v16450_v6 }
 0x79c   :  { %13599 = vmatpush3.bf16.msra.mxu1 %v16450_v6 }
 0x79d   :  { %13601 = vmatprep.subr.bf16.mxu1 %v16460_v35 }
 0x7a0   :  { %13603 = vmatpush3.bf16.msra.mxu1 %v16460_v35 }
 0x7a1   :  { %13605 = vmatprep.subr.bf16.mxu1 %v16471_v55 }
 0x7a4   :  { %13607 = vmatpush3.bf16.msra.mxu1 %v16471_v55 }
 0x7a5   :  { %13609 = vmatprep.subr.bf16.mxu1 %v16481_v45 }
 0x7a8   :  { %13611 = vmatpush3.bf16.msra.mxu1 %v16481_v45 }
 0x7a9   :  { %13613 = vmatprep.subr.bf16.mxu1 %v16497_v47 }
 0x7ac   :  { %13615 = vmatpush3.bf16.msra.mxu1 %v16497_v47 }
 0x7ad   :  { %13617 = vmatprep.subr.bf16.mxu1 %v13616_v18 }
 0x7af   :  { %11616 = vmatmul.mubr.f32.vlgmr.msra.gmra.mrb[12].mxu1 %v17918_v37 }
 0x7b0   :  { %13619 = vmatpush3.bf16.msra.mxu1 %v13616_v18  ;;  %11650 = vmatprep.mubr.f32.mxu1 %v16598_v50  ;;  %v6323_v18 = vand.u32 4294901760, %v9086_v61 }
 0x7b1   :  { %13621 = vmatprep.subr.bf16.mxu1 %v13620_v51 }
 0x7b2   :  { %v16835_v13 = vpack.c.bf16 %v6323_v18, %v6320_v24 }
 0x7b4   :  { %13623 = vmatpush3.bf16.msra.mxu1 %v13620_v51 }
 0x7b5   :  { %13625 = vmatprep.subr.bf16.mxu1 %v13624_v22 }
 0x7b8   :  { %13627 = vmatpush3.bf16.msra.mxu1 %v13624_v22  ;;  %v16845_v22 = vld [vmem:[%s17646_s2 + $0xf8] sm:$0xff] }
 0x7b9   :  { %13629 = vmatprep.subr.bf16.mxu1 %v13628_v0  ;;  %v6335_v63 = vand.u32 4294901760, %v16845_v22 }
 0x7bc   :  { %13631 = vmatpush3.bf16.msra.mxu1 %v13628_v0  ;;  %v16855_v0 = vpack.c.bf16 %v6329_v54, %v6326_v58 }
 0x7bd   :  { %13633 = vmatprep.subr.bf16.mxu1 %v13632_v17 }
 0x7c0   :  { %13635 = vmatpush3.bf16.msra.mxu1 %v13632_v17  ;;  %v6332_v17 = vand.u32 4294901760, %v16840_v49 }
 0x7c1   :  { %13637 = vmatprep.subr.bf16.mxu1 %v13636_v29 }
 0x7c4   :  { %13639 = vmatpush3.bf16.msra.mxu1 %v13636_v29 }
 0x7c5   :  { %13641 = vmatprep.subr.bf16.mxu1 %v13640_v12 }
 0x7c8   :  { %13643 = vmatpush3.bf16.msra.mxu1 %v13640_v12 }
 0x7c9   :  { %13645 = vmatprep.subr.bf16.mxu1 %v13644_v8 }
 0x7cc   :  { %13647 = vmatpush3.bf16.msra.mxu1 %v13644_v8  ;;  %v16875_v8 = vsub.f32 %v9082_v48, %v6311_v60 }
 0x7cd   :  { %13649 = vmatprep.subr.bf16.mxu1 %v16374_v42 }
 0x7cf   :  { %11651 = vmatmul.mubr.f32.vlgmr.msra.gmra.mrb[12].mxu1 %v16590_v5 }
 0x7d0   :  { %13651 = vmatpush3.bf16.msra.mxu1 %v16374_v42  ;;  %11685 = vmatprep.mubr.f32.mxu1 %v16598_v50  ;;  %v6290_v50 = vand.u32 4294901760, %v9075_v30  ;;  %v9077_v42 = vld [vmem:[%s17646_s2 + $0x90] sm:$0xff] }
 0x7d1   :  { %13653 = vmatprep.subr.bf16.mxu1 %v16408_v32 }
 0x7d2   :  { %v16822_v44 = vsub.f32 %v9075_v30, %v6290_v50  ;;  %v16882_v30 = vpack.c.bf16 %v6335_v63, %v6332_v17 }
 0x7d4   :  { %13655 = vmatpush3.bf16.msra.mxu1 %v16408_v32  ;;  %v6393_v51 = vand.u32 4294901760, %v16822_v44 }
 0x7d5   :  { %13657 = vmatprep.subr.bf16.mxu1 %v16430_v56 }
 0x7d6   :  { %v6394_v3 = vsub.f32 %v16822_v44, %v6393_v51 }
 0x7d8   :  { %13659 = vmatpush3.bf16.msra.mxu1 %v16430_v56  ;;  %v6296_v56 = vand.u32 4294901760, %v9077_v42 }
 0x7d9   :  { %13661 = vmatprep.subr.bf16.mxu1 %v16450_v6 }
 0x7da   :  { %v16847_v15 = vsub.f32 %v9077_v42, %v6296_v56 }
 0x7dc   :  { %13663 = vmatpush3.bf16.msra.mxu1 %v16450_v6  ;;  %v6293_v6 = vand.u32 4294901760, %v9076_v57  ;;  %v6407_v21 = vand.u32 4294901760, %v16847_v15 }
 0x7dd   :  { %13665 = vmatprep.subr.bf16.mxu1 %v16460_v35 }
 0x7de   :  { %v16771_v32 = vpack.c.bf16 %v6293_v6, %v6290_v50  ;;  %v16824_v41 = vsub.f32 %v9076_v57, %v6293_v6  ;;  %v6395_v57 = vand.u32 4294901760, %v6394_v3  ;;  %v6408_v6 = vsub.f32 %v16847_v15, %v6407_v21 }
 0x7e0   :  { %13667 = vmatpush3.bf16.msra.mxu1 %v16460_v35  ;;  %v9078_v35 = vld [vmem:[%s17646_s2 + $0x98] sm:$0xff]  ;;  %v6400_v37 = vand.u32 4294901760, %v16824_v41  ;;  %v6409_v39 = vand.u32 4294901760, %v6408_v6 }
 0x7e1   :  { %13669 = vmatprep.subr.bf16.mxu1 %v16471_v55 }
 0x7e2   :  { %v6401_v29 = vsub.f32 %v16824_v41, %v6400_v37 }
 0x7e4   :  { %13671 = vmatpush3.bf16.msra.mxu1 %v16471_v55  ;;  %v6299_v55 = vand.u32 4294901760, %v9078_v35  ;;  %v6402_v50 = vand.u32 4294901760, %v6401_v29  ;;  %v16918_v29 = vsub.f32 %v9086_v61, %v6323_v18 }
 0x7e5   :  { %13673 = vmatprep.subr.bf16.mxu1 %v16481_v45 }
 0x7e6   :  { %v16781_v62 = vpack.c.bf16 %v6299_v55, %v6296_v56  ;;  %v16849_v36 = vsub.f32 %v9078_v35, %v6299_v55  ;;  %v6428_v56 = vand.u32 4294901760, %v16871_v19  ;;  %v17793_v55 = vand.u32 4294901760, %v16873_v52 }
 0x7e7   :  { %v13712_v25 = vpack.c.bf16 %v6402_v50, %v6395_v57 }
 0x7e8   :  { %13675 = vmatpush3.bf16.msra.mxu1 %v16481_v45  ;;  %v6302_v45 = vand.u32 4294901760, %v9079_v10  ;;  %v6414_v9 = vand.u32 4294901760, %v16849_v36  ;;  %v6436_v3 = vsub.f32 %v16873_v52, %v17793_v55 }
 0x7e9   :  { %13677 = vmatprep.subr.bf16.mxu1 %v16497_v47 }
 0x7ea   :  { %v16869_v12 = vsub.f32 %v9079_v10, %v6302_v45  ;;  %v6415_v42 = vsub.f32 %v16849_v36, %v6414_v9  ;;  %v17794_v10 = vand.u32 4294901760, %v16875_v8 }
 0x7ec   :  { %13679 = vmatpush3.bf16.msra.mxu1 %v16497_v47  ;;  %v16793_v47 = vpack.c.bf16 %v6305_v14, %v6302_v45  ;;  %v6421_v35 = vand.u32 4294901760, %v16869_v12  ;;  %v16898_v14 = vsub.f32 %v9084_v53, %v6317_v40  ;;  %v6416_v48 = vand.u32 4294901760, %v6415_v42 }
 0x7ed   :  { %13681 = vmatprep.subr.bf16.mxu1 %v16771_v32  ;;  %v6437_v42 = vand.u32 4294901760, %v6436_v3 }
 0x7ee   :  { %v13716_v57 = vpack.c.bf16 %v6416_v48, %v6409_v39 }
 0x7ef   :  { %11686 = vmatmul.mubr.f32.vlgmr.msra.gmra.mrb[12].mxu1 %v16590_v5  ;;  %v16803_v5 = vpack.c.bf16 %v6311_v60, %v6308_v7  ;;  %v6422_v7 = vsub.f32 %v16869_v12, %v6421_v35  ;;  %v6429_v60 = vsub.f32 %v16871_v19, %v6428_v56 }
 0x7f0   :  { %13683 = vmatpush3.bf16.msra.mxu1 %v16771_v32  ;;  %11720 = vmatprep.mubr.f32.mxu1 %v16321_v16  ;;  %v6314_v16 = vand.u32 4294901760, %v9083_v11 }
 0x7f1   :  { %13685 = vmatprep.subr.bf16.mxu1 %v16781_v62  ;;  %v6423_v50 = vand.u32 4294901760, %v6422_v7  ;;  %v6430_v6 = vand.u32 4294901760, %v6429_v60 }
 0x7f2   :  { %v16827_v46 = vpack.c.bf16 %v6317_v40, %v6314_v16  ;;  %v16896_v45 = vsub.f32 %v9083_v11, %v6314_v16  ;;  %v6443_v11 = vsub.f32 %v16875_v8, %v17794_v10  ;;  %v6456_v16 = vand.u32 4294901760, %v16898_v14 }
 0x7f3   :  { %v16916_v40 = vsub.f32 %v9085_v23, %v6320_v24  ;;  %v6470_v24 = vand.u32 4294901760, %v16918_v29  ;;  %v13720_v18 = vpack.c.bf16 %v6430_v6, %v6423_v50 }
 0x7f4   :  { %13687 = vmatpush3.bf16.msra.mxu1 %v16781_v62  ;;  %v6449_v53 = vand.u32 4294901760, %v16896_v45  ;;  %v6444_v55 = vand.u32 4294901760, %v6443_v11  ;;  %v6457_v23 = vsub.f32 %v16898_v14, %v6456_v16 }
 0x7f5   :  { %13689 = vmatprep.subr.bf16.mxu1 %v16793_v47  ;;  %v6463_v61 = vand.u32 4294901760, %v16916_v40  ;;  %v6471_v3 = vsub.f32 %v16918_v29, %v6470_v24 }
 0x7f6   :  { %v6450_v10 = vsub.f32 %v16896_v45, %v6449_v53  ;;  %v13724_v39 = vpack.c.bf16 %v6444_v55, %v6437_v42  ;;  %v6458_v7 = vand.u32 4294901760, %v6457_v23 }
 0x7f7   :  { %v6464_v60 = vsub.f32 %v16916_v40, %v6463_v61  ;;  %v6472_v11 = vand.u32 4294901760, %v6471_v3  ;;  %v13748_v3 = vpack.c.bf16 %v16849_v36, %v16847_v15  ;;  %v13828_v15 = vpack.c.bf16 %v6470_v24, %v6463_v61  ;;  %v9099_v24 = vld [vmem:[%s17646_s2 + $0x140] sm:$0xff] }
 0x7f8   :  { %13691 = vmatpush3.bf16.msra.mxu1 %v16793_v47  ;;  %v6451_v48 = vand.u32 4294901760, %v6450_v10 }
 0x7f9   :  { %13693 = vmatprep.subr.bf16.mxu1 %v16803_v5  ;;  %v6465_v10 = vand.u32 4294901760, %v6464_v60  ;;  %v13744_v60 = vpack.c.bf16 %v16824_v41, %v16822_v44  ;;  %v13816_v44 = vpack.c.bf16 %v6428_v56, %v6421_v35  ;;  %v17929_v41 = vand.u32 4294901760, %v16873_v52  ;;  %v9095_v35 = vld [vmem:[%s17646_s2 + $0x120] sm:$0xff]  ;;  %v9096_v56 = vld [vmem:[%s17646_s2 + $0x128] sm:$0xff] }
 0x7fa   :  { %v13728_v55 = vpack.c.bf16 %v6458_v7, %v6451_v48 }
 0x7fc   :  { %13695 = vmatpush3.bf16.msra.mxu1 %v16803_v5 }
 0x7fd   :  { %13697 = vmatprep.subr.bf16.mxu1 %v16827_v46 }
 0x800   :  { %13699 = vmatpush3.bf16.msra.mxu1 %v16827_v46 }
 0x801   :  { %13701 = vmatprep.subr.bf16.mxu1 %v16835_v13 }
 0x804   :  { %13703 = vmatpush3.bf16.msra.mxu1 %v16835_v13 }
 0x805   :  { %13705 = vmatprep.subr.bf16.mxu1 %v16855_v0 }
 0x808   :  { %13707 = vmatpush3.bf16.msra.mxu1 %v16855_v0 }
 0x809   :  { %13709 = vmatprep.subr.bf16.mxu1 %v16882_v30 }
 0x80c   :  { %13711 = vmatpush3.bf16.msra.mxu1 %v16882_v30 }
 0x80d   :  { %13713 = vmatprep.subr.bf16.mxu1 %v13712_v25 }
 0x80f   :  { %11721 = vmatmul.mubr.f32.vlgmr.msra.gmra.mrb[12].mxu1 %v16323_v20  ;;  %v16933_v20 = vsub.f32 %v16815_v34, %v6326_v58 }
 0x810   :  { %13715 = vmatpush3.bf16.msra.mxu1 %v13712_v25  ;;  %11755 = vmatprep.mubr.f32.mxu1 %v16294_v59  ;;  %v16938_v25 = vsub.f32 %v16820_v4, %v6329_v54  ;;  %v16951_v4 = vsub.f32 %v16840_v49, %v6332_v17  ;;  %v16956_v54 = vsub.f32 %v16845_v22, %v6335_v63 }
 0x811   :  { %13717 = vmatprep.subr.bf16.mxu1 %v13716_v57  ;;  %v6477_v34 = vand.u32 4294901760, %v16933_v20  ;;  %v13732_v22 = vpack.c.bf16 %v6472_v11, %v6465_v10  ;;  %v13756_v10 = vpack.c.bf16 %v16875_v8, %v16873_v52  ;;  %v13760_v11 = vpack.c.bf16 %v16898_v14, %v16896_v45 }
 0x812   :  { %v6484_v58 = vand.u32 4294901760, %v16938_v25  ;;  %v6491_v49 = vand.u32 4294901760, %v16951_v4  ;;  %v6498_v17 = vand.u32 4294901760, %v16956_v54  ;;  %v7003_v45 = vand.u32 4294901760, %v9095_v35 }
 0x813   :  { %v7006_v14 = vand.u32 4294901760, %v9096_v56 }
 0x814   :  { %13719 = vmatpush3.bf16.msra.mxu1 %v13716_v57  ;;  %v6478_v57 = vsub.f32 %v16933_v20, %v6477_v34  ;;  %v6485_v50 = vsub.f32 %v16938_v25, %v6484_v58  ;;  %v6492_v42 = vsub.f32 %v16951_v4, %v6491_v49  ;;  %v6499_v23 = vsub.f32 %v16956_v54, %v6498_v17 }
 0x815   :  { %13721 = vmatprep.subr.bf16.mxu1 %v13720_v18  ;;  %v13832_v36 = vpack.c.bf16 %v6484_v58, %v6477_v34  ;;  %v17118_v58 = vld [vmem:[%s17646_s2 + $0x150] sm:$0xff] }
 0x816   :  { %v6479_v63 = vand.u32 4294901760, %v6478_v57  ;;  %v6486_v6 = vand.u32 4294901760, %v6485_v50  ;;  %v6493_v48 = vand.u32 4294901760, %v6492_v42  ;;  %v6500_v7 = vand.u32 4294901760, %v6499_v23 }
 0x817   :  { %v13764_v57 = vpack.c.bf16 %v16918_v29, %v16916_v40  ;;  %v13772_v50 = vpack.c.bf16 %v16956_v54, %v16951_v4  ;;  %v9098_v40 = vld [vmem:[%s17646_s2 + $0x138] sm:$0xff]  ;;  %v17129_v54 = vld [vmem:[%s17646_s2 + $0x160] sm:$0xff]  ;;  %v17146_v23 = vand.u32 4294901760, %v16669_v1 }
 0x818   :  { %13723 = vmatpush3.bf16.msra.mxu1 %v13720_v18  ;;  %v13736_v18 = vpack.c.bf16 %v6486_v6, %v6479_v63  ;;  %v7012_v61 = vand.u32 4294901760, %v9098_v40  ;;  %v17123_v4 = vld [vmem:[%s17646_s2 + $0x158] sm:$0xff]  ;;  %v7021_v6 = vand.u32 4294901760, %v17118_v58 }
 0x819   :  { %13725 = vmatprep.subr.bf16.mxu1 %v13724_v39  ;;  %v7024_v42 = vand.u32 4294901760, %v17123_v4 }
 0x81c   :  { %13727 = vmatpush3.bf16.msra.mxu1 %v13724_v39  ;;  %v13740_v39 = vpack.c.bf16 %v6500_v7, %v6493_v48 }
 0x81d   :  { %13729 = vmatprep.subr.bf16.mxu1 %v13728_v55 }
 0x820   :  { %13731 = vmatpush3.bf16.msra.mxu1 %v13728_v55  ;;  %v13752_v55 = vpack.c.bf16 %v16871_v19, %v16869_v12  ;;  %v9094_v12 = vld [vmem:[%s17646_s2 + $0x118] sm:$0xff] }
 0x821   :  { %13733 = vmatprep.subr.bf16.mxu1 %v13732_v22  ;;  %v7000_v52 = vand.u32 4294901760, %v9094_v12 }
 0x824   :  { %13735 = vmatpush3.bf16.msra.mxu1 %v13732_v22 }
 0x825   :  { %13737 = vmatprep.subr.bf16.mxu1 %v13736_v18 }
 0x828   :  { %13739 = vmatpush3.bf16.msra.mxu1 %v13736_v18  ;;  %v7027_v18 = vand.u32 4294901760, %v17129_v54 }
 0x829   :  { %13741 = vmatprep.subr.bf16.mxu1 %v13740_v39 }
 0x82c   :  { %13743 = vmatpush3.bf16.msra.mxu1 %v13740_v39 }
 0x82d   :  { %13745 = vmatprep.subr.bf16.mxu1 %v13744_v60 }
 0x82f   :  { %11756 = vmatmul.mubr.f32.vlgmr.msra.gmra.mrb[12].mxu1 %v16296_v26 }
 0x830   :  { %13747 = vmatpush3.bf16.msra.mxu1 %v13744_v60  ;;  %11790 = vmatprep.mubr.f32.mxu1 %v16303_v31  ;;  %v13768_v31 = vpack.c.bf16 %v16938_v25, %v16933_v20  ;;  %v9100_v20 = vld [vmem:[%s17646_s2 + $0x148] sm:$0xff]  ;;  %v7015_v25 = vand.u32 4294901760, %v9099_v24  ;;  %v17154_v60 = vpack.c.bf16 %v7024_v42, %v7021_v6 }
 0x831   :  { %13749 = vmatprep.subr.bf16.mxu1 %v13748_v3  ;;  %v7018_v34 = vand.u32 4294901760, %v9100_v20 }
 0x833   :  { %v17141_v63 = vpack.c.bf16 %v7018_v34, %v7015_v25 }
 0x834   :  { %13751 = vmatpush3.bf16.msra.mxu1 %v13748_v3  ;;  %v17159_v3 = vld [vmem:[%s17646_s2 + $0x170] sm:$0xff] }
 0x835   :  { %13753 = vmatprep.subr.bf16.mxu1 %v13752_v55 }
 0x838   :  { %13755 = vmatpush3.bf16.msra.mxu1 %v13752_v55  ;;  %v17164_v55 = vld [vmem:[%s17646_s2 + $0x178] sm:$0xff] }
 0x839   :  { %13757 = vmatprep.subr.bf16.mxu1 %v13756_v10 }
 0x83c   :  { %13759 = vmatpush3.bf16.msra.mxu1 %v13756_v10 }
 0x83d   :  { %13761 = vmatprep.subr.bf16.mxu1 %v13760_v11 }
 0x840   :  { %13763 = vmatpush3.bf16.msra.mxu1 %v13760_v11  ;;  %v17168_v11 = vsub.f32 %v9094_v12, %v7000_v52 }
 0x841   :  { %13765 = vmatprep.subr.bf16.mxu1 %v13764_v57 }
 0x844   :  { %13767 = vmatpush3.bf16.msra.mxu1 %v13764_v57  ;;  %v17172_v57 = vsub.f32 %v16669_v1, %v17146_v23 }
 0x845   :  { %13769 = vmatprep.subr.bf16.mxu1 %v13768_v31 }
 0x848   :  { %13771 = vmatpush3.bf16.msra.mxu1 %v13768_v31 }
 0x849   :  { %13773 = vmatprep.subr.bf16.mxu1 %v13772_v50 }
 0x84c   :  { %13775 = vmatpush3.bf16.msra.mxu1 %v13772_v50  ;;  %v7033_v50 = vand.u32 4294901760, %v17159_v3 }
 0x84d   :  { %13777 = vmatprep.subr.bf16.mxu1 %v16771_v32 }
 0x84f   :  { %11791 = vmatmul.mubr.f32.vlgmr.msra.gmra.mrb[12].mxu1 %v16306_v38  ;;  %v13808_v38 = vpack.c.bf16 %v6400_v37, %v6393_v51  ;;  %v17930_v51 = vand.u32 4294901760, %v16875_v8 }
 0x850   :  { %13779 = vmatpush3.bf16.msra.mxu1 %v16771_v32  ;;  %11825 = vmatprep.mubr.f32.mxu1 %v16310_v43  ;;  %v13812_v43 = vpack.c.bf16 %v6414_v9, %v6407_v21  ;;  %v13836_v21 = vpack.c.bf16 %v6498_v17, %v6491_v49  ;;  %v17054_v9 = vand.u32 4294901760, %v16672_v27  ;;  %v17134_v49 = vld [vmem:[%s17646_s2 + $0x168] sm:$0xff] }
 0x851   :  { %13781 = vmatprep.subr.bf16.mxu1 %v16781_v62  ;;  %v13820_v37 = vpack.c.bf16 %v17930_v51, %v17929_v41  ;;  %v7030_v48 = vand.u32 4294901760, %v17134_v49  ;;  %v7115_v41 = vand.u32 4294901760, %v17168_v11  ;;  %v17192_v51 = vsub.f32 %v9095_v35, %v7003_v45 }
 0x853   :  { %v17178_v31 = vpack.c.bf16 %v7030_v48, %v7027_v18 }
 0x854   :  { %13783 = vmatpush3.bf16.msra.mxu1 %v16781_v62 }
 0x855   :  { %13785 = vmatprep.subr.bf16.mxu1 %v16793_v47 }
 0x858   :  { %13787 = vmatpush3.bf16.msra.mxu1 %v16793_v47 }
 0x859   :  { %13789 = vmatprep.subr.bf16.mxu1 %v16803_v5 }
 0x85c   :  { %13791 = vmatpush3.bf16.msra.mxu1 %v16803_v5 }
 0x85d   :  { %13793 = vmatprep.subr.bf16.mxu1 %v16827_v46 }
 0x860   :  { %13795 = vmatpush3.bf16.msra.mxu1 %v16827_v46 }
 0x861   :  { %13797 = vmatprep.subr.bf16.mxu1 %v16835_v13 }
 0x864   :  { %13799 = vmatpush3.bf16.msra.mxu1 %v16835_v13 }
 0x865   :  { %13801 = vmatprep.subr.bf16.mxu1 %v16855_v0 }
 0x868   :  { %13803 = vmatpush3.bf16.msra.mxu1 %v16855_v0 }
 0x869   :  { %13805 = vmatprep.subr.bf16.mxu1 %v16882_v30 }
 0x86c   :  { %13807 = vmatpush3.bf16.msra.mxu1 %v16882_v30 }
 0x86d   :  { %13809 = vmatprep.subr.bf16.mxu1 %v13808_v38 }
 0x86f   :  { %11826 = vmatmul.mubr.f32.vlgmr.msra.gmra.mrb[12].mxu1 %v16313_v28  ;;  %v13824_v28 = vpack.c.bf16 %v6456_v16, %v6449_v53  ;;  %v9097_v16 = vld [vmem:[%s17646_s2 + $0x130] sm:$0xff] }
 0x870   :  { %13811 = vmatpush3.bf16.msra.mxu1 %v13808_v38  ;;  %11860 = vmatprep.mubr.f32.mxu1 %v16294_v59  ;;  %v7009_v29 = vand.u32 4294901760, %v9097_v16  ;;  %v7036_v38 = vand.u32 4294901760, %v17164_v55 }
 0x871   :  { %13813 = vmatprep.subr.bf16.mxu1 %v13812_v43 }
 0x874   :  { %13815 = vmatpush3.bf16.msra.mxu1 %v13812_v43 }
 0x875   :  { %13817 = vmatprep.subr.bf16.mxu1 %v13816_v44 }
 0x878   :  { %13819 = vmatpush3.bf16.msra.mxu1 %v13816_v44 }
 0x879   :  { %13821 = vmatprep.subr.bf16.mxu1 %v13820_v37 }
 0x87c   :  { %13823 = vmatpush3.bf16.msra.mxu1 %v13820_v37  ;;  %v17194_v37 = vsub.f32 %v9096_v56, %v7006_v14  ;;  %v17223_v56 = vsub.f32 %v9099_v24, %v7015_v25  ;;  %v17244_v25 = vsub.f32 %v17118_v58, %v7021_v6 }
 0x87d   :  { %13825 = vmatprep.subr.bf16.mxu1 %v13824_v28 }
 0x87e   :  { %v7129_v12 = vand.u32 4294901760, %v17194_v37  ;;  %v7150_v24 = vand.u32 4294901760, %v17223_v56 }
 0x880   :  { %13827 = vmatpush3.bf16.msra.mxu1 %v13824_v28  ;;  %v17196_v28 = vsub.f32 %v9097_v16, %v7009_v29 }
 0x881   :  { %13829 = vmatprep.subr.bf16.mxu1 %v13828_v15 }
 0x884   :  { %13831 = vmatpush3.bf16.msra.mxu1 %v13828_v15  ;;  %v17198_v15 = vsub.f32 %v9098_v40, %v7012_v61  ;;  %v7130_v40 = vsub.f32 %v17194_v37, %v7129_v12 }
 0x885   :  { %13833 = vmatprep.subr.bf16.mxu1 %v13832_v36 }
 0x888   :  { %13835 = vmatpush3.bf16.msra.mxu1 %v13832_v36  ;;  %v7083_v36 = vand.u32 4294901760, %v17172_v57 }
 0x889   :  { %13837 = vmatprep.subr.bf16.mxu1 %v13836_v21 }
 0x88c   :  { %13839 = vmatpush3.bf16.msra.mxu1 %v13836_v21  ;;  %v17206_v21 = vpack.c.bf16 %v7036_v38, %v7033_v50 }
 0x88d   :  { %13841 = vmatprep.subr.bf16.mxu1 %v16771_v32 }
 0x88f   :  { %11861 = vmatmul.mubr.f32.vlgmr.msra.gmra.mrb[12].mxu1 %v16296_v26 }
 0x890   :  { %13843 = vmatpush3.bf16.msra.mxu1 %v16771_v32  ;;  %11895 = vmatprep.mubr.f32.mxu1 %v16294_v59  ;;  %v17060_v59 = vsub.f32 %v16672_v27, %v17054_v9  ;;  %v9091_v32 = vld [vmem:[%s17646_s2 + $0x100] sm:$0xff]  ;;  %v9093_v27 = vld [vmem:[%s17646_s2 + $0x110] sm:$0xff] }
 0x891   :  { %13845 = vmatprep.subr.bf16.mxu1 %v16781_v62 }
 0x894   :  { %13847 = vmatpush3.bf16.msra.mxu1 %v16781_v62  ;;  %v9092_v62 = vld [vmem:[%s17646_s2 + $0x108] sm:$0xff] }
 0x895   :  { %13849 = vmatprep.subr.bf16.mxu1 %v16793_v47 }
 0x898   :  { %13851 = vmatpush3.bf16.msra.mxu1 %v16793_v47  ;;  %v6991_v47 = vand.u32 4294901760, %v9091_v32 }
 0x899   :  { %13853 = vmatprep.subr.bf16.mxu1 %v16803_v5 }
 0x89a   :  { %v17136_v17 = vsub.f32 %v9091_v32, %v6991_v47 }
 0x89c   :  { %13855 = vmatpush3.bf16.msra.mxu1 %v16803_v5  ;;  %v6994_v5 = vand.u32 4294901760, %v9092_v62  ;;  %v7094_v7 = vand.u32 4294901760, %v17136_v17 }
 0x89d   :  { %13857 = vmatprep.subr.bf16.mxu1 %v16827_v46 }
 0x89e   :  { %v17079_v19 = vpack.c.bf16 %v6994_v5, %v6991_v47  ;;  %v17138_v22 = vsub.f32 %v9092_v62, %v6994_v5  ;;  %v7095_v43 = vsub.f32 %v17136_v17, %v7094_v7  ;;  %v7116_v5 = vsub.f32 %v17168_v11, %v7115_v41 }
 0x8a0   :  { %13859 = vmatpush3.bf16.msra.mxu1 %v16827_v46  ;;  %v7073_v46 = vand.u32 4294901760, %v17060_v59  ;;  %v7101_v39 = vand.u32 4294901760, %v17138_v22  ;;  %v7096_v32 = vand.u32 4294901760, %v7095_v43 }
 0x8a1   :  { %13861 = vmatprep.subr.bf16.mxu1 %v16835_v13 }
 0x8a2   :  { %v7074_v8 = vsub.f32 %v17060_v59, %v7073_v46  ;;  %v7102_v1 = vsub.f32 %v17138_v22, %v7101_v39 }
 0x8a4   :  { %13863 = vmatpush3.bf16.msra.mxu1 %v16835_v13  ;;  %v6997_v13 = vand.u32 4294901760, %v9093_v27  ;;  %v7075_v53 = vand.u32 4294901760, %v7074_v8  ;;  %v7103_v62 = vand.u32 4294901760, %v7102_v1  ;;  %v7084_v8 = vsub.f32 %v17172_v57, %v7083_v36 }
 0x8a5   :  { %13865 = vmatprep.subr.bf16.mxu1 %v16855_v0 }
 0x8a6   :  { %v17166_v10 = vsub.f32 %v9093_v27, %v6997_v13  ;;  %v7122_v27 = vand.u32 4294901760, %v17192_v51  ;;  %v13904_v35 = vpack.c.bf16 %v7103_v62, %v7096_v32  ;;  %v7085_v43 = vand.u32 4294901760, %v7084_v8 }
 0x8a7   :  { %v7131_v62 = vand.u32 4294901760, %v7130_v40  ;;  %v17261_v8 = vsub.f32 %v17129_v54, %v7027_v18 }
 0x8a8   :  { %13867 = vmatpush3.bf16.msra.mxu1 %v16855_v0  ;;  %v17092_v0 = vpack.c.bf16 %v7000_v52, %v6997_v13  ;;  %v7108_v44 = vand.u32 4294901760, %v17166_v10  ;;  %v7136_v13 = vand.u32 4294901760, %v17196_v28  ;;  %v17795_v52 = vand.u32 4294901760, %v17198_v15 }
 0x8a9   :  { %13869 = vmatprep.subr.bf16.mxu1 %v16882_v30  ;;  %v7123_v16 = vsub.f32 %v17192_v51, %v7122_v27  ;;  %v7178_v54 = vand.u32 4294901760, %v17261_v8 }
 0x8aa   :  { %v7109_v47 = vsub.f32 %v17166_v10, %v7108_v44 }
 0x8ab   :  { %v7124_v32 = vand.u32 4294901760, %v7123_v16 }
 0x8ac   :  { %13871 = vmatpush3.bf16.msra.mxu1 %v16882_v30  ;;  %v17103_v30 = vpack.c.bf16 %v7006_v14, %v7003_v45  ;;  %v17225_v45 = vsub.f32 %v9100_v20, %v7018_v34  ;;  %v7110_v14 = vand.u32 4294901760, %v7109_v47  ;;  %v17247_v34 = vsub.f32 %v17123_v4, %v7024_v42 }
 0x8ad   :  { %13873 = vmatprep.subr.bf16.mxu1 %v17079_v19  ;;  %v7164_v4 = vand.u32 4294901760, %v17244_v25  ;;  %v13912_v42 = vpack.c.bf16 %v7131_v62, %v7124_v32 }
 0x8ae   :  { %v7157_v20 = vand.u32 4294901760, %v17225_v45  ;;  %v7171_v6 = vand.u32 4294901760, %v17247_v34 }
 0x8af   :  { %11896 = vmatmul.mubr.f32.vlgmr.msra.gmra.mrb[12].mxu1 %v16296_v26  ;;  %v17113_v26 = vpack.c.bf16 %v7012_v61, %v7009_v29  ;;  %v7137_v29 = vsub.f32 %v17196_v28, %v7136_v13  ;;  %v7144_v61 = vsub.f32 %v17198_v15, %v17795_v52  ;;  %v7151_v52 = vsub.f32 %v17223_v56, %v7150_v24 }
 0x8b0   :  { %13875 = vmatpush3.bf16.msra.mxu1 %v17079_v19  ;;  %11930 = vmatprep.mubr.f32.mxu1 %v7075_v53  ;;  %v7117_v53 = vand.u32 4294901760, %v7116_v5  ;;  %v7158_v58 = vsub.f32 %v17225_v45, %v7157_v20  ;;  %v7165_v40 = vsub.f32 %v17244_v25, %v7164_v4 }
 0x8b1   :  { %13877 = vmatprep.subr.bf16.mxu1 %v17092_v0  ;;  %v7138_v47 = vand.u32 4294901760, %v7137_v29  ;;  %v7145_v5 = vand.u32 4294901760, %v7144_v61  ;;  %v7172_v29 = vsub.f32 %v17247_v34, %v7171_v6 }
 0x8b2   :  { %v13908_v1 = vpack.c.bf16 %v7117_v53, %v7110_v14  ;;  %v7152_v53 = vand.u32 4294901760, %v7151_v52  ;;  %v7159_v16 = vand.u32 4294901760, %v7158_v58  ;;  %v7166_v61 = vand.u32 4294901760, %v7165_v40 }
 0x8b3   :  { %v13916_v14 = vpack.c.bf16 %v7145_v5, %v7138_v47  ;;  %v13940_v40 = vpack.c.bf16 %v17168_v11, %v17166_v10  ;;  %v14020_v10 = vpack.c.bf16 %v7171_v6, %v7164_v4  ;;  %v17941_v4 = vld [vmem:[#allocation40_spill] sm:$0xff]  ;;  %v17942_v6 = vld [vmem:[#allocation41_spill] sm:$0xff] }
 0x8b4   :  { %13879 = vmatpush3.bf16.msra.mxu1 %v17092_v0  ;;  %v13920_v52 = vpack.c.bf16 %v7159_v16, %v7152_v53  ;;  %v13936_v16 = vpack.c.bf16 %v17138_v22, %v17136_v17  ;;  %v14008_v17 = vpack.c.bf16 %v7129_v12, %v7122_v27  ;;  %v17931_v22 = vand.u32 4294901760, %v17198_v15  ;;  %v17933_v12 = vld [vmem:[#allocation22_spill] sm:$0xff] }
 0x8b5   :  { %13881 = vmatprep.subr.bf16.mxu1 %v17103_v30  ;;  %v17932_v27 = vmov 0.0|0.0  }
 0x8b8   :  { %13883 = vmatpush3.bf16.msra.mxu1 %v17103_v30 }
 0x8b9   :  { %13885 = vmatprep.subr.bf16.mxu1 %v17113_v26 }
 0x8bc   :  { %13887 = vmatpush3.bf16.msra.mxu1 %v17113_v26 }
 0x8bd   :  { %13889 = vmatprep.subr.bf16.mxu1 %v17141_v63 }
 0x8c0   :  { %13891 = vmatpush3.bf16.msra.mxu1 %v17141_v63 }
 0x8c1   :  { %13893 = vmatprep.subr.bf16.mxu1 %v17154_v60 }
 0x8c4   :  { %13895 = vmatpush3.bf16.msra.mxu1 %v17154_v60 }
 0x8c5   :  { %13897 = vmatprep.subr.bf16.mxu1 %v17178_v31 }
 0x8c8   :  { %13899 = vmatpush3.bf16.msra.mxu1 %v17178_v31 }
 0x8c9   :  { %13901 = vmatprep.subr.bf16.mxu1 %v17206_v21 }
 0x8cc   :  { %13903 = vmatpush3.bf16.msra.mxu1 %v17206_v21 }
 0x8cd   :  { %13905 = vmatprep.subr.bf16.mxu1 %v13904_v35 }
 0x8cf   :  { %11931 = vmatmul.mubr.f32.vlgmr.msra.gmra.mrb[12].mxu1 %v7085_v43  ;;  %v7173_v43 = vand.u32 4294901760, %v7172_v29  ;;  %v13944_v29 = vpack.c.bf16 %v17194_v37, %v17192_v51 }
 0x8d0   :  { %13907 = vmatpush3.bf16.msra.mxu1 %v13904_v35  ;;  %11965 = vmatprep.mubr.f32.mxu1 %v17054_v9  ;;  %v17266_v35 = vsub.f32 %v17134_v49, %v7030_v48  ;;  %v17279_v49 = vsub.f32 %v17159_v3, %v7033_v50  ;;  %v17284_v48 = vsub.f32 %v17164_v55, %v7036_v38 }
 0x8d1   :  { %13909 = vmatprep.subr.bf16.mxu1 %v13908_v1  ;;  %v13924_v55 = vpack.c.bf16 %v7173_v43, %v7166_v61  ;;  %v13952_v61 = vpack.c.bf16 %v17225_v45, %v17223_v56  ;;  %v13956_v43 = vpack.c.bf16 %v17247_v34, %v17244_v25  ;;  %v17935_v56 = vld [vmem:[#allocation24_spill] sm:$0xff]  ;;  %v17936_v45 = vld [vmem:[#allocation25_spill] sm:$0xff]  ;;  %v17939_v25 = vld [vmem:[#allocation30_spill] sm:$0xff] }
 0x8d2   :  { %v7185_v18 = vand.u32 4294901760, %v17266_v35  ;;  %v7192_v3 = vand.u32 4294901760, %v17279_v49  ;;  %v7199_v50 = vand.u32 4294901760, %v17284_v48  ;;  %v17940_v34 = vld [vmem:[#allocation39_spill] sm:$0xff] }
 0x8d4   :  { %13911 = vmatpush3.bf16.msra.mxu1 %v13908_v1  ;;  %v7179_v1 = vsub.f32 %v17261_v8, %v7178_v54  ;;  %v7186_v32 = vsub.f32 %v17266_v35, %v7185_v18  ;;  %v7193_v47 = vsub.f32 %v17279_v49, %v7192_v3  ;;  %v7200_v5 = vsub.f32 %v17284_v48, %v7199_v50 }
 0x8d5   :  { %13913 = vmatprep.subr.bf16.mxu1 %v13912_v42  ;;  %v14024_v11 = vpack.c.bf16 %v7185_v18, %v7178_v54  ;;  %v17945_v54 = vld [vmem:[#allocation36_spill] sm:$0xff]  ;;  %v17946_v18 = vld [vmem:[#allocation37_spill] sm:$0xff] }
 0x8d6   :  { %v7180_v38 = vand.u32 4294901760, %v7179_v1  ;;  %v7187_v62 = vand.u32 4294901760, %v7186_v32  ;;  %v7201_v53 = vand.u32 4294901760, %v7200_v5  ;;  %v13960_v1 = vpack.c.bf16 %v17266_v35, %v17261_v8  ;;  %v17943_v8 = vld [vmem:[#allocation34_spill] sm:$0xff]  ;;  %v17944_v35 = vld [vmem:[#allocation35_spill] sm:$0xff]  ;;  %v17955_v5 = vld [vmem:[#allocation33_spill] sm:$0xff] }
 0x8d7   :  { %v13964_v32 = vpack.c.bf16 %v17284_v48, %v17279_v49  ;;  %v17947_v49 = vld [vmem:[#allocation38_spill] sm:$0xff]  ;;  %v17948_v48 = vld [vmem:[#allocation3_spill] sm:$0xff] }
 0x8d8   :  { %13915 = vmatpush3.bf16.msra.mxu1 %v13912_v42  ;;  %v13928_v58 = vpack.c.bf16 %v7187_v62, %v7180_v38  ;;  %v7194_v42 = vand.u32 4294901760, %v7193_v47  ;;  %v17952_v38 = vld [vmem:[#allocation29_spill] sm:$0xff]  ;;  %v17953_v62 = vld [vmem:[#allocation31_spill] sm:$0xff]  ;;  %v17954_v47 = vld [vmem:[#allocation32_spill] sm:$0xff] }
 0x8d9   :  { %13917 = vmatprep.subr.bf16.mxu1 %v13916_v14 }
 0x8dc   :  { %13919 = vmatpush3.bf16.msra.mxu1 %v13916_v14  ;;  %v13932_v14 = vpack.c.bf16 %v7201_v53, %v7194_v42  ;;  %v17957_v42 = vld [vmem:[#allocation43_spill] sm:$0xff]  ;;  %v17958_v53 = vld [vmem:[#allocation44_spill] sm:$0xff] }
 0x8dd   :  { %13921 = vmatprep.subr.bf16.mxu1 %v13920_v52 }
 0x8e0   :  { %13923 = vmatpush3.bf16.msra.mxu1 %v13920_v52  ;;  %v13948_v52 = vpack.c.bf16 %v17198_v15, %v17196_v28 }
 0x8e1   :  { %13925 = vmatprep.subr.bf16.mxu1 %v13924_v55 }
 0x8e4   :  { %13927 = vmatpush3.bf16.msra.mxu1 %v13924_v55  ;;  %v17951_v55 = vld [vmem:[#allocation26_spill] sm:$0xff] }
 0x8e5   :  { %13929 = vmatprep.subr.bf16.mxu1 %v13928_v58 }
 0x8e8   :  { %13931 = vmatpush3.bf16.msra.mxu1 %v13928_v58  ;;  %v17956_v58 = vld [vmem:[#allocation42_spill] sm:$0xff] }
 0x8e9   :  { %13933 = vmatprep.subr.bf16.mxu1 %v13932_v14 }
 0x8ec   :  { %13935 = vmatpush3.bf16.msra.mxu1 %v13932_v14  ;;  %v17959_v14 = vld [vmem:[#allocation45_spill] sm:$0xff] }
 0x8ed   :  { %13937 = vmatprep.subr.bf16.mxu1 %v13936_v16 }
 0x8ef   :  { %11966 = vmatmul.mubr.f32.vlgmr.msra.gmra.mrb[12].mxu1 %v17146_v23 }
 0x8f0   :  { %13939 = vmatpush3.bf16.msra.mxu1 %v13936_v16  ;;  %12000 = vmatprep.mubr.f32.mxu1 %v17060_v59  ;;  %v14000_v59 = vpack.c.bf16 %v7101_v39, %v7094_v7  ;;  %v14012_v7 = vpack.c.bf16 %v17931_v22, %v7136_v13  ;;  %v14016_v39 = vpack.c.bf16 %v7157_v20, %v7150_v24  ;;  %v17934_v13 = vld [vmem:[#allocation23_spill] sm:$0xff]  ;;  %v17938_v20 = vld [vmem:[#allocation28_spill] sm:$0xff]  ;;  %v17960_v16 = vld [vmem:[#allocation46_spill] sm:$0xff] }
 0x8f1   :  { %13941 = vmatprep.subr.bf16.mxu1 %v13940_v40  ;;  %v17937_v24 = vld [vmem:[#allocation27_spill] sm:$0xff] }
 0x8f4   :  { %13943 = vmatpush3.bf16.msra.mxu1 %v13940_v40  ;;  %v17961_v40 = vld [vmem:[#allocation47_spill] sm:$0xff] }
 0x8f5   :  { %13945 = vmatprep.subr.bf16.mxu1 %v13944_v29 }
 0x8f8   :  { %13947 = vmatpush3.bf16.msra.mxu1 %v13944_v29  ;;  %v17962_v29 = vld [vmem:[#allocation48_spill] sm:$0xff] }
 0x8f9   :  { %13949 = vmatprep.subr.bf16.mxu1 %v13948_v52 }
 0x8fc   :  { %13951 = vmatpush3.bf16.msra.mxu1 %v13948_v52  ;;  %v17963_v52 = vld [vmem:[#allocation49_spill] sm:$0xff] }
 0x8fd   :  { %13953 = vmatprep.subr.bf16.mxu1 %v13952_v61 }
 0x900   :  { %13955 = vmatpush3.bf16.msra.mxu1 %v13952_v61 }
 0x901   :  { %13957 = vmatprep.subr.bf16.mxu1 %v13956_v43 }
 0x904   :  { %13959 = vmatpush3.bf16.msra.mxu1 %v13956_v43 }
 0x905   :  { %13961 = vmatprep.subr.bf16.mxu1 %v13960_v1 }
 0x908   :  { %13963 = vmatpush3.bf16.msra.mxu1 %v13960_v1 }
 0x909   :  { %13965 = vmatprep.subr.bf16.mxu1 %v13964_v32 }
 0x90c   :  { %13967 = vmatpush3.bf16.msra.mxu1 %v13964_v32 }
 0x90d   :  { %13969 = vmatprep.subr.bf16.mxu1 %v17079_v19 }
 0x90f   :  { %12001 = vmatmul.mubr.f32.vlgmr.msra.gmra.mrb[12].mxu1 %v17172_v57  ;;  %v14028_v57 = vpack.c.bf16 %v7199_v50, %v7192_v3  ;;  %v17949_v3 = vld [vmem:[#allocation20_spill] sm:$0xff]  ;;  %v17950_v50 = vld [vmem:[#allocation21_spill] sm:$0xff] }
 0x910   :  { %13971 = vmatpush3.bf16.msra.mxu1 %v17079_v19  ;;  %12035 = vmatprep.mubr.f32.mxu1 %v7073_v46  ;;  %v14004_v46 = vpack.c.bf16 %v7115_v41, %v7108_v44 }
 0x911   :  { %13973 = vmatprep.subr.bf16.mxu1 %v17092_v0 }
 0x914   :  { %13975 = vmatpush3.bf16.msra.mxu1 %v17092_v0 }
 0x915   :  { %13977 = vmatprep.subr.bf16.mxu1 %v17103_v30 }
 0x918   :  { %13979 = vmatpush3.bf16.msra.mxu1 %v17103_v30 }
 0x919   :  { %13981 = vmatprep.subr.bf16.mxu1 %v17113_v26 }
 0x91c   :  { %13983 = vmatpush3.bf16.msra.mxu1 %v17113_v26 }
 0x91d   :  { %13985 = vmatprep.subr.bf16.mxu1 %v17141_v63 }
 0x920   :  { %13987 = vmatpush3.bf16.msra.mxu1 %v17141_v63 }
 0x921   :  { %13989 = vmatprep.subr.bf16.mxu1 %v17154_v60 }
 0x924   :  { %13991 = vmatpush3.bf16.msra.mxu1 %v17154_v60 }
 0x925   :  { %13993 = vmatprep.subr.bf16.mxu1 %v17178_v31 }
 0x928   :  { %13995 = vmatpush3.bf16.msra.mxu1 %v17178_v31 }
 0x929   :  { %13997 = vmatprep.subr.bf16.mxu1 %v17206_v21 }
 0x92c   :  { %13999 = vmatpush3.bf16.msra.mxu1 %v17206_v21 }
 0x92d   :  { %14001 = vmatprep.subr.bf16.mxu1 %v14000_v59 }
 0x92f   :  { %12036 = vmatmul.mubr.f32.vlgmr.msra.gmra.mrb[12].mxu1 %v7083_v36 }
 0x930   :  { %14003 = vmatpush3.bf16.msra.mxu1 %v14000_v59  ;;  %12070 = vmatprep.mubr.f32.mxu1 %v17054_v9 }
 0x931   :  { %14005 = vmatprep.subr.bf16.mxu1 %v14004_v46 }
 0x934   :  { %14007 = vmatpush3.bf16.msra.mxu1 %v14004_v46 }
 0x935   :  { %14009 = vmatprep.subr.bf16.mxu1 %v14008_v17 }
 0x938   :  { %14011 = vmatpush3.bf16.msra.mxu1 %v14008_v17 }
 0x939   :  { %14013 = vmatprep.subr.bf16.mxu1 %v14012_v7 }
 0x93c   :  { %14015 = vmatpush3.bf16.msra.mxu1 %v14012_v7 }
 0x93d   :  { %14017 = vmatprep.subr.bf16.mxu1 %v14016_v39 }
 0x940   :  { %14019 = vmatpush3.bf16.msra.mxu1 %v14016_v39 }
 0x941   :  { %14021 = vmatprep.subr.bf16.mxu1 %v14020_v10 }
 0x944   :  { %14023 = vmatpush3.bf16.msra.mxu1 %v14020_v10 }
 0x945   :  { %14025 = vmatprep.subr.bf16.mxu1 %v14024_v11 }
 0x948   :  { %14027 = vmatpush3.bf16.msra.mxu1 %v14024_v11 }
 0x949   :  { %14029 = vmatprep.subr.bf16.mxu1 %v14028_v57 }
 0x94c   :  { %14031 = vmatpush3.bf16.msra.mxu1 %v14028_v57 }
 0x94d   :  { %14033 = vmatprep.subr.bf16.mxu1 %v17079_v19 }
 0x94f   :  { %12071 = vmatmul.mubr.f32.vlgmr.msra.gmra.mrb[12].mxu1 %v17146_v23 }
 0x950   :  { %14035 = vmatpush3.bf16.msra.mxu1 %v17079_v19  ;;  %12105 = vmatprep.mubr.f32.mxu1 %v17054_v9  ;;  %v9107_v9 = vld [vmem:[%s17647_s6] ss:$0 sm:$0xff] }
 0x951   :  { %14037 = vmatprep.subr.bf16.mxu1 %v17092_v0 }
 0x954   :  { %14039 = vmatpush3.bf16.msra.mxu1 %v17092_v0 }
 0x955   :  { %14041 = vmatprep.subr.bf16.mxu1 %v17103_v30 }
 0x958   :  { %14043 = vmatpush3.bf16.msra.mxu1 %v17103_v30 }
 0x959   :  { %14045 = vmatprep.subr.bf16.mxu1 %v17113_v26 }
 0x95c   :  { %14047 = vmatpush3.bf16.msra.mxu1 %v17113_v26 }
 0x95d   :  { %14049 = vmatprep.subr.bf16.mxu1 %v17141_v63 }
 0x960   :  { %14051 = vmatpush3.bf16.msra.mxu1 %v17141_v63 }
 0x961   :  { %14053 = vmatprep.subr.bf16.mxu1 %v17154_v60 }
 0x964   :  { %14055 = vmatpush3.bf16.msra.mxu1 %v17154_v60 }
 0x965   :  { %14057 = vmatprep.subr.bf16.mxu1 %v17178_v31 }
 0x968   :  { %14059 = vmatpush3.bf16.msra.mxu1 %v17178_v31 }
 0x969   :  { %14061 = vmatprep.subr.bf16.mxu1 %v17206_v21 }
 0x96c   :  { %14063 = vmatpush3.bf16.msra.mxu1 %v17206_v21 }
 0x96f   :  { %12106 = vmatmul.mubr.f32.vlgmr.msra.gmra.mrb[12].mxu1 %v17146_v23 }
 0xa42   :  { %v12107_v19 = vpop.f32.mrb[12].mxu1 }
 0xa43   :  { %v17394_v0 = vadd.f32 %v12107_v19, %v9107_v9  ;;  %v7664_v30 = vpop.f32.mrb[13].mxu1 }
 0xa44   :  { %v17396_v26 = vadd.f32 %v9107_v9, %v7664_v30 }
 0xa45   :  { %v7693_v61 = vmul.f32 %v17394_v0, %v17394_v0 }
 0xa46   :  { %v7685_v63 = vadd.f32 %v17394_v0, %v17396_v26  ;;  %v7692_v43 = vmul.f32 %v17396_v26, %v17396_v26 }
 0xa48   :  { %v7686_v60 = vrot.slane %v7685_v63, 4  ;;  %v7694_v1 = vadd.f32 %v7693_v61, %v7692_v43 }
 0xa4a   :  { %v7687_v31 = vadd.f32 %v7686_v60, %v7685_v63  ;;  %v7695_v32 = vrot.slane %v7694_v1, 4 }
 0xa4c   :  { %v7688_v44 = vrot.slane %v7687_v31, 2  ;;  %v7696_v59 = vadd.f32 %v7695_v32, %v7694_v1 }
 0xa4e   :  { %v7689_v41 = vadd.f32 %v7688_v44, %v7687_v31  ;;  %v7697_v46 = vrot.slane %v7696_v59, 2  ;;  %v8985_v44 = vld [vmem:[%s17648_s7] sm:$0x1] }
 0xa50   :  { %v7690_v51 = vrot.slane %v7689_v41, 1  ;;  %v7698_v17 = vadd.f32 %v7697_v46, %v7696_v59 }
 0xa52   :  { %v7691_v37 = vadd.f32 %v7690_v51, %v7689_v41  ;;  %v7699_v22 = vrot.slane %v7698_v17, 1 }
 0xa54   :  { %v17400_v23 = vand.u32 4294901760, %v7691_v37  ;;  %v7700_v7 = vadd.f32 %v7699_v22, %v7698_v17 }
 0xa56   :  { %v7783_v28 = vsub.f32 %v7691_v37, %v17400_v23  ;;  %v17509_v39 = vand.u32 4294901760, %v7700_v7  ;;  %v8989_v37 = vld [vmem:[%s17649_s8] sm:$0x1] }
 0xa58   :  { %v7784_v15 = vand.u32 4294901760, %v7783_v28  ;;  %v17515_v10 = vsub.f32 %v7700_v7, %v17509_v39 }
 0xa5a   :  { %v7785_v36 = vsub.f32 %v7783_v28, %v7784_v15  ;;  %v8425_v11 = vand.u32 4294901760, %v17515_v10 }
 0xa5c   :  { %v7786_v21 = vand.u32 4294901760, %v7785_v36  ;;  %v8426_v57 = vsub.f32 %v17515_v10, %v8425_v11 }
 0xa5e   :  { %12141 = vmatmul.mubr.f32.vlgmr.msra.gmra.mrb[6].mxu0 %v7786_v21  ;;  %v8427_v9 = vand.u32 4294901760, %v8426_v57 }
 0xa5f   :  { %14090 = vmatpush3.bf16.msra.mxu0 %v15725_v33  ;;  %12175 = vmatprep.mubr.msk.f32.mxu0 %vm14510_vm12, %v17859_v2 }
 0xa60   :  { %14091 = vmatprep.subr.bf16.mxu0 %v17932_v27 }
 0xa63   :  { %14093 = vmatpush3.bf16.msra.mxu0 %v17933_v12 }
 0xa64   :  { %14094 = vmatprep.subr.bf16.mxu0 %v17932_v27 }
 0xa67   :  { %14096 = vmatpush3.bf16.msra.mxu0 %v17934_v13 }
 0xa68   :  { %14097 = vmatprep.subr.bf16.mxu0 %v17932_v27 }
 0xa6b   :  { %14099 = vmatpush3.bf16.msra.mxu0 %v17935_v56 }
 0xa6c   :  { %14100 = vmatprep.subr.bf16.mxu0 %v17932_v27 }
 0xa6f   :  { %14102 = vmatpush3.bf16.msra.mxu0 %v17936_v45 }
 0xa70   :  { %14103 = vmatprep.subr.bf16.mxu0 %v17932_v27 }
 0xa73   :  { %14105 = vmatpush3.bf16.msra.mxu0 %v17937_v24 }
 0xa74   :  { %14106 = vmatprep.subr.bf16.mxu0 %v17932_v27 }
 0xa77   :  { %14108 = vmatpush3.bf16.msra.mxu0 %v17938_v20 }
 0xa78   :  { %14109 = vmatprep.subr.bf16.mxu0 %v17932_v27 }
 0xa7b   :  { %14111 = vmatpush3.bf16.msra.mxu0 %v17939_v25 }
 0xa7c   :  { %14112 = vmatprep.subr.bf16.mxu0 %v17932_v27 }
 0xa7e   :  { %12176 = vmatmul.mubr.f32.vlgmr.msra.gmra.mrb[6].mxu0 %v17400_v23 }
 0xa7f   :  { %14114 = vmatpush3.bf16.msra.mxu0 %v17940_v34  ;;  %12210 = vmatprep.mubr.msk.f32.mxu0 %vm14510_vm12, %v17859_v2 }
 0xa80   :  { %14115 = vmatprep.subr.bf16.mxu0 %v17932_v27 }
 0xa83   :  { %14117 = vmatpush3.bf16.msra.mxu0 %v17941_v4 }
 0xa84   :  { %14118 = vmatprep.subr.bf16.mxu0 %v17932_v27 }
 0xa87   :  { %14120 = vmatpush3.bf16.msra.mxu0 %v17942_v6 }
 0xa88   :  { %14121 = vmatprep.subr.bf16.mxu0 %v17932_v27 }
 0xa8b   :  { %14123 = vmatpush3.bf16.msra.mxu0 %v17943_v8 }
 0xa8c   :  { %14124 = vmatprep.subr.bf16.mxu0 %v17932_v27 }
 0xa8f   :  { %14126 = vmatpush3.bf16.msra.mxu0 %v17944_v35 }
 0xa90   :  { %14127 = vmatprep.subr.bf16.mxu0 %v17932_v27 }
 0xa93   :  { %14129 = vmatpush3.bf16.msra.mxu0 %v17945_v54 }
 0xa94   :  { %14130 = vmatprep.subr.bf16.mxu0 %v17932_v27 }
 0xa97   :  { %14132 = vmatpush3.bf16.msra.mxu0 %v17946_v18 }
 0xa98   :  { %14133 = vmatprep.subr.bf16.mxu0 %v17932_v27 }
 0xa9b   :  { %14135 = vmatpush3.bf16.msra.mxu0 %v17947_v49 }
 0xa9c   :  { %14136 = vmatprep.subr.bf16.mxu0 %v17932_v27 }
 0xa9e   :  { %12211 = vmatmul.mubr.f32.vlgmr.msra.gmra.mrb[6].mxu0 %v7783_v28  ;;  %v17964_v28 = vld [vmem:[#allocation10_spill] sm:$0xff] }
 0xa9f   :  { %14138 = vmatpush3.bf16.msra.mxu0 %v17948_v48  ;;  %12245 = vmatprep.mubr.msk.f32.mxu0 %vm14510_vm12, %v17859_v2 }
 0xaa0   :  { %14139 = vmatprep.subr.bf16.mxu0 %v17932_v27 }
 0xaa3   :  { %14141 = vmatpush3.bf16.msra.mxu0 %v17949_v3 }
 0xaa4   :  { %14142 = vmatprep.subr.bf16.mxu0 %v17932_v27 }
 0xaa7   :  { %14144 = vmatpush3.bf16.msra.mxu0 %v17950_v50 }
 0xaa8   :  { %14145 = vmatprep.subr.bf16.mxu0 %v17932_v27 }
 0xaab   :  { %14147 = vmatpush3.bf16.msra.mxu0 %v17951_v55 }
 0xaac   :  { %14148 = vmatprep.subr.bf16.mxu0 %v17932_v27 }
 0xaaf   :  { %14150 = vmatpush3.bf16.msra.mxu0 %v17952_v38 }
 0xab0   :  { %14151 = vmatprep.subr.bf16.mxu0 %v17932_v27 }
 0xab3   :  { %14153 = vmatpush3.bf16.msra.mxu0 %v17953_v62 }
 0xab4   :  { %14154 = vmatprep.subr.bf16.mxu0 %v17932_v27 }
 0xab7   :  { %14156 = vmatpush3.bf16.msra.mxu0 %v17954_v47 }
 0xab8   :  { %14157 = vmatprep.subr.bf16.mxu0 %v17932_v27 }
 0xabb   :  { %14159 = vmatpush3.bf16.msra.mxu0 %v17955_v5 }
 0xabc   :  { %14160 = vmatprep.subr.bf16.mxu0 %v17932_v27 }
 0xabe   :  { %12246 = vmatmul.mubr.f32.vlgmr.msra.gmra.mrb[6].mxu0 %v7784_v15 }
 0xabf   :  { %14162 = vmatpush3.bf16.msra.mxu0 %v17956_v58  ;;  %12280 = vmatprep.mubr.msk.f32.mxu0 %vm14510_vm12, %v17859_v2 }
 0xac0   :  { %14163 = vmatprep.subr.bf16.mxu0 %v17932_v27 }
 0xac3   :  { %14165 = vmatpush3.bf16.msra.mxu0 %v17957_v42 }
 0xac4   :  { %14166 = vmatprep.subr.bf16.mxu0 %v17932_v27 }
 0xac7   :  { %14168 = vmatpush3.bf16.msra.mxu0 %v17958_v53 }
 0xac8   :  { %14169 = vmatprep.subr.bf16.mxu0 %v17932_v27 }
 0xacb   :  { %14171 = vmatpush3.bf16.msra.mxu0 %v17959_v14 }
 0xacc   :  { %14172 = vmatprep.subr.bf16.mxu0 %v17932_v27 }
 0xacf   :  { %14174 = vmatpush3.bf16.msra.mxu0 %v17960_v16 }
 0xad0   :  { %14175 = vmatprep.subr.bf16.mxu0 %v17932_v27 }
 0xad3   :  { %14177 = vmatpush3.bf16.msra.mxu0 %v17961_v40 }
 0xad4   :  { %14178 = vmatprep.subr.bf16.mxu0 %v17932_v27 }
 0xad7   :  { %14180 = vmatpush3.bf16.msra.mxu0 %v17962_v29 }
 0xad8   :  { %14181 = vmatprep.subr.bf16.mxu0 %v17932_v27 }
 0xadb   :  { %14183 = vmatpush3.bf16.msra.mxu0 %v17963_v52 }
 0xadc   :  { %14184 = vmatprep.subr.bf16.mxu0 %v17932_v27 }
 0xade   :  { %12281 = vmatmul.mubr.f32.vlgmr.msra.gmra.mrb[6].mxu0 %v17400_v23 }
 0xadf   :  { %14186 = vmatpush3.bf16.msra.mxu0 %v17948_v48  ;;  %12315 = vmatprep.mubr.msk.f32.mxu0 %vm14510_vm12, %v17859_v2 }
 0xae0   :  { %14187 = vmatprep.subr.bf16.mxu0 %v17932_v27 }
 0xae3   :  { %14189 = vmatpush3.bf16.msra.mxu0 %v17949_v3 }
 0xae4   :  { %14190 = vmatprep.subr.bf16.mxu0 %v17932_v27 }
 0xae7   :  { %14192 = vmatpush3.bf16.msra.mxu0 %v17950_v50 }
 0xae8   :  { %14193 = vmatprep.subr.bf16.mxu0 %v17932_v27 }
 0xaeb   :  { %14195 = vmatpush3.bf16.msra.mxu0 %v17951_v55 }
 0xaec   :  { %14196 = vmatprep.subr.bf16.mxu0 %v17932_v27 }
 0xaef   :  { %14198 = vmatpush3.bf16.msra.mxu0 %v17952_v38 }
 0xaf0   :  { %14199 = vmatprep.subr.bf16.mxu0 %v17932_v27 }
 0xaf3   :  { %14201 = vmatpush3.bf16.msra.mxu0 %v17953_v62 }
 0xaf4   :  { %14202 = vmatprep.subr.bf16.mxu0 %v17932_v27 }
 0xaf7   :  { %14204 = vmatpush3.bf16.msra.mxu0 %v17954_v47 }
 0xaf8   :  { %14205 = vmatprep.subr.bf16.mxu0 %v17932_v27 }
 0xafb   :  { %14207 = vmatpush3.bf16.msra.mxu0 %v17955_v5 }
 0xafc   :  { %14208 = vmatprep.subr.bf16.mxu0 %v17932_v27 }
 0xafe   :  { %12316 = vmatmul.mubr.f32.vlgmr.msra.gmra.mrb[6].mxu0 %v17400_v23 }
 0xaff   :  { %14210 = vmatpush3.bf16.msra.mxu0 %v17948_v48  ;;  %12350 = vmatprep.mubr.msk.f32.mxu0 %vm14510_vm12, %v17859_v2 }
 0xb00   :  { %14211 = vmatprep.subr.bf16.mxu0 %v17932_v27 }
 0xb03   :  { %14213 = vmatpush3.bf16.msra.mxu0 %v17949_v3 }
 0xb04   :  { %14214 = vmatprep.subr.bf16.mxu0 %v17932_v27 }
 0xb07   :  { %14216 = vmatpush3.bf16.msra.mxu0 %v17950_v50 }
 0xb08   :  { %14217 = vmatprep.subr.bf16.mxu0 %v17932_v27 }
 0xb0b   :  { %14219 = vmatpush3.bf16.msra.mxu0 %v17951_v55 }
 0xb0c   :  { %14220 = vmatprep.subr.bf16.mxu0 %v17932_v27 }
 0xb0f   :  { %14222 = vmatpush3.bf16.msra.mxu0 %v17952_v38 }
 0xb10   :  { %14223 = vmatprep.subr.bf16.mxu0 %v17932_v27 }
 0xb13   :  { %14225 = vmatpush3.bf16.msra.mxu0 %v17953_v62 }
 0xb14   :  { %14226 = vmatprep.subr.bf16.mxu0 %v17932_v27 }
 0xb17   :  { %14228 = vmatpush3.bf16.msra.mxu0 %v17954_v47 }
 0xb18   :  { %14229 = vmatprep.subr.bf16.mxu0 %v17932_v27 }
 0xb1b   :  { %14231 = vmatpush3.bf16.msra.mxu0 %v17955_v5 }
 0xb1c   :  { %14232 = vmatprep.subr.bf16.mxu0 %v17932_v27 }
 0xb1e   :  { %12351 = vmatmul.mubr.f32.vlgmr.msra.gmra.mrb[8].mxu0 %v8427_v9 }
 0xb1f   :  { %14234 = vmatpush3.bf16.msra.mxu0 %v15725_v33  ;;  %12385 = vmatprep.mubr.msk.f32.mxu0 %vm14510_vm12, %v17859_v2 }
 0xb20   :  { %14235 = vmatprep.subr.bf16.mxu0 %v17932_v27 }
 0xb23   :  { %14237 = vmatpush3.bf16.msra.mxu0 %v17933_v12 }
 0xb24   :  { %14238 = vmatprep.subr.bf16.mxu0 %v17932_v27 }
 0xb27   :  { %14240 = vmatpush3.bf16.msra.mxu0 %v17934_v13 }
 0xb28   :  { %14241 = vmatprep.subr.bf16.mxu0 %v17932_v27 }
 0xb2b   :  { %14243 = vmatpush3.bf16.msra.mxu0 %v17935_v56 }
 0xb2c   :  { %14244 = vmatprep.subr.bf16.mxu0 %v17932_v27 }
 0xb2f   :  { %14246 = vmatpush3.bf16.msra.mxu0 %v17936_v45  ;;  %v14506_v45 = vld [vmem:[%s17640_s0] sm:$0xff] }
 0xb30   :  { %14247 = vmatprep.subr.bf16.mxu0 %v17932_v27 }
 0xb33   :  { %14249 = vmatpush3.bf16.msra.mxu0 %v17937_v24 }
 0xb34   :  { %14250 = vmatprep.subr.bf16.mxu0 %v17932_v27 }
 0xb37   :  { %14252 = vmatpush3.bf16.msra.mxu0 %v17938_v20  ;;  %v14507_v20 = vld [vmem:[%s17640_s0 + $0x8] sm:$0xff] }
 0xb38   :  { %14253 = vmatprep.subr.bf16.mxu0 %v17932_v27 }
 0xb3b   :  { %14255 = vmatpush3.bf16.msra.mxu0 %v17939_v25 }
 0xb3c   :  { %14256 = vmatprep.subr.bf16.mxu0 %v17932_v27 }
 0xb3e   :  { %12386 = vmatmul.mubr.f32.vlgmr.msra.gmra.mrb[8].mxu0 %v17509_v39 }
 0xb3f   :  { %14258 = vmatpush3.bf16.msra.mxu0 %v17940_v34  ;;  %12420 = vmatprep.mubr.msk.f32.mxu0 %vm14510_vm12, %v17859_v2 }
 0xb40   :  { %14259 = vmatprep.subr.bf16.mxu0 %v17932_v27 }
 0xb43   :  { %14261 = vmatpush3.bf16.msra.mxu0 %v17941_v4 }
 0xb44   :  { %14262 = vmatprep.subr.bf16.mxu0 %v17932_v27 }
 0xb47   :  { %14264 = vmatpush3.bf16.msra.mxu0 %v17942_v6 }
 0xb48   :  { %14265 = vmatprep.subr.bf16.mxu0 %v17932_v27 }
 0xb4b   :  { %14267 = vmatpush3.bf16.msra.mxu0 %v17943_v8 }
 0xb4c   :  { %14268 = vmatprep.subr.bf16.mxu0 %v17932_v27 }
 0xb4f   :  { %14270 = vmatpush3.bf16.msra.mxu0 %v17944_v35 }
 0xb50   :  { %14271 = vmatprep.subr.bf16.mxu0 %v17932_v27 }
 0xb53   :  { %14273 = vmatpush3.bf16.msra.mxu0 %v17945_v54 }
 0xb54   :  { %14274 = vmatprep.subr.bf16.mxu0 %v17932_v27 }
 0xb57   :  { %14276 = vmatpush3.bf16.msra.mxu0 %v17946_v18 }
 0xb58   :  { %14277 = vmatprep.subr.bf16.mxu0 %v17932_v27 }
 0xb5b   :  { %14279 = vmatpush3.bf16.msra.mxu0 %v17947_v49 }
 0xb5c   :  { %14280 = vmatprep.subr.bf16.mxu0 %v17932_v27 }
 0xb5e   :  { %12421 = vmatmul.mubr.f32.vlgmr.msra.gmra.mrb[8].mxu0 %v17515_v10 }
 0xb5f   :  { %14282 = vmatpush3.bf16.msra.mxu0 %v17948_v48  ;;  %12455 = vmatprep.mubr.msk.f32.mxu0 %vm14510_vm12, %v17859_v2 }
 0xb60   :  { %14283 = vmatprep.subr.bf16.mxu0 %v17932_v27 }
 0xb63   :  { %14285 = vmatpush3.bf16.msra.mxu0 %v17949_v3 }
 0xb64   :  { %14286 = vmatprep.subr.bf16.mxu0 %v17932_v27 }
 0xb67   :  { %14288 = vmatpush3.bf16.msra.mxu0 %v17950_v50 }
 0xb68   :  { %14289 = vmatprep.subr.bf16.mxu0 %v17932_v27 }
 0xb6b   :  { %14291 = vmatpush3.bf16.msra.mxu0 %v17951_v55 }
 0xb6c   :  { %14292 = vmatprep.subr.bf16.mxu0 %v17932_v27 }
 0xb6f   :  { %14294 = vmatpush3.bf16.msra.mxu0 %v17952_v38 }
 0xb70   :  { %14295 = vmatprep.subr.bf16.mxu0 %v17932_v27 }
 0xb73   :  { %14297 = vmatpush3.bf16.msra.mxu0 %v17953_v62 }
 0xb74   :  { %14298 = vmatprep.subr.bf16.mxu0 %v17932_v27 }
 0xb77   :  { %14300 = vmatpush3.bf16.msra.mxu0 %v17954_v47 }
 0xb78   :  { %14301 = vmatprep.subr.bf16.mxu0 %v17932_v27 }
 0xb7b   :  { %14303 = vmatpush3.bf16.msra.mxu0 %v17955_v5 }
 0xb7c   :  { %14304 = vmatprep.subr.bf16.mxu0 %v17932_v27 }
 0xb7e   :  { %12456 = vmatmul.mubr.f32.vlgmr.msra.gmra.mrb[8].mxu0 %v8425_v11 }
 0xb7f   :  { %14306 = vmatpush3.bf16.msra.mxu0 %v17956_v58  ;;  %12490 = vmatprep.mubr.msk.f32.mxu0 %vm14510_vm12, %v17859_v2 }
 0xb80   :  { %14307 = vmatprep.subr.bf16.mxu0 %v17932_v27 }
 0xb83   :  { %14309 = vmatpush3.bf16.msra.mxu0 %v17957_v42 }
 0xb84   :  { %14310 = vmatprep.subr.bf16.mxu0 %v17932_v27 }
 0xb87   :  { %14312 = vmatpush3.bf16.msra.mxu0 %v17958_v53 }
 0xb88   :  { %14313 = vmatprep.subr.bf16.mxu0 %v17932_v27 }
 0xb8b   :  { %14315 = vmatpush3.bf16.msra.mxu0 %v17959_v14 }
 0xb8c   :  { %14316 = vmatprep.subr.bf16.mxu0 %v17932_v27 }
 0xb8f   :  { %14318 = vmatpush3.bf16.msra.mxu0 %v17960_v16 }
 0xb90   :  { %14319 = vmatprep.subr.bf16.mxu0 %v17932_v27 }
 0xb93   :  { %14321 = vmatpush3.bf16.msra.mxu0 %v17961_v40 }
 0xb94   :  { %14322 = vmatprep.subr.bf16.mxu0 %v17932_v27 }
 0xb97   :  { %14324 = vmatpush3.bf16.msra.mxu0 %v17962_v29 }
 0xb98   :  { %14325 = vmatprep.subr.bf16.mxu0 %v17932_v27 }
 0xb9b   :  { %14327 = vmatpush3.bf16.msra.mxu0 %v17963_v52 }
 0xb9c   :  { %14328 = vmatprep.subr.bf16.mxu0 %v17932_v27 }
 0xb9e   :  { %12491 = vmatmul.mubr.f32.vlgmr.msra.gmra.mrb[8].mxu0 %v17509_v39 }
 0xb9f   :  { %14330 = vmatpush3.bf16.msra.mxu0 %v17948_v48  ;;  %12525 = vmatprep.mubr.msk.f32.mxu0 %vm14510_vm12, %v17859_v2 }
 0xba0   :  { %14331 = vmatprep.subr.bf16.mxu0 %v17932_v27 }
 0xba3   :  { %14333 = vmatpush3.bf16.msra.mxu0 %v17949_v3 }
 0xba4   :  { %14334 = vmatprep.subr.bf16.mxu0 %v17932_v27 }
 0xba7   :  { %14336 = vmatpush3.bf16.msra.mxu0 %v17950_v50 }
 0xba8   :  { %14337 = vmatprep.subr.bf16.mxu0 %v17932_v27 }
 0xbab   :  { %14339 = vmatpush3.bf16.msra.mxu0 %v17951_v55 }
 0xbac   :  { %14340 = vmatprep.subr.bf16.mxu0 %v17932_v27 }
 0xbaf   :  { %14342 = vmatpush3.bf16.msra.mxu0 %v17952_v38 }
 0xbb0   :  { %14343 = vmatprep.subr.bf16.mxu0 %v17932_v27 }
 0xbb3   :  { %14345 = vmatpush3.bf16.msra.mxu0 %v17953_v62 }
 0xbb4   :  { %14346 = vmatprep.subr.bf16.mxu0 %v17932_v27 }
 0xbb7   :  { %14348 = vmatpush3.bf16.msra.mxu0 %v17954_v47 }
 0xbb8   :  { %14349 = vmatprep.subr.bf16.mxu0 %v17932_v27 }
 0xbbb   :  { %14351 = vmatpush3.bf16.msra.mxu0 %v17955_v5 }
 0xbbe   :  { %12526 = vmatmul.mubr.f32.vlgmr.msra.gmra.mrb[8].mxu0 %v17509_v39 }
 0xbd1   :  { %v8338_v33 = vpop.f32.mrb[6].mxu0 }
 0xbd2   :  { %v12317_v2 = vpop.f32.mrb[7].mxu0  ;;  %v8983_v19 = vmul.f32 %v8338_v33, %v8338_v33 }
 0xc91   :  { %v8979_v30 = vpop.f32.mrb[8].mxu0 }
 0xc92   :  { %v8984_v63 = vsub.f32 %v8979_v30, %v8983_v19  ;;  %v12527_v60 = vpop.f32.mrb[9].mxu0 }
 0xc94   :  { %v8986_v31 = vadd.f32 1e-05, %v8984_v63 }
 0xc96   :  { %14504 = vrsqrt.f32 %v8986_v31 }
 0xca0   :  { %v14505_v41 = vpop.eup %14504 }
 0xca1   :  { %v8988_v51 = vmul.f32 %v14505_v41, %v8985_v44 }
 0xca3   :  { %v8990_v23 = vmul.f32 %v8988_v51, %v8338_v33  ;;  %v8996_v15 = vrot.slane %v8988_v51, %v17964_v28 }
 0xca5   :  { %v8991_v36 = vsub.f32 %v8989_v37, %v8990_v23  ;;  %v8998_v21 = vmul.f32 %v8996_v15, %v17396_v26  ;;  %v8999_v27 = vmul.f32 %v8996_v15, %v17394_v0 }
 0xca7   :  { %v9004_v12 = vrot.slane %v8991_v36, %v17964_v28 }
 0xca9   :  { %v9006_v13 = vadd.f32 %v9004_v12, %v8998_v21  ;;  %v9007_v56 = vadd.f32 %v9004_v12, %v8999_v27 }
 0xcab   :  { %v9008_v24 = vadd.f32 %v14506_v45, %v9006_v13  ;;  %v9009_v25 = vadd.f32 %v14507_v20, %v9007_v56 }
 0xcad   :  { %v9010_v34 = vmax.f32 %v9008_v24, 0.0  ;;  %v9011_v4 = vmax.f32 %v9009_v25, 0.0 }
 0xcaf   :  { %9012 = vst [vmem:[%s17650_s10] sm:$0xff] %v9010_v34  ;;  %9013 = vst [vmem:[%s17650_s10 + $0x8] sm:$0xff] %v9011_v4 }

</bundles_post_ra>
